<compile_context>
chip_gen: v7x
topology: tpu7x:2x2x1
jax: 0.10.0
libtpu: 0.0.40
codegen_flags: <defaults>
</compile_context>

<pallas_src>
import numpy as np
import jax
import jax.numpy as jnp
from jax.experimental import pallas as pl
from jax.experimental.pallas import tpu as pltpu

# ---------------- configuration (config.*) ----------------
N_CLASSES = 3          # config.n_classes
S_CH      = 4          # config.s (EEG channels)
T_LEN     = 64         # time samples
F1        = 8          # config.F1
T1        = 5          # config.T1 (temporal kernel length)
F2        = 8          # config.F2
P1_T      = 4          # config.P1_T (pool window)
P1_S      = 2          # config.P1_S (pool stride)
BN_EPS    = 1e-5
LOG_EPS   = 1e-6
BATCH     = 2

T_OUT1   = T_LEN - T1 + 1                 # after temporal conv
T_POOL   = (T_OUT1 - P1_T) // P1_S + 1    # after avg pool
LAST_DIM = F2 * T_POOL                    # config.last_dim

# Mosaic dot lowering supports DEFAULT / HIGHEST. The three matmuls below total
# <2 MFLOP per batch tile, so HIGHEST's extra bf16 passes are noise at these
# shapes; it is kept so the 1e-3 check vs the f32 reference stays tight.
# For production-scale batches flip to jax.lax.Precision.DEFAULT.
MATMUL_PRECISION = jax.lax.Precision.HIGHEST
_HP = jax.lax.Precision.HIGHEST            # wrapper-side (XLA) folding einsums

MAX_B_TILE = 512       # batch rows per grid step (tile = B_TILE*256*4 bytes)


# ---------------- Pallas kernel ----------------
def shallow_convnet_kernel(x_ref, wconv_ref, beff_ref, pool_ref, wlin_ref,
                           blin_ref, out_ref):
    # x_ref    : (B_TILE, S_CH*T_LEN)    flattened (channel-major) input rows
    # wconv_ref: (S_CH*T_LEN, F2*T_OUT1) banded conv1*conv2*BN weight
    # beff_ref : (1, F2*T_OUT1)          folded bias (conv1 bias through BN)
    # pool_ref : (F2*T_OUT1, F2*T_POOL)  block-diagonal average-pool matrix
    # wlin_ref : (LAST_DIM, N_CLASSES)   classifier weight (transposed)
    # blin_ref : (1, N_CLASSES)
    # out_ref  : (B_TILE, N_CLASSES)
    y = jnp.dot(x_ref[...], wconv_ref[...],
                preferred_element_type=jnp.float32,
                precision=MATMUL_PRECISION) + beff_ref[...]
    y = y * y                                            # ActSquare
    p = jnp.dot(y, pool_ref[...],
                preferred_element_type=jnp.float32,
                precision=MATMUL_PRECISION)              # AvgPool2d as matmul
    p = jnp.log(jnp.maximum(p, LOG_EPS))                 # ActLog
    # Dropout: identity at inference.
    out_ref[...] = jnp.dot(p, wlin_ref[...],
                           preferred_element_type=jnp.float32,
                           precision=MATMUL_PRECISION) + blin_ref[...]


# ---------------- wrapper ----------------
def _round_up(x, m):
    return (x + m - 1) // m * m


def _fold_params(params):
    """Fold conv1(+bias)+conv2+BN into a banded matmul weight; build the
    block-diagonal pooling matrix and the classifier weight."""
    w1 = params["w1"].reshape(F1, T1)                       # (F1, T1)
    w2 = params["w2"][..., 0]                               # (F2, F1, S_CH)
    scale = params["gamma"] / jnp.sqrt(params["rvar"] + BN_EPS)
    shift = params["beta"] - params["rmean"] * scale

    # weff[g, s, k] = scale[g] * sum_f w2[g,f,s] * w1[f,k]
    weff = scale[:, None, None] * jnp.einsum("gfs,fk->gsk", w2, w1,
                                             precision=_HP)
    # beff[g] = scale[g] * sum_{f,s} w2[g,f,s] * b1[f] + shift[g]
    beff = scale * jnp.einsum("gfs,f->g", w2, params["b1"],
                              precision=_HP) + shift

    # Banded conv matrix: Wconv[s*T_LEN + (t+k), g*T_OUT1 + t] = weff[g, s, k]
    band = np.zeros((T1, T_LEN, T_OUT1), np.float32)
    for k in range(T1):
        for t in range(T_OUT1):
            band[k, t + k, t] = 1.0
    wconv = jnp.einsum("gsk,kut->sugt", weff, jnp.asarray(band),
                       precision=_HP).reshape(S_CH * T_LEN, F2 * T_OUT1)
    beff_row = jnp.repeat(beff, T_OUT1)[None, :]            # (1, F2*T_OUT1)

    # Block-diagonal average-pool matrix; columns already in torch.Flatten
    # order (g*T_POOL + t) -> no in-kernel reshape/transpose needed.
    pm = np.zeros((T_OUT1, T_POOL), np.float32)
    for j in range(T_POOL):
        pm[j * P1_S:j * P1_S + P1_T, j] = 1.0 / P1_T
    pool_bd = jnp.asarray(np.kron(np.eye(F2, dtype=np.float32), pm))

    wlin_t = params["wlin"].T                               # (LAST_DIM, N_CLASSES)
    blin_row = params["blin"][None, :]                      # (1, N_CLASSES)
    return wconv, beff_row, pool_bd, wlin_t, blin_row


def shallow_conv_net_forward(x, params):
    """x: (B, T_LEN, S_CH) float32 -> logits (B, N_CLASSES)."""
    B = x.shape[0]
    wconv, beff_row, pool_bd, wlin_t, blin_row = _fold_params(params)

    # (B, T, S) -> (B, S, T) -> (B, S*T); row layout matches Wconv's rows.
    xflat = jnp.transpose(x, (0, 2, 1)).reshape(B, S_CH * T_LEN)

    # Batch tiling: sublane-aligned tiles, grid over batch tiles ("parallel").
    b_tile = min(_round_up(B, 8), MAX_B_TILE)
    b_pad = _round_up(B, b_tile)
    if b_pad != B:
        xflat = jnp.pad(xflat, ((0, b_pad - B), (0, 0)))

    out = pl.pallas_call(
        shallow_convnet_kernel,
        out_shape=jax.ShapeDtypeStruct((b_pad, N_CLASSES), jnp.float32),
        grid=(b_pad // b_tile,),
        in_specs=[
            pl.BlockSpec((b_tile, S_CH * T_LEN), lambda i: (i, 0)),       # x tile
            pl.BlockSpec((S_CH * T_LEN, F2 * T_OUT1), lambda i: (0, 0)),  # Wconv
            pl.BlockSpec((1, F2 * T_OUT1), lambda i: (0, 0)),             # beff
            pl.BlockSpec((F2 * T_OUT1, F2 * T_POOL), lambda i: (0, 0)),   # pool
            pl.BlockSpec((LAST_DIM, N_CLASSES), lambda i: (0, 0)),        # Wlin^T
            pl.BlockSpec((1, N_CLASSES), lambda i: (0, 0)),               # blin
        ],
        out_specs=pl.BlockSpec((b_tile, N_CLASSES), lambda i: (i, 0)),    # VMEM
        compiler_params=pltpu.CompilerParams(
            dimension_semantics=("parallel",)),
    )(xflat, wconv, beff_row, pool_bd, wlin_t, blin_row)
    return out[:B]


# ---------------- pure-JAX reference (for verification) ----------------
def reference_forward(x, params):
    w1 = params["w1"].reshape(F1, T1)
    xp = jnp.transpose(x, (0, 2, 1))[:, None, :, :]          # (B,1,S,T)
    wins = jnp.stack([xp[:, 0, :, k:k + T_OUT1] for k in range(T1)], axis=-1)
    h1 = jnp.einsum("bstk,fk->bfst", wins, w1, precision=_HP) \
        + params["b1"][None, :, None, None]
    h2 = jnp.einsum("bfst,gfs->bgt", h1, params["w2"][..., 0], precision=_HP)
    scale = params["gamma"] / jnp.sqrt(params["rvar"] + BN_EPS)
    shift = params["beta"] - params["rmean"] * scale
    h3 = h2 * scale[None, :, None] + shift[None, :, None]
    h4 = h3 * h3
    pooled = jnp.stack(
        [h4[:, :, j * P1_S:j * P1_S + P1_T].mean(axis=-1) for j in range(T_POOL)],
        axis=-1)
    h5 = jnp.log(jnp.maximum(pooled, LOG_EPS))
    flat = h5.reshape(x.shape[0], LAST_DIM)
    return jnp.dot(flat, params["wlin"].T, precision=_HP) + params["blin"]


# ---------------- deterministic parameter init ----------------
def _renorm(w, max_norm):
    # torch.renorm(w, p=2, dim=0, maxnorm=max_norm): per-output-row L2 cap
    flat = w.reshape(w.shape[0], -1)
    norms = jnp.linalg.norm(flat, axis=1, keepdims=True)
    s = jnp.minimum(1.0, max_norm / jnp.maximum(norms, 1e-12))
    return (flat * s).reshape(w.shape)


def init_params(key):
    ks = jax.random.split(key, 9)
    p = {
        "w1":    0.1 * jax.random.normal(ks[0], (F1, 1, 1, T1), jnp.float32),
        "b1":    0.1 * jax.random.normal(ks[1], (F1,), jnp.float32),
        "w2":    0.1 * jax.random.normal(ks[2], (F2, F1, S_CH, 1), jnp.float32),
        "gamma": 1.0 + 0.05 * jax.random.normal(ks[3], (F2,), jnp.float32),
        "beta":  0.05 * jax.random.normal(ks[4], (F2,), jnp.float32),
        "rmean": 0.05 * jax.random.normal(ks[5], (F2,), jnp.float32),
        "rvar":  1.0 + 0.1 * jnp.abs(jax.random.normal(ks[6], (F2,), jnp.float32)),
        "wlin":  0.05 * jax.random.normal(ks[7], (N_CLASSES, LAST_DIM), jnp.float32),
        "blin":  0.05 * jax.random.normal(ks[8], (N_CLASSES,), jnp.float32),
    }
    # max_norm constraints (as Conv2dWithConstraint / LinearWithConstraint do)
    p["w1"] = _renorm(p["w1"], 2.0)
    p["w2"] = _renorm(p["w2"], 2.0)
    p["wlin"] = _renorm(p["wlin"], 0.5)
    return p


if __name__ == "__main__":
    key = jax.random.PRNGKey(0)
    pkey, xkey = jax.random.split(key)
    params = init_params(pkey)
    # module input: (batch, time, channels) — forward does permute(0,2,1).unsqueeze(1)
    x = jax.random.normal(xkey, (BATCH, T_LEN, S_CH), jnp.float32)

    out = shallow_conv_net_forward(x, params)
    out = jax.block_until_ready(out)

    ref = reference_forward(x, params)
    assert out.shape == (BATCH, N_CLASSES)
    assert jnp.allclose(out, ref, rtol=1e-3, atol=1e-3), (out, ref)

    # TODO(synk): Dropout is treated as inference-mode identity (no RNG mask).
    print("KERNEL_OK")
</pallas_src>

<mosaic_0001>
module attributes {stable_mosaic.version = 11 : i64} {
  func.func @shallow_convnet_kernel(%arg0: i32, %arg1: memref<8x256xf32, #tpu.memory_space<vmem>>, %arg2: memref<256x480xf32, #tpu.memory_space<vmem>>, %arg3: memref<1x480xf32, #tpu.memory_space<vmem>>, %arg4: memref<480x232xf32, #tpu.memory_space<vmem>>, %arg5: memref<232x3xf32, #tpu.memory_space<vmem>>, %arg6: memref<1x3xf32, #tpu.memory_space<vmem>>, %arg7: memref<8x3xf32, #tpu.memory_space<vmem>>) attributes {dimension_semantics = [#tpu.dimension_semantics<parallel>], iteration_bounds = array<i64: 1>, scalar_prefetch = 0 : i64, scratch_operands = 0 : i64, tpu.core_type = #tpu.core_type<tc>, window_params = [{transform_indices = @transform_0, window_bounds = array<i64: 8, 256>}, {pipeline_mode = #tpu.pipeline_mode<synchronous>, transform_indices = @transform_1, window_bounds = array<i64: 256, 480>}, {pipeline_mode = #tpu.pipeline_mode<synchronous>, transform_indices = @transform_2, window_bounds = array<i64: 1, 480>}, {pipeline_mode = #tpu.pipeline_mode<synchronous>, transform_indices = @transform_3, window_bounds = array<i64: 480, 232>}, {pipeline_mode = #tpu.pipeline_mode<synchronous>, transform_indices = @transform_4, window_bounds = array<i64: 232, 3>}, {pipeline_mode = #tpu.pipeline_mode<synchronous>, transform_indices = @transform_5, window_bounds = array<i64: 1, 3>}, {transform_indices = @transform_6, window_bounds = array<i64: 8, 3>}]} {
    %c0 = arith.constant 0 : index
    %c0_0 = arith.constant 0 : index
    %0 = vector.load %arg1[%c0, %c0_0] : memref<8x256xf32, #tpu.memory_space<vmem>>, vector<8x256xf32>
    %c0_1 = arith.constant 0 : index
    %c0_2 = arith.constant 0 : index
    %1 = vector.load %arg2[%c0_1, %c0_2] : memref<256x480xf32, #tpu.memory_space<vmem>>, vector<256x480xf32>
    %cst = arith.constant dense<0.000000e+00> : vector<8x480xf32>
    %2 = tpu.matmul %0, %1, %cst {dimension_numbers = #tpu.dot_dimension_numbers<[1], [0], [0], [1], [0, 0, 1, 1], [], []>, precision = #tpu.contract_precision<fp32>} : vector<8x256xf32>, vector<256x480xf32>, vector<8x480xf32> -> vector<8x480xf32>
    %c0_3 = arith.constant 0 : index
    %c0_4 = arith.constant 0 : index
    %3 = vector.load %arg3[%c0_3, %c0_4] : memref<1x480xf32, #tpu.memory_space<vmem>>, vector<1x480xf32>
    %4 = vector.broadcast %3 : vector<1x480xf32> to vector<8x480xf32>
    %5 = arith.addf %2, %4 : vector<8x480xf32>
    %6 = arith.mulf %5, %5 : vector<8x480xf32>
    %c0_5 = arith.constant 0 : index
    %c0_6 = arith.constant 0 : index
    %7 = vector.load %arg4[%c0_5, %c0_6] : memref<480x232xf32, #tpu.memory_space<vmem>>, vector<480x232xf32>
    %cst_7 = arith.constant dense<0.000000e+00> : vector<8x232xf32>
    %8 = tpu.matmul %6, %7, %cst_7 {dimension_numbers = #tpu.dot_dimension_numbers<[1], [0], [0], [1], [0, 0, 1, 1], [], []>, precision = #tpu.contract_precision<fp32>} : vector<8x480xf32>, vector<480x232xf32>, vector<8x232xf32> -> vector<8x232xf32>
    %cst_8 = arith.constant 9.99999997E-7 : f32
    %9 = vector.broadcast %cst_8 : f32 to vector<8x232xf32>
    %10 = arith.maximumf %8, %9 : vector<8x232xf32>
    %11 = math.log %10 : vector<8x232xf32>
    %c0_9 = arith.constant 0 : index
    %c0_10 = arith.constant 0 : index
    %12 = vector.load %arg5[%c0_9, %c0_10] : memref<232x3xf32, #tpu.memory_space<vmem>>, vector<232x3xf32>
    %cst_11 = arith.constant dense<0.000000e+00> : vector<8x3xf32>
    %13 = tpu.matmul %11, %12, %cst_11 {dimension_numbers = #tpu.dot_dimension_numbers<[1], [0], [0], [1], [0, 0, 1, 1], [], []>, precision = #tpu.contract_precision<fp32>} : vector<8x232xf32>, vector<232x3xf32>, vector<8x3xf32> -> vector<8x3xf32>
    %c0_12 = arith.constant 0 : index
    %c0_13 = arith.constant 0 : index
    %14 = vector.load %arg6[%c0_12, %c0_13] : memref<1x3xf32, #tpu.memory_space<vmem>>, vector<1x3xf32>
    %15 = vector.broadcast %14 : vector<1x3xf32> to vector<8x3xf32>
    %16 = arith.addf %13, %15 : vector<8x3xf32>
    %c0_14 = arith.constant 0 : index
    %c0_15 = arith.constant 0 : index
    %17 = vector.load %arg7[%c0_14, %c0_15] : memref<8x3xf32, #tpu.memory_space<vmem>>, vector<8x3xf32>
    tpu.vector_store %arg7[%c0_14, %c0_15], %16 {strides = array<i32>} : memref<8x3xf32, #tpu.memory_space<vmem>>, vector<8x3xf32>,
    return
  }
  func.func @transform_0(%arg0: i32) -> (i32, i32) {
    %c0_i32 = arith.constant 0 : i32
    %c0_i32_0 = arith.constant 0 : i32
    return %arg0, %c0_i32 : i32, i32
  }
  func.func @transform_1(%arg0: i32) -> (i32, i32) {
    %c0_i32 = arith.constant 0 : i32
    %c0_i32_0 = arith.constant 0 : i32
    %c0_i32_1 = arith.constant 0 : i32
    return %c0_i32, %c0_i32_0 : i32, i32
  }
  func.func @transform_2(%arg0: i32) -> (i32, i32) {
    %c0_i32 = arith.constant 0 : i32
    %c0_i32_0 = arith.constant 0 : i32
    %c0_i32_1 = arith.constant 0 : i32
    return %c0_i32, %c0_i32_0 : i32, i32
  }
  func.func @transform_3(%arg0: i32) -> (i32, i32) {
    %c0_i32 = arith.constant 0 : i32
    %c0_i32_0 = arith.constant 0 : i32
    %c0_i32_1 = arith.constant 0 : i32
    return %c0_i32, %c0_i32_0 : i32, i32
  }
  func.func @transform_4(%arg0: i32) -> (i32, i32) {
    %c0_i32 = arith.constant 0 : i32
    %c0_i32_0 = arith.constant 0 : i32
    %c0_i32_1 = arith.constant 0 : i32
    return %c0_i32, %c0_i32_0 : i32, i32
  }
  func.func @transform_5(%arg0: i32) -> (i32, i32) {
    %c0_i32 = arith.constant 0 : i32
    %c0_i32_0 = arith.constant 0 : i32
    %c0_i32_1 = arith.constant 0 : i32
    return %c0_i32, %c0_i32_0 : i32, i32
  }
  func.func @transform_6(%arg0: i32) -> (i32, i32) {
    %c0_i32 = arith.constant 0 : i32
    %c0_i32_0 = arith.constant 0 : i32
    return %arg0, %c0_i32 : i32, i32
  }
}

</mosaic_0001>

<bundles_post_ra>
// kernel: tpu_custom_call.1
= control target key start
LH: loop header
LB: loop body
LE: loop exit
PB: predicated region body
PF: predicated region fallthrough
CT: control target
= control target key end

     0   :  { %vm2867_vm0 = vcmask 785408   ;;  %vm5377_vm1 = vcmask 850944   ;;  %vm6204_vm2 = vcmask 23552   ;;  %s13163_s1 = inlined_call_operand.vmem [shape: f32[256,480], index: 1, kind: input, shape index: {}]   ;;  %s13164_s0 = inlined_call_operand.vmem [shape: f32[8,256], index: 0, kind: input, shape index: {}]   ;;  %s13165_s3 = inlined_call_operand.vmem [shape: f32[480,232], index: 3, kind: input, shape index: {}]   ;;  %s13166_s2 = inlined_call_operand.vmem [shape: f32[1,480], index: 2, kind: input, shape index: {}]   ;;  %s13167_s4 = inlined_call_operand.vmem [shape: f32[232,3], index: 4, kind: input, shape index: {}]   ;;  %s13168_s5 = inlined_call_operand.vmem [shape: f32[1,3], index: 5, kind: input, shape index: {}]   ;;  %s13169_s6 = inlined_call_operand.vmem [shape: f32[8,3], index: 6, kind: output, shape index: {}]  }
   0x1   :  { %v26_v0 = vld [vmem:[%s13163_s1 + $0x8] sm:$0xff]  ;;  %v25_v2 = vld [vmem:[%s13163_s1] sm:$0xff] }
   0x2   :  { %v30_v1 = vld [vmem:[%s13163_s1 + $0x28] sm:$0xff]  ;;  %v175_v3 = vand.u32 4294901760, %v26_v0  ;;  %v29_v5 = vld [vmem:[%s13163_s1 + $0x20] sm:$0xff]  ;;  %v177_v6 = vand.u32 4294901760, %v25_v2 }
   0x3   :  { %v179_v4 = vand.u32 4294901760, %v30_v1  ;;  %v34_v7 = vld [vmem:[%s13163_s1 + $0x48] sm:$0xff]  ;;  %v181_v9 = vand.u32 4294901760, %v29_v5  ;;  %v33_v12 = vld [vmem:[%s13163_s1 + $0x40] sm:$0xff] }
   0x4   :  { %v38_v8 = vld [vmem:[%s13163_s1 + $0x68] sm:$0xff]  ;;  %v183_v10 = vand.u32 4294901760, %v34_v7  ;;  %v8075_v14 = vsub.f32 %v26_v0, %v175_v3  ;;  %v8079_v16 = vsub.f32 %v25_v2, %v177_v6  ;;  %v37_v17 = vld [vmem:[%s13163_s1 + $0x60] sm:$0xff]  ;;  %v185_v27 = vand.u32 4294901760, %v33_v12 }
   0x5   :  { %v187_v11 = vand.u32 4294901760, %v38_v8  ;;  %v8073_v13 = vpack.c.bf16 %v179_v4, %v175_v3  ;;  %v8077_v15 = vsub.f32 %v30_v1, %v179_v4  ;;  %v42_v18 = vld [vmem:[%s13163_s1 + $0x88] sm:$0xff]  ;;  %v8087_v19 = vpack.c.bf16 %v181_v9, %v177_v6  ;;  %v41_v24 = vld [vmem:[%s13163_s1 + $0x80] sm:$0xff] }
   0x6   :  { %13999 = vst [vmem:[#allocation3_spill] sm:$0xff] %v8075_v14  ;;  %14001 = vst [vmem:[#allocation5_spill] sm:$0xff] %v8079_v16  ;;  %v8089_v20 = vsub.f32 %v29_v5, %v181_v9  ;;  %v8093_v22 = vsub.f32 %v34_v7, %v183_v10  ;;  %v46_v23 = vld [vmem:[%s13163_s1 + $0xa8] sm:$0xff]  ;;  %v45_v28 = vld [vmem:[%s13163_s1 + $0xa0] sm:$0xff]  ;;  %v189_v30 = vand.u32 4294901760, %v37_v17  ;;  %v191_v31 = vand.u32 4294901760, %v42_v18 }
   0x7   :  { %13998 = vst [vmem:[#allocation2_spill] sm:$0xff] %v8073_v13  ;;  %14000 = vst [vmem:[#allocation4_spill] sm:$0xff] %v8077_v15  ;;  %v8091_v21 = vpack.c.bf16 %v187_v11, %v183_v10  ;;  %6212 = vmatprep.subr.bf16.mxu1 %v8073_v13  ;;  %v6339_v25 = vpack.c.bf16 %v8077_v15, %v8075_v14  ;;  %v8104_v26 = vsub.f32 %v38_v8, %v187_v11  ;;  %v50_v32 = vld [vmem:[%s13163_s1 + $0xc8] sm:$0xff]  ;;  %v49_v42 = vld [vmem:[%s13163_s1 + $0xc0] sm:$0xff] }
   0x8   :  { %14002 = vst [vmem:[#allocation6_spill] sm:$0xff] %v8087_v19  ;;  %6214 = vmatpush1.bf16.msra.mxu1 %v8087_v19  ;;  %v6341_v29 = vpack.c.bf16 %v8089_v20, %v8079_v16  ;;  %v8116_v33 = vsub.f32 %v33_v12, %v185_v27  ;;  %v195_v35 = vand.u32 4294901760, %v46_v23  ;;  %v193_v36 = vand.u32 4294901760, %v41_v24  ;;  %v54_v37 = vld [vmem:[%s13163_s1 + $0xe8] sm:$0xff]  ;;  %v53_v43 = vld [vmem:[%s13163_s1 + $0xe0] sm:$0xff] }
   0x9   :  { %14003 = vst [vmem:[#allocation7_spill] sm:$0xff] %v8091_v21  ;;  %14004 = vst [vmem:[#allocation8_spill] sm:$0xff] %v8104_v26  ;;  %6340 = vmatprep.subr.bf16.mxu0 %v6339_v25  ;;  %6216 = vmatprep.subr.bf16.mxu1 %v8091_v21  ;;  %v6343_v34 = vpack.c.bf16 %v8104_v26, %v8093_v22  ;;  %v8123_v38 = vpack.c.bf16 %v189_v30, %v185_v27  ;;  %v197_v41 = vand.u32 4294901760, %v45_v28  ;;  %v58_v48 = vld [vmem:[%s13163_s1 + $0x108] sm:$0xff]  ;;  %v57_v58 = vld [vmem:[%s13163_s1 + $0x100] sm:$0xff] }
   0xa   :  { %6342 = vmatpush1.bf16.msra.mxu0 %v6341_v29  ;;  %v8125_v39 = vsub.f32 %v37_v17, %v189_v30  ;;  %v8127_v40 = vsub.f32 %v42_v18, %v191_v31  ;;  %v8135_v44 = vpack.c.bf16 %v195_v35, %v191_v31  ;;  %v8137_v45 = vsub.f32 %v46_v23, %v195_v35  ;;  %v62_v53 = vld [vmem:[%s13163_s1 + $0x128] sm:$0xff]  ;;  %v61_v59 = vld [vmem:[%s13163_s1 + $0x120] sm:$0xff] }
   0xb   :  { %14005 = vst [vmem:[#allocation9_spill] sm:$0xff] %v8123_v38  ;;  %6344 = vmatprep.subr.bf16.mxu0 %v6343_v34  ;;  %v8139_v46 = vsub.f32 %v41_v24, %v193_v36  ;;  %v199_v47 = vand.u32 4294901760, %v50_v32  ;;  %v8147_v50 = vpack.c.bf16 %v197_v41, %v193_v36  ;;  %v8149_v51 = vsub.f32 %v45_v28, %v197_v41  ;;  %v66_v0 = vld [vmem:[%s13163_s1 + $0x148] sm:$0xff]  ;;  %v65_v10 = vld [vmem:[%s13163_s1 + $0x140] sm:$0xff] }
   0xc   :  { %14006 = vst [vmem:[#allocation10_spill] sm:$0xff] %v8135_v44  ;;  %6218 = vmatpush1.bf16.msra.mxu1 %v8123_v38  ;;  %v6345_v49 = vpack.c.bf16 %v8125_v39, %v8116_v33  ;;  %v203_v52 = vand.u32 4294901760, %v54_v37  ;;  %v6347_v54 = vpack.c.bf16 %v8137_v45, %v8127_v40  ;;  %v201_v56 = vand.u32 4294901760, %v49_v42  ;;  %v70_v5 = vld [vmem:[%s13163_s1 + $0x168] sm:$0xff]  ;;  %v69_v11 = vld [vmem:[%s13163_s1 + $0x160] sm:$0xff] }
   0xd   :  { %14007 = vst [vmem:[#allocation11_spill] sm:$0xff] %v8147_v50  ;;  %6220 = vmatprep.subr.bf16.mxu1 %v8135_v44  ;;  %v8157_v55 = vsub.f32 %v50_v32, %v199_v47  ;;  %v205_v57 = vand.u32 4294901760, %v53_v43  ;;  %v6349_v60 = vpack.c.bf16 %v8149_v51, %v8139_v46  ;;  %v207_v63 = vand.u32 4294901760, %v58_v48  ;;  %v74_v23 = vld [vmem:[%s13163_s1 + $0x188] sm:$0xff]  ;;  %v73_v35 = vld [vmem:[%s13163_s1 + $0x180] sm:$0xff] }
   0xe   :  { %6346 = vmatpush1.bf16.msra.mxu0 %v6345_v49  ;;  %v8167_v61 = vpack.c.bf16 %v203_v52, %v199_v47  ;;  %v8169_v62 = vsub.f32 %v54_v37, %v203_v52  ;;  %v8176_v2 = vsub.f32 %v49_v42, %v201_v56  ;;  %v211_v4 = vand.u32 4294901760, %v62_v53  ;;  %v78_v29 = vld [vmem:[%s13163_s1 + $0x1a8] sm:$0xff]  ;;  %v77_v36 = vld [vmem:[%s13163_s1 + $0x1a0] sm:$0xff] }
   0xf   :  { %6348 = vmatprep.subr.bf16.mxu0 %v6347_v54  ;;  %v8174_v1 = vpack.c.bf16 %v205_v57, %v201_v56  ;;  %v8178_v3 = vsub.f32 %v53_v43, %v205_v57  ;;  %v8186_v7 = vsub.f32 %v58_v48, %v207_v63  ;;  %v209_v8 = vand.u32 4294901760, %v57_v58  ;;  %v82_v43 = vld [vmem:[%s13163_s1 + $0x1c8] sm:$0xff] }
  0x10   :  { %14008 = vst [vmem:[#allocation12_spill] sm:$0xff] %v8167_v61  ;;  %6222 = vmatpush1.bf16.msra.mxu1 %v8147_v50  ;;  %v6351_v6 = vpack.c.bf16 %v8169_v62, %v8157_v55  ;;  %v213_v9 = vand.u32 4294901760, %v61_v59  ;;  %v8195_v12 = vpack.c.bf16 %v211_v4, %v207_v63  ;;  %v8197_v17 = vsub.f32 %v62_v53, %v211_v4  ;;  %v86_v53 = vld [vmem:[%s13163_s1 + $0x1e8] sm:$0xff] }
  0x11   :  { %14009 = vst [vmem:[#allocation13_spill] sm:$0xff] %v8174_v1  ;;  %6224 = vmatprep.subr.bf16.mxu1 %v8167_v61  ;;  %v215_v18 = vand.u32 4294901760, %v66_v0  ;;  %v6353_v24 = vpack.c.bf16 %v8178_v3, %v8176_v2  ;;  %v8204_v25 = vsub.f32 %v57_v58, %v209_v8  ;;  %v219_v28 = vand.u32 4294901760, %v70_v5 }
  0x12   :  { %14010 = vst [vmem:[#allocation14_spill] sm:$0xff] %v8195_v12  ;;  %6350 = vmatpush1.bf16.msra.mxu0 %v6349_v60  ;;  %v8206_v27 = vsub.f32 %v61_v59, %v213_v9  ;;  %v6355_v30 = vpack.c.bf16 %v8197_v17, %v8186_v7  ;;  %v217_v32 = vand.u32 4294901760, %v65_v10  ;;  %v221_v34 = vand.u32 4294901760, %v69_v11  ;;  %v81_v59 = vld [vmem:[%s13163_s1 + $0x1c0] sm:$0xff] }
  0x13   :  { %6352 = vmatprep.subr.bf16.mxu0 %v6351_v6  ;;  %v8213_v31 = vsub.f32 %v66_v0, %v215_v18  ;;  %v8222_v37 = vpack.c.bf16 %v213_v9, %v209_v8  ;;  %v8224_v41 = vsub.f32 %v70_v5, %v219_v28  ;;  %v223_v42 = vand.u32 4294901760, %v74_v23  ;;  %v85_v60 = vld [vmem:[%s13163_s1 + $0x1e0] sm:$0xff]  ;;  %v90_v8 = vld [vmem:[%s13163_s1 + $0x208] sm:$0xff] }
  0x14   :  { %6226 = vmatpush1.bf16.msra.mxu1 %v8174_v1  ;;  %v6357_v47 = vpack.c.bf16 %v8206_v27, %v8204_v25  ;;  %v8232_v48 = vpack.c.bf16 %v219_v28, %v215_v18  ;;  %v8234_v49 = vsub.f32 %v65_v10, %v217_v32  ;;  %v227_v52 = vand.u32 4294901760, %v78_v29  ;;  %v94_v9 = vld [vmem:[%s13163_s1 + $0x228] sm:$0xff]  ;;  %v97_v1 = vld [vmem:[%s13163_s1 + $0x240] sm:$0xff] }
  0x15   :  { %14011 = vst [vmem:[#allocation15_spill] sm:$0xff] %v8222_v37  ;;  %6228 = vmatprep.subr.bf16.mxu1 %v8195_v12  ;;  %v8239_v54 = vsub.f32 %v69_v11, %v221_v34  ;;  %v8241_v56 = vsub.f32 %v74_v23, %v223_v42  ;;  %v225_v57 = vand.u32 4294901760, %v73_v35  ;;  %v229_v58 = vand.u32 4294901760, %v77_v36 }
  0x16   :  { %14012 = vst [vmem:[#allocation16_spill] sm:$0xff] %v8232_v48  ;;  %6354 = vmatpush1.bf16.msra.mxu0 %v6353_v24  ;;  %v6359_v63 = vpack.c.bf16 %v8224_v41, %v8213_v31  ;;  %v8251_v0 = vsub.f32 %v78_v29, %v227_v52  ;;  %v231_v4 = vand.u32 4294901760, %v82_v43  ;;  %v8254_v5 = vpack.c.bf16 %v221_v34, %v217_v32  ;;  %v93_v32 = vld [vmem:[%s13163_s1 + $0x220] sm:$0xff] }
  0x17   :  { %14013 = vst [vmem:[#allocation17_spill] sm:$0xff] %v8239_v54  ;;  %14014 = vst [vmem:[#allocation18_spill] sm:$0xff] %v8241_v56  ;;  %6356 = vmatprep.subr.bf16.mxu0 %v6355_v30  ;;  %v235_v6 = vand.u32 4294901760, %v86_v53  ;;  %v8263_v10 = vpack.c.bf16 %v227_v52, %v223_v42  ;;  %v233_v11 = vand.u32 4294901760, %v81_v59  ;;  %v237_v18 = vand.u32 4294901760, %v85_v60  ;;  %v89_v30 = vld [vmem:[%s13163_s1 + $0x200] sm:$0xff] }
  0x18   :  { %14015 = vst [vmem:[#allocation19_spill] sm:$0xff] %v8251_v0  ;;  %6230 = vmatpush1.bf16.msra.mxu1 %v8222_v37  ;;  %14016 = vst [vmem:[#allocation20_spill] sm:$0xff] %v8254_v5  ;;  %v6361_v23 = vpack.c.bf16 %v8239_v54, %v8234_v49  ;;  %v8267_v24 = vsub.f32 %v73_v35, %v225_v57  ;;  %v8269_v28 = vsub.f32 %v77_v36, %v229_v58  ;;  %v98_v36 = vld [vmem:[%s13163_s1 + $0x248] sm:$0xff] }
  0x19   :  { %6232 = vmatprep.subr.bf16.mxu1 %v8232_v48  ;;  %14017 = vst [vmem:[#allocation21_spill] sm:$0xff] %v8263_v10  ;;  %v6363_v29 = vpack.c.bf16 %v8251_v0, %v8241_v56  ;;  %v8279_v34 = vsub.f32 %v82_v43, %v231_v4  ;;  %v8281_v42 = vsub.f32 %v86_v53, %v235_v6  ;;  %v239_v35 = vand.u32 4294901760, %v90_v8  ;;  %v102_v52 = vld [vmem:[%s13163_s1 + $0x268] sm:$0xff] }
  0x1a   :  { %6358 = vmatpush1.bf16.msra.mxu0 %v6357_v47  ;;  %14018 = vst [vmem:[#allocation22_spill] sm:$0xff] %v8267_v24  ;;  %14019 = vst [vmem:[#allocation23_spill] sm:$0xff] %v8269_v28  ;;  %v243_v47 = vand.u32 4294901760, %v94_v9  ;;  %v8290_v48 = vpack.c.bf16 %v229_v58, %v225_v57  ;;  %v8292_v37 = vpack.c.bf16 %v235_v6, %v231_v4  ;;  %v245_v12 = vand.u32 4294901760, %v93_v32 }
  0x1b   :  { %6360 = vmatprep.subr.bf16.mxu0 %v6359_v63  ;;  %14020 = vst [vmem:[#allocation24_spill] sm:$0xff] %v8279_v34  ;;  %14021 = vst [vmem:[#allocation25_spill] sm:$0xff] %v8281_v42  ;;  %v8295_v43 = vsub.f32 %v81_v59, %v233_v11  ;;  %v8297_v53 = vsub.f32 %v85_v60, %v237_v18  ;;  %v241_v63 = vand.u32 4294901760, %v89_v30  ;;  %v247_v58 = vand.u32 4294901760, %v98_v36 }
  0x1c   :  { %6234 = vmatpush1.bf16.msra.mxu1 %v8254_v5  ;;  %14022 = vst [vmem:[#allocation26_spill] sm:$0xff] %v8290_v48  ;;  %14023 = vst [vmem:[#allocation27_spill] sm:$0xff] %v8292_v37  ;;  %v101_v5 = vld [vmem:[%s13163_s1 + $0x260] sm:$0xff]  ;;  %v6365_v57 = vpack.c.bf16 %v8269_v28, %v8267_v24  ;;  %v251_v4 = vand.u32 4294901760, %v102_v52  ;;  %v6367_v59 = vpack.c.bf16 %v8281_v42, %v8279_v34 }
  0x1d   :  { %6236 = vmatprep.subr.bf16.mxu1 %v8263_v10  ;;  %14024 = vst [vmem:[#allocation28_spill] sm:$0xff] %v8295_v43  ;;  %14025 = vst [vmem:[#allocation29_spill] sm:$0xff] %v8297_v53  ;;  %v8309_v60 = vsub.f32 %v90_v8, %v239_v35  ;;  %v8311_v6 = vsub.f32 %v94_v9, %v243_v47  ;;  %v106_v10 = vld [vmem:[%s13163_s1 + $0x288] sm:$0xff]  ;;  %v8320_v61 = vpack.c.bf16 %v237_v18, %v233_v11  ;;  %v8334_v28 = vld [vmem:[%s13163_s1 + $0x280] sm:$0xff] }
  0x1e   :  { %6362 = vmatpush1.bf16.msra.mxu0 %v6361_v23  ;;  %v110_v23 = vld [vmem:[%s13163_s1 + $0x2a8] sm:$0xff]  ;;  %v253_v50 = vand.u32 4294901760, %v101_v5  ;;  %v6369_v8 = vpack.c.bf16 %v8297_v53, %v8295_v43  ;;  %v8325_v9 = vpack.c.bf16 %v243_v47, %v239_v35  ;;  %v8327_v42 = vsub.f32 %v89_v30, %v241_v63  ;;  %v109_v30 = vld [vmem:[%s13163_s1 + $0x2a0] sm:$0xff] }
  0x1f   :  { %6364 = vmatprep.subr.bf16.mxu0 %v6363_v29  ;;  %14026 = vst [vmem:[#allocation30_spill] sm:$0xff] %v8309_v60  ;;  %14027 = vst [vmem:[#allocation31_spill] sm:$0xff] %v8311_v6  ;;  %v249_v29 = vand.u32 4294901760, %v97_v1  ;;  %v8329_v34 = vsub.f32 %v93_v32, %v245_v12  ;;  %v8336_v11 = vsub.f32 %v98_v36, %v247_v58  ;;  %v114_v32 = vld [vmem:[%s13163_s1 + $0x2c8] sm:$0xff] }
  0x20   :  { %6238 = vmatpush1.bf16.msra.mxu1 %v8290_v48  ;;  %14028 = vst [vmem:[#allocation32_spill] sm:$0xff] %v8320_v61  ;;  %14029 = vst [vmem:[#allocation33_spill] sm:$0xff] %v8325_v9  ;;  %v8338_v18 = vsub.f32 %v102_v52, %v251_v4  ;;  %v259_v48 = vand.u32 4294901760, %v110_v23  ;;  %v6371_v35 = vpack.c.bf16 %v8311_v6, %v8309_v60  ;;  %v113_v6 = vld [vmem:[%s13163_s1 + $0x2c0] sm:$0xff]  ;;  %v8375_v60 = vld [vmem:[%s13163_s1 + $0x308] sm:$0xff] }
  0x21   :  { %6240 = vmatprep.subr.bf16.mxu1 %v8292_v37  ;;  %14030 = vst [vmem:[#allocation34_spill] sm:$0xff] %v8327_v42  ;;  %14031 = vst [vmem:[#allocation35_spill] sm:$0xff] %v8329_v34  ;;  %v255_v37 = vand.u32 4294901760, %v106_v10  ;;  %v8349_v47 = vpack.c.bf16 %v245_v12, %v241_v63  ;;  %v8351_v36 = vsub.f32 %v97_v1, %v249_v29  ;;  %v261_v1 = vand.u32 4294901760, %v109_v30 }
  0x22   :  { %6366 = vmatpush1.bf16.msra.mxu0 %v6365_v57  ;;  %14032 = vst [vmem:[#allocation36_spill] sm:$0xff] %v8336_v11  ;;  %14033 = vst [vmem:[#allocation37_spill] sm:$0xff] %v8338_v18  ;;  %v8353_v52 = vsub.f32 %v101_v5, %v253_v50  ;;  %v257_v57 = vand.u32 4294901760, %v8334_v28  ;;  %v6373_v5 = vpack.c.bf16 %v8329_v34, %v8327_v42  ;;  %v8400_v34 = vld [vmem:[%s13163_s1 + $0x368] sm:$0xff]  ;;  %v271_v38 = vand.u32 4294901760, %v8375_v60 }
  0x23   :  { %6368 = vmatprep.subr.bf16.mxu0 %v6367_v59  ;;  %14034 = vst [vmem:[#allocation38_spill] sm:$0xff] %v8349_v47  ;;  %14035 = vst [vmem:[#allocation39_spill] sm:$0xff] %v8351_v36  ;;  %v118_v59 = vld [vmem:[%s13163_s1 + $0x2e8] sm:$0xff]  ;;  %v8370_v63 = vpack.c.bf16 %v251_v4, %v247_v58  ;;  %v6375_v53 = vpack.c.bf16 %v8338_v18, %v8336_v11  ;;  %v8379_v43 = vsub.f32 %v106_v10, %v255_v37  ;;  %v121_v58 = vld [vmem:[%s13163_s1 + $0x300] sm:$0xff] }
  0x24   :  { %6242 = vmatpush1.bf16.msra.mxu1 %v8320_v61  ;;  %14036 = vst [vmem:[#allocation40_spill] sm:$0xff] %v8353_v52  ;;  %v117_v61 = vld [vmem:[%s13163_s1 + $0x2e0] sm:$0xff]  ;;  %v8381_v12 = vsub.f32 %v110_v23, %v259_v48  ;;  %v267_v18 = vand.u32 4294901760, %v118_v59  ;;  %v265_v10 = vand.u32 4294901760, %v113_v6  ;;  %v8395_v23 = vld [vmem:[%s13163_s1 + $0x348] sm:$0xff]  ;;  %v8403_v42 = vpack.c.bf16 %v253_v50, %v249_v29 }
  0x25   :  { %6244 = vmatprep.subr.bf16.mxu1 %v8325_v9  ;;  %14037 = vst [vmem:[#allocation41_spill] sm:$0xff] %v8370_v63  ;;  %14038 = vst [vmem:[#allocation42_spill] sm:$0xff] %v8379_v43  ;;  %v126_v9 = vld [vmem:[%s13163_s1 + $0x328] sm:$0xff]  ;;  %v125_v4 = vld [vmem:[%s13163_s1 + $0x320] sm:$0xff]  ;;  %v269_v11 = vand.u32 4294901760, %v117_v61  ;;  %v8407_v24 = vpack.c.bf16 %v259_v48, %v255_v37  ;;  %v8410_v44 = vsub.f32 %v8334_v28, %v257_v57  ;;  %v273_v56 = vand.u32 4294901760, %v121_v58 }
  0x26   :  { %6370 = vmatpush1.bf16.msra.mxu0 %v6369_v8  ;;  %14039 = vst [vmem:[#allocation43_spill] sm:$0xff] %v8381_v12  ;;  %v263_v8 = vand.u32 4294901760, %v114_v32  ;;  %14040 = vst [vmem:[#allocation44_spill] sm:$0xff] %v8403_v42  ;;  %v275_v0 = vand.u32 4294901760, %v126_v9  ;;  %v277_v54 = vand.u32 4294901760, %v125_v4  ;;  %v129_v50 = vld [vmem:[%s13163_s1 + $0x340] sm:$0xff]  ;;  %v8420_v37 = vsub.f32 %v109_v30, %v261_v1 }
  0x27   :  { %6372 = vmatprep.subr.bf16.mxu0 %v6371_v35  ;;  %v6377_v35 = vpack.c.bf16 %v8353_v52, %v8351_v36  ;;  %14041 = vst [vmem:[#allocation45_spill] sm:$0xff] %v8407_v24  ;;  %v133_v29 = vld [vmem:[%s13163_s1 + $0x360] sm:$0xff]  ;;  %v6379_v48 = vpack.c.bf16 %v8381_v12, %v8379_v43  ;;  %v279_v28 = vand.u32 4294901760, %v8395_v23  ;;  %v8428_v52 = vsub.f32 %v118_v59, %v267_v18 }
  0x28   :  { %6246 = vmatpush1.bf16.msra.mxu1 %v8349_v47  ;;  %v8426_v47 = vsub.f32 %v114_v32, %v263_v8  ;;  %v8430_v36 = vsub.f32 %v113_v6, %v265_v10  ;;  %v8432_v21 = vsub.f32 %v117_v61, %v269_v11  ;;  %v8435_v30 = vpack.c.bf16 %v261_v1, %v257_v57  ;;  %v142_v32 = vld [vmem:[%s13163_s1 + $0x3a8] sm:$0xff] }
  0x29   :  { %6248 = vmatprep.subr.bf16.mxu1 %v8370_v63  ;;  %v283_v63 = vand.u32 4294901760, %v8400_v34  ;;  %14043 = vst [vmem:[#allocation47_spill] sm:$0xff] %v8428_v52  ;;  %v281_v12 = vand.u32 4294901760, %v129_v50  ;;  %v285_v43 = vand.u32 4294901760, %v133_v29  ;;  %v8447_v61 = vsub.f32 %v8375_v60, %v271_v38  ;;  %v137_v60 = vld [vmem:[%s13163_s1 + $0x380] sm:$0xff] }
  0x2a   :  { %6374 = vmatpush1.bf16.msra.mxu0 %v6373_v5  ;;  %14042 = vst [vmem:[#allocation46_spill] sm:$0xff] %v8426_v47  ;;  %14044 = vst [vmem:[#allocation48_spill] sm:$0xff] %v8430_v36  ;;  %v8437_v5 = vpack.c.bf16 %v267_v18, %v263_v8  ;;  %v8449_v6 = vsub.f32 %v126_v9, %v275_v0  ;;  %v8451_v57 = vsub.f32 %v121_v58, %v273_v56  ;;  %v141_v9 = vld [vmem:[%s13163_s1 + $0x3a0] sm:$0xff] }
  0x2b   :  { %6376 = vmatprep.subr.bf16.mxu0 %v6375_v53  ;;  %14045 = vst [vmem:[#allocation49_spill] sm:$0xff] %v8432_v21  ;;  %14046 = vst [vmem:[#allocation50_spill] sm:$0xff] %v8435_v30  ;;  %v138_v53 = vld [vmem:[%s13163_s1 + $0x388] sm:$0xff]  ;;  %v8453_v18 = vsub.f32 %v125_v4, %v277_v54  ;;  %v6381_v59 = vpack.c.bf16 %v8420_v37, %v8410_v44  ;;  %v8457_v1 = vpack.c.bf16 %v269_v11, %v265_v10 }
  0x2c   :  { %6250 = vmatpush1.bf16.msra.mxu1 %v8403_v42  ;;  %14047 = vst [vmem:[#allocation51_spill] sm:$0xff] %v8437_v5  ;;  %14048 = vst [vmem:[#allocation52_spill] sm:$0xff] %v8447_v61  ;;  %v8460_v8 = vsub.f32 %v8395_v23, %v279_v28  ;;  %v6383_v58 = vpack.c.bf16 %v8428_v52, %v8426_v47  ;;  %v6385_v11 = vpack.c.bf16 %v8432_v21, %v8430_v36  ;;  %v146_v21 = vld [vmem:[%s13163_s1 + $0x3c8] sm:$0xff]  ;;  %v23_v36 = vld [vmem:[%s13164_s0] sm:$0xff] }
  0x2d   :  { %6252 = vmatprep.subr.bf16.mxu1 %v8407_v24  ;;  %14049 = vst [vmem:[#allocation53_spill] sm:$0xff] %v8449_v6  ;;  %14050 = vst [vmem:[#allocation54_spill] sm:$0xff] %v8451_v57  ;;  %v8463_v24 = vsub.f32 %v8400_v34, %v283_v63  ;;  %v287_v4 = vand.u32 4294901760, %v138_v53  ;;  %v291_v10 = vand.u32 4294901760, %v142_v32  ;;  %v24_v34 = vld [vmem:[%s13164_s0 + $0x8] sm:$0xff]  ;;  %v8479_v23 = vpack.c.bf16 %v275_v0, %v271_v38 }
  0x2e   :  { %14051 = vst [vmem:[#allocation55_spill] sm:$0xff] %v8453_v18  ;;  %6378 = vmatpush1.bf16.msra.mxu0 %v6377_v35  ;;  %14052 = vst [vmem:[#allocation56_spill] sm:$0xff] %v8457_v1  ;;  %v8481_v35 = vpack.c.bf16 %v277_v54, %v273_v56  ;;  %v8483_v42 = vsub.f32 %v129_v50, %v281_v12  ;;  %v6387_v38 = vpack.c.bf16 %v8449_v6, %v8447_v61  ;;  %v150_v50 = vld [vmem:[%s13163_s1 + $0x3e8] sm:$0xff] }
  0x2f   :  { %14053 = vst [vmem:[#allocation57_spill] sm:$0xff] %v8460_v8  ;;  %14054 = vst [vmem:[#allocation58_spill] sm:$0xff] %v8463_v24  ;;  %6380 = vmatprep.subr.bf16.mxu0 %v6379_v48  ;;  %v8485_v48 = vsub.f32 %v133_v29, %v285_v43  ;;  %v6389_v54 = vpack.c.bf16 %v8453_v18, %v8451_v57  ;;  %v289_v56 = vand.u32 4294901760, %v137_v60  ;;  %v293_v0 = vand.u32 4294901760, %v141_v9 }
  0x30   :  { %6254 = vmatpush1.bf16.msra.mxu1 %v8435_v30  ;;  %14055 = vst [vmem:[#allocation59_spill] sm:$0xff] %v8479_v23  ;;  %14056 = vst [vmem:[#allocation60_spill] sm:$0xff] %v8481_v35  ;;  %v8501_v29 = vpack.c.bf16 %v283_v63, %v279_v28  ;;  %v8503_v30 = vpack.c.bf16 %v285_v43, %v281_v12  ;;  %v8507_v52 = vand.u32 4294901760, %v24_v34  ;;  %v295_v57 = vand.u32 4294901760, %v146_v21  ;;  %v145_v28 = vld [vmem:[%s13163_s1 + $0x3c0] sm:$0xff] }
  0x31   :  { %14057 = vst [vmem:[#allocation61_spill] sm:$0xff] %v8485_v48  ;;  %6256 = vmatprep.subr.bf16.mxu1 %v8437_v5  ;;  %v6391_v5 = vpack.c.bf16 %v8463_v24, %v8460_v8  ;;  %v8509_v6 = vsub.f32 %v138_v53, %v287_v4  ;;  %v8511_v18 = vsub.f32 %v142_v32, %v291_v10  ;;  %v8513_v61 = vand.u32 4294901760, %v23_v36 }
  0x32   :  { %6382 = vmatpush1.bf16.msra.mxu0 %v6381_v59  ;;  %14058 = vst [vmem:[#allocation62_spill] sm:$0xff] %v8501_v29  ;;  %14059 = vst [vmem:[#allocation63_spill] sm:$0xff] %v8503_v30  ;;  %v6393_v63 = vpack.c.bf16 %v8485_v48, %v8483_v42  ;;  %v8518_v43 = vpack.c.bf16 %v291_v10, %v287_v4  ;;  %v299_v12 = vand.u32 4294901760, %v150_v50  ;;  %v149_v59 = vld [vmem:[%s13163_s1 + $0x3e0] sm:$0xff] }
  0x33   :  { %14060 = vst [vmem:[#allocation64_spill] sm:$0xff] %v8507_v52  ;;  %6384 = vmatprep.subr.bf16.mxu0 %v6383_v58  ;;  %14061 = vst [vmem:[#allocation65_spill] sm:$0xff] %v8511_v18  ;;  %v8524_v53 = vsub.f32 %v24_v34, %v8507_v52  ;;  %v8527_v32 = vpack.c.bf16 %v293_v0, %v289_v56  ;;  %v8535_v10 = vsub.f32 %v23_v36, %v8513_v61 }
  0x34   :  { %14062 = vst [vmem:[#allocation66_spill] sm:$0xff] %v8513_v61  ;;  %6258 = vmatpush1.bf16.msra.mxu1 %v8457_v1  ;;  %14063 = vst [vmem:[#allocation67_spill] sm:$0xff] %v8518_v43  ;;  %v8537_v1 = vsub.f32 %v137_v60, %v289_v56  ;;  %v8539_v34 = vsub.f32 %v141_v9, %v293_v0  ;;  %v6395_v58 = vpack.c.bf16 %v8511_v18, %v8509_v6 }
  0x35   :  { %14064 = vst [vmem:[#allocation68_spill] sm:$0xff] %v8524_v53  ;;  %6260 = vmatprep.subr.bf16.mxu1 %v8479_v23  ;;  %14065 = vst [vmem:[#allocation69_spill] sm:$0xff] %v8527_v32  ;;  %v8542_v23 = vand.u32 4294901760, %v8524_v53  ;;  %907 = vmatprep.mubr.f32.mxu0 %v8524_v53  ;;  %v8548_v4 = vsub.f32 %v146_v21, %v295_v57  ;;  %v297_v36 = vand.u32 4294901760, %v145_v28  ;;  %v301_v9 = vand.u32 4294901760, %v149_v59 }
  0x36   :  { %14066 = vst [vmem:[#allocation70_spill] sm:$0xff] %v8535_v10  ;;  %6386 = vmatpush1.bf16.msra.mxu0 %v6385_v11  ;;  %v8552_v60 = vsub.f32 %v150_v50, %v299_v12  ;;  %v14068_v0 = vand.u32 4294901760, %v8079_v16  ;;  %v14069_v21 = vand.u32 4294901760, %v8075_v14  ;;  %v14070_v11 = vand.u32 4294901760, %v8077_v15 }
  0x37   :  { %14067 = vst [vmem:[#allocation71_spill] sm:$0xff] %v8542_v23  ;;  %6388 = vmatprep.subr.bf16.mxu0 %v6387_v38  ;;  %v306_v56 = vsub.f32 %v8524_v53, %v8542_v23  ;;  %v8567_v50 = vand.u32 4294901760, %v8535_v10 }
  0x38   :  { %6262 = vmatpush1.bf16.msra.mxu1 %v8481_v35  ;;  %v329_v38 = vsub.f32 %v8079_v16, %v14068_v0  ;;  %v323_v48 = vsub.f32 %v8075_v14, %v14069_v21  ;;  %v335_v61 = vsub.f32 %v8077_v15, %v14070_v11  ;;  %v14072_v35 = vand.u32 4294901760, %v8089_v20 }
  0x39   :  { %6264 = vmatprep.subr.bf16.mxu1 %v8501_v29  ;;  %14071 = vst [vmem:[#allocation72_spill] sm:$0xff] %v8567_v50  ;;  %v8572_v18 = vand.u32 4294901760, %v306_v56  ;;  %v14074_v0 = vand.u32 4294901760, %v8093_v22  ;;  %v14075_v21 = vand.u32 4294901760, %v8104_v26  ;;  %v6397_v15 = vpack.c.bf16 %v8539_v34, %v8537_v1 }
  0x3a   :  { %v341_v53 = vsub.f32 %v8089_v20, %v14072_v35  ;;  %6390 = vmatpush1.bf16.msra.mxu0 %v6389_v54  ;;  %v8583_v14 = vpack.c.bf16 %v299_v12, %v295_v57  ;;  %v8588_v56 = vsub.f32 %v145_v28, %v297_v36  ;;  %v324_v57 = vand.u32 4294901760, %v323_v48 }
  0x3b   :  { %14073 = vst [vmem:[#allocation73_spill] sm:$0xff] %v8572_v18  ;;  %v347_v29 = vsub.f32 %v8093_v22, %v14074_v0  ;;  %v359_v16 = vsub.f32 %v8104_v26, %v14075_v21  ;;  %6392 = vmatprep.subr.bf16.mxu0 %v6391_v5  ;;  %v8590_v0 = vsub.f32 %v149_v59, %v301_v9  ;;  %v336_v12 = vand.u32 4294901760, %v335_v61 }
  0x3c   :  { %14076 = vst [vmem:[#allocation74_spill] sm:$0xff] %v8583_v14  ;;  %6266 = vmatpush1.bf16.msra.mxu1 %v8503_v30  ;;  %v6399_v21 = vpack.c.bf16 %v8552_v60, %v8548_v4  ;;  %308 = vmatprep.mubr.f32.mxu1 %v8572_v18  ;;  %v330_v35 = vand.u32 4294901760, %v329_v38  ;;  %v342_v11 = vand.u32 4294901760, %v341_v53  ;;  %v312_v28 = vsub.f32 %v8535_v10, %v8567_v50 }
  0x3d   :  { %6268 = vmatprep.subr.bf16.mxu1 %v8518_v43  ;;  %v348_v54 = vand.u32 4294901760, %v347_v29  ;;  %v360_v59 = vand.u32 4294901760, %v359_v16  ;;  %v14077_v30 = vand.u32 4294901760, %v8116_v33  ;;  %v14078_v18 = vand.u32 4294901760, %v8125_v39 }
  0x3e   :  { %6394 = vmatpush1.bf16.msra.mxu0 %v6393_v63  ;;  %v14079_v48 = vand.u32 4294901760, %v8127_v40  ;;  %v8611_v16 = vpack.c.bf16 %v301_v9, %v297_v36  ;;  %v14081_v29 = vand.u32 4294901760, %v8137_v45  ;;  %v6275_v38 = vpack.c.bf16 %v336_v12, %v324_v57 }
  0x3f   :  { %v353_v26 = vsub.f32 %v8116_v33, %v14077_v30  ;;  %6396 = vmatprep.subr.bf16.mxu0 %v6395_v58  ;;  %v365_v5 = vsub.f32 %v8125_v39, %v14078_v18  ;;  %v6401_v18 = vpack.c.bf16 %v8590_v0, %v8588_v56  ;;  %v8621_v53 = vand.u32 4294901760, %v312_v28 }
  0x40   :  { %v371_v61 = vsub.f32 %v8127_v40, %v14079_v48  ;;  %6270 = vmatpush1.bf16.msra.mxu1 %v8527_v32  ;;  %14080 = vst [vmem:[#allocation75_spill] sm:$0xff] %v8611_v16  ;;  %v383_v30 = vsub.f32 %v8137_v45, %v14081_v29  ;;  %v13294_v48 = vand.u32 4294901760, %v8169_v62  ;;  %v6277_v63 = vpack.c.bf16 %v342_v11, %v330_v35 }
  0x41   :  { %6272 = vmatprep.subr.bf16.mxu1 %v8583_v14  ;;  %14082 = vst [vmem:[#allocation76_spill] sm:$0xff] %v8621_v53  ;;  %v6279_v36 = vpack.c.bf16 %v360_v59, %v348_v54  ;;  %v354_v9 = vand.u32 4294901760, %v353_v26  ;;  %v366_v50 = vand.u32 4294901760, %v365_v5  ;;  %v14083_v29 = vand.u32 4294901760, %v8139_v46 }
  0x42   :  { %6398 = vmatpush1.bf16.msra.mxu0 %v6397_v15  ;;  %v372_v32 = vand.u32 4294901760, %v371_v61  ;;  %v14084_v14 = vand.u32 4294901760, %v8149_v51  ;;  %v384_v57 = vand.u32 4294901760, %v383_v30  ;;  %v14085_v15 = vand.u32 4294901760, %v8157_v55 }
  0x43   :  { %6400 = vmatprep.subr.bf16.mxu0 %v6399_v21  ;;  %v377_v58 = vsub.f32 %v8139_v46, %v14083_v29  ;;  %v13300_v26 = vand.u32 4294901760, %v8176_v2  ;;  %v13299_v35 = vand.u32 4294901760, %v8178_v3  ;;  %v407_v54 = vsub.f32 %v8169_v62, %v13294_v48 }
  0x44   :  { %v389_v43 = vsub.f32 %v8149_v51, %v14084_v14  ;;  %6274 = vmatpush1.bf16.msra.mxu1 %v8611_v16  ;;  %v395_v11 = vsub.f32 %v8157_v55, %v14085_v15  ;;  %v13297_v21 = vand.u32 4294901760, %v8186_v7  ;;  %v13296_v14 = vand.u32 4294901760, %v8197_v17 }
  0x45   :  { %6276 = vmatprep.subr.bf16.mxu1 %v6275_v38  ;;  %v13295_v5 = vand.u32 4294901760, %v8204_v25  ;;  %v13298_v12 = vand.u32 4294901760, %v8206_v27  ;;  %v13302_v28 = vand.u32 4294901760, %v8213_v31  ;;  %v6281_v61 = vpack.c.bf16 %v366_v50, %v354_v9 }
  0x46   :  { %6402 = vmatpush1.bf16.msra.mxu0 %v6401_v18  ;;  %v378_v30 = vand.u32 4294901760, %v377_v58  ;;  %v390_v38 = vand.u32 4294901760, %v389_v43  ;;  %v6283_v29 = vpack.c.bf16 %v384_v57, %v372_v32  ;;  %v396_v15 = vand.u32 4294901760, %v395_v11  ;;  %v14087_v11 = vld [vmem:[#allocation7_spill] sm:$0xff]  ;;  %v14091_v57 = vld [vmem:[#allocation9_spill] sm:$0xff] }
  0x47   :  { %314 = vmatmul.mubr.f32.vlgmr.msra.gmra.mrb[0].mxu1 %v8621_v53  ;;  %6404 = vmatprep.subr.bf16.mxu0 %v8073_v13  ;;  %v401_v18 = vsub.f32 %v8176_v2, %v13300_v26  ;;  %v413_v48 = vsub.f32 %v8178_v3, %v13299_v35  ;;  %v408_v59 = vand.u32 4294901760, %v407_v54  ;;  %v419_v43 = vsub.f32 %v8186_v7, %v13297_v21  ;;  %v14088_v54 = vld [vmem:[#allocation17_spill] sm:$0xff] }
  0x48   :  { %6278 = vmatpush1.bf16.msra.mxu1 %v6277_v63  ;;  %705 = vmatprep.mubr.f32.mxu1 %v8507_v52  ;;  %v431_v32 = vsub.f32 %v8197_v17, %v13296_v14  ;;  %v425_v50 = vsub.f32 %v8204_v25, %v13295_v5  ;;  %v437_v63 = vsub.f32 %v8206_v27, %v13298_v12  ;;  %v14089_v14 = vld [vmem:[#allocation18_spill] sm:$0xff]  ;;  %v14092_v5 = vand.u32 4294901760, %v8234_v49 }
  0x49   :  { %910 = vmatmul.mubr.f32.vlgmr.msra.gmra.mrb[0].mxu0 %v8535_v10  ;;  %6280 = vmatprep.subr.bf16.mxu1 %v6279_v36  ;;  %v443_v58 = vsub.f32 %v8213_v31, %v13302_v28  ;;  %v14086_v36 = vand.u32 4294901760, %v8224_v41  ;;  %v6285_v12 = vpack.c.bf16 %v390_v38, %v378_v30  ;;  %v402_v35 = vand.u32 4294901760, %v401_v18  ;;  %v14090_v10 = vld [vmem:[#allocation19_spill] sm:$0xff] }
  0x4a   :  { %6406 = vmatpush1.bf16.msra.mxu0 %v8087_v19  ;;  %1047 = vmatprep.mubr.f32.mxu0 %v8542_v23  ;;  %v414_v26 = vand.u32 4294901760, %v413_v48  ;;  %v13311_v28 = vand.u32 4294901760, %v14090_v10  ;;  %v6287_v19 = vpack.c.bf16 %v408_v59, %v396_v15  ;;  %v420_v13 = vand.u32 4294901760, %v419_v43  ;;  %v14097_v18 = vld [vmem:[#allocation23_spill] sm:$0xff]  ;;  %v14101_v15 = vld [vmem:[#allocation12_spill] sm:$0xff] }
  0x4b   :  { %v455_v9 = vsub.f32 %v8224_v41, %v14086_v36  ;;  %6408 = vmatprep.subr.bf16.mxu0 %v14087_v11  ;;  %v432_v36 = vand.u32 4294901760, %v431_v32  ;;  %v426_v53 = vand.u32 4294901760, %v425_v50  ;;  %v438_v23 = vand.u32 4294901760, %v437_v63  ;;  %v14098_v50 = vld [vmem:[#allocation24_spill] sm:$0xff] }
  0x4c   :  { %6282 = vmatpush1.bf16.msra.mxu1 %v6281_v61  ;;  %v444_v52 = vand.u32 4294901760, %v443_v58  ;;  %v449_v21 = vsub.f32 %v8234_v49, %v14092_v5  ;;  %v14093_v61 = vld [vmem:[#allocation10_spill] sm:$0xff]  ;;  %v14094_v48 = vand.u32 4294901760, %v14088_v54  ;;  %v14095_v59 = vand.u32 4294901760, %v14089_v14 }
  0x4d   :  { %6284 = vmatprep.subr.bf16.mxu1 %v6283_v29  ;;  %v456_v11 = vand.u32 4294901760, %v455_v9  ;;  %v14096_v29 = vld [vmem:[#allocation22_spill] sm:$0xff]  ;;  %v6289_v32 = vpack.c.bf16 %v414_v26, %v402_v35  ;;  %v479_v5 = vsub.f32 %v14090_v10, %v13311_v28  ;;  %v13313_v63 = vand.u32 4294901760, %v14098_v50  ;;  %v14099_v9 = vld [vmem:[#allocation25_spill] sm:$0xff] }
  0x4e   :  { %6410 = vmatpush1.bf16.msra.mxu0 %v14091_v57  ;;  %v461_v30 = vsub.f32 %v14088_v54, %v14094_v48  ;;  %v467_v38 = vsub.f32 %v14089_v14, %v14095_v59  ;;  %v6291_v58 = vpack.c.bf16 %v432_v36, %v420_v13  ;;  %v13318_v48 = vand.u32 4294901760, %v14099_v9 }
  0x4f   :  { %6412 = vmatprep.subr.bf16.mxu0 %v14093_v61  ;;  %v14100_v61 = vld [vmem:[#allocation11_spill] sm:$0xff]  ;;  %v6293_v57 = vpack.c.bf16 %v438_v23, %v426_v53  ;;  %v6295_v59 = vpack.c.bf16 %v456_v11, %v444_v52  ;;  %v450_v16 = vand.u32 4294901760, %v449_v21  ;;  %v14102_v26 = vand.u32 4294901760, %v14096_v29  ;;  %v14104_v52 = vld [vmem:[#allocation28_spill] sm:$0xff]  ;;  %v14105_v21 = vld [vmem:[#allocation29_spill] sm:$0xff] }
  0x50   :  { %6286 = vmatpush1.bf16.msra.mxu1 %v6285_v12  ;;  %v462_v43 = vand.u32 4294901760, %v461_v30  ;;  %v468_v12 = vand.u32 4294901760, %v467_v38  ;;  %v14103_v28 = vand.u32 4294901760, %v14097_v18  ;;  %v480_v13 = vand.u32 4294901760, %v479_v5  ;;  %v14106_v30 = vld [vmem:[#allocation30_spill] sm:$0xff]  ;;  %v14109_v5 = vld [vmem:[#allocation13_spill] sm:$0xff] }
  0x51   :  { %6288 = vmatprep.subr.bf16.mxu1 %v6287_v19  ;;  %v473_v35 = vsub.f32 %v14096_v29, %v14102_v26  ;;  %v491_v23 = vsub.f32 %v14098_v50, %v13313_v63  ;;  %v503_v36 = vsub.f32 %v14099_v9, %v13318_v48  ;;  %v14107_v26 = vld [vmem:[#allocation31_spill] sm:$0xff]  ;;  %v14111_v63 = vld [vmem:[#allocation36_spill] sm:$0xff]  ;;  %v14112_v53 = vld [vmem:[#allocation37_spill] sm:$0xff]  ;;  %v14116_v29 = vand.u32 4294901760, %v14106_v30 }
  0x52   :  { %6414 = vmatpush1.bf16.msra.mxu0 %v14100_v61  ;;  %v485_v19 = vsub.f32 %v14097_v18, %v14103_v28  ;;  %v14108_v28 = vld [vmem:[#allocation34_spill] sm:$0xff]  ;;  %v14110_v61 = vld [vmem:[#allocation35_spill] sm:$0xff]  ;;  %v6299_v48 = vpack.c.bf16 %v480_v13, %v468_v12 }
  0x53   :  { %6416 = vmatprep.subr.bf16.mxu0 %v14101_v15  ;;  %v14113_v11 = vld [vmem:[#allocation14_spill] sm:$0xff]  ;;  %v474_v10 = vand.u32 4294901760, %v473_v35  ;;  %v492_v38 = vand.u32 4294901760, %v491_v23  ;;  %v14114_v15 = vand.u32 4294901760, %v14104_v52  ;;  %v504_v50 = vand.u32 4294901760, %v503_v36  ;;  %v14119_v35 = vld [vmem:[#allocation15_spill] sm:$0xff] }
  0x54   :  { %6290 = vmatpush1.bf16.msra.mxu1 %v6289_v32  ;;  %v486_v14 = vand.u32 4294901760, %v485_v19  ;;  %v14123_v36 = vld [vmem:[#allocation39_spill] sm:$0xff] }
  0x55   :  { %6292 = vmatprep.subr.bf16.mxu1 %v6291_v58  ;;  %v6297_v58 = vpack.c.bf16 %v462_v43, %v450_v16  ;;  %v497_v32 = vsub.f32 %v14104_v52, %v14114_v15  ;;  %v14117_v16 = vand.u32 4294901760, %v14107_v26  ;;  %v14118_v43 = vand.u32 4294901760, %v14108_v28 }
  0x56   :  { %6418 = vmatpush1.bf16.msra.mxu0 %v14109_v5  ;;  %v14115_v5 = vand.u32 4294901760, %v14105_v21  ;;  %v14120_v15 = vand.u32 4294901760, %v14110_v61 }
  0x57   :  { %6420 = vmatprep.subr.bf16.mxu0 %v14113_v11  ;;  %v515_v11 = vsub.f32 %v14106_v30, %v14116_v29  ;;  %v521_v12 = vsub.f32 %v14108_v28, %v14118_v43  ;;  %v14122_v29 = vand.u32 4294901760, %v14112_v53  ;;  %v14126_v28 = vld [vmem:[#allocation42_spill] sm:$0xff]  ;;  %v6301_v30 = vpack.c.bf16 %v486_v14, %v474_v10 }
  0x58   :  { %6294 = vmatpush1.bf16.msra.mxu1 %v6293_v57  ;;  %v509_v18 = vsub.f32 %v14105_v21, %v14115_v5  ;;  %v527_v57 = vsub.f32 %v14107_v26, %v14117_v16  ;;  %v533_v19 = vsub.f32 %v14110_v61, %v14120_v15  ;;  %v14124_v16 = vld [vmem:[#allocation16_spill] sm:$0xff]  ;;  %v498_v21 = vand.u32 4294901760, %v497_v32  ;;  %v14127_v61 = vld [vmem:[#allocation43_spill] sm:$0xff] }
  0x59   :  { %6296 = vmatprep.subr.bf16.mxu1 %v6295_v59  ;;  %v14121_v59 = vand.u32 4294901760, %v14111_v63  ;;  %v551_v23 = vsub.f32 %v14112_v53, %v14122_v29  ;;  %v14125_v26 = vld [vmem:[#allocation40_spill] sm:$0xff]  ;;  %v13329_v52 = vand.u32 4294901760, %v14127_v61  ;;  %v522_v54 = vand.u32 4294901760, %v521_v12 }
  0x5a   :  { %6422 = vmatpush1.bf16.msra.mxu0 %v14119_v35  ;;  %v510_v15 = vand.u32 4294901760, %v509_v18  ;;  %v528_v9 = vand.u32 4294901760, %v527_v57  ;;  %v14128_v29 = vld [vmem:[#allocation20_spill] sm:$0xff]  ;;  %v534_v5 = vand.u32 4294901760, %v533_v19  ;;  %v14129_v43 = vand.u32 4294901760, %v14123_v36  ;;  %v14133_v19 = vld [vmem:[#allocation47_spill] sm:$0xff] }
  0x5b   :  { %v539_v13 = vsub.f32 %v14111_v63, %v14121_v59  ;;  %6424 = vmatprep.subr.bf16.mxu0 %v14124_v16  ;;  %v6303_v59 = vpack.c.bf16 %v504_v50, %v492_v38  ;;  %v516_v63 = vand.u32 4294901760, %v515_v11  ;;  %v552_v16 = vand.u32 4294901760, %v551_v23  ;;  %v14134_v23 = vld [vmem:[#allocation26_spill] sm:$0xff] }
  0x5c   :  { %6298 = vmatpush1.bf16.msra.mxu1 %v6297_v58  ;;  %v545_v35 = vsub.f32 %v14123_v36, %v14129_v43  ;;  %v14130_v58 = vld [vmem:[#allocation21_spill] sm:$0xff]  ;;  %v14131_v10 = vand.u32 4294901760, %v14125_v26  ;;  %v14132_v18 = vand.u32 4294901760, %v14126_v28  ;;  %v6305_v38 = vpack.c.bf16 %v510_v15, %v498_v21 }
  0x5d   :  { %6300 = vmatprep.subr.bf16.mxu1 %v6299_v48  ;;  %v540_v53 = vand.u32 4294901760, %v539_v13  ;;  %v575_v32 = vsub.f32 %v14127_v61, %v13329_v52  ;;  %v13330_v57 = vand.u32 4294901760, %v8426_v47  ;;  %v6307_v12 = vpack.c.bf16 %v528_v9, %v516_v63  ;;  %v14135_v48 = vld [vmem:[#allocation27_spill] sm:$0xff]  ;;  %v14138_v9 = vld [vmem:[#allocation48_spill] sm:$0xff] }
  0x5e   :  { %6426 = vmatpush1.bf16.msra.mxu0 %v14128_v29  ;;  %v557_v14 = vsub.f32 %v14125_v26, %v14131_v10  ;;  %v563_v50 = vsub.f32 %v14126_v28, %v14132_v18  ;;  %v13332_v13 = vand.u32 4294901760, %v14133_v19  ;;  %v6309_v43 = vpack.c.bf16 %v534_v5, %v522_v54  ;;  %v14145_v5 = vld [vmem:[#allocation33_spill] sm:$0xff] }
  0x5f   :  { %6428 = vmatprep.subr.bf16.mxu0 %v14130_v58  ;;  %v6311_v10 = vpack.c.bf16 %v552_v16, %v540_v53  ;;  %v546_v18 = vand.u32 4294901760, %v545_v35  ;;  %v14136_v21 = vand.u32 4294901760, %v8410_v44  ;;  %v14137_v52 = vand.u32 4294901760, %v8420_v37  ;;  %v14139_v35 = vld [vmem:[#allocation49_spill] sm:$0xff] }
  0x60   :  { %6302 = vmatpush1.bf16.msra.mxu1 %v6301_v30  ;;  %v558_v11 = vand.u32 4294901760, %v557_v14  ;;  %v564_v30 = vand.u32 4294901760, %v563_v50  ;;  %v576_v63 = vand.u32 4294901760, %v575_v32  ;;  %v587_v54 = vsub.f32 %v8426_v47, %v13330_v57  ;;  %v14140_v14 = vld [vmem:[#allocation52_spill] sm:$0xff] }
  0x61   :  { %6304 = vmatprep.subr.bf16.mxu1 %v6303_v59  ;;  %v569_v15 = vsub.f32 %v8410_v44, %v14136_v21  ;;  %v581_v59 = vsub.f32 %v8420_v37, %v14137_v52  ;;  %v599_v16 = vsub.f32 %v14133_v19, %v13332_v13  ;;  %v14141_v21 = vld [vmem:[#allocation53_spill] sm:$0xff]  ;;  %v14142_v52 = vld [vmem:[#allocation54_spill] sm:$0xff]  ;;  %v14143_v32 = vld [vmem:[#allocation32_spill] sm:$0xff]  ;;  %v14148_v53 = vand.u32 4294901760, %v14140_v14 }
  0x62   :  { %6430 = vmatpush1.bf16.msra.mxu0 %v14134_v23  ;;  %v14144_v23 = vld [vmem:[#allocation55_spill] sm:$0xff]  ;;  %v6315_v13 = vpack.c.bf16 %v576_v63, %v564_v30  ;;  %v588_v50 = vand.u32 4294901760, %v587_v54  ;;  %v14154_v54 = vand.u32 4294901760, %v8463_v24 }
  0x63   :  { %6432 = vmatprep.subr.bf16.mxu0 %v14135_v48  ;;  %v570_v29 = vand.u32 4294901760, %v569_v15  ;;  %v582_v47 = vand.u32 4294901760, %v581_v59  ;;  %v14146_v48 = vand.u32 4294901760, %v14138_v9  ;;  %v600_v57 = vand.u32 4294901760, %v599_v16  ;;  %v14151_v15 = vld [vmem:[#allocation38_spill] sm:$0xff] }
  0x64   :  { %6306 = vmatpush1.bf16.msra.mxu1 %v6305_v38 }
  0x65   :  { %6308 = vmatprep.subr.bf16.mxu1 %v6307_v12  ;;  %v6313_v12 = vpack.c.bf16 %v558_v11, %v546_v18  ;;  %v593_v38 = vsub.f32 %v14138_v9, %v14146_v48  ;;  %v14149_v11 = vand.u32 4294901760, %v14141_v21  ;;  %v14150_v18 = vand.u32 4294901760, %v14142_v52 }
  0x66   :  { %6434 = vmatpush1.bf16.msra.mxu0 %v14143_v32  ;;  %v14147_v32 = vand.u32 4294901760, %v14139_v35  ;;  %v14152_v48 = vand.u32 4294901760, %v14144_v23 }
  0x67   :  { %6436 = vmatprep.subr.bf16.mxu0 %v14145_v5  ;;  %v611_v5 = vsub.f32 %v14140_v14, %v14148_v53  ;;  %v617_v30 = vsub.f32 %v14142_v52, %v14150_v18  ;;  %v647_v53 = vsub.f32 %v8463_v24, %v14154_v54  ;;  %v14156_v18 = vld [vmem:[#allocation61_spill] sm:$0xff]  ;;  %v14158_v54 = vld [vmem:[#allocation44_spill] sm:$0xff] }
  0x68   :  { %6310 = vmatpush1.bf16.msra.mxu1 %v6309_v43  ;;  %v605_v58 = vsub.f32 %v14139_v35, %v14147_v32  ;;  %v623_v43 = vsub.f32 %v14141_v21, %v14149_v11  ;;  %v629_v59 = vsub.f32 %v14144_v23, %v14152_v48  ;;  %v14155_v32 = vld [vmem:[#allocation41_spill] sm:$0xff]  ;;  %v6317_v11 = vpack.c.bf16 %v582_v47, %v570_v29 }
  0x69   :  { %6312 = vmatprep.subr.bf16.mxu1 %v6311_v10  ;;  %v14153_v10 = vand.u32 4294901760, %v8460_v8  ;;  %v13341_v52 = vand.u32 4294901760, %v14156_v18  ;;  %v13342_v48 = vand.u32 4294901760, %v8509_v6  ;;  %v14157_v23 = vld [vmem:[#allocation65_spill] sm:$0xff]  ;;  %v618_v9 = vand.u32 4294901760, %v617_v30 }
  0x6a   :  { %6438 = vmatpush1.bf16.msra.mxu0 %v14151_v15  ;;  %v594_v15 = vand.u32 4294901760, %v593_v38  ;;  %v606_v21 = vand.u32 4294901760, %v605_v58  ;;  %v13343_v14 = vand.u32 4294901760, %v14157_v23  ;;  %v624_v35 = vand.u32 4294901760, %v623_v43  ;;  %v14160_v38 = vld [vmem:[#allocation45_spill] sm:$0xff] }
  0x6b   :  { %v635_v63 = vsub.f32 %v8460_v8, %v14153_v10  ;;  %6440 = vmatprep.subr.bf16.mxu0 %v14155_v32  ;;  %v6319_v10 = vpack.c.bf16 %v600_v57, %v588_v50  ;;  %v612_v8 = vand.u32 4294901760, %v611_v5  ;;  %v630_v16 = vand.u32 4294901760, %v629_v59  ;;  %v14161_v5 = vld [vmem:[#allocation3_spill] sm:$0xff] }
  0x6c   :  { %6314 = vmatpush1.bf16.msra.mxu1 %v6313_v12  ;;  %v648_v32 = vand.u32 4294901760, %v647_v53  ;;  %v14159_v47 = vand.u32 4294901760, %v8483_v42  ;;  %v653_v58 = vsub.f32 %v14156_v18, %v13341_v52  ;;  %v14162_v50 = vand.u32 4294901760, %v14161_v5  ;;  %v14163_v12 = vld [vmem:[#allocation4_spill] sm:$0xff] }
  0x6d   :  { %6316 = vmatprep.subr.bf16.mxu1 %v6315_v13  ;;  %v636_v24 = vand.u32 4294901760, %v635_v63  ;;  %v14164_v43 = vand.u32 4294901760, %v14163_v12  ;;  %v6321_v59 = vpack.c.bf16 %v606_v21, %v594_v15  ;;  %v659_v63 = vsub.f32 %v8509_v6, %v13342_v48  ;;  %v14168_v15 = vld [vmem:[#allocation50_spill] sm:$0xff]  ;;  %v14170_v48 = vld [vmem:[#allocation8_spill] sm:$0xff] }
  0x6e   :  { %6442 = vmatpush1.bf16.msra.mxu0 %v14158_v54  ;;  %v641_v29 = vsub.f32 %v8483_v42, %v14159_v47  ;;  %v671_v53 = vsub.f32 %v14157_v23, %v13343_v14  ;;  %v14165_v47 = vld [vmem:[#allocation5_spill] sm:$0xff]  ;;  %v14167_v13 = vand.u32 4294901760, %v8089_v20  ;;  %v6323_v5 = vpack.c.bf16 %v624_v35, %v612_v8  ;;  %v14174_v8 = vld [vmem:[#allocation51_spill] sm:$0xff]  ;;  %v14249_v54 = vld [vmem:[#allocation64_spill] sm:$0xff] }
  0x6f   :  { %6444 = vmatprep.subr.bf16.mxu0 %v14160_v38  ;;  %v8837_v30 = vpack.c.bf16 %v14164_v43, %v14162_v50  ;;  %v14166_v52 = vand.u32 4294901760, %v14165_v47  ;;  %v13347_v50 = vand.u32 4294901760, %v8548_v4  ;;  %v13346_v21 = vand.u32 4294901760, %v8552_v60 }
  0x70   :  { %6318 = vmatpush1.bf16.msra.mxu1 %v6317_v11  ;;  %v6325_v11 = vpack.c.bf16 %v630_v16, %v618_v9  ;;  %v6327_v12 = vpack.c.bf16 %v648_v32, %v636_v24  ;;  %v14169_v43 = vand.u32 4294901760, %v8093_v22  ;;  %v14171_v14 = vand.u32 4294901760, %v14170_v48 }
  0x71   :  { %v8849_v57 = vpack.c.bf16 %v14167_v13, %v14166_v52  ;;  %6320 = vmatprep.subr.bf16.mxu1 %v6319_v10  ;;  %v14172_v20 = vand.u32 4294901760, %v8116_v33  ;;  %v14173_v52 = vand.u32 4294901760, %v8125_v39  ;;  %v642_v35 = vand.u32 4294901760, %v641_v29 }
  0x72   :  { %6446 = vmatpush1.bf16.msra.mxu0 %v14168_v15  ;;  %v8858_v38 = vpack.c.bf16 %v14171_v14, %v14169_v43  ;;  %v654_v13 = vand.u32 4294901760, %v653_v58  ;;  %v14175_v47 = vand.u32 4294901760, %v8537_v1  ;;  %v14176_v22 = vand.u32 4294901760, %v8539_v34 }
  0x73   :  { %v8864_v10 = vpack.c.bf16 %v14173_v52, %v14172_v20  ;;  %6448 = vmatprep.subr.bf16.mxu0 %v14174_v8  ;;  %v660_v14 = vand.u32 4294901760, %v659_v63  ;;  %v672_v16 = vand.u32 4294901760, %v671_v53  ;;  %v13345_v33 = vand.u32 4294901760, %v8588_v56  ;;  %v14182_v20 = vld [vmem:[#allocation59_spill] sm:$0xff] }
  0x74   :  { %v665_v24 = vsub.f32 %v8537_v1, %v14175_v47  ;;  %v677_v9 = vsub.f32 %v8539_v34, %v14176_v22  ;;  %6322 = vmatpush1.bf16.msra.mxu1 %v6321_v59  ;;  %v13344_v39 = vand.u32 4294901760, %v8590_v0  ;;  %v683_v32 = vsub.f32 %v8548_v4, %v13347_v50 }
  0x75   :  { %6324 = vmatprep.subr.bf16.mxu1 %v6323_v5  ;;  %v695_v48 = vsub.f32 %v8552_v60, %v13346_v21  ;;  %v14177_v29 = vand.u32 4294901760, %v8127_v40  ;;  %v14178_v58 = vand.u32 4294901760, %v8137_v45  ;;  %v14179_v63 = vand.u32 4294901760, %v8139_v46  ;;  %v14181_v5 = vld [vmem:[#allocation56_spill] sm:$0xff]  ;;  %v14206_v21 = vld [vmem:[#allocation22_spill] sm:$0xff] }
  0x76   :  { %v14180_v53 = vand.u32 4294901760, %v8149_v51  ;;  %6450 = vmatpush1.bf16.msra.mxu0 %v14181_v5  ;;  %v6329_v52 = vpack.c.bf16 %v654_v13, %v642_v35  ;;  %v666_v47 = vand.u32 4294901760, %v665_v24  ;;  %v678_v22 = vand.u32 4294901760, %v677_v9 }
  0x77   :  { %v8885_v59 = vpack.c.bf16 %v14178_v58, %v14177_v29  ;;  %6452 = vmatprep.subr.bf16.mxu0 %v14182_v20  ;;  %v689_v40 = vsub.f32 %v8588_v56, %v13345_v33  ;;  %v701_v45 = vsub.f32 %v8590_v0, %v13344_v39  ;;  %v14183_v46 = vand.u32 4294901760, %v8157_v55  ;;  %v8917_v55 = vld [vmem:[%s13163_s1 + $0x18] sm:$0xff] }
  0x78   :  { %v8891_v43 = vpack.c.bf16 %v14180_v53, %v14179_v63  ;;  %6326 = vmatpush1.bf16.msra.mxu1 %v6325_v11  ;;  %v14184_v51 = vand.u32 4294901760, %v8169_v62  ;;  %v6331_v58 = vpack.c.bf16 %v672_v16, %v660_v14  ;;  %v684_v35 = vand.u32 4294901760, %v683_v32  ;;  %v14187_v63 = vld [vmem:[#allocation60_spill] sm:$0xff]  ;;  %v8922_v62 = vld [vmem:[%s13163_s1 + $0x38] sm:$0xff] }
  0x79   :  { %6328 = vmatprep.subr.bf16.mxu1 %v6327_v12  ;;  %v696_v13 = vand.u32 4294901760, %v695_v48  ;;  %v14185_v11 = vand.u32 4294901760, %v8176_v2  ;;  %v14186_v24 = vand.u32 4294901760, %v8178_v3  ;;  %v14188_v12 = vld [vmem:[#allocation62_spill] sm:$0xff]  ;;  %v14189_v2 = vand.u32 4294901760, %v8186_v7  ;;  %v9008_v33 = vld [vmem:[%s13163_s1 + $0xb8] sm:$0xff] }
  0x7a   :  { %v8905_v29 = vpack.c.bf16 %v14184_v51, %v14183_v46  ;;  %6454 = vmatpush1.bf16.msra.mxu0 %v14187_v63  ;;  %v14190_v3 = vand.u32 4294901760, %v8197_v17  ;;  %v6333_v16 = vpack.c.bf16 %v678_v22, %v666_v47  ;;  %v690_v32 = vand.u32 4294901760, %v689_v40  ;;  %v8942_v17 = vld [vmem:[%s13163_s1 + $0x10] sm:$0xff]  ;;  %v8958_v47 = vld [vmem:[%s13163_s1 + $0x78] sm:$0xff] }
  0x7b   :  { %v8911_v9 = vpack.c.bf16 %v14186_v24, %v14185_v11  ;;  %6456 = vmatprep.subr.bf16.mxu0 %v14188_v12  ;;  %v702_v48 = vand.u32 4294901760, %v701_v45  ;;  %v14191_v53 = vand.u32 4294901760, %v8204_v25  ;;  %v14192_v46 = vand.u32 4294901760, %v8206_v27  ;;  %v14193_v25 = vld [vmem:[#allocation63_spill] sm:$0xff]  ;;  %v8953_v27 = vld [vmem:[%s13163_s1 + $0x58] sm:$0xff] }
  0x7c   :  { %v8929_v14 = vpack.c.bf16 %v14190_v3, %v14189_v2  ;;  %6330 = vmatpush1.bf16.msra.mxu1 %v6329_v52  ;;  %v6335_v11 = vpack.c.bf16 %v696_v13, %v684_v35  ;;  %v13349_v24 = vand.u32 4294901760, %v8917_v55  ;;  %v13348_v7 = vand.u32 4294901760, %v8922_v62  ;;  %v8947_v52 = vld [vmem:[%s13163_s1 + $0x30] sm:$0xff]  ;;  %v14197_v35 = vld [vmem:[#allocation17_spill] sm:$0xff]  ;;  %v14199_v3 = vld [vmem:[#allocation67_spill] sm:$0xff] }
  0x7d   :  { %v8935_v51 = vpack.c.bf16 %v14192_v46, %v14191_v53  ;;  %6332 = vmatprep.subr.bf16.mxu1 %v6331_v58  ;;  %v14194_v22 = vand.u32 4294901760, %v8213_v31  ;;  %v14195_v40 = vand.u32 4294901760, %v8224_v41  ;;  %v14196_v58 = vand.u32 4294901760, %v8234_v49  ;;  %v14210_v41 = vld [vmem:[#allocation74_spill] sm:$0xff]  ;;  %v14231_v12 = vld [vmem:[#allocation35_spill] sm:$0xff] }
  0x7e   :  { %6458 = vmatpush1.bf16.msra.mxu0 %v14193_v25  ;;  %v14198_v13 = vand.u32 4294901760, %v14197_v35  ;;  %v6337_v53 = vpack.c.bf16 %v702_v48, %v690_v32  ;;  %v13351_v46 = vand.u32 4294901760, %v8942_v17  ;;  %v13350_v39 = vand.u32 4294901760, %v8947_v52  ;;  %v8991_v32 = vld [vmem:[%s13163_s1 + $0x70] sm:$0xff]  ;;  %v8996_v48 = vld [vmem:[%s13163_s1 + $0x98] sm:$0xff] }
  0x7f   :  { %v8964_v45 = vpack.c.bf16 %v14195_v40, %v14194_v22  ;;  %6460 = vmatprep.subr.bf16.mxu0 %v14199_v3  ;;  %v8979_v31 = vpack.c.bf16 %v13348_v7, %v13349_v24  ;;  %v14203_v40 = vld [vmem:[#allocation19_spill] sm:$0xff]  ;;  %v14207_v50 = vand.u32 4294901760, %v14206_v21  ;;  %v14213_v21 = vand.u32 4294901760, %v8958_v47  ;;  %v9060_v25 = vld [vmem:[%s13163_s1 + $0xd8] sm:$0xff] }
  0x80   :  { %v8970_v2 = vpack.c.bf16 %v14198_v13, %v14196_v58  ;;  %6334 = vmatpush1.bf16.msra.mxu1 %v6333_v16  ;;  %v8986_v16 = vld [vmem:[%s13163_s1 + $0x50] sm:$0xff]  ;;  %v14204_v58 = vand.u32 4294901760, %v14203_v40  ;;  %v14205_v13 = vld [vmem:[#allocation69_spill] sm:$0xff]  ;;  %v14208_v7 = vld [vmem:[#allocation23_spill] sm:$0xff]  ;;  %v14232_v63 = vand.u32 4294901760, %v14231_v12  ;;  %v14234_v8 = vand.u32 4294901760, %v8991_v32 }
  0x81   :  { %6336 = vmatprep.subr.bf16.mxu1 %v6335_v11  ;;  %14200 = vst [vmem:[#allocation39_spill] sm:$0xff] %v8979_v31  ;;  %v14201_v11 = vld [vmem:[#allocation18_spill] sm:$0xff]  ;;  %v14209_v24 = vand.u32 4294901760, %v14208_v7  ;;  %v14217_v40 = vld [vmem:[#allocation25_spill] sm:$0xff]  ;;  %v14223_v3 = vld [vmem:[#allocation75_spill] sm:$0xff]  ;;  %v14233_v5 = vand.u32 4294901760, %v8986_v16 }
  0x82   :  { %v14202_v22 = vand.u32 4294901760, %v14201_v11  ;;  %6462 = vmatpush1.bf16.msra.mxu0 %v14205_v13  ;;  %v9021_v11 = vpack.c.bf16 %v13350_v39, %v13351_v46  ;;  %v9042_v39 = vld [vmem:[%s13163_s1 + $0xb0] sm:$0xff]  ;;  %v14237_v12 = vand.u32 4294901760, %v8996_v48 }
  0x83   :  { %v9014_v49 = vpack.c.bf16 %v14209_v24, %v14207_v50  ;;  %6464 = vmatprep.subr.bf16.mxu0 %v14210_v41  ;;  %v14212_v50 = vand.u32 4294901760, %v8953_v27  ;;  %v14215_v46 = vld [vmem:[#allocation24_spill] sm:$0xff]  ;;  %v14221_v41 = vld [vmem:[#allocation29_spill] sm:$0xff]  ;;  %v9086_v15 = vpack.c.bf16 %v14234_v8, %v14233_v5 }
  0x84   :  { %v9002_v35 = vpack.c.bf16 %v14204_v58, %v14202_v22  ;;  %6338 = vmatpush1.bf16.msra.mxu1 %v6337_v53  ;;  %14211 = vst [vmem:[#allocation40_spill] sm:$0xff] %v9021_v11  ;;  %v9037_v53 = vld [vmem:[%s13163_s1 + $0x90] sm:$0xff]  ;;  %v14216_v58 = vand.u32 4294901760, %v14215_v46  ;;  %v14218_v22 = vand.u32 4294901760, %v14217_v40  ;;  %v14222_v7 = vand.u32 4294901760, %v14221_v41  ;;  %v9065_v46 = vld [vmem:[%s13163_s1 + $0xf8] sm:$0xff] }
  0x85   :  { %6596 = vmatprep.subr.bf16.mxu1 %v8979_v31  ;;  %v9031_v24 = vpack.c.bf16 %v14213_v21, %v14212_v50  ;;  %v14219_v50 = vld [vmem:[#allocation28_spill] sm:$0xff]  ;;  %v14225_v40 = vld [vmem:[#allocation30_spill] sm:$0xff]  ;;  %14235 = vst [vmem:[#allocation43_spill] sm:$0xff] %v9086_v15 }
  0x86   :  { %v9048_v31 = vpack.c.bf16 %v14218_v22, %v14216_v58  ;;  %v14220_v21 = vand.u32 4294901760, %v14219_v50  ;;  %6466 = vmatpush1.bf16.msra.mxu0 %v14223_v3  ;;  %v14224_v22 = vld [vmem:[#allocation66_spill] sm:$0xff]  ;;  %v14226_v41 = vand.u32 4294901760, %v14225_v40  ;;  %v14227_v58 = vld [vmem:[#allocation31_spill] sm:$0xff]  ;;  %v9103_v8 = vld [vmem:[%s13163_s1 + $0xd0] sm:$0xff] }
  0x87   :  { %14214 = vst [vmem:[#allocation42_spill] sm:$0xff] %v9031_v24  ;;  %707 = vmatmul.mubr.f32.vlgmr.msra.gmra.mrb[0].mxu1 %v14224_v22  ;;  %6468 = vmatprep.subr.bf16.mxu0 %v8837_v30  ;;  %v9108_v5 = vld [vmem:[%s13163_s1 + $0xf0] sm:$0xff] }
  0x88   :  { %v9054_v13 = vpack.c.bf16 %v14222_v7, %v14220_v21  ;;  %v14228_v7 = vand.u32 4294901760, %v14227_v58  ;;  %v14229_v21 = vld [vmem:[#allocation34_spill] sm:$0xff]  ;;  %6598 = vmatpush1.bf16.msra.mxu1 %v9021_v11  ;;  %v14242_v58 = vld [vmem:[#allocation37_spill] sm:$0xff] }
  0x89   :  { %v14230_v3 = vand.u32 4294901760, %v14229_v21  ;;  %6600 = vmatprep.subr.bf16.mxu1 %v9031_v24  ;;  %v9114_v21 = vld [vmem:[%s13163_s1 + $0x118] sm:$0xff]  ;;  %v14243_v40 = vand.u32 4294901760, %v14242_v58  ;;  %v14247_v24 = vand.u32 4294901760, %v14125_v26  ;;  %v14251_v58 = vand.u32 4294901760, %v9042_v39  ;;  %v9148_v26 = vld [vmem:[%s13163_s1 + $0x110] sm:$0xff] }
  0x8a   :  { %v9073_v50 = vpack.c.bf16 %v14228_v7, %v14226_v41  ;;  %v14236_v41 = vld [vmem:[#allocation72_spill] sm:$0xff] }
  0x8b   :  { %v9079_v20 = vpack.c.bf16 %v14232_v63, %v14230_v3  ;;  %1051 = vmatmul.mubr.f32.vlgmr.msra.gmra.mrb[0].mxu0 %v14236_v41  ;;  %v14238_v63 = vand.u32 4294901760, %v9008_v33  ;;  %v14245_v41 = vld [vmem:[#allocation73_spill] sm:$0xff] }
  0x8c   :  { %6470 = vmatpush1.bf16.msra.mxu0 %v8849_v57  ;;  %1592 = vmatprep.mubr.f32.mxu1 %v14245_v41  ;;  %v14246_v57 = vand.u32 4294901760, %v14123_v36  ;;  %v9153_v36 = vld [vmem:[%s13163_s1 + $0x130] sm:$0xff]  ;;  %v14257_v41 = vand.u32 4294901760, %v14127_v61 }
  0x8d   :  { %v9096_v3 = vpack.c.bf16 %v14238_v63, %v14237_v12  ;;  %v9119_v12 = vld [vmem:[%s13163_s1 + $0x138] sm:$0xff]  ;;  %v14240_v63 = vld [vmem:[#allocation36_spill] sm:$0xff]  ;;  %6472 = vmatprep.subr.bf16.mxu0 %v8858_v38  ;;  %1314 = vmatprep.mubr.f32.mxu0 %v14249_v54  ;;  %v14256_v38 = vand.u32 4294901760, %v14126_v28  ;;  %v14260_v28 = vand.u32 4294901760, %v8420_v37  ;;  %v14265_v37 = vld [vmem:[#allocation46_spill] sm:$0xff] }
  0x8e   :  { %v14241_v7 = vand.u32 4294901760, %v14240_v63  ;;  %v9133_v11 = vpack.c.bf16 %v14247_v24, %v14246_v57  ;;  %6602 = vmatpush1.bf16.msra.mxu1 %v9086_v15  ;;  %v14250_v63 = vand.u32 4294901760, %v9037_v53  ;;  %v14253_v24 = vand.u32 4294901760, %v9060_v25 }
  0x8f   :  { %14239 = vst [vmem:[#allocation47_spill] sm:$0xff] %v9096_v3  ;;  %6604 = vmatprep.subr.bf16.mxu1 %v9096_v3  ;;  %v9168_v15 = vpack.c.bf16 %v14257_v41, %v14256_v38  ;;  %v9174_v3 = vld [vmem:[%s13163_s1 + $0x158] sm:$0xff]  ;;  %v14262_v41 = vand.u32 4294901760, %v9103_v8  ;;  %v14263_v38 = vand.u32 4294901760, %v9108_v5 }
  0x90   :  { %v9125_v30 = vpack.c.bf16 %v14243_v40, %v14241_v7  ;;  %14248 = vst [vmem:[#allocation65_spill] sm:$0xff] %v9133_v11  ;;  %v9141_v40 = vpack.c.bf16 %v14251_v58, %v14250_v63  ;;  %v14254_v7 = vand.u32 4294901760, %v9065_v46  ;;  %6474 = vmatpush1.bf16.msra.mxu0 %v8864_v10  ;;  %v14269_v10 = vld [vmem:[#allocation48_spill] sm:$0xff] }
  0x91   :  { %14258 = vst [vmem:[#allocation5_spill] sm:$0xff] %v9168_v15  ;;  %6476 = vmatprep.subr.bf16.mxu0 %v8885_v59  ;;  %v9195_v63 = vpack.c.bf16 %v14263_v38, %v14262_v41  ;;  %v14267_v59 = vand.u32 4294901760, %v14133_v19  ;;  %v14270_v61 = vand.u32 4294901760, %v14269_v10  ;;  %v14274_v41 = vand.u32 4294901760, %v9114_v21  ;;  %v9226_v10 = vld [vmem:[%s13163_s1 + $0x170] sm:$0xff]  ;;  %v14285_v15 = vld [vmem:[#allocation54_spill] sm:$0xff] }
  0x92   :  { %14244 = vst [vmem:[#allocation61_spill] sm:$0xff] %v9125_v30  ;;  %14252 = vst [vmem:[#allocation3_spill] sm:$0xff] %v9141_v40  ;;  %v9160_v57 = vpack.c.bf16 %v14254_v7, %v14253_v24  ;;  %v9179_v24 = vld [vmem:[%s13163_s1 + $0x178] sm:$0xff]  ;;  %v14259_v7 = vand.u32 4294901760, %v8410_v44  ;;  %6606 = vmatpush1.bf16.msra.mxu1 %v9141_v40  ;;  %v9200_v44 = vld [vmem:[%s13163_s1 + $0x150] sm:$0xff]  ;;  %v14275_v38 = vand.u32 4294901760, %v9119_v12 }
  0x93   :  { %14264 = vst [vmem:[#allocation17_spill] sm:$0xff] %v9195_v63  ;;  %v14271_v40 = vld [vmem:[#allocation49_spill] sm:$0xff]  ;;  %v14286_v11 = vand.u32 4294901760, %v14285_v15  ;;  %v14293_v15 = vand.u32 4294901760, %v9179_v24 }
  0x94   :  { %14255 = vst [vmem:[#allocation4_spill] sm:$0xff] %v9160_v57  ;;  %v9185_v58 = vpack.c.bf16 %v14260_v28, %v14259_v7  ;;  %v14266_v7 = vand.u32 4294901760, %v14265_v37  ;;  %v14272_v22 = vand.u32 4294901760, %v14271_v40  ;;  %6608 = vmatprep.subr.bf16.mxu1 %v9160_v57  ;;  %v9236_v40 = vld [vmem:[%s13163_s1 + $0x1b8] sm:$0xff]  ;;  %6478 = vmatpush1.bf16.msra.mxu0 %v8891_v43 }
  0x95   :  { %6480 = vmatprep.subr.bf16.mxu0 %v8905_v29  ;;  %v14282_v37 = vld [vmem:[#allocation53_spill] sm:$0xff] }
  0x96   :  { %14261 = vst [vmem:[#allocation8_spill] sm:$0xff] %v9185_v58  ;;  %v9206_v28 = vpack.c.bf16 %v14267_v59, %v14266_v7  ;;  %v9212_v54 = vpack.c.bf16 %v14272_v22, %v14270_v61  ;;  %v9219_v58 = vpack.c.bf16 %v14275_v38, %v14274_v41  ;;  %v9231_v22 = vld [vmem:[%s13163_s1 + $0x198] sm:$0xff]  ;;  %v14277_v61 = vand.u32 4294901760, %v9148_v26  ;;  %v14280_v38 = vld [vmem:[#allocation52_spill] sm:$0xff]  ;;  %6610 = vmatpush1.bf16.msra.mxu1 %v9195_v63 }
  0x97   :  { %v14278_v7 = vand.u32 4294901760, %v9153_v36  ;;  %v14281_v19 = vand.u32 4294901760, %v14280_v38  ;;  %v14283_v57 = vand.u32 4294901760, %v14282_v37  ;;  %v14290_v38 = vand.u32 4294901760, %v8917_v55 }
  0x98   :  { %14268 = vst [vmem:[#allocation18_spill] sm:$0xff] %v9206_v28  ;;  %14273 = vst [vmem:[#allocation19_spill] sm:$0xff] %v9212_v54  ;;  %6612 = vmatprep.subr.bf16.mxu1 %v9219_v58  ;;  %v14292_v28 = vand.u32 4294901760, %v9174_v3  ;;  %6482 = vmatpush1.bf16.msra.mxu0 %v8911_v9  ;;  %v14302_v9 = vld [vmem:[#allocation57_spill] sm:$0xff]  ;;  %v14307_v63 = vand.u32 4294901760, %v8483_v42 }
  0x99   :  { %14276 = vst [vmem:[#allocation22_spill] sm:$0xff] %v9219_v58  ;;  %v9244_v59 = vpack.c.bf16 %v14278_v7, %v14277_v61  ;;  %v9251_v54 = vpack.c.bf16 %v14283_v57, %v14281_v19  ;;  %v14287_v61 = vld [vmem:[#allocation55_spill] sm:$0xff]  ;;  %v9266_v37 = vsub.f32 %v8917_v55, %v14290_v38  ;;  %v14291_v57 = vand.u32 4294901760, %v8922_v62  ;;  %v9288_v55 = vld [vmem:[%s13163_s1 + $0x1b0] sm:$0xff]  ;;  %6484 = vmatprep.subr.bf16.mxu0 %v8929_v14 }
  0x9a   :  { %v14288_v7 = vand.u32 4294901760, %v14287_v61  ;;  %v9278_v29 = vpack.c.bf16 %v14293_v15, %v14292_v28  ;;  %v14297_v38 = vand.u32 4294901760, %v8953_v27  ;;  %v14298_v15 = vand.u32 4294901760, %v8958_v47 }
  0x9b   :  { %14279 = vst [vmem:[#allocation23_spill] sm:$0xff] %v9244_v59  ;;  %14284 = vst [vmem:[#allocation24_spill] sm:$0xff] %v9251_v54  ;;  %v9271_v19 = vsub.f32 %v8922_v62, %v14291_v57  ;;  %v14295_v62 = vand.u32 4294901760, %v8942_v17  ;;  %6614 = vmatpush1.bf16.msra.mxu1 %v9244_v59  ;;  %v14313_v14 = vand.u32 4294901760, %v9231_v22  ;;  %v14321_v59 = vand.u32 4294901760, %v8996_v48 }
  0x9c   :  { %v9261_v30 = vpack.c.bf16 %v14288_v7, %v14286_v11  ;;  %14294 = vst [vmem:[#allocation28_spill] sm:$0xff] %v9278_v29  ;;  %v9283_v11 = vld [vmem:[%s13163_s1 + $0x190] sm:$0xff]  ;;  %v14296_v7 = vand.u32 4294901760, %v8947_v52  ;;  %v9303_v57 = vsub.f32 %v8953_v27, %v14297_v38  ;;  %v9308_v43 = vsub.f32 %v8958_v47, %v14298_v15  ;;  %v14304_v15 = vld [vmem:[#allocation58_spill] sm:$0xff]  ;;  %6616 = vmatprep.subr.bf16.mxu1 %v9278_v29 }
  0x9d   :  { %v9293_v61 = vsub.f32 %v8942_v17, %v14295_v62  ;;  %v9314_v17 = vld [vmem:[%s13163_s1 + $0x1d8] sm:$0xff]  ;;  %v14299_v27 = vand.u32 4294901760, %v8986_v16  ;;  %v14300_v47 = vand.u32 4294901760, %v8991_v32  ;;  %v14303_v38 = vand.u32 4294901760, %v14302_v9  ;;  %v83_v9 = vld [vmem:[%s13163_s1 + $0x1d0] sm:$0xff]  ;;  %6486 = vmatpush1.bf16.msra.mxu0 %v8935_v51 }
  0x9e   :  { %14289 = vst [vmem:[#allocation25_spill] sm:$0xff] %v9261_v30  ;;  %v9298_v28 = vsub.f32 %v8947_v52, %v14296_v7  ;;  %v9319_v52 = vld [vmem:[%s13163_s1 + $0x1f8] sm:$0xff]  ;;  %v14305_v41 = vand.u32 4294901760, %v14304_v15  ;;  %v14308_v30 = vand.u32 4294901760, %v14156_v18  ;;  %v1509_v42 = vand.u32 4294901760, %v9283_v11  ;;  %6488 = vmatprep.subr.bf16.mxu0 %v8964_v45  ;;  %v91_v45 = vld [vmem:[%s13163_s1 + $0x210] sm:$0xff] }
  0x9f   :  { %v9324_v62 = vsub.f32 %v8986_v16, %v14299_v27  ;;  %v9329_v7 = vsub.f32 %v8991_v32, %v14300_v47  ;;  %v14310_v16 = vand.u32 4294901760, %v9200_v44  ;;  %v14311_v32 = vand.u32 4294901760, %v9226_v10 }
  0xa0   :  { %v9336_v58 = vpack.c.bf16 %v14305_v41, %v14303_v38  ;;  %v9342_v54 = vpack.c.bf16 %v14308_v30, %v14307_v63  ;;  %v14314_v47 = vand.u32 4294901760, %v9236_v40  ;;  %v1513_v18 = vand.u32 4294901760, %v9288_v55  ;;  %v87_v38 = vld [vmem:[%s13163_s1 + $0x1f0] sm:$0xff] }
  0xa1   :  { %14301 = vst [vmem:[#allocation29_spill] sm:$0xff] %v9329_v7  ;;  %v9349_v27 = vpack.c.bf16 %v14311_v32, %v14310_v16  ;;  %v1515_v30 = vand.u32 4294901760, %v9314_v17  ;;  %v1519_v63 = vand.u32 4294901760, %v9319_v52  ;;  %v14316_v15 = vand.u32 4294901760, %v8509_v6  ;;  %6490 = vmatpush1.bf16.msra.mxu0 %v8970_v2 }
  0xa2   :  { %14306 = vst [vmem:[#allocation30_spill] sm:$0xff] %v9336_v58  ;;  %14309 = vst [vmem:[#allocation31_spill] sm:$0xff] %v9342_v54  ;;  %v9355_v41 = vpack.c.bf16 %v14314_v47, %v14313_v14  ;;  %v14317_v16 = vand.u32 4294901760, %v14157_v23  ;;  %v14318_v14 = vand.u32 4294901760, %v8537_v1  ;;  %v14319_v47 = vand.u32 4294901760, %v8539_v34  ;;  %6492 = vmatprep.subr.bf16.mxu0 %v9002_v35 }
  0xa3   :  { %14312 = vst [vmem:[#allocation34_spill] sm:$0xff] %v9349_v27  ;;  %v9383_v54 = vsub.f32 %v8996_v48, %v14321_v59  ;;  %v14322_v58 = vand.u32 4294901760, %v9008_v33  ;;  %v14323_v6 = vand.u32 4294901760, %v9037_v53  ;;  %v14324_v1 = vand.u32 4294901760, %v9042_v39  ;;  %v92_v48 = vld [vmem:[%s13163_s1 + $0x218] sm:$0xff]  ;;  %6618 = vmatpush1.bf16.msra.mxu1 %v9349_v27 }
  0xa4   :  { %14315 = vst [vmem:[#allocation35_spill] sm:$0xff] %v9355_v41  ;;  %v9372_v32 = vpack.c.bf16 %v14317_v16, %v14316_v15  ;;  %v9378_v29 = vpack.c.bf16 %v14319_v47, %v14318_v14  ;;  %v14326_v59 = vand.u32 4294901760, %v9065_v46  ;;  %v14327_v51 = vand.u32 4294901760, %v9103_v8  ;;  %6620 = vmatprep.subr.bf16.mxu1 %v9355_v41 }
  0xa5   :  { %v9388_v7 = vsub.f32 %v9008_v33, %v14322_v58  ;;  %v9393_v23 = vsub.f32 %v9037_v53, %v14323_v6  ;;  %v9398_v34 = vsub.f32 %v9042_v39, %v14324_v1  ;;  %v9407_v33 = vld [vmem:[%s13163_s1 + $0x238] sm:$0xff]  ;;  %v14325_v58 = vand.u32 4294901760, %v9060_v25  ;;  %6494 = vmatpush1.bf16.msra.mxu0 %v9014_v49  ;;  %v111_v49 = vld [vmem:[%s13163_s1 + $0x2b0] sm:$0xff] }
  0xa6   :  { %14320 = vst [vmem:[#allocation36_spill] sm:$0xff] %v9378_v29  ;;  %v9417_v39 = vsub.f32 %v9065_v46, %v14326_v59  ;;  %v9422_v15 = vsub.f32 %v9103_v8, %v14327_v51  ;;  %v14328_v16 = vand.u32 4294901760, %v9108_v5  ;;  %v1517_v47 = vand.u32 4294901760, %v83_v9  ;;  %v95_v51 = vld [vmem:[%s13163_s1 + $0x230] sm:$0xff]  ;;  %6496 = vmatprep.subr.bf16.mxu0 %v9048_v31 }
  0xa7   :  { %v9412_v53 = vsub.f32 %v9060_v25, %v14325_v58  ;;  %v9431_v25 = vpack.c.bf16 %v1513_v18, %v1509_v42  ;;  %v1521_v6 = vand.u32 4294901760, %v87_v38  ;;  %v14330_v46 = vand.u32 4294901760, %v8548_v4 }
  0xa8   :  { %v9427_v14 = vsub.f32 %v9108_v5, %v14328_v16  ;;  %v14331_v1 = vand.u32 4294901760, %v8552_v60  ;;  %v9440_v8 = vpack.c.bf16 %v1519_v63, %v1515_v30  ;;  %v1523_v5 = vand.u32 4294901760, %v92_v48 }
  0xa9   :  { %14329 = vst [vmem:[#allocation37_spill] sm:$0xff] %v9431_v25  ;;  %v1527_v59 = vand.u32 4294901760, %v9407_v33  ;;  %v14334_v4 = vand.u32 4294901760, %v8588_v56  ;;  %v14335_v60 = vand.u32 4294901760, %v8590_v0  ;;  %v14338_v41 = vand.u32 4294901760, %v9119_v12  ;;  %6622 = vmatpush1.bf16.msra.mxu1 %v9431_v25  ;;  %v108_v25 = vld [vmem:[%s13163_s1 + $0x298] sm:$0xff]  ;;  %6498 = vmatpush1.bf16.msra.mxu0 %v9054_v13 }
  0xaa   :  { %v9437_v58 = vpack.c.bf16 %v14331_v1, %v14330_v46  ;;  %14333 = vst [vmem:[#allocation46_spill] sm:$0xff] %v9440_v8  ;;  %v14337_v46 = vand.u32 4294901760, %v9114_v21  ;;  %v14341_v56 = vand.u32 4294901760, %v9153_v36  ;;  %v14347_v2 = vand.u32 4294901760, %v9200_v44  ;;  %6624 = vmatprep.subr.bf16.mxu1 %v9440_v8  ;;  %6500 = vmatprep.subr.bf16.mxu0 %v9073_v50  ;;  %v123_v50 = vld [vmem:[%s13163_s1 + $0x310] sm:$0xff] }
  0xab   :  { %v9453_v16 = vpack.c.bf16 %v14335_v60, %v14334_v4  ;;  %v9463_v27 = vsub.f32 %v9119_v12, %v14338_v41  ;;  %v104_v12 = vld [vmem:[%s13163_s1 + $0x278] sm:$0xff]  ;;  %v14343_v41 = vand.u32 4294901760, %v9174_v3  ;;  %v14349_v60 = vand.u32 4294901760, %v9226_v10 }
  0xac   :  { %14332 = vst [vmem:[#allocation73_spill] sm:$0xff] %v9437_v58  ;;  %v9458_v1 = vsub.f32 %v9114_v21, %v14337_v46  ;;  %v14339_v58 = vand.u32 4294901760, %v9148_v26  ;;  %v9473_v0 = vsub.f32 %v9153_v36, %v14341_v56  ;;  %v100_v21 = vld [vmem:[%s13163_s1 + $0x258] sm:$0xff]  ;;  %v9495_v4 = vsub.f32 %v9200_v44, %v14347_v2  ;;  %v99_v44 = vld [vmem:[%s13163_s1 + $0x250] sm:$0xff] }
  0xad   :  { %14336 = vst [vmem:[#allocation48_spill] sm:$0xff] %v9453_v16  ;;  %v9500_v46 = vsub.f32 %v9226_v10, %v14349_v60  ;;  %v103_v10 = vld [vmem:[%s13163_s1 + $0x270] sm:$0xff]  ;;  %v14354_v35 = vand.u32 4294901760, %v9236_v40  ;;  %v1531_v60 = vand.u32 4294901760, %v100_v21  ;;  %v112_v16 = vld [vmem:[%s13163_s1 + $0x2b8] sm:$0xff]  ;;  %v9542_v8 = vsub.f32 %v9319_v52, %v1519_v63  ;;  %6502 = vmatpush1.bf16.msra.mxu0 %v9079_v20 }
  0xae   :  { %v9468_v29 = vsub.f32 %v9148_v26, %v14339_v58  ;;  %14342 = vst [vmem:[#allocation52_spill] sm:$0xff] %v9473_v0  ;;  %v9485_v26 = vsub.f32 %v9174_v3, %v14343_v41  ;;  %v14345_v58 = vand.u32 4294901760, %v9179_v24  ;;  %14348 = vst [vmem:[#allocation55_spill] sm:$0xff] %v9495_v4  ;;  %v14351_v3 = vand.u32 4294901760, %v9231_v22  ;;  %v120_v52 = vld [vmem:[%s13163_s1 + $0x2f8] sm:$0xff] }
  0xaf   :  { %14350 = vst [vmem:[#allocation57_spill] sm:$0xff] %v9500_v46  ;;  %v1525_v41 = vand.u32 4294901760, %v91_v45  ;;  %v9520_v2 = vsub.f32 %v9236_v40, %v14354_v35  ;;  %v9535_v40 = vsub.f32 %v9288_v55, %v1513_v18  ;;  %v9539_v35 = vsub.f32 %v9314_v17, %v1515_v30  ;;  %14360 = vst [vmem:[#allocation83_spill] sm:$0xff] %v9542_v8  ;;  %v116_v17 = vld [vmem:[%s13163_s1 + $0x2d8] sm:$0xff] }
  0xb0   :  { %14340 = vst [vmem:[#allocation49_spill] sm:$0xff] %v9468_v29  ;;  %14344 = vst [vmem:[#allocation53_spill] sm:$0xff] %v9485_v26  ;;  %v9490_v36 = vsub.f32 %v9179_v24, %v14345_v58  ;;  %v9506_v56 = vsub.f32 %v9231_v22, %v14351_v3  ;;  %v9509_v24 = vpack.c.bf16 %v1521_v6, %v1517_v47  ;;  %v1529_v58 = vand.u32 4294901760, %v95_v51 }
  0xb1   :  { %14355 = vst [vmem:[#allocation78_spill] sm:$0xff] %v9520_v2  ;;  %v9523_v22 = vpack.c.bf16 %v1527_v59, %v1523_v5  ;;  %v1535_v3 = vand.u32 4294901760, %v104_v12  ;;  %14358 = vst [vmem:[#allocation81_spill] sm:$0xff] %v9535_v40  ;;  %v107_v2 = vld [vmem:[%s13163_s1 + $0x290] sm:$0xff]  ;;  %v9547_v46 = vsub.f32 %v83_v9, %v1517_v47  ;;  %v9549_v4 = vsub.f32 %v87_v38, %v1521_v6 }
  0xb2   :  { %14346 = vst [vmem:[#allocation54_spill] sm:$0xff] %v9490_v36  ;;  %14352 = vst [vmem:[#allocation58_spill] sm:$0xff] %v9506_v56  ;;  %v9532_v56 = vsub.f32 %v9283_v11, %v1509_v42  ;;  %v1533_v11 = vand.u32 4294901760, %v99_v44  ;;  %v1537_v55 = vand.u32 4294901760, %v103_v10  ;;  %6626 = vmatpush1.bf16.msra.mxu1 %v9509_v24  ;;  %v9562_v42 = vsub.f32 %v92_v48, %v1523_v5  ;;  %v115_v48 = vld [vmem:[%s13163_s1 + $0x2d0] sm:$0xff] }
  0xb3   :  { %14353 = vst [vmem:[#allocation77_spill] sm:$0xff] %v9509_v24  ;;  %14356 = vst [vmem:[#allocation79_spill] sm:$0xff] %v9523_v22  ;;  %v9564_v18 = vpack.c.bf16 %v1529_v58, %v1525_v41  ;;  %v1539_v31 = vand.u32 4294901760, %v108_v25  ;;  %v1543_v30 = vand.u32 4294901760, %v112_v16  ;;  %6628 = vmatprep.subr.bf16.mxu1 %v9523_v22  ;;  %v9568_v63 = vsub.f32 %v9407_v33, %v1527_v59  ;;  %v119_v6 = vld [vmem:[%s13163_s1 + $0x2f0] sm:$0xff] }
  0xb4   :  { %14357 = vst [vmem:[#allocation80_spill] sm:$0xff] %v9532_v56  ;;  %14359 = vst [vmem:[#allocation82_spill] sm:$0xff] %v9539_v35  ;;  %v9570_v9 = vsub.f32 %v91_v45, %v1525_v41  ;;  %v9572_v38 = vsub.f32 %v95_v51, %v1529_v58  ;;  %v9574_v47 = vpack.c.bf16 %v1535_v3, %v1531_v60  ;;  %v1541_v5 = vand.u32 4294901760, %v107_v2  ;;  %v124_v45 = vld [vmem:[%s13163_s1 + $0x318] sm:$0xff] }
  0xb5   :  { %14361 = vst [vmem:[#allocation84_spill] sm:$0xff] %v9547_v46  ;;  %14362 = vst [vmem:[#allocation85_spill] sm:$0xff] %v9549_v4  ;;  %v1545_v22 = vand.u32 4294901760, %v111_v49  ;;  %v1547_v33 = vand.u32 4294901760, %v116_v17  ;;  %v1551_v59 = vand.u32 4294901760, %v120_v52  ;;  %v128_v51 = vld [vmem:[%s13163_s1 + $0x338] sm:$0xff]  ;;  %v9590_v41 = vsub.f32 %v100_v21, %v1531_v60 }
  0xb6   :  { %14363 = vst [vmem:[#allocation86_spill] sm:$0xff] %v9562_v42  ;;  %14364 = vst [vmem:[#allocation87_spill] sm:$0xff] %v9564_v18  ;;  %v9592_v58 = vsub.f32 %v104_v12, %v1535_v3  ;;  %v9594_v24 = vpack.c.bf16 %v1537_v55, %v1533_v11  ;;  %v9596_v13 = vsub.f32 %v99_v44, %v1533_v11  ;;  %6630 = vmatpush1.bf16.msra.mxu1 %v9564_v18  ;;  %v127_v21 = vld [vmem:[%s13163_s1 + $0x330] sm:$0xff]  ;;  %v132_v3 = vld [vmem:[%s13163_s1 + $0x358] sm:$0xff] }
  0xb7   :  { %14365 = vst [vmem:[#allocation88_spill] sm:$0xff] %v9568_v63  ;;  %14366 = vst [vmem:[#allocation89_spill] sm:$0xff] %v9570_v9  ;;  %v9601_v9 = vpack.c.bf16 %v1543_v30, %v1539_v31  ;;  %v1549_v63 = vand.u32 4294901760, %v115_v48  ;;  %v1553_v42 = vand.u32 4294901760, %v119_v6  ;;  %6632 = vmatprep.subr.bf16.mxu1 %v9574_v47  ;;  %v9610_v12 = vsub.f32 %v108_v25, %v1539_v31  ;;  %v136_v11 = vld [vmem:[%s13163_s1 + $0x378] sm:$0xff]  ;;  %v131_v31 = vld [vmem:[%s13163_s1 + $0x350] sm:$0xff] }
  0xb8   :  { %14367 = vst [vmem:[#allocation90_spill] sm:$0xff] %v9572_v38  ;;  %14368 = vst [vmem:[#allocation91_spill] sm:$0xff] %v9574_v47  ;;  %v9599_v38 = vsub.f32 %v103_v10, %v1537_v55  ;;  %v9612_v44 = vsub.f32 %v112_v16, %v1543_v30  ;;  %v1555_v10 = vand.u32 4294901760, %v124_v45  ;;  %v1559_v60 = vand.u32 4294901760, %v128_v51  ;;  %v135_v30 = vld [vmem:[%s13163_s1 + $0x370] sm:$0xff]  ;;  %v14381_v47 = vld [vmem:[#allocation61_spill] sm:$0xff] }
  0xb9   :  { %14369 = vst [vmem:[#allocation92_spill] sm:$0xff] %v9590_v41  ;;  %14370 = vst [vmem:[#allocation93_spill] sm:$0xff] %v9592_v58  ;;  %v9621_v55 = vpack.c.bf16 %v1545_v22, %v1541_v5  ;;  %v9623_v18 = vsub.f32 %v107_v2, %v1541_v5  ;;  %v9625_v25 = vsub.f32 %v111_v49, %v1545_v22  ;;  %6504 = vmatprep.subr.bf16.mxu0 %v14381_v47  ;;  %v140_v22 = vld [vmem:[%s13163_s1 + $0x398] sm:$0xff] }
  0xba   :  { %14371 = vst [vmem:[#allocation94_spill] sm:$0xff] %v9594_v24  ;;  %14372 = vst [vmem:[#allocation95_spill] sm:$0xff] %v9596_v13  ;;  %v9627_v16 = vpack.c.bf16 %v1551_v59, %v1547_v33  ;;  %v9638_v20 = vsub.f32 %v120_v52, %v1551_v59  ;;  %v1557_v2 = vand.u32 4294901760, %v123_v50  ;;  %v1561_v5 = vand.u32 4294901760, %v127_v21  ;;  %v144_v49 = vld [vmem:[%s13163_s1 + $0x3b8] sm:$0xff]  ;;  %6634 = vmatpush1.bf16.msra.mxu1 %v9594_v24  ;;  %v139_v52 = vld [vmem:[%s13163_s1 + $0x390] sm:$0xff] }
  0xbb   :  { %14373 = vst [vmem:[#allocation96_spill] sm:$0xff] %v9599_v38  ;;  %14374 = vst [vmem:[#allocation97_spill] sm:$0xff] %v9601_v9  ;;  %v1567_v47 = vand.u32 4294901760, %v136_v11  ;;  %6636 = vmatprep.subr.bf16.mxu1 %v9601_v9  ;;  %v9658_v59 = vsub.f32 %v119_v6, %v1553_v42  ;;  %v1565_v24 = vand.u32 4294901760, %v131_v31  ;;  %v1575_v38 = vand.u32 4294901760, %v144_v49  ;;  %v148_v13 = vld [vmem:[%s13163_s1 + $0x3d8] sm:$0xff] }
  0xbc   :  { %14375 = vst [vmem:[#allocation98_spill] sm:$0xff] %v9610_v12  ;;  %14376 = vst [vmem:[#allocation99_spill] sm:$0xff] %v9612_v44  ;;  %v9636_v44 = vsub.f32 %v116_v17, %v1547_v33  ;;  %v1563_v17 = vand.u32 4294901760, %v132_v3  ;;  %v143_v33 = vld [vmem:[%s13163_s1 + $0x3b0] sm:$0xff]  ;;  %v1571_v12 = vand.u32 4294901760, %v140_v22  ;;  %v14391_v6 = vld [vmem:[#allocation5_spill] sm:$0xff]  ;;  %v9674_v9 = vpack.c.bf16 %v1561_v5, %v1557_v2 }
  0xbd   :  { %14377 = vst [vmem:[#allocation100_spill] sm:$0xff] %v9621_v55  ;;  %14378 = vst [vmem:[#allocation101_spill] sm:$0xff] %v9623_v18  ;;  %v9649_v18 = vsub.f32 %v115_v48, %v1549_v63  ;;  %v9663_v48 = vsub.f32 %v124_v45, %v1555_v10  ;;  %v1573_v45 = vand.u32 4294901760, %v139_v52 }
  0xbe   :  { %14379 = vst [vmem:[#allocation102_spill] sm:$0xff] %v9625_v25  ;;  %14380 = vst [vmem:[#allocation103_spill] sm:$0xff] %v9627_v16  ;;  %v9647_v25 = vpack.c.bf16 %v1553_v42, %v1549_v63  ;;  %v14388_v63 = vld [vmem:[#allocation65_spill] sm:$0xff]  ;;  %6638 = vmatpush1.bf16.msra.mxu1 %v9621_v55 }
  0xbf   :  { %14382 = vst [vmem:[#allocation61_spill] sm:$0xff] %v9636_v44  ;;  %14383 = vst [vmem:[#allocation104_spill] sm:$0xff] %v9638_v20  ;;  %v9660_v20 = vpack.c.bf16 %v1559_v60, %v1555_v10  ;;  %v1569_v44 = vand.u32 4294901760, %v135_v30  ;;  %6506 = vmatpush1.bf16.msra.mxu0 %v14388_v63  ;;  %v152_v42 = vld [vmem:[%s13163_s1 + $0x3f8] sm:$0xff]  ;;  %v1577_v10 = vand.u32 4294901760, %v143_v33  ;;  %v9683_v63 = vsub.f32 %v132_v3, %v1563_v17 }
  0xc0   :  { %14384 = vst [vmem:[#allocation105_spill] sm:$0xff] %v9647_v25  ;;  %14385 = vst [vmem:[#allocation106_spill] sm:$0xff] %v9649_v18  ;;  %v9665_v18 = vsub.f32 %v128_v51, %v1559_v60  ;;  %6508 = vmatprep.subr.bf16.mxu0 %v14391_v6  ;;  %v9679_v51 = vsub.f32 %v127_v21, %v1561_v5  ;;  %v9681_v60 = vpack.c.bf16 %v1567_v47, %v1563_v17 }
  0xc1   :  { %14386 = vst [vmem:[#allocation107_spill] sm:$0xff] %v9658_v59  ;;  %14387 = vst [vmem:[#allocation108_spill] sm:$0xff] %v9660_v20  ;;  %v9676_v59 = vsub.f32 %v123_v50, %v1557_v2  ;;  %6640 = vmatprep.subr.bf16.mxu1 %v9627_v16  ;;  %v9690_v6 = vsub.f32 %v131_v31, %v1565_v24  ;;  %v1579_v50 = vand.u32 4294901760, %v148_v13  ;;  %v1583_v2 = vand.u32 4294901760, %v152_v42  ;;  %v14422_v16 = vld [vmem:[#allocation25_spill] sm:$0xff] }
  0xc2   :  { %14389 = vst [vmem:[#allocation65_spill] sm:$0xff] %v9663_v48  ;;  %14390 = vst [vmem:[#allocation109_spill] sm:$0xff] %v9665_v18  ;;  %v9685_v18 = vsub.f32 %v136_v11, %v1567_v47  ;;  %v9688_v48 = vpack.c.bf16 %v1569_v44, %v1565_v24  ;;  %v9693_v58 = vsub.f32 %v135_v30, %v1569_v44  ;;  %v14405_v11 = vld [vmem:[#allocation18_spill] sm:$0xff]  ;;  %v13417_v24 = vand.u32 4294901760, %v9266_v37  ;;  %v14414_v30 = vld [vmem:[#allocation24_spill] sm:$0xff] }
  0xc3   :  { %14392 = vst [vmem:[#allocation5_spill] sm:$0xff] %v9674_v9  ;;  %14393 = vst [vmem:[#allocation110_spill] sm:$0xff] %v9676_v59  ;;  %v14400_v59 = vld [vmem:[#allocation8_spill] sm:$0xff]  ;;  %v9695_v21 = vpack.c.bf16 %v1575_v38, %v1571_v12  ;;  %v9697_v5 = vsub.f32 %v140_v22, %v1571_v12  ;;  %v9699_v3 = vsub.f32 %v144_v49, %v1575_v38  ;;  %6642 = vmatpush1.bf16.msra.mxu1 %v9647_v25 }
  0xc4   :  { %14394 = vst [vmem:[#allocation111_spill] sm:$0xff] %v9679_v51  ;;  %14395 = vst [vmem:[#allocation112_spill] sm:$0xff] %v9681_v60  ;;  %6510 = vmatpush1.bf16.msra.mxu0 %v14400_v59  ;;  %v9702_v17 = vpack.c.bf16 %v1577_v10, %v1573_v45  ;;  %v9704_v47 = vsub.f32 %v139_v52, %v1573_v45  ;;  %6644 = vmatprep.subr.bf16.mxu1 %v9660_v20  ;;  %v14410_v59 = vld [vmem:[#allocation29_spill] sm:$0xff]  ;;  %v14417_v12 = vand.u32 4294901760, %v9298_v28 }
  0xc5   :  { %14396 = vst [vmem:[#allocation113_spill] sm:$0xff] %v9683_v63  ;;  %14397 = vst [vmem:[#allocation114_spill] sm:$0xff] %v9685_v18  ;;  %6512 = vmatprep.subr.bf16.mxu0 %v14405_v11  ;;  %v9714_v22 = vsub.f32 %v143_v33, %v1577_v10  ;;  %v9716_v49 = vpack.c.bf16 %v1583_v2, %v1579_v50  ;;  %v14411_v11 = vld [vmem:[#allocation19_spill] sm:$0xff]  ;;  %v9721_v31 = vsub.f32 %v148_v13, %v1579_v50  ;;  %v147_v33 = vld [vmem:[%s13163_s1 + $0x3d0] sm:$0xff] }
  0xc6   :  { %14398 = vst [vmem:[#allocation115_spill] sm:$0xff] %v9688_v48  ;;  %14399 = vst [vmem:[#allocation116_spill] sm:$0xff] %v9690_v6  ;;  %v9723_v44 = vsub.f32 %v152_v42, %v1583_v2  ;;  %v151_v10 = vld [vmem:[%s13163_s1 + $0x3f0] sm:$0xff]  ;;  %v1607_v13 = vsub.f32 %v9266_v37, %v13417_v24  ;;  %v14415_v42 = vand.u32 4294901760, %v9271_v19  ;;  %v1625_v45 = vsub.f32 %v9298_v28, %v14417_v12  ;;  %v14430_v18 = vld [vmem:[#allocation31_spill] sm:$0xff] }
  0xc7   :  { %14401 = vst [vmem:[#allocation8_spill] sm:$0xff] %v9693_v58  ;;  %14402 = vst [vmem:[#allocation117_spill] sm:$0xff] %v9695_v21  ;;  %6646 = vmatpush1.bf16.msra.mxu1 %v9674_v9  ;;  %v14418_v24 = vand.u32 4294901760, %v9303_v57  ;;  %v1585_v55 = vand.u32 4294901760, %v151_v10  ;;  %v14426_v12 = vand.u32 4294901760, %v9393_v23 }
  0xc8   :  { %14403 = vst [vmem:[#allocation118_spill] sm:$0xff] %v9697_v5  ;;  %14404 = vst [vmem:[#allocation119_spill] sm:$0xff] %v9699_v3  ;;  %6514 = vmatpush1.bf16.msra.mxu0 %v14411_v11  ;;  %v1619_v50 = vsub.f32 %v9271_v19, %v14415_v42  ;;  %v14416_v11 = vand.u32 4294901760, %v9293_v61  ;;  %v14419_v42 = vand.u32 4294901760, %v9308_v43  ;;  %6648 = vmatprep.subr.bf16.mxu1 %v9681_v60 }
  0xc9   :  { %14406 = vst [vmem:[#allocation18_spill] sm:$0xff] %v9702_v17  ;;  %14407 = vst [vmem:[#allocation120_spill] sm:$0xff] %v9704_v47  ;;  %6516 = vmatprep.subr.bf16.mxu0 %v14414_v30  ;;  %v1631_v52 = vsub.f32 %v9303_v57, %v14418_v24  ;;  %v14420_v30 = vand.u32 4294901760, %v9324_v62  ;;  %v1581_v24 = vand.u32 4294901760, %v147_v33  ;;  %v1661_v25 = vsub.f32 %v9393_v23, %v14426_v12 }
  0xca   :  { %14408 = vst [vmem:[#allocation121_spill] sm:$0xff] %v9714_v22  ;;  %14409 = vst [vmem:[#allocation122_spill] sm:$0xff] %v9716_v49  ;;  %v1613_v38 = vsub.f32 %v9293_v61, %v14416_v11  ;;  %v1643_v2 = vsub.f32 %v9308_v43, %v14419_v42  ;;  %v14421_v11 = vand.u32 4294901760, %v14410_v59  ;;  %v14423_v42 = vand.u32 4294901760, %v9383_v54 }
  0xcb   :  { %14412 = vst [vmem:[#allocation29_spill] sm:$0xff] %v9721_v31  ;;  %14413 = vst [vmem:[#allocation19_spill] sm:$0xff] %v9723_v44  ;;  %v1637_v9 = vsub.f32 %v9324_v62, %v14420_v30  ;;  %v14424_v44 = vand.u32 4294901760, %v9388_v7  ;;  %v14425_v31 = vld [vmem:[#allocation30_spill] sm:$0xff]  ;;  %v1608_v22 = vand.u32 4294901760, %v1607_v13  ;;  %6650 = vmatpush1.bf16.msra.mxu1 %v9688_v48  ;;  %v1632_v5 = vand.u32 4294901760, %v1631_v52 }
  0xcc   :  { %v1649_v20 = vsub.f32 %v14410_v59, %v14421_v11  ;;  %6518 = vmatpush1.bf16.msra.mxu0 %v14422_v16  ;;  %v1655_v60 = vsub.f32 %v9383_v54, %v14423_v42  ;;  %v1620_v11 = vand.u32 4294901760, %v1619_v50  ;;  %v14427_v16 = vand.u32 4294901760, %v9398_v34  ;;  %6652 = vmatprep.subr.bf16.mxu1 %v9695_v21  ;;  %v14434_v21 = vld [vmem:[#allocation36_spill] sm:$0xff] }
  0xcd   :  { %v1667_v30 = vsub.f32 %v9388_v7, %v14424_v44  ;;  %6520 = vmatprep.subr.bf16.mxu0 %v14425_v31  ;;  %v1614_v3 = vand.u32 4294901760, %v1613_v38  ;;  %v1626_v42 = vand.u32 4294901760, %v1625_v45  ;;  %v1644_v58 = vand.u32 4294901760, %v1643_v2 }
  0xce   :  { %v1673_v47 = vsub.f32 %v9398_v34, %v14427_v16  ;;  %v1638_v44 = vand.u32 4294901760, %v1637_v9  ;;  %v1650_v31 = vand.u32 4294901760, %v1649_v20  ;;  %v14428_v13 = vand.u32 4294901760, %v9412_v53 }
  0xcf   :  { %v14429_v12 = vand.u32 4294901760, %v9417_v39  ;;  %v1656_v16 = vand.u32 4294901760, %v1655_v60  ;;  %v1668_v48 = vand.u32 4294901760, %v1667_v30  ;;  %v9790_v9 = vpack.c.bf16 %v1585_v55, %v1581_v24  ;;  %6654 = vmatpush1.bf16.msra.mxu1 %v9702_v17 }
  0xd0   :  { %v1679_v50 = vsub.f32 %v9412_v53, %v14428_v13  ;;  %6522 = vmatpush1.bf16.msra.mxu0 %v14430_v18  ;;  %v9792_v20 = vsub.f32 %v147_v33, %v1581_v24  ;;  %v1662_v45 = vand.u32 4294901760, %v1661_v25  ;;  %v1674_v2 = vand.u32 4294901760, %v1673_v47  ;;  %6656 = vmatprep.subr.bf16.mxu1 %v9716_v49 }
  0xd1   :  { %v1691_v6 = vsub.f32 %v9417_v39, %v14429_v12  ;;  %6524 = vmatprep.subr.bf16.mxu0 %v9372_v32  ;;  %14431 = vst [vmem:[#allocation24_spill] sm:$0xff] %v9790_v9  ;;  %v9795_v13 = vsub.f32 %v151_v10, %v1585_v55  ;;  %v6659_v12 = vpack.c.bf16 %v1620_v11, %v1608_v22  ;;  %v13443_v60 = vand.u32 4294901760, %v9458_v1  ;;  %v14437_v10 = vld [vmem:[#allocation73_spill] sm:$0xff]  ;;  %v14438_v11 = vld [vmem:[#allocation55_spill] sm:$0xff] }
  0xd2   :  { %14432 = vst [vmem:[#allocation25_spill] sm:$0xff] %v9792_v20  ;;  %v6661_v18 = vpack.c.bf16 %v1626_v42, %v1614_v3  ;;  %v6663_v30 = vpack.c.bf16 %v1644_v58, %v1632_v5  ;;  %v6665_v52 = vpack.c.bf16 %v1650_v31, %v1638_v44  ;;  %v1680_v38 = vand.u32 4294901760, %v1679_v50  ;;  %v14439_v44 = vld [vmem:[#allocation57_spill] sm:$0xff]  ;;  %v14457_v20 = vld [vmem:[#allocation86_spill] sm:$0xff] }
  0xd3   :  { %14433 = vst [vmem:[#allocation30_spill] sm:$0xff] %v9795_v13  ;;  %v1692_v32 = vand.u32 4294901760, %v1691_v6  ;;  %v6667_v33 = vpack.c.bf16 %v1668_v48, %v1656_v16  ;;  %v14435_v25 = vand.u32 4294901760, %v9422_v15  ;;  %v14436_v55 = vand.u32 4294901760, %v9427_v14  ;;  %6658 = vmatpush1.bf16.msra.mxu1 %v9790_v9  ;;  %v14440_v16 = vld [vmem:[#allocation58_spill] sm:$0xff] }
  0xd4   :  { %6526 = vmatpush1.bf16.msra.mxu0 %v14434_v21  ;;  %v13444_v22 = vand.u32 4294901760, %v9463_v27  ;;  %v9812_v58 = vpack.c.bf16 %v1674_v2, %v1662_v45  ;;  %v13445_v6 = vand.u32 4294901760, %v9468_v29  ;;  %v13446_v48 = vand.u32 4294901760, %v9473_v0  ;;  %6660 = vmatprep.subr.bf16.mxu1 %v6659_v12  ;;  %v14441_v2 = vld [vmem:[#allocation78_spill] sm:$0xff]  ;;  %v14443_v12 = vld [vmem:[#allocation76_spill] sm:$0xff] }
  0xd5   :  { %v9803_v47 = vsub.f32 %v9422_v15, %v14435_v25  ;;  %v9808_v3 = vsub.f32 %v9427_v14, %v14436_v55  ;;  %6528 = vmatprep.subr.bf16.mxu0 %v14437_v10  ;;  %v13447_v21 = vand.u32 4294901760, %v9485_v26  ;;  %v9821_v5 = vsub.f32 %v9458_v1, %v13443_v60  ;;  %v14442_v10 = vld [vmem:[#allocation48_spill] sm:$0xff]  ;;  %v14449_v25 = vld [vmem:[#allocation66_spill] sm:$0xff] }
  0xd6   :  { %v6671_v50 = vpack.c.bf16 %v1692_v32, %v1680_v38  ;;  %v13454_v45 = vand.u32 4294901760, %v14440_v16  ;;  %v1715_v60 = vsub.f32 %v9463_v27, %v13444_v22  ;;  %1598 = vmatmul.mubr.f32.vlgmr.msra.gmra.mrb[2].mxu1 %v14443_v12  ;;  %v14444_v38 = vld [vmem:[#allocation2_spill] sm:$0xff]  ;;  %v1721_v22 = vsub.f32 %v9473_v0, %v13446_v48  ;;  %v14448_v48 = vld [vmem:[#allocation64_spill] sm:$0xff] }
  0xd7   :  { %v1686_v32 = vand.u32 4294901760, %v9803_v47  ;;  %v1727_v42 = vsub.f32 %v9485_v26, %v13447_v21  ;;  %6662 = vmatpush1.bf16.msra.mxu1 %v6661_v18  ;;  %v1698_v31 = vand.u32 4294901760, %v9808_v3  ;;  %v14445_v12 = vand.u32 4294901760, %v9490_v36  ;;  %1989 = vmatprep.mubr.f32.mxu1 %v14448_v48 }
  0xd8   :  { %6530 = vmatpush1.bf16.msra.mxu0 %v14442_v10  ;;  %v1709_v10 = vsub.f32 %v9468_v29, %v13445_v6  ;;  %v14446_v47 = vand.u32 4294901760, %v14438_v11  ;;  %v14447_v6 = vand.u32 4294901760, %v14439_v44  ;;  %6664 = vmatprep.subr.bf16.mxu1 %v6663_v30  ;;  %v1704_v18 = vand.u32 4294901760, %v9821_v5 }
  0xd9   :  { %6532 = vmatprep.subr.bf16.mxu0 %v14444_v38  ;;  %v1739_v38 = vsub.f32 %v9490_v36, %v14445_v12  ;;  %v1751_v3 = vsub.f32 %v14440_v16, %v13454_v45  ;;  %v14450_v12 = vand.u32 4294901760, %v14441_v2  ;;  %v1716_v49 = vand.u32 4294901760, %v1715_v60  ;;  %v14460_v60 = vld [vmem:[#allocation10_spill] sm:$0xff] }
  0xda   :  { %v1733_v24 = vsub.f32 %v14438_v11, %v14446_v47  ;;  %v1745_v55 = vsub.f32 %v14439_v44, %v14447_v6  ;;  %v14451_v47 = vand.u32 4294901760, %v9532_v56  ;;  %v14452_v6 = vld [vmem:[#allocation6_spill] sm:$0xff]  ;;  %v14453_v17 = vand.u32 4294901760, %v9535_v40  ;;  %v14502_v11 = vld [vmem:[#allocation19_spill] sm:$0xff] }
  0xdb   :  { %1316 = vmatmul.mubr.f32.vlgmr.msra.gmra.mrb[0].mxu0 %v14449_v25  ;;  %v1763_v21 = vsub.f32 %v14441_v2, %v14450_v12  ;;  %v14454_v5 = vand.u32 4294901760, %v9539_v35  ;;  %v14455_v45 = vand.u32 4294901760, %v9542_v8  ;;  %v14456_v12 = vld [vmem:[#allocation7_spill] sm:$0xff]  ;;  %6666 = vmatpush1.bf16.msra.mxu1 %v6665_v52  ;;  %v1728_v51 = vand.u32 4294901760, %v1727_v42  ;;  %v14459_v2 = vld [vmem:[#allocation9_spill] sm:$0xff]  ;;  %v14504_v26 = vld [vmem:[#allocation30_spill] sm:$0xff] }
  0xdc   :  { %v1757_v9 = vsub.f32 %v9532_v56, %v14451_v47  ;;  %6534 = vmatpush1.bf16.msra.mxu0 %v14452_v6  ;;  %v1769_v30 = vsub.f32 %v9535_v40, %v14453_v17  ;;  %1451 = vmatprep.mubr.f32.mxu0 %v14448_v48  ;;  %v1710_v47 = vand.u32 4294901760, %v1709_v10  ;;  %v1722_v17 = vand.u32 4294901760, %v1721_v22 }
  0xdd   :  { %v1775_v25 = vsub.f32 %v9539_v35, %v14454_v5  ;;  %v1787_v13 = vsub.f32 %v9542_v8, %v14455_v45  ;;  %6536 = vmatprep.subr.bf16.mxu0 %v14456_v12  ;;  %v1740_v40 = vand.u32 4294901760, %v1739_v38  ;;  %v14458_v5 = vld [vmem:[#allocation88_spill] sm:$0xff]  ;;  %6668 = vmatprep.subr.bf16.mxu1 %v6667_v33  ;;  %v1734_v56 = vand.u32 4294901760, %v1733_v24 }
  0xde   :  { %v13470_v35 = vand.u32 4294901760, %v14458_v5  ;;  %v1746_v45 = vand.u32 4294901760, %v1745_v55  ;;  %v1752_v8 = vand.u32 4294901760, %v1751_v3  ;;  %v1764_v48 = vand.u32 4294901760, %v1763_v21 }
  0xdf   :  { %v1758_v10 = vand.u32 4294901760, %v1757_v9  ;;  %v1770_v12 = vand.u32 4294901760, %v1769_v30  ;;  %v1776_v6 = vand.u32 4294901760, %v1775_v25  ;;  %v1788_v16 = vand.u32 4294901760, %v1787_v13  ;;  %6670 = vmatpush1.bf16.msra.mxu1 %v9812_v58  ;;  %v14465_v25 = vld [vmem:[#allocation90_spill] sm:$0xff] }
  0xe0   :  { %6538 = vmatpush1.bf16.msra.mxu0 %v14459_v2  ;;  %v6673_v63 = vpack.c.bf16 %v1698_v31, %v1686_v32  ;;  %v14461_v52 = vand.u32 4294901760, %v9547_v46  ;;  %v14462_v33 = vand.u32 4294901760, %v9549_v4  ;;  %v14463_v21 = vand.u32 4294901760, %v14457_v20  ;;  %v14464_v31 = vld [vmem:[#allocation89_spill] sm:$0xff]  ;;  %6672 = vmatprep.subr.bf16.mxu1 %v6671_v50  ;;  %v14492_v50 = vld [vmem:[#allocation111_spill] sm:$0xff] }
  0xe1   :  { %6540 = vmatprep.subr.bf16.mxu0 %v14460_v60  ;;  %v6675_v13 = vpack.c.bf16 %v1716_v49, %v1704_v18  ;;  %v9907_v42 = vsub.f32 %v14458_v5, %v13470_v35  ;;  %v13473_v2 = vand.u32 4294901760, %v14464_v31  ;;  %v13472_v55 = vand.u32 4294901760, %v14465_v25  ;;  %v14466_v60 = vld [vmem:[#allocation11_spill] sm:$0xff]  ;;  %v14467_v18 = vld [vmem:[#allocation93_spill] sm:$0xff]  ;;  %v14495_v35 = vld [vmem:[#allocation116_spill] sm:$0xff] }
  0xe2   :  { %v9891_v22 = vsub.f32 %v9547_v46, %v14461_v52  ;;  %v9896_v24 = vsub.f32 %v9549_v4, %v14462_v33  ;;  %v9901_v9 = vsub.f32 %v14457_v20, %v14463_v21  ;;  %v6677_v32 = vpack.c.bf16 %v1722_v17, %v1710_v47  ;;  %v14468_v21 = vld [vmem:[#allocation12_spill] sm:$0xff]  ;;  %v14474_v17 = vld [vmem:[#allocation99_spill] sm:$0xff]  ;;  %v14485_v47 = vld [vmem:[#allocation61_spill] sm:$0xff] }
  0xe3   :  { %v6679_v38 = vpack.c.bf16 %v1740_v40, %v1728_v51  ;;  %v6681_v3 = vpack.c.bf16 %v1746_v45, %v1734_v56  ;;  %v13471_v30 = vand.u32 4294901760, %v9590_v41  ;;  %v6683_v52 = vpack.c.bf16 %v1764_v48, %v1752_v8  ;;  %6674 = vmatpush1.bf16.msra.mxu1 %v6673_v63  ;;  %v14483_v63 = vld [vmem:[#allocation101_spill] sm:$0xff]  ;;  %v14486_v46 = vld [vmem:[#allocation104_spill] sm:$0xff]  ;;  %v14487_v20 = vld [vmem:[#allocation106_spill] sm:$0xff] }
  0xe4   :  { %6542 = vmatpush1.bf16.msra.mxu0 %v14466_v60  ;;  %v9913_v58 = vpack.c.bf16 %v1770_v12, %v1758_v10  ;;  %v9915_v49 = vpack.c.bf16 %v1788_v16, %v1776_v6  ;;  %v13474_v33 = vand.u32 4294901760, %v14467_v18  ;;  %v1812_v8 = vand.u32 4294901760, %v9907_v42  ;;  %v14469_v16 = vld [vmem:[#allocation95_spill] sm:$0xff]  ;;  %6676 = vmatprep.subr.bf16.mxu1 %v6675_v13  ;;  %v14470_v10 = vld [vmem:[#allocation13_spill] sm:$0xff]  ;;  %v14471_v13 = vld [vmem:[#allocation96_spill] sm:$0xff] }
  0xe5   :  { %6544 = vmatprep.subr.bf16.mxu0 %v14468_v21  ;;  %v9928_v51 = vsub.f32 %v14464_v31, %v13473_v2  ;;  %v9933_v48 = vsub.f32 %v14465_v25, %v13472_v55  ;;  %v9939_v6 = vsub.f32 %v9590_v41, %v13471_v30  ;;  %v14472_v60 = vld [vmem:[#allocation98_spill] sm:$0xff]  ;;  %v14481_v30 = vld [vmem:[#allocation15_spill] sm:$0xff]  ;;  %v14482_v2 = vld [vmem:[#allocation16_spill] sm:$0xff]  ;;  %v14507_v44 = vand.u32 4294901760, %v14469_v16 }
  0xe6   :  { %v9951_v12 = vsub.f32 %v14467_v18, %v13474_v33  ;;  %v14473_v55 = vld [vmem:[#allocation14_spill] sm:$0xff]  ;;  %v14488_v5 = vld [vmem:[#allocation107_spill] sm:$0xff]  ;;  %v14489_v31 = vld [vmem:[#allocation65_spill] sm:$0xff]  ;;  %v14510_v45 = vand.u32 4294901760, %v9896_v24  ;;  %v14515_v24 = vand.u32 4294901760, %v14483_v63 }
  0xe7   :  { %6678 = vmatpush1.bf16.msra.mxu1 %v6677_v32  ;;  %v14484_v42 = vld [vmem:[#allocation102_spill] sm:$0xff]  ;;  %v14490_v21 = vld [vmem:[#allocation109_spill] sm:$0xff]  ;;  %v14496_v32 = vld [vmem:[#allocation8_spill] sm:$0xff]  ;;  %v1806_v33 = vand.u32 4294901760, %v9928_v51  ;;  %v1818_v29 = vand.u32 4294901760, %v9933_v48  ;;  %v1829_v36 = vsub.f32 %v14469_v16, %v14507_v44  ;;  %v14509_v48 = vand.u32 4294901760, %v9891_v22 }
  0xe8   :  { %6546 = vmatpush1.bf16.msra.mxu0 %v14470_v10  ;;  %6680 = vmatprep.subr.bf16.mxu1 %v6679_v38  ;;  %v14491_v18 = vld [vmem:[#allocation110_spill] sm:$0xff]  ;;  %v14498_v40 = vld [vmem:[#allocation119_spill] sm:$0xff]  ;;  %v14499_v10 = vld [vmem:[#allocation120_spill] sm:$0xff]  ;;  %v1824_v38 = vand.u32 4294901760, %v9939_v6  ;;  %v1836_v0 = vand.u32 4294901760, %v9951_v12  ;;  %v14512_v12 = vand.u32 4294901760, %v14472_v60 }
  0xe9   :  { %6548 = vmatprep.subr.bf16.mxu0 %v14473_v55  ;;  %v14494_v4 = vld [vmem:[#allocation114_spill] sm:$0xff]  ;;  %v14500_v56 = vld [vmem:[#allocation121_spill] sm:$0xff]  ;;  %v14505_v25 = vld [vmem:[#allocation20_spill] sm:$0xff]  ;;  %v14513_v16 = vand.u32 4294901760, %v14474_v17  ;;  %v13501_v22 = vand.u32 4294901760, %v14488_v5 }
  0xea   :  { %v14503_v41 = vld [vmem:[#allocation25_spill] sm:$0xff]  ;;  %v1847_v44 = vsub.f32 %v14472_v60, %v14512_v12  ;;  %v1830_v12 = vand.u32 4294901760, %v1829_v36  ;;  %v14520_v36 = vld [vmem:[#allocation32_spill] sm:$0xff] }
  0xeb   :  { %6682 = vmatpush1.bf16.msra.mxu1 %v6681_v3  ;;  %v14501_v3 = vld [vmem:[#allocation29_spill] sm:$0xff] }
  0xec   :  { %6550 = vmatpush1.bf16.msra.mxu0 %v14481_v30  ;;  %6684 = vmatprep.subr.bf16.mxu1 %v6683_v52  ;;  %v14497_v30 = vld [vmem:[#allocation118_spill] sm:$0xff]  ;;  %v14506_v55 = vld [vmem:[#allocation21_spill] sm:$0xff]  ;;  %v6689_v52 = vpack.c.bf16 %v14510_v45, %v14509_v48  ;;  %v14517_v45 = vld [vmem:[#allocation27_spill] sm:$0xff]  ;;  %v6693_v48 = vpack.c.bf16 %v1818_v29, %v1806_v33  ;;  %v14519_v29 = vand.u32 4294901760, %v14486_v46 }
  0xed   :  { %6552 = vmatprep.subr.bf16.mxu0 %v14482_v2  ;;  %v14493_v2 = vld [vmem:[#allocation113_spill] sm:$0xff] }
  0xee   :  { %v14521_v60 = vld [vmem:[#allocation33_spill] sm:$0xff] }
  0xef   :  { %6686 = vmatpush1.bf16.msra.mxu1 %v9913_v58  ;;  %v13500_v58 = vand.u32 4294901760, %v14487_v20 }
  0xf0   :  { %6554 = vmatpush1.bf16.msra.mxu0 %v14505_v25  ;;  %v14508_v25 = vand.u32 4294901760, %v14471_v13  ;;  %6688 = vmatprep.subr.bf16.mxu1 %v9915_v49  ;;  %v14516_v49 = vand.u32 4294901760, %v14484_v42 }
  0xf1   :  { %6556 = vmatprep.subr.bf16.mxu0 %v14506_v55  ;;  %v14511_v55 = vand.u32 4294901760, %v9901_v9  ;;  %v1853_v9 = vsub.f32 %v14483_v63, %v14515_v24  ;;  %v1848_v24 = vand.u32 4294901760, %v1847_v44  ;;  %v13505_v44 = vand.u32 4294901760, %v14493_v2 }
  0xf2   :  { %v1841_v51 = vsub.f32 %v14471_v13, %v14508_v25  ;;  %v1859_v25 = vsub.f32 %v14474_v17, %v14513_v16  ;;  %v14514_v13 = vld [vmem:[#allocation26_spill] sm:$0xff] }
  0xf3   :  { %v6691_v6 = vpack.c.bf16 %v1812_v8, %v14511_v55  ;;  %v1865_v8 = vsub.f32 %v14484_v42, %v14516_v49  ;;  %v6695_v55 = vpack.c.bf16 %v1836_v0, %v1824_v38  ;;  %6690 = vmatpush1.bf16.msra.mxu1 %v6689_v52  ;;  %v14518_v49 = vand.u32 4294901760, %v14485_v47 }
  0xf4   :  { %6558 = vmatpush1.bf16.msra.mxu0 %v14514_v13  ;;  %v1842_v16 = vand.u32 4294901760, %v1841_v51  ;;  %v13502_v13 = vand.u32 4294901760, %v14489_v31  ;;  %v1860_v63 = vand.u32 4294901760, %v1859_v25  ;;  %v1883_v0 = vsub.f32 %v14486_v46, %v14519_v29 }
  0xf5   :  { %6560 = vmatprep.subr.bf16.mxu0 %v14517_v45  ;;  %6692 = vmatprep.subr.bf16.mxu1 %v6691_v6  ;;  %v1871_v45 = vsub.f32 %v14485_v47, %v14518_v49  ;;  %v1854_v33 = vand.u32 4294901760, %v1853_v9  ;;  %v1866_v38 = vand.u32 4294901760, %v1865_v8  ;;  %v13504_v52 = vand.u32 4294901760, %v14491_v18 }
  0xf6   :  { %v13503_v51 = vand.u32 4294901760, %v14492_v50  ;;  %v6697_v6 = vpack.c.bf16 %v1842_v16, %v1830_v12  ;;  %v1877_v49 = vsub.f32 %v14487_v20, %v13500_v58  ;;  %v1889_v9 = vsub.f32 %v14488_v5, %v13501_v22 }
  0xf7   :  { %6694 = vmatpush1.bf16.msra.mxu1 %v6693_v48  ;;  %v1895_v8 = vsub.f32 %v14489_v31, %v13502_v13  ;;  %v6699_v16 = vpack.c.bf16 %v1860_v63, %v1848_v24  ;;  %v1872_v29 = vand.u32 4294901760, %v1871_v45  ;;  %v1884_v48 = vand.u32 4294901760, %v1883_v0  ;;  %v14524_v13 = vld [vmem:[#allocation41_spill] sm:$0xff] }
  0xf8   :  { %6562 = vmatpush1.bf16.msra.mxu0 %v14520_v36  ;;  %6696 = vmatprep.subr.bf16.mxu1 %v6695_v55  ;;  %v14523_v36 = vld [vmem:[#allocation38_spill] sm:$0xff]  ;;  %v6701_v25 = vpack.c.bf16 %v1866_v38, %v1854_v33  ;;  %v1901_v58 = vsub.f32 %v14491_v18, %v13504_v52  ;;  %v1913_v22 = vsub.f32 %v14492_v50, %v13503_v51  ;;  %v14525_v63 = vand.u32 4294901760, %v14494_v4 }
  0xf9   :  { %6564 = vmatprep.subr.bf16.mxu0 %v14521_v60  ;;  %v14522_v60 = vand.u32 4294901760, %v14490_v21  ;;  %v1919_v55 = vsub.f32 %v14493_v2, %v13505_v44  ;;  %v13517_v0 = vand.u32 4294901760, %v14496_v32  ;;  %v1878_v33 = vand.u32 4294901760, %v1877_v49  ;;  %v14526_v44 = vld [vmem:[#allocation44_spill] sm:$0xff] }
  0xfa   :  { %v1931_v24 = vsub.f32 %v14494_v4, %v14525_v63  ;;  %v1890_v38 = vand.u32 4294901760, %v1889_v9  ;;  %v6703_v51 = vpack.c.bf16 %v1884_v48, %v1872_v29  ;;  %v13515_v52 = vand.u32 4294901760, %v14498_v40  ;;  %v14527_v63 = vld [vmem:[#allocation45_spill] sm:$0xff] }
  0xfb   :  { %v1907_v12 = vsub.f32 %v14490_v21, %v14522_v60  ;;  %6698 = vmatpush1.bf16.msra.mxu1 %v6697_v6  ;;  %v1896_v60 = vand.u32 4294901760, %v1895_v8  ;;  %v1902_v2 = vand.u32 4294901760, %v1901_v58  ;;  %v1914_v18 = vand.u32 4294901760, %v1913_v22 }
  0xfc   :  { %6566 = vmatpush1.bf16.msra.mxu0 %v14523_v36  ;;  %6700 = vmatprep.subr.bf16.mxu1 %v6699_v16  ;;  %v1920_v45 = vand.u32 4294901760, %v1919_v55  ;;  %v1932_v4 = vand.u32 4294901760, %v1931_v24  ;;  %v14528_v6 = vand.u32 4294901760, %v14495_v35  ;;  %v1937_v9 = vsub.f32 %v14496_v32, %v13517_v0  ;;  %v14530_v55 = vld [vmem:[#allocation51_spill] sm:$0xff]  ;;  %v14578_v0 = vld [vmem:[#allocation93_spill] sm:$0xff] }
  0xfd   :  { %6568 = vmatprep.subr.bf16.mxu0 %v14524_v13  ;;  %v1908_v36 = vand.u32 4294901760, %v1907_v12  ;;  %v13516_v13 = vand.u32 4294901760, %v14497_v30  ;;  %v6705_v8 = vpack.c.bf16 %v1890_v38, %v1878_v33  ;;  %v13514_v16 = vand.u32 4294901760, %v14499_v10 }
  0xfe   :  { %v1925_v49 = vsub.f32 %v14495_v35, %v14528_v6  ;;  %v13511_v58 = vand.u32 4294901760, %v14500_v56  ;;  %v13509_v29 = vand.u32 4294901760, %v14501_v3  ;;  %v13510_v48 = vand.u32 4294901760, %v14502_v11 }
  0xff   :  { %6702 = vmatpush1.bf16.msra.mxu1 %v6701_v25  ;;  %v6707_v12 = vpack.c.bf16 %v1908_v36, %v1896_v60  ;;  %v1943_v22 = vsub.f32 %v14497_v30, %v13516_v13  ;;  %v14529_v25 = vld [vmem:[#allocation50_spill] sm:$0xff]  ;;  %v6709_v24 = vpack.c.bf16 %v1914_v18, %v1902_v2  ;;  %v6711_v33 = vpack.c.bf16 %v1932_v4, %v1920_v45  ;;  %v14531_v2 = vld [vmem:[#allocation56_spill] sm:$0xff]  ;;  %v14532_v45 = vld [vmem:[#allocation59_spill] sm:$0xff] }
 0x100   :  { %6570 = vmatpush1.bf16.msra.mxu0 %v14526_v44  ;;  %6704 = vmatprep.subr.bf16.mxu1 %v6703_v51  ;;  %v1955_v44 = vsub.f32 %v14498_v40, %v13515_v52  ;;  %v1926_v38 = vand.u32 4294901760, %v1925_v49  ;;  %v1938_v51 = vand.u32 4294901760, %v1937_v9  ;;  %v1949_v60 = vsub.f32 %v14499_v10, %v13514_v16  ;;  %v2749_v13 = vld [vmem:[%s13165_s3 + $0x10] sm:$0xff] }
 0x101   :  { %6572 = vmatprep.subr.bf16.mxu0 %v14527_v63  ;;  %v1961_v36 = vsub.f32 %v14500_v56, %v13511_v58  ;;  %v13513_v63 = vand.u32 4294901760, %v14503_v41  ;;  %v13512_v6 = vand.u32 4294901760, %v14504_v26  ;;  %v1967_v4 = vsub.f32 %v14501_v3, %v13509_v29  ;;  %v14533_v58 = vld [vmem:[#allocation60_spill] sm:$0xff] }
 0x102   :  { %v1979_v18 = vsub.f32 %v14502_v11, %v13510_v48  ;;  %v6713_v49 = vpack.c.bf16 %v1938_v51, %v1926_v38  ;;  %v1950_v9 = vand.u32 4294901760, %v1949_v60 }
 0x103   :  { %6706 = vmatpush1.bf16.msra.mxu1 %v6705_v8  ;;  %v1962_v8 = vand.u32 4294901760, %v1961_v36  ;;  %v1968_v29 = vand.u32 4294901760, %v1967_v4  ;;  %v14535_v36 = vld [vmem:[#allocation63_spill] sm:$0xff]  ;;  %v14541_v4 = vld [vmem:[#allocation66_spill] sm:$0xff] }
 0x104   :  { %6574 = vmatpush1.bf16.msra.mxu0 %v14529_v25  ;;  %6708 = vmatprep.subr.bf16.mxu1 %v6707_v12  ;;  %v1944_v25 = vand.u32 4294901760, %v1943_v22  ;;  %v1973_v12 = vsub.f32 %v14503_v41, %v13513_v63  ;;  %v1985_v22 = vsub.f32 %v14504_v26, %v13512_v6  ;;  %v1980_v48 = vand.u32 4294901760, %v1979_v18 }
 0x105   :  { %6576 = vmatprep.subr.bf16.mxu0 %v14530_v55  ;;  %v1956_v55 = vand.u32 4294901760, %v1955_v44  ;;  %v14544_v18 = vpack.c.bf16 %v9308_v43, %v9303_v57 }
 0x106   :  { %v1974_v38 = vand.u32 4294901760, %v1973_v12  ;;  %v1986_v51 = vand.u32 4294901760, %v1985_v22  ;;  %v6719_v60 = vpack.c.bf16 %v1980_v48, %v1968_v29  ;;  %v14542_v29 = vpack.c.bf16 %v9298_v28, %v9293_v61  ;;  %v14543_v48 = vld [vmem:[#allocation68_spill] sm:$0xff] }
 0x107   :  { %6710 = vmatpush1.bf16.msra.mxu1 %v6709_v24  ;;  %v6715_v44 = vpack.c.bf16 %v1956_v55, %v1944_v25  ;;  %v6717_v24 = vpack.c.bf16 %v1962_v8, %v1950_v9  ;;  %v14538_v25 = vld [vmem:[#allocation74_spill] sm:$0xff]  ;;  %v14540_v55 = vld [vmem:[#allocation75_spill] sm:$0xff]  ;;  %v14547_v9 = vpack.c.bf16 %v9398_v34, %v9393_v23  ;;  %v14548_v8 = vpack.c.bf16 %v9417_v39, %v9412_v53 }
 0x108   :  { %6578 = vmatpush1.bf16.msra.mxu0 %v14531_v2  ;;  %6712 = vmatprep.subr.bf16.mxu1 %v6711_v33  ;;  %v14534_v2 = vld [vmem:[#allocation62_spill] sm:$0xff]  ;;  %v6721_v6 = vpack.c.bf16 %v1986_v51, %v1974_v38  ;;  %v14537_v33 = vld [vmem:[#allocation69_spill] sm:$0xff]  ;;  %v14549_v12 = vpack.c.bf16 %v9427_v14, %v9422_v15  ;;  %v14550_v22 = vpack.c.bf16 %v9463_v27, %v9458_v1 }
 0x109   :  { %6580 = vmatprep.subr.bf16.mxu0 %v14532_v45  ;;  %v14536_v45 = vld [vmem:[#allocation67_spill] sm:$0xff]  ;;  %v14554_v38 = vld [vmem:[#allocation54_spill] sm:$0xff]  ;;  %v14555_v51 = vld [vmem:[#allocation53_spill] sm:$0xff] }
 0x10b   :  { %6714 = vmatpush1.bf16.msra.mxu1 %v6713_v49  ;;  %v14546_v49 = vpack.c.bf16 %v9388_v7, %v9383_v54 }
 0x10c   :  { %6582 = vmatpush1.bf16.msra.mxu0 %v14533_v58  ;;  %6716 = vmatprep.subr.bf16.mxu1 %v6715_v44  ;;  %v14539_v58 = vpack.c.bf16 %v9271_v19, %v9266_v37  ;;  %v14551_v44 = vld [vmem:[#allocation52_spill] sm:$0xff] }
 0x10d   :  { %6584 = vmatprep.subr.bf16.mxu0 %v14534_v2  ;;  %v14552_v2 = vld [vmem:[#allocation49_spill] sm:$0xff] }
 0x10f   :  { %6718 = vmatpush1.bf16.msra.mxu1 %v6717_v24  ;;  %v14553_v24 = vpack.c.bf16 %v14551_v44, %v14552_v2  ;;  %v14706_v44 = vld [vmem:[#allocation87_spill] sm:$0xff] }
 0x110   :  { %6586 = vmatpush1.bf16.msra.mxu0 %v14535_v36  ;;  %6720 = vmatprep.subr.bf16.mxu1 %v6719_v60  ;;  %v14556_v60 = vpack.c.bf16 %v14554_v38, %v14555_v51  ;;  %v14557_v36 = vld [vmem:[#allocation57_spill] sm:$0xff] }
 0x111   :  { %6588 = vmatprep.subr.bf16.mxu0 %v14536_v45  ;;  %v14558_v45 = vld [vmem:[#allocation55_spill] sm:$0xff] }
 0x113   :  { %6722 = vmatpush1.bf16.msra.mxu1 %v6721_v6  ;;  %v14545_v6 = vpack.c.bf16 %v14410_v59, %v9324_v62 }
 0x114   :  { %6590 = vmatpush1.bf16.msra.mxu0 %v14537_v33  ;;  %6724 = vmatprep.subr.bf16.mxu1 %v14539_v58  ;;  %v14559_v33 = vpack.c.bf16 %v14557_v36, %v14558_v45  ;;  %v14561_v58 = vld [vmem:[#allocation58_spill] sm:$0xff] }
 0x115   :  { %6592 = vmatprep.subr.bf16.mxu0 %v14538_v25  ;;  %v14560_v25 = vld [vmem:[#allocation78_spill] sm:$0xff] }
 0x116   :  { %1991 = vmatmul.mubr.f32.vlgmr.msra.gmra.mrb[2].mxu1 %v14541_v4 }
 0x117   :  { %6726 = vmatpush1.bf16.msra.mxu1 %v14542_v29  ;;  %2191 = vmatprep.mubr.f32.mxu1 %v14543_v48  ;;  %v14563_v29 = vld [vmem:[#allocation81_spill] sm:$0xff]  ;;  %v14564_v48 = vld [vmem:[#allocation80_spill] sm:$0xff] }
 0x118   :  { %6594 = vmatpush1.bf16.msra.mxu0 %v14540_v55  ;;  %6728 = vmatprep.subr.bf16.mxu1 %v14544_v18  ;;  %v14562_v55 = vpack.c.bf16 %v14560_v25, %v14561_v58  ;;  %v14565_v18 = vpack.c.bf16 %v14563_v29, %v14564_v48  ;;  %v14587_v29 = vld [vmem:[#allocation98_spill] sm:$0xff]  ;;  %v2757_v25 = vld [vmem:[%s13165_s3 + $0x50] sm:$0xff] }
 0x119   :  { %v14588_v48 = vpack.c.bf16 %v14474_v17, %v14587_v29  ;;  %v14591_v17 = vld [vmem:[#allocation101_spill] sm:$0xff]  ;;  %v2755_v29 = vld [vmem:[%s13165_s3 + $0x40] sm:$0xff] }
 0x11b   :  { %1453 = vmatmul.mubr.f32.vlgmr.msra.gmra.mrb[0].mxu0 %v14541_v4  ;;  %6730 = vmatpush1.bf16.msra.mxu1 %v14545_v6  ;;  %v14566_v6 = vld [vmem:[#allocation83_spill] sm:$0xff]  ;;  %v14579_v4 = vld [vmem:[#allocation92_spill] sm:$0xff] }
 0x11c   :  { %6732 = vmatprep.subr.bf16.mxu1 %v14546_v49  ;;  %v14567_v49 = vld [vmem:[#allocation82_spill] sm:$0xff] }
 0x11f   :  { %6734 = vmatpush1.bf16.msra.mxu1 %v14547_v9  ;;  %v14568_v9 = vpack.c.bf16 %v14566_v6, %v14567_v49  ;;  %v2753_v49 = vld [vmem:[%s13165_s3 + $0x30] sm:$0xff] }
 0x120   :  { %6736 = vmatprep.subr.bf16.mxu1 %v14548_v8  ;;  %v14569_v8 = vld [vmem:[#allocation85_spill] sm:$0xff] }
 0x123   :  { %6738 = vmatpush1.bf16.msra.mxu1 %v14549_v12  ;;  %v14570_v12 = vld [vmem:[#allocation84_spill] sm:$0xff] }
 0x124   :  { %6740 = vmatprep.subr.bf16.mxu1 %v14550_v22  ;;  %v14571_v22 = vpack.c.bf16 %v14569_v8, %v14570_v12  ;;  %v2877_v8 = vand.u32 4294901760, %v2749_v13  ;;  %v2754_v12 = vld [vmem:[%s13165_s3 + $0x38] sm:$0xff] }
 0x127   :  { %6742 = vmatpush1.bf16.msra.mxu1 %v14553_v24  ;;  %v14572_v24 = vld [vmem:[#allocation88_spill] sm:$0xff] }
 0x128   :  { %6744 = vmatprep.subr.bf16.mxu1 %v14556_v60  ;;  %v14573_v60 = vld [vmem:[#allocation86_spill] sm:$0xff] }
 0x129   :  { %v14574_v63 = vpack.c.bf16 %v14572_v24, %v14573_v60  ;;  %v14580_v24 = vpack.c.bf16 %v14578_v0, %v14579_v4  ;;  %v14583_v0 = vld [vmem:[#allocation96_spill] sm:$0xff] }
 0x12b   :  { %6746 = vmatpush1.bf16.msra.mxu1 %v14559_v33  ;;  %v10205_v33 = vld [vmem:[%s13165_s3 + $0x8] sm:$0xff] }
 0x12c   :  { %6748 = vmatprep.subr.bf16.mxu1 %v14562_v55  ;;  %v10210_v55 = vld [vmem:[%s13165_s3 + $0x18] sm:$0xff] }
 0x12d   :  { %v13519_v52 = vand.u32 4294901760, %v10210_v55 }
 0x12f   :  { %6750 = vmatpush1.bf16.msra.mxu1 %v14565_v18  ;;  %v14575_v18 = vld [vmem:[#allocation90_spill] sm:$0xff] }
 0x130   :  { %6752 = vmatprep.subr.bf16.mxu1 %v14568_v9  ;;  %v14576_v9 = vld [vmem:[#allocation89_spill] sm:$0xff] }
 0x131   :  { %v14577_v16 = vpack.c.bf16 %v14575_v18, %v14576_v9  ;;  %v2752_v9 = vld [vmem:[%s13165_s3 + $0x28] sm:$0xff] }
 0x133   :  { %6754 = vmatpush1.bf16.msra.mxu1 %v14571_v22  ;;  %v13520_v22 = vand.u32 4294901760, %v10205_v33 }
 0x134   :  { %6756 = vmatprep.subr.bf16.mxu1 %v14574_v63  ;;  %v2747_v63 = vld [vmem:[%s13165_s3] sm:$0xff] }
 0x135   :  { %v2873_v60 = vand.u32 4294901760, %v2747_v63 }
 0x137   :  { %6758 = vmatpush1.bf16.msra.mxu1 %v14577_v16  ;;  %v10230_v16 = vpack.c.bf16 %v13519_v52, %v13520_v22  ;;  %v10232_v18 = vpack.c.bf16 %v2877_v8, %v2873_v60  ;;  %v10244_v6 = vsub.f32 %v2747_v63, %v2873_v60  ;;  %v2879_v52 = vand.u32 4294901760, %v2752_v9  ;;  %v2751_v22 = vld [vmem:[%s13165_s3 + $0x20] sm:$0xff] }
 0x138   :  { %6760 = vmatprep.subr.bf16.mxu1 %v14580_v24  ;;  %v14584_v24 = vld [vmem:[#allocation95_spill] sm:$0xff]  ;;  %v2881_v60 = vand.u32 4294901760, %v2751_v22  ;;  %v2885_v63 = vand.u32 4294901760, %v2753_v49 }
 0x139   :  { %14581 = vst [vmem:[#allocation31_spill] sm:$0xff] %v10230_v16  ;;  %14582 = vst [vmem:[#allocation36_spill] sm:$0xff] %v10232_v18  ;;  %v14585_v4 = vpack.c.bf16 %v14583_v0, %v14584_v24  ;;  %6980 = vmatprep.subr.bf16.mxu0 %v10230_v16  ;;  %v2883_v16 = vand.u32 4294901760, %v2754_v12  ;;  %v2756_v0 = vld [vmem:[%s13165_s3 + $0x48] sm:$0xff]  ;;  %v2758_v24 = vld [vmem:[%s13165_s3 + $0x58] sm:$0xff] }
 0x13a   :  { %14586 = vst [vmem:[#allocation73_spill] sm:$0xff] %v10244_v6  ;;  %6982 = vmatpush1.bf16.msra.mxu0 %v10232_v18  ;;  %v10269_v18 = vsub.f32 %v2752_v9, %v2879_v52  ;;  %v2891_v9 = vand.u32 4294901760, %v2758_v24 }
 0x13b   :  { %6762 = vmatpush1.bf16.msra.mxu1 %v14585_v4  ;;  %v10256_v4 = vsub.f32 %v2749_v13, %v2877_v8  ;;  %v10258_v6 = vpack.c.bf16 %v2883_v16, %v2879_v52  ;;  %v10271_v13 = vsub.f32 %v2754_v12, %v2883_v16  ;;  %v10273_v8 = vpack.c.bf16 %v2885_v63, %v2881_v60 }
 0x13c   :  { %6764 = vmatprep.subr.bf16.mxu1 %v14588_v48  ;;  %v14592_v48 = vpack.c.bf16 %v14484_v42, %v14591_v17  ;;  %14593 = vst [vmem:[#allocation2_spill] sm:$0xff] %v10269_v18  ;;  %v14597_v42 = vpack.c.bf16 %v14486_v46, %v14485_v47  ;;  %v10287_v52 = vsub.f32 %v2753_v49, %v2885_v63  ;;  %v2887_v12 = vand.u32 4294901760, %v2756_v0  ;;  %v14613_v18 = vld [vmem:[#allocation114_spill] sm:$0xff]  ;;  %v14700_v47 = vld [vmem:[#allocation79_spill] sm:$0xff] }
 0x13d   :  { %14589 = vst [vmem:[#allocation48_spill] sm:$0xff] %v10256_v4  ;;  %14590 = vst [vmem:[#allocation76_spill] sm:$0xff] %v10258_v6  ;;  %v10275_v4 = vsub.f32 %v2751_v22, %v2881_v60  ;;  %6984 = vmatprep.subr.bf16.mxu0 %v10258_v6  ;;  %v2889_v22 = vand.u32 4294901760, %v2755_v29  ;;  %v2893_v16 = vand.u32 4294901760, %v2757_v25  ;;  %v2760_v60 = vld [vmem:[%s13165_s3 + $0x68] sm:$0xff] }
 0x13e   :  { %14594 = vst [vmem:[#allocation6_spill] sm:$0xff] %v10271_v13  ;;  %14595 = vst [vmem:[#allocation7_spill] sm:$0xff] %v10273_v8  ;;  %6986 = vmatpush1.bf16.msra.mxu0 %v10273_v8  ;;  %v10299_v49 = vpack.c.bf16 %v2891_v9, %v2887_v12  ;;  %v10301_v63 = vsub.f32 %v2756_v0, %v2887_v12  ;;  %v10303_v8 = vsub.f32 %v2758_v24, %v2891_v9 }
 0x13f   :  { %6766 = vmatpush1.bf16.msra.mxu1 %v14592_v48  ;;  %14596 = vst [vmem:[#allocation9_spill] sm:$0xff] %v10275_v4  ;;  %14598 = vst [vmem:[#allocation10_spill] sm:$0xff] %v10287_v52  ;;  %v2762_v48 = vld [vmem:[%s13165_s3 + $0x78] sm:$0xff]  ;;  %v10305_v6 = vpack.c.bf16 %v2893_v16, %v2889_v22  ;;  %v2759_v52 = vld [vmem:[%s13165_s3 + $0x60] sm:$0xff]  ;;  %v14604_v13 = vpack.c.bf16 %v14490_v21, %v14489_v31  ;;  %v10318_v0 = vsub.f32 %v2757_v25, %v2893_v16 }
 0x140   :  { %6768 = vmatprep.subr.bf16.mxu1 %v14597_v42  ;;  %v14599_v42 = vpack.c.bf16 %v14488_v5, %v14487_v20  ;;  %14600 = vst [vmem:[#allocation11_spill] sm:$0xff] %v10299_v49  ;;  %14601 = vst [vmem:[#allocation12_spill] sm:$0xff] %v10301_v63  ;;  %v2761_v4 = vld [vmem:[%s13165_s3 + $0x70] sm:$0xff]  ;;  %6988 = vmatprep.subr.bf16.mxu0 %v10299_v49  ;;  %v2895_v24 = vand.u32 4294901760, %v2760_v60  ;;  %v2899_v12 = vand.u32 4294901760, %v2762_v48  ;;  %v2897_v9 = vand.u32 4294901760, %v2759_v52 }
 0x141   :  { %14602 = vst [vmem:[#allocation13_spill] sm:$0xff] %v10303_v8  ;;  %14603 = vst [vmem:[#allocation14_spill] sm:$0xff] %v10305_v6  ;;  %v2901_v8 = vand.u32 4294901760, %v2761_v4  ;;  %v2764_v63 = vld [vmem:[%s13165_s3 + $0x88] sm:$0xff]  ;;  %v14614_v21 = vld [vmem:[#allocation113_spill] sm:$0xff] }
 0x142   :  { %14606 = vst [vmem:[#allocation16_spill] sm:$0xff] %v10318_v0  ;;  %6990 = vmatpush1.bf16.msra.mxu0 %v10305_v6  ;;  %v10333_v16 = vsub.f32 %v2760_v60, %v2895_v24  ;;  %v10335_v49 = vsub.f32 %v2762_v48, %v2899_v12  ;;  %v2763_v6 = vld [vmem:[%s13165_s3 + $0x80] sm:$0xff]  ;;  %v2903_v48 = vand.u32 4294901760, %v2764_v63  ;;  %v2809_v5 = vld [vmem:[%s13165_s3 + $0x1f0] sm:$0xff] }
 0x143   :  { %6770 = vmatpush1.bf16.msra.mxu1 %v14599_v42  ;;  %v10316_v42 = vsub.f32 %v2755_v29, %v2889_v22  ;;  %v14607_v29 = vld [vmem:[#allocation110_spill] sm:$0xff]  ;;  %v10331_v22 = vpack.c.bf16 %v2899_v12, %v2895_v24  ;;  %v10337_v0 = vpack.c.bf16 %v2901_v8, %v2897_v9  ;;  %v10350_v60 = vsub.f32 %v2761_v4, %v2901_v8 }
 0x144   :  { %6772 = vmatprep.subr.bf16.mxu1 %v14604_v13  ;;  %v2766_v13 = vld [vmem:[%s13165_s3 + $0x98] sm:$0xff]  ;;  %v14608_v25 = vpack.c.bf16 %v14492_v50, %v14607_v29  ;;  %14610 = vst [vmem:[#allocation21_spill] sm:$0xff] %v10333_v16  ;;  %14611 = vst [vmem:[#allocation26_spill] sm:$0xff] %v10335_v49  ;;  %v14615_v50 = vpack.c.bf16 %v14613_v18, %v14614_v21  ;;  %v2905_v12 = vand.u32 4294901760, %v2763_v6  ;;  %v2768_v16 = vld [vmem:[%s13165_s3 + $0xa8] sm:$0xff] }
 0x145   :  { %14605 = vst [vmem:[#allocation15_spill] sm:$0xff] %v10316_v42  ;;  %14609 = vst [vmem:[#allocation20_spill] sm:$0xff] %v10331_v22  ;;  %v2765_v42 = vld [vmem:[%s13165_s3 + $0x90] sm:$0xff]  ;;  %6992 = vmatprep.subr.bf16.mxu0 %v10331_v22  ;;  %v2907_v24 = vand.u32 4294901760, %v2766_v13  ;;  %v14618_v4 = vpack.c.bf16 %v14496_v32, %v14495_v35  ;;  %v2803_v35 = vld [vmem:[%s13165_s3 + $0x1c0] sm:$0xff] }
 0x146   :  { %14612 = vst [vmem:[#allocation27_spill] sm:$0xff] %v10337_v0  ;;  %14617 = vst [vmem:[#allocation33_spill] sm:$0xff] %v10350_v60  ;;  %v2909_v49 = vand.u32 4294901760, %v2765_v42  ;;  %6994 = vmatpush1.bf16.msra.mxu0 %v10337_v0  ;;  %v2767_v0 = vld [vmem:[%s13165_s3 + $0xa0] sm:$0xff]  ;;  %v2769_v60 = vld [vmem:[%s13165_s3 + $0xb0] sm:$0xff] }
 0x147   :  { %6774 = vmatpush1.bf16.msra.mxu1 %v14608_v25  ;;  %v10348_v25 = vsub.f32 %v2759_v52, %v2897_v9  ;;  %v10363_v8 = vpack.c.bf16 %v2907_v24, %v2903_v48  ;;  %v10365_v52 = vsub.f32 %v2764_v63, %v2903_v48  ;;  %v10367_v9 = vsub.f32 %v2766_v13, %v2907_v24  ;;  %v14696_v18 = vld [vmem:[#allocation46_spill] sm:$0xff]  ;;  %v14699_v29 = vld [vmem:[#allocation77_spill] sm:$0xff] }
 0x148   :  { %6776 = vmatprep.subr.bf16.mxu1 %v14615_v50  ;;  %v2770_v50 = vld [vmem:[%s13165_s3 + $0xb8] sm:$0xff]  ;;  %v10369_v22 = vpack.c.bf16 %v2909_v49, %v2905_v12  ;;  %v10382_v63 = vsub.f32 %v2765_v42, %v2909_v49  ;;  %v2911_v13 = vand.u32 4294901760, %v2768_v16  ;;  %v2913_v24 = vand.u32 4294901760, %v2767_v0 }
 0x149   :  { %14616 = vst [vmem:[#allocation32_spill] sm:$0xff] %v10348_v25  ;;  %14619 = vst [vmem:[#allocation38_spill] sm:$0xff] %v10363_v8  ;;  %v14623_v25 = vpack.c.bf16 %v14498_v40, %v14497_v30  ;;  %6996 = vmatprep.subr.bf16.mxu0 %v10363_v8  ;;  %v2915_v48 = vand.u32 4294901760, %v2770_v50  ;;  %v14695_v40 = vand.u32 4294901760, %v10210_v55 }
 0x14a   :  { %14620 = vst [vmem:[#allocation41_spill] sm:$0xff] %v10365_v52  ;;  %14621 = vst [vmem:[#allocation44_spill] sm:$0xff] %v10367_v9  ;;  %v2917_v9 = vand.u32 4294901760, %v2769_v60  ;;  %6998 = vmatpush1.bf16.msra.mxu0 %v10369_v22  ;;  %v2772_v52 = vld [vmem:[%s13165_s3 + $0xc8] sm:$0xff]  ;;  %v10397_v42 = vsub.f32 %v2768_v16, %v2911_v13 }
 0x14b   :  { %6778 = vmatpush1.bf16.msra.mxu1 %v14618_v4  ;;  %14622 = vst [vmem:[#allocation45_spill] sm:$0xff] %v10369_v22  ;;  %v10380_v4 = vsub.f32 %v2763_v6, %v2905_v12  ;;  %14625 = vst [vmem:[#allocation51_spill] sm:$0xff] %v10382_v63  ;;  %v14626_v6 = vpack.c.bf16 %v14500_v56, %v14499_v10  ;;  %v10395_v49 = vpack.c.bf16 %v2915_v48, %v2911_v13  ;;  %v2771_v22 = vld [vmem:[%s13165_s3 + $0xc0] sm:$0xff]  ;;  %v2773_v63 = vld [vmem:[%s13165_s3 + $0xd0] sm:$0xff] }
 0x14c   :  { %6780 = vmatprep.subr.bf16.mxu1 %v14623_v25  ;;  %v2774_v25 = vld [vmem:[%s13165_s3 + $0xd8] sm:$0xff]  ;;  %14628 = vst [vmem:[#allocation59_spill] sm:$0xff] %v10397_v42  ;;  %v10399_v12 = vsub.f32 %v2770_v50, %v2915_v48  ;;  %v10401_v8 = vpack.c.bf16 %v2917_v9, %v2913_v24  ;;  %v10414_v16 = vsub.f32 %v2769_v60, %v2917_v9  ;;  %v2919_v50 = vand.u32 4294901760, %v2772_v52  ;;  %v2776_v42 = vld [vmem:[%s13165_s3 + $0xe8] sm:$0xff] }
 0x14d   :  { %14624 = vst [vmem:[#allocation50_spill] sm:$0xff] %v10380_v4  ;;  %14627 = vst [vmem:[#allocation56_spill] sm:$0xff] %v10395_v49  ;;  %v14631_v4 = vpack.c.bf16 %v14502_v11, %v14501_v3  ;;  %7000 = vmatprep.subr.bf16.mxu0 %v10395_v49  ;;  %v2923_v13 = vand.u32 4294901760, %v2774_v25  ;;  %v2921_v48 = vand.u32 4294901760, %v2771_v22  ;;  %v2804_v3 = vld [vmem:[%s13165_s3 + $0x1c8] sm:$0xff]  ;;  %v2806_v56 = vld [vmem:[%s13165_s3 + $0x1d8] sm:$0xff] }
 0x14e   :  { %14629 = vst [vmem:[#allocation60_spill] sm:$0xff] %v10399_v12  ;;  %14630 = vst [vmem:[#allocation62_spill] sm:$0xff] %v10401_v8  ;;  %v2925_v12 = vand.u32 4294901760, %v2773_v63  ;;  %7002 = vmatpush1.bf16.msra.mxu0 %v10401_v8  ;;  %v10429_v9 = vsub.f32 %v2772_v52, %v2919_v50  ;;  %v2775_v8 = vld [vmem:[%s13165_s3 + $0xe0] sm:$0xff]  ;;  %v2927_v52 = vand.u32 4294901760, %v2776_v42  ;;  %v14692_v10 = vld [vmem:[#allocation37_spill] sm:$0xff] }
 0x14f   :  { %6782 = vmatpush1.bf16.msra.mxu1 %v14626_v6  ;;  %v10412_v6 = vsub.f32 %v2767_v0, %v2913_v24  ;;  %14633 = vst [vmem:[#allocation67_spill] sm:$0xff] %v10414_v16  ;;  %v14634_v0 = vpack.c.bf16 %v14504_v26, %v14503_v41  ;;  %v10427_v60 = vpack.c.bf16 %v2923_v13, %v2919_v50  ;;  %v2777_v16 = vld [vmem:[%s13165_s3 + $0xf0] sm:$0xff]  ;;  %v14649_v41 = vld [vmem:[#allocation42_spill] sm:$0xff]  ;;  %v2983_v30 = vand.u32 4294901760, %v2804_v3 }
 0x150   :  { %6784 = vmatprep.subr.bf16.mxu1 %v14631_v4  ;;  %v2778_v4 = vld [vmem:[%s13165_s3 + $0xf8] sm:$0xff]  ;;  %14636 = vst [vmem:[#allocation74_spill] sm:$0xff] %v10429_v9  ;;  %v10431_v24 = vsub.f32 %v2774_v25, %v2923_v13  ;;  %v10433_v49 = vpack.c.bf16 %v2925_v12, %v2921_v48  ;;  %v10442_v26 = vsub.f32 %v2771_v22, %v2921_v48  ;;  %v2929_v25 = vand.u32 4294901760, %v2775_v8 }
 0x151   :  { %14632 = vst [vmem:[#allocation63_spill] sm:$0xff] %v10412_v6  ;;  %14635 = vst [vmem:[#allocation69_spill] sm:$0xff] %v10427_v60  ;;  %v14639_v6 = vld [vmem:[#allocation39_spill] sm:$0xff]  ;;  %v2931_v50 = vand.u32 4294901760, %v2778_v4  ;;  %7004 = vmatprep.subr.bf16.mxu0 %v10427_v60  ;;  %v2933_v13 = vand.u32 4294901760, %v2777_v16  ;;  %v2782_v22 = vld [vmem:[%s13165_s3 + $0x118] sm:$0xff]  ;;  %v10459_v48 = vsub.f32 %v2776_v42, %v2927_v52 }
 0x152   :  { %14637 = vst [vmem:[#allocation75_spill] sm:$0xff] %v10431_v24  ;;  %14638 = vst [vmem:[#allocation68_spill] sm:$0xff] %v10433_v49  ;;  %v14642_v24 = vld [vmem:[#allocation70_spill] sm:$0xff]  ;;  %7006 = vmatpush1.bf16.msra.mxu0 %v10433_v49  ;;  %v2987_v32 = vand.u32 4294901760, %v2806_v56 }
 0x153   :  { %6786 = vmatpush1.bf16.msra.mxu1 %v14634_v0  ;;  %14640 = vst [vmem:[#allocation123_spill] sm:$0xff] %v10442_v26  ;;  %v10444_v0 = vsub.f32 %v2773_v63, %v2925_v12  ;;  %v10449_v9 = vpack.c.bf16 %v2931_v50, %v2927_v52  ;;  %v14644_v63 = vld [vmem:[#allocation40_spill] sm:$0xff]  ;;  %v14645_v12 = vld [vmem:[#allocation71_spill] sm:$0xff]  ;;  %v10461_v60 = vsub.f32 %v2778_v4, %v2931_v50  ;;  %v2939_v4 = vand.u32 4294901760, %v2782_v22 }
 0x154   :  { %6788 = vmatprep.subr.bf16.mxu1 %v14639_v6  ;;  %v2780_v6 = vld [vmem:[%s13165_s3 + $0x108] sm:$0xff]  ;;  %14646 = vst [vmem:[#allocation71_spill] sm:$0xff] %v10459_v48  ;;  %v2781_v26 = vld [vmem:[%s13165_s3 + $0x110] sm:$0xff]  ;;  %v10475_v42 = vsub.f32 %v2777_v16, %v2933_v13  ;;  %v10649_v21 = vpack.c.bf16 %v2987_v32, %v2983_v30 }
 0x155   :  { %14641 = vst [vmem:[#allocation124_spill] sm:$0xff] %v10444_v0  ;;  %14643 = vst [vmem:[#allocation70_spill] sm:$0xff] %v10449_v9  ;;  %v2935_v49 = vand.u32 4294901760, %v2780_v6  ;;  %v2779_v0 = vld [vmem:[%s13165_s3 + $0x100] sm:$0xff]  ;;  %7008 = vmatprep.subr.bf16.mxu0 %v10449_v9  ;;  %v2941_v50 = vand.u32 4294901760, %v2781_v26  ;;  %v2784_v48 = vld [vmem:[%s13165_s3 + $0x128] sm:$0xff]  ;;  %v10489_v16 = vsub.f32 %v2782_v22, %v2939_v4 }
 0x156   :  { %2194 = vmatmul.mubr.f32.vlgmr.msra.gmra.mrb[2].mxu1 %v14642_v24  ;;  %14647 = vst [vmem:[#allocation125_spill] sm:$0xff] %v10461_v60  ;;  %v10463_v24 = vpack.c.bf16 %v2933_v13, %v2929_v25  ;;  %14651 = vst [vmem:[#allocation128_spill] sm:$0xff] %v10475_v42  ;;  %v2937_v52 = vand.u32 4294901760, %v2779_v0  ;;  %v14653_v9 = vld [vmem:[#allocation43_spill] sm:$0xff]  ;;  %v2785_v42 = vld [vmem:[%s13165_s3 + $0x130] sm:$0xff] }
 0x157   :  { %6790 = vmatpush1.bf16.msra.mxu1 %v14644_v63  ;;  %2331 = vmatprep.mubr.f32.mxu1 %v14645_v12  ;;  %v10473_v12 = vsub.f32 %v2775_v8, %v2929_v25  ;;  %v10478_v60 = vpack.c.bf16 %v2939_v4, %v2935_v49  ;;  %v10487_v8 = vsub.f32 %v2780_v6, %v2935_v49  ;;  %v2943_v6 = vand.u32 4294901760, %v2784_v48 }
 0x158   :  { %14648 = vst [vmem:[#allocation126_spill] sm:$0xff] %v10463_v24  ;;  %6792 = vmatprep.subr.bf16.mxu1 %v14649_v41  ;;  %7010 = vmatpush1.bf16.msra.mxu0 %v10463_v24  ;;  %v2786_v41 = vld [vmem:[%s13165_s3 + $0x138] sm:$0xff]  ;;  %14655 = vst [vmem:[#allocation131_spill] sm:$0xff] %v10489_v16  ;;  %v10491_v25 = vpack.c.bf16 %v2941_v50, %v2937_v52  ;;  %v10493_v13 = vsub.f32 %v2779_v0, %v2937_v52  ;;  %v2783_v24 = vld [vmem:[%s13165_s3 + $0x120] sm:$0xff]  ;;  %v2949_v16 = vand.u32 4294901760, %v2785_v42 }
 0x159   :  { %14650 = vst [vmem:[#allocation127_spill] sm:$0xff] %v10473_v12  ;;  %14652 = vst [vmem:[#allocation129_spill] sm:$0xff] %v10478_v60  ;;  %v14658_v12 = vld [vmem:[#allocation47_spill] sm:$0xff]  ;;  %7012 = vmatprep.subr.bf16.mxu0 %v10478_v60  ;;  %v10503_v49 = vsub.f32 %v2781_v26, %v2941_v50  ;;  %v2947_v22 = vand.u32 4294901760, %v2786_v41  ;;  %v2945_v4 = vand.u32 4294901760, %v2783_v24  ;;  %v10515_v26 = vsub.f32 %v2784_v48, %v2943_v6 }
 0x15a   :  { %14654 = vst [vmem:[#allocation130_spill] sm:$0xff] %v10487_v8  ;;  %14656 = vst [vmem:[#allocation132_spill] sm:$0xff] %v10491_v25  ;;  %v2788_v52 = vld [vmem:[%s13165_s3 + $0x148] sm:$0xff]  ;;  %v10531_v48 = vsub.f32 %v2785_v42, %v2949_v16 }
 0x15b   :  { %6794 = vmatpush1.bf16.msra.mxu1 %v14653_v9  ;;  %14657 = vst [vmem:[#allocation133_spill] sm:$0xff] %v10493_v13  ;;  %14659 = vst [vmem:[#allocation134_spill] sm:$0xff] %v10503_v49  ;;  %v10506_v0 = vpack.c.bf16 %v2947_v22, %v2943_v6  ;;  %v2790_v13 = vld [vmem:[%s13165_s3 + $0x158] sm:$0xff]  ;;  %v14661_v8 = vld [vmem:[#allocation3_spill] sm:$0xff]  ;;  %v10517_v50 = vsub.f32 %v2786_v41, %v2947_v22  ;;  %v10519_v60 = vpack.c.bf16 %v2949_v16, %v2945_v4 }
 0x15c   :  { %6796 = vmatprep.subr.bf16.mxu1 %v14658_v12  ;;  %7014 = vmatpush1.bf16.msra.mxu0 %v10491_v25  ;;  %14662 = vst [vmem:[#allocation136_spill] sm:$0xff] %v10515_v26  ;;  %v10521_v49 = vsub.f32 %v2783_v24, %v2945_v4  ;;  %v2787_v25 = vld [vmem:[%s13165_s3 + $0x140] sm:$0xff]  ;;  %v2789_v12 = vld [vmem:[%s13165_s3 + $0x150] sm:$0xff]  ;;  %14667 = vst [vmem:[#allocation140_spill] sm:$0xff] %v10531_v48  ;;  %v2951_v41 = vand.u32 4294901760, %v2788_v52  ;;  %v2955_v6 = vand.u32 4294901760, %v2790_v13 }
 0x15d   :  { %14660 = vst [vmem:[#allocation135_spill] sm:$0xff] %v10506_v0  ;;  %14663 = vst [vmem:[#allocation137_spill] sm:$0xff] %v10517_v50  ;;  %v14666_v9 = vld [vmem:[#allocation4_spill] sm:$0xff]  ;;  %7016 = vmatprep.subr.bf16.mxu0 %v10506_v0  ;;  %v2953_v22 = vand.u32 4294901760, %v2787_v25  ;;  %v2957_v50 = vand.u32 4294901760, %v2789_v12  ;;  %v2792_v4 = vld [vmem:[%s13165_s3 + $0x168] sm:$0xff] }
 0x15e   :  { %14664 = vst [vmem:[#allocation138_spill] sm:$0xff] %v10519_v60  ;;  %14665 = vst [vmem:[#allocation139_spill] sm:$0xff] %v10521_v49  ;;  %v10534_v24 = vpack.c.bf16 %v2955_v6, %v2951_v41  ;;  %v2794_v49 = vld [vmem:[%s13165_s3 + $0x178] sm:$0xff]  ;;  %v10543_v42 = vsub.f32 %v2788_v52, %v2951_v41  ;;  %v10545_v16 = vsub.f32 %v2790_v13, %v2955_v6  ;;  %v2959_v13 = vand.u32 4294901760, %v2792_v4 }
 0x15f   :  { %6798 = vmatpush1.bf16.msra.mxu1 %v14661_v8  ;;  %v14669_v26 = vld [vmem:[#allocation17_spill] sm:$0xff]  ;;  %v10547_v0 = vpack.c.bf16 %v2957_v50, %v2953_v22  ;;  %v10549_v48 = vsub.f32 %v2787_v25, %v2953_v22  ;;  %v14674_v8 = vld [vmem:[#allocation22_spill] sm:$0xff]  ;;  %v10559_v52 = vsub.f32 %v2789_v12, %v2957_v50  ;;  %v2963_v41 = vand.u32 4294901760, %v2794_v49  ;;  %v10567_v22 = vld [vmem:[%s13165_s3 + $0x188] sm:$0xff]  ;;  %14697 = vst [vmem:[#allocation160_spill] sm:$0xff] %v10649_v21 }
 0x160   :  { %6800 = vmatprep.subr.bf16.mxu1 %v14666_v9  ;;  %7018 = vmatpush1.bf16.msra.mxu0 %v10519_v60  ;;  %14668 = vst [vmem:[#allocation141_spill] sm:$0xff] %v10534_v24  ;;  %14670 = vst [vmem:[#allocation142_spill] sm:$0xff] %v10543_v42  ;;  %v2791_v60 = vld [vmem:[%s13165_s3 + $0x160] sm:$0xff]  ;;  %v2793_v9 = vld [vmem:[%s13165_s3 + $0x170] sm:$0xff]  ;;  %v10575_v50 = vsub.f32 %v2792_v4, %v2959_v13 }
 0x161   :  { %14671 = vst [vmem:[#allocation143_spill] sm:$0xff] %v10545_v16  ;;  %14672 = vst [vmem:[#allocation144_spill] sm:$0xff] %v10547_v0  ;;  %7020 = vmatprep.subr.bf16.mxu0 %v10534_v24  ;;  %v2961_v6 = vand.u32 4294901760, %v2791_v60  ;;  %v2965_v16 = vand.u32 4294901760, %v2793_v9  ;;  %v10562_v25 = vpack.c.bf16 %v2963_v41, %v2959_v13  ;;  %v14677_v12 = vld [vmem:[#allocation23_spill] sm:$0xff]  ;;  %v10577_v24 = vsub.f32 %v2794_v49, %v2963_v41  ;;  %v2795_v42 = vld [vmem:[%s13165_s3 + $0x180] sm:$0xff] }
 0x162   :  { %14673 = vst [vmem:[#allocation145_spill] sm:$0xff] %v10549_v48  ;;  %14675 = vst [vmem:[#allocation146_spill] sm:$0xff] %v10559_v52  ;;  %v10572_v48 = vld [vmem:[%s13165_s3 + $0x198] sm:$0xff]  ;;  %v2967_v49 = vand.u32 4294901760, %v10567_v22  ;;  %v10595_v41 = vpop.f32.mrb[0].mxu1 }
 0x163   :  { %6802 = vmatpush1.bf16.msra.mxu1 %v14669_v26  ;;  %14676 = vst [vmem:[#allocation147_spill] sm:$0xff] %v10562_v25  ;;  %14678 = vst [vmem:[#allocation148_spill] sm:$0xff] %v10575_v50  ;;  %v10579_v52 = vpack.c.bf16 %v2965_v16, %v2961_v6  ;;  %v14682_v26 = vld [vmem:[#allocation28_spill] sm:$0xff]  ;;  %v10591_v4 = vsub.f32 %v2793_v9, %v2965_v16  ;;  %v2971_v13 = vand.u32 4294901760, %v10572_v48  ;;  %v2802_v9 = vld [vmem:[%s13165_s3 + $0x1b8] sm:$0xff] }
 0x164   :  { %6804 = vmatprep.subr.bf16.mxu1 %v14674_v8  ;;  %7022 = vmatpush1.bf16.msra.mxu0 %v10547_v0  ;;  %14679 = vst [vmem:[#allocation149_spill] sm:$0xff] %v10577_v24  ;;  %v10581_v0 = vsub.f32 %v2791_v60, %v2961_v6  ;;  %v2797_v8 = vld [vmem:[%s13165_s3 + $0x190] sm:$0xff]  ;;  %v2969_v60 = vand.u32 4294901760, %v2795_v42  ;;  %14684 = vst [vmem:[#allocation153_spill] sm:$0xff] %v10595_v41  ;;  %v14687_v16 = vld [vmem:[#allocation34_spill] sm:$0xff]  ;;  %v2979_v41 = vand.u32 4294901760, %v2802_v9 }
 0x165   :  { %14680 = vst [vmem:[#allocation150_spill] sm:$0xff] %v10579_v52  ;;  %7024 = vmatprep.subr.bf16.mxu0 %v10562_v25  ;;  %14683 = vst [vmem:[#allocation152_spill] sm:$0xff] %v10591_v4  ;;  %v2973_v6 = vand.u32 4294901760, %v2797_v8  ;;  %v10600_v24 = vpack.c.bf16 %v2971_v13, %v2967_v49  ;;  %v2800_v25 = vld [vmem:[%s13165_s3 + $0x1a8] sm:$0xff]  ;;  %v10680_v45 = vsub.f32 %v10567_v22, %v2967_v49 }
 0x166   :  { %14681 = vst [vmem:[#allocation151_spill] sm:$0xff] %v10581_v0  ;;  %v10597_v0 = vpop.f32.mrb[1].mxu1  ;;  %v2975_v50 = vand.u32 4294901760, %v2800_v25  ;;  %v10683_v38 = vsub.f32 %v10572_v48, %v2971_v13  ;;  %v10685_v51 = vsub.f32 %v2795_v42, %v2969_v60  ;;  %v14711_v22 = vld [vmem:[#allocation91_spill] sm:$0xff]  ;;  %v10700_v48 = vsub.f32 %v2804_v3, %v2983_v30 }
 0x167   :  { %6806 = vmatpush1.bf16.msra.mxu1 %v14677_v12  ;;  %14685 = vst [vmem:[#allocation154_spill] sm:$0xff] %v10597_v0  ;;  %14686 = vst [vmem:[#allocation155_spill] sm:$0xff] %v10600_v24  ;;  %v10609_v4 = vpack.c.bf16 %v2973_v6, %v2969_v60  ;;  %v2801_v0 = vld [vmem:[%s13165_s3 + $0x1b0] sm:$0xff]  ;;  %v10702_v42 = vsub.f32 %v2806_v56, %v2987_v32  ;;  %v14719_v56 = vld [vmem:[#allocation94_spill] sm:$0xff]  ;;  %v14731_v13 = vand.u32 4294901760, %v9266_v37  ;;  %v14732_v60 = vand.u32 4294901760, %v9271_v19 }
 0x168   :  { %6808 = vmatprep.subr.bf16.mxu1 %v14682_v26  ;;  %7026 = vmatpush1.bf16.msra.mxu0 %v10579_v52  ;;  %v2799_v52 = vld [vmem:[%s13165_s3 + $0x1a0] sm:$0xff]  ;;  %v14689_v26 = vld [vmem:[#allocation35_spill] sm:$0xff]  ;;  %v2981_v63 = vand.u32 4294901760, %v2801_v0  ;;  %v10619_v11 = vpack.c.bf16 %v2979_v41, %v2975_v50  ;;  %14702 = vst [vmem:[#allocation163_spill] sm:$0xff] %v10680_v45  ;;  %14703 = vst [vmem:[#allocation164_spill] sm:$0xff] %v10683_v38  ;;  %v10691_v2 = vsub.f32 %v2800_v25, %v2975_v50 }
 0x169   :  { %14688 = vst [vmem:[#allocation156_spill] sm:$0xff] %v10609_v4  ;;  %7028 = vmatprep.subr.bf16.mxu0 %v10600_v24  ;;  %v2977_v12 = vand.u32 4294901760, %v2799_v52  ;;  %v14693_v24 = vand.u32 4294901760, %v10205_v33  ;;  %14704 = vst [vmem:[#allocation165_spill] sm:$0xff] %v10685_v51  ;;  %v14721_v32 = vld [vmem:[#allocation100_spill] sm:$0xff]  ;;  %v14739_v37 = vand.u32 4294901760, %v9324_v62 }
 0x16a   :  { %14690 = vst [vmem:[#allocation157_spill] sm:$0xff] %v10619_v11  ;;  %14707 = vst [vmem:[#allocation87_spill] sm:$0xff] %v10691_v2  ;;  %v14740_v19 = vand.u32 4294901760, %v14410_v59  ;;  %v14746_v62 = vand.u32 4294901760, %v9412_v53  ;;  %v14747_v59 = vand.u32 4294901760, %v9417_v39  ;;  %v14756_v39 = vld [vmem:[#allocation53_spill] sm:$0xff] }
 0x16b   :  { %6810 = vmatpush1.bf16.msra.mxu1 %v14687_v16  ;;  %v10622_v16 = vpack.c.bf16 %v2981_v63, %v2977_v12  ;;  %14712 = vst [vmem:[#allocation91_spill] sm:$0xff] %v10700_v48  ;;  %14713 = vst [vmem:[#allocation170_spill] sm:$0xff] %v10702_v42 }
 0x16c   :  { %6812 = vmatprep.subr.bf16.mxu1 %v14689_v26  ;;  %7030 = vmatpush1.bf16.msra.mxu0 %v10609_v4  ;;  %v10634_v26 = vsub.f32 %v10205_v33, %v14693_v24  ;;  %v10639_v4 = vsub.f32 %v10210_v55, %v14695_v40  ;;  %v2985_v33 = vand.u32 4294901760, %v2803_v35  ;;  %v2808_v55 = vld [vmem:[%s13165_s3 + $0x1e8] sm:$0xff] }
 0x16d   :  { %14691 = vst [vmem:[#allocation158_spill] sm:$0xff] %v10622_v16  ;;  %7032 = vmatprep.subr.bf16.mxu0 %v10619_v11  ;;  %v2810_v11 = vld [vmem:[%s13165_s3 + $0x1f8] sm:$0xff] }
 0x16e   :  { %14694 = vst [vmem:[#allocation159_spill] sm:$0xff] %v10634_v26  ;;  %v2995_v31 = vand.u32 4294901760, %v2810_v11  ;;  %v13644_v20 = vand.u32 4294901760, %v10634_v26  ;;  %v13647_v46 = vand.u32 4294901760, %v10639_v4 }
 0x16f   :  { %6814 = vmatpush1.bf16.msra.mxu1 %v14692_v10  ;;  %v2805_v10 = vld [vmem:[%s13165_s3 + $0x1d0] sm:$0xff] }
 0x170   :  { %6816 = vmatprep.subr.bf16.mxu1 %v14696_v18  ;;  %v2989_v24 = vand.u32 4294901760, %v2805_v10  ;;  %7034 = vmatpush1.bf16.msra.mxu0 %v10622_v16  ;;  %v2991_v18 = vand.u32 4294901760, %v2808_v55  ;;  %v2807_v16 = vld [vmem:[%s13165_s3 + $0x1e0] sm:$0xff]  ;;  %v3019_v58 = vsub.f32 %v10634_v26, %v13644_v20  ;;  %v3031_v36 = vsub.f32 %v10639_v4, %v13647_v46 }
 0x171   :  { %7036 = vmatprep.subr.bf16.mxu0 %v10649_v21  ;;  %v2993_v17 = vand.u32 4294901760, %v2807_v16  ;;  %v2997_v21 = vand.u32 4294901760, %v2809_v5  ;;  %v10693_v20 = vsub.f32 %v2802_v9, %v2979_v41  ;;  %v10695_v26 = vsub.f32 %v2799_v52, %v2977_v12  ;;  %v14730_v12 = vld [vmem:[#allocation122_spill] sm:$0xff] }
 0x172   :  { %v10652_v40 = vpack.c.bf16 %v2989_v24, %v2985_v33  ;;  %v10697_v46 = vsub.f32 %v2801_v0, %v2981_v63  ;;  %v10706_v49 = vsub.f32 %v2805_v10, %v2989_v24  ;;  %v10709_v25 = vsub.f32 %v2808_v55, %v2991_v18 }
 0x173   :  { %6818 = vmatpush1.bf16.msra.mxu1 %v14699_v29  ;;  %v10671_v29 = vpack.c.bf16 %v2995_v31, %v2991_v18  ;;  %14708 = vst [vmem:[#allocation167_spill] sm:$0xff] %v10693_v20  ;;  %14709 = vst [vmem:[#allocation168_spill] sm:$0xff] %v10695_v26  ;;  %v10711_v50 = vsub.f32 %v2810_v11, %v2995_v31  ;;  %v10713_v52 = vpack.c.bf16 %v2997_v21, %v2993_v17  ;;  %v14722_v11 = vld [vmem:[#allocation103_spill] sm:$0xff]  ;;  %v14723_v31 = vld [vmem:[#allocation105_spill] sm:$0xff] }
 0x174   :  { %14698 = vst [vmem:[#allocation161_spill] sm:$0xff] %v10652_v40  ;;  %6820 = vmatprep.subr.bf16.mxu1 %v14700_v47  ;;  %v10687_v47 = vsub.f32 %v2797_v8, %v2973_v6  ;;  %7038 = vmatpush1.bf16.msra.mxu0 %v10652_v40  ;;  %14710 = vst [vmem:[#allocation169_spill] sm:$0xff] %v10697_v46  ;;  %v10704_v8 = vsub.f32 %v2803_v35, %v2985_v33  ;;  %v3020_v30 = vand.u32 4294901760, %v3019_v58  ;;  %v14720_v35 = vld [vmem:[#allocation97_spill] sm:$0xff]  ;;  %v14729_v18 = vld [vmem:[#allocation18_spill] sm:$0xff] }
 0x175   :  { %14701 = vst [vmem:[#allocation162_spill] sm:$0xff] %v10671_v29  ;;  %14715 = vst [vmem:[#allocation172_spill] sm:$0xff] %v10706_v49  ;;  %7040 = vmatprep.subr.bf16.mxu0 %v10671_v29  ;;  %v10715_v63 = vsub.f32 %v2807_v16, %v2993_v17  ;;  %v10717_v0 = vsub.f32 %v2809_v5, %v2997_v21  ;;  %v3032_v3 = vand.u32 4294901760, %v3031_v36  ;;  %v14724_v17 = vld [vmem:[#allocation108_spill] sm:$0xff]  ;;  %v14725_v5 = vld [vmem:[#allocation5_spill] sm:$0xff]  ;;  %v14734_v9 = vand.u32 4294901760, %v9293_v61 }
 0x176   :  { %14705 = vst [vmem:[#allocation166_spill] sm:$0xff] %v10687_v47  ;;  %14714 = vst [vmem:[#allocation171_spill] sm:$0xff] %v10704_v8  ;;  %v14726_v21 = vld [vmem:[#allocation112_spill] sm:$0xff]  ;;  %v14727_v36 = vld [vmem:[#allocation115_spill] sm:$0xff]  ;;  %v6851_v41 = vpack.c.bf16 %v14732_v60, %v14731_v13  ;;  %v14735_v16 = vand.u32 4294901760, %v9298_v28  ;;  %v14736_v24 = vand.u32 4294901760, %v9303_v57 }
 0x177   :  { %6822 = vmatpush1.bf16.msra.mxu1 %v14706_v44  ;;  %14716 = vst [vmem:[#allocation173_spill] sm:$0xff] %v10713_v52  ;;  %14717 = vst [vmem:[#allocation174_spill] sm:$0xff] %v10715_v63  ;;  %v7043_v10 = vpack.c.bf16 %v3032_v3, %v3020_v30  ;;  %v14728_v58 = vld [vmem:[#allocation117_spill] sm:$0xff]  ;;  %v14733_v6 = vld [vmem:[#allocation24_spill] sm:$0xff]  ;;  %v14737_v55 = vand.u32 4294901760, %v9308_v43  ;;  %v14742_v61 = vand.u32 4294901760, %v9383_v54 }
 0x178   :  { %6824 = vmatprep.subr.bf16.mxu1 %v14711_v22  ;;  %14718 = vst [vmem:[#allocation175_spill] sm:$0xff] %v10717_v0  ;;  %7042 = vmatpush1.bf16.msra.mxu0 %v10713_v52  ;;  %v6853_v33 = vpack.c.bf16 %v14735_v16, %v14734_v9  ;;  %v14738_v3 = vld [vmem:[#allocation72_spill] sm:$0xff]  ;;  %v14743_v28 = vand.u32 4294901760, %v9388_v7  ;;  %v14744_v43 = vand.u32 4294901760, %v9393_v23  ;;  %v14745_v57 = vand.u32 4294901760, %v9398_v34  ;;  %v14752_v34 = vld [vmem:[#allocation49_spill] sm:$0xff] }
 0x179   :  { %7044 = vmatprep.subr.bf16.mxu0 %v7043_v10  ;;  %v6855_v30 = vpack.c.bf16 %v14737_v55, %v14736_v24  ;;  %v6857_v10 = vpack.c.bf16 %v14740_v19, %v14739_v37  ;;  %v14741_v13 = vld [vmem:[#allocation64_spill] sm:$0xff]  ;;  %v6863_v9 = vpack.c.bf16 %v14747_v59, %v14746_v62  ;;  %v14748_v16 = vand.u32 4294901760, %v9422_v15  ;;  %v14758_v19 = vld [vmem:[#allocation54_spill] sm:$0xff] }
 0x17a   :  { %v6859_v60 = vpack.c.bf16 %v14743_v28, %v14742_v61  ;;  %v14749_v54 = vand.u32 4294901760, %v9427_v14  ;;  %v14750_v7 = vand.u32 4294901760, %v9458_v1  ;;  %v14751_v23 = vand.u32 4294901760, %v9463_v27  ;;  %v14760_v14 = vld [vmem:[#allocation55_spill] sm:$0xff]  ;;  %v14762_v28 = vld [vmem:[#allocation57_spill] sm:$0xff]  ;;  %v14764_v27 = vld [vmem:[#allocation58_spill] sm:$0xff] }
 0x17b   :  { %6826 = vmatpush1.bf16.msra.mxu1 %v14719_v56  ;;  %v14753_v55 = vand.u32 4294901760, %v14752_v34  ;;  %v14757_v37 = vand.u32 4294901760, %v14756_v39  ;;  %v14759_v15 = vand.u32 4294901760, %v14758_v19  ;;  %v14761_v61 = vand.u32 4294901760, %v14760_v14  ;;  %v14768_v59 = vld [vmem:[#allocation80_spill] sm:$0xff]  ;;  %v14780_v19 = vld [vmem:[#allocation86_spill] sm:$0xff] }
 0x17c   :  { %6828 = vmatprep.subr.bf16.mxu1 %v14720_v35  ;;  %v6867_v24 = vpack.c.bf16 %v14751_v23, %v14750_v7  ;;  %v14763_v1 = vand.u32 4294901760, %v14762_v28  ;;  %v14772_v7 = vld [vmem:[#allocation82_spill] sm:$0xff]  ;;  %v14784_v28 = vld [vmem:[#allocation89_spill] sm:$0xff] }
 0x17d   :  { %v14773_v23 = vand.u32 4294901760, %v14772_v7 }
 0x17f   :  { %6830 = vmatpush1.bf16.msra.mxu1 %v14721_v32 }
 0x180   :  { %6832 = vmatprep.subr.bf16.mxu1 %v14722_v11 }
 0x183   :  { %6834 = vmatpush1.bf16.msra.mxu1 %v14723_v31 }
 0x184   :  { %6836 = vmatprep.subr.bf16.mxu1 %v14724_v17 }
 0x187   :  { %6838 = vmatpush1.bf16.msra.mxu1 %v14725_v5 }
 0x188   :  { %6840 = vmatprep.subr.bf16.mxu1 %v14726_v21 }
 0x18b   :  { %6842 = vmatpush1.bf16.msra.mxu1 %v14727_v36 }
 0x18c   :  { %6844 = vmatprep.subr.bf16.mxu1 %v14728_v58 }
 0x18f   :  { %6846 = vmatpush1.bf16.msra.mxu1 %v14729_v18 }
 0x190   :  { %6848 = vmatprep.subr.bf16.mxu1 %v14730_v12 }
 0x193   :  { %6850 = vmatpush1.bf16.msra.mxu1 %v14733_v6 }
 0x194   :  { %6852 = vmatprep.subr.bf16.mxu1 %v6851_v41  ;;  %v6861_v41 = vpack.c.bf16 %v14745_v57, %v14744_v43  ;;  %v14765_v43 = vand.u32 4294901760, %v14764_v27  ;;  %v14766_v57 = vld [vmem:[#allocation78_spill] sm:$0xff] }
 0x196   :  { %2335 = vmatmul.mubr.f32.vlgmr.msra.gmra.mrb[2].mxu1 %v14738_v3 }
 0x197   :  { %6854 = vmatpush1.bf16.msra.mxu1 %v6853_v33  ;;  %2598 = vmatprep.mubr.f32.mxu1 %v14741_v13  ;;  %v6865_v33 = vpack.c.bf16 %v14749_v54, %v14748_v16  ;;  %v14770_v16 = vld [vmem:[#allocation81_spill] sm:$0xff] }
 0x198   :  { %6856 = vmatprep.subr.bf16.mxu1 %v6855_v30  ;;  %v14754_v30 = vld [vmem:[#allocation52_spill] sm:$0xff]  ;;  %v14771_v54 = vand.u32 4294901760, %v14770_v16  ;;  %v14792_v16 = vld [vmem:[#allocation95_spill] sm:$0xff] }
 0x199   :  { %v14755_v53 = vand.u32 4294901760, %v14754_v30  ;;  %v14776_v30 = vld [vmem:[#allocation84_spill] sm:$0xff] }
 0x19b   :  { %6858 = vmatpush1.bf16.msra.mxu1 %v6857_v10  ;;  %v6869_v3 = vpack.c.bf16 %v14755_v53, %v14753_v55  ;;  %v6871_v10 = vpack.c.bf16 %v14759_v15, %v14757_v37  ;;  %v14777_v53 = vand.u32 4294901760, %v14776_v30  ;;  %v14781_v15 = vand.u32 4294901760, %v14780_v19 }
 0x19c   :  { %6860 = vmatprep.subr.bf16.mxu1 %v6859_v60  ;;  %v6873_v60 = vpack.c.bf16 %v14763_v1, %v14761_v61  ;;  %v14785_v1 = vand.u32 4294901760, %v14784_v28 }
 0x19f   :  { %6862 = vmatpush1.bf16.msra.mxu1 %v6861_v41  ;;  %v14767_v41 = vand.u32 4294901760, %v14766_v57  ;;  %v14788_v57 = vld [vmem:[#allocation92_spill] sm:$0xff] }
 0x1a0   :  { %6864 = vmatprep.subr.bf16.mxu1 %v6863_v9  ;;  %v14769_v9 = vand.u32 4294901760, %v14768_v59 }
 0x1a1   :  { %v6875_v62 = vpack.c.bf16 %v14767_v41, %v14765_v43  ;;  %v14789_v41 = vand.u32 4294901760, %v14788_v57 }
 0x1a3   :  { %6866 = vmatpush1.bf16.msra.mxu1 %v6865_v33  ;;  %v6877_v33 = vpack.c.bf16 %v14771_v54, %v14769_v9  ;;  %v14793_v54 = vand.u32 4294901760, %v14792_v16 }
 0x1a4   :  { %6868 = vmatprep.subr.bf16.mxu1 %v6867_v24  ;;  %v14774_v24 = vld [vmem:[#allocation83_spill] sm:$0xff] }
 0x1a5   :  { %v14775_v34 = vand.u32 4294901760, %v14774_v24  ;;  %v14796_v24 = vld [vmem:[#allocation98_spill] sm:$0xff] }
 0x1a7   :  { %6870 = vmatpush1.bf16.msra.mxu1 %v6869_v3  ;;  %v6879_v55 = vpack.c.bf16 %v14775_v34, %v14773_v23  ;;  %v14778_v3 = vld [vmem:[#allocation85_spill] sm:$0xff]  ;;  %v14797_v34 = vand.u32 4294901760, %v14796_v24 }
 0x1a8   :  { %6872 = vmatprep.subr.bf16.mxu1 %v6871_v10  ;;  %v14779_v39 = vand.u32 4294901760, %v14778_v3  ;;  %v14782_v10 = vld [vmem:[#allocation88_spill] sm:$0xff]  ;;  %v14800_v3 = vld [vmem:[#allocation101_spill] sm:$0xff] }
 0x1a9   :  { %v14783_v14 = vand.u32 4294901760, %v14782_v10  ;;  %v14804_v10 = vld [vmem:[#allocation61_spill] sm:$0xff] }
 0x1aa   :  { %v6881_v37 = vpack.c.bf16 %v14779_v39, %v14777_v53  ;;  %v14801_v39 = vand.u32 4294901760, %v14800_v3 }
 0x1ab   :  { %6874 = vmatpush1.bf16.msra.mxu1 %v6873_v60  ;;  %v6883_v61 = vpack.c.bf16 %v14783_v14, %v14781_v15  ;;  %v14786_v60 = vld [vmem:[#allocation90_spill] sm:$0xff]  ;;  %v14805_v14 = vand.u32 4294901760, %v14804_v10 }
 0x1ac   :  { %6876 = vmatprep.subr.bf16.mxu1 %v6875_v62  ;;  %v14787_v27 = vand.u32 4294901760, %v14786_v60  ;;  %v14790_v62 = vld [vmem:[#allocation93_spill] sm:$0xff]  ;;  %v14808_v60 = vld [vmem:[#allocation106_spill] sm:$0xff] }
 0x1ad   :  { %v14791_v59 = vand.u32 4294901760, %v14790_v62  ;;  %v14812_v62 = vld [vmem:[#allocation65_spill] sm:$0xff] }
 0x1ae   :  { %v6885_v43 = vpack.c.bf16 %v14787_v27, %v14785_v1  ;;  %v14809_v27 = vand.u32 4294901760, %v14808_v60 }
 0x1af   :  { %6878 = vmatpush1.bf16.msra.mxu1 %v6877_v33  ;;  %v6887_v9 = vpack.c.bf16 %v14791_v59, %v14789_v41  ;;  %v14794_v33 = vld [vmem:[#allocation96_spill] sm:$0xff]  ;;  %v14813_v59 = vand.u32 4294901760, %v14812_v62 }
 0x1b0   :  { %6880 = vmatprep.subr.bf16.mxu1 %v6879_v55  ;;  %v14795_v7 = vand.u32 4294901760, %v14794_v33  ;;  %v14798_v55 = vld [vmem:[#allocation99_spill] sm:$0xff]  ;;  %v14816_v33 = vld [vmem:[#allocation110_spill] sm:$0xff] }
 0x1b1   :  { %v14799_v30 = vand.u32 4294901760, %v14798_v55  ;;  %v14820_v55 = vld [vmem:[#allocation113_spill] sm:$0xff] }
 0x1b2   :  { %v6889_v23 = vpack.c.bf16 %v14795_v7, %v14793_v54  ;;  %v14817_v7 = vand.u32 4294901760, %v14816_v33 }
 0x1b3   :  { %6882 = vmatpush1.bf16.msra.mxu1 %v6881_v37  ;;  %v6891_v53 = vpack.c.bf16 %v14799_v30, %v14797_v34  ;;  %v14802_v37 = vld [vmem:[#allocation102_spill] sm:$0xff]  ;;  %v14821_v30 = vand.u32 4294901760, %v14820_v55 }
 0x1b4   :  { %6884 = vmatprep.subr.bf16.mxu1 %v6883_v61  ;;  %v14803_v19 = vand.u32 4294901760, %v14802_v37  ;;  %v14806_v61 = vld [vmem:[#allocation104_spill] sm:$0xff] }
 0x1b5   :  { %v14807_v28 = vand.u32 4294901760, %v14806_v61  ;;  %v14824_v37 = vld [vmem:[#allocation116_spill] sm:$0xff]  ;;  %v14828_v61 = vld [vmem:[#allocation118_spill] sm:$0xff] }
 0x1b6   :  { %v6893_v15 = vpack.c.bf16 %v14803_v19, %v14801_v39  ;;  %v14825_v19 = vand.u32 4294901760, %v14824_v37  ;;  %v14847_v37 = vld [vmem:[#allocation42_spill] sm:$0xff] }
 0x1b7   :  { %6886 = vmatpush1.bf16.msra.mxu1 %v6885_v43  ;;  %v6895_v1 = vpack.c.bf16 %v14807_v28, %v14805_v14  ;;  %v14810_v43 = vld [vmem:[#allocation107_spill] sm:$0xff]  ;;  %v14829_v28 = vand.u32 4294901760, %v14828_v61 }
 0x1b8   :  { %6888 = vmatprep.subr.bf16.mxu1 %v6887_v9  ;;  %v14811_v57 = vand.u32 4294901760, %v14810_v43  ;;  %v14814_v9 = vld [vmem:[#allocation109_spill] sm:$0xff]  ;;  %v14832_v43 = vld [vmem:[#allocation120_spill] sm:$0xff]  ;;  %v14851_v61 = vld [vmem:[#allocation3_spill] sm:$0xff] }
 0x1b9   :  { %v14815_v16 = vand.u32 4294901760, %v14814_v9  ;;  %v14836_v9 = vld [vmem:[#allocation29_spill] sm:$0xff] }
 0x1ba   :  { %v6897_v41 = vpack.c.bf16 %v14811_v57, %v14809_v27  ;;  %v14833_v57 = vand.u32 4294901760, %v14832_v43  ;;  %v14854_v43 = vld [vmem:[#allocation22_spill] sm:$0xff] }
 0x1bb   :  { %6890 = vmatpush1.bf16.msra.mxu1 %v6889_v23  ;;  %v6899_v54 = vpack.c.bf16 %v14815_v16, %v14813_v59  ;;  %v14818_v23 = vld [vmem:[#allocation111_spill] sm:$0xff]  ;;  %v14837_v16 = vand.u32 4294901760, %v14836_v9  ;;  %v14857_v9 = vld [vmem:[#allocation73_spill] sm:$0xff] }
 0x1bc   :  { %6892 = vmatprep.subr.bf16.mxu1 %v6891_v53  ;;  %v14819_v24 = vand.u32 4294901760, %v14818_v23  ;;  %v14822_v53 = vld [vmem:[#allocation114_spill] sm:$0xff]  ;;  %v14840_v23 = vld [vmem:[#allocation25_spill] sm:$0xff] }
 0x1bd   :  { %v14823_v3 = vand.u32 4294901760, %v14822_v53  ;;  %v14844_v53 = vld [vmem:[#allocation39_spill] sm:$0xff] }
 0x1be   :  { %v6901_v34 = vpack.c.bf16 %v14819_v24, %v14817_v7  ;;  %v14841_v24 = vand.u32 4294901760, %v14840_v23 }
 0x1bf   :  { %6894 = vmatpush1.bf16.msra.mxu1 %v6893_v15  ;;  %v6903_v39 = vpack.c.bf16 %v14823_v3, %v14821_v30  ;;  %v14826_v15 = vld [vmem:[#allocation8_spill] sm:$0xff]  ;;  %v14845_v3 = vld [vmem:[#allocation66_spill] sm:$0xff] }
 0x1c0   :  { %6896 = vmatprep.subr.bf16.mxu1 %v6895_v1  ;;  %v14827_v10 = vand.u32 4294901760, %v14826_v15  ;;  %v14830_v1 = vld [vmem:[#allocation119_spill] sm:$0xff] }
 0x1c1   :  { %v14831_v60 = vand.u32 4294901760, %v14830_v1  ;;  %v14848_v15 = vld [vmem:[#allocation43_spill] sm:$0xff] }
 0x1c2   :  { %v6905_v14 = vpack.c.bf16 %v14827_v10, %v14825_v19  ;;  %v155_v19 = vlaneseq  ;;  %v14849_v10 = vld [vmem:[#allocation47_spill] sm:$0xff] }
 0x1c3   :  { %6898 = vmatpush1.bf16.msra.mxu1 %v6897_v41  ;;  %v6907_v27 = vpack.c.bf16 %v14831_v60, %v14829_v28  ;;  %v14834_v41 = vld [vmem:[#allocation121_spill] sm:$0xff]  ;;  %v14852_v28 = vld [vmem:[#allocation4_spill] sm:$0xff]  ;;  %v153_v60 = vld [vmem:[%s13166_s2] sm:$0xf] }
 0x1c4   :  { %6900 = vmatprep.subr.bf16.mxu1 %v6899_v54  ;;  %v14835_v62 = vand.u32 4294901760, %v14834_v41  ;;  %v14838_v54 = vld [vmem:[#allocation19_spill] sm:$0xff] }
 0x1c5   :  { %v14839_v33 = vand.u32 4294901760, %v14838_v54  ;;  %v14858_v54 = vld [vmem:[#allocation48_spill] sm:$0xff] }
 0x1c6   :  { %v6909_v59 = vpack.c.bf16 %v14835_v62, %v14833_v57  ;;  %v14855_v62 = vld [vmem:[#allocation23_spill] sm:$0xff] }
 0x1c7   :  { %6902 = vmatpush1.bf16.msra.mxu1 %v6901_v34  ;;  %v6911_v7 = vpack.c.bf16 %v14839_v33, %v14837_v16  ;;  %v14842_v34 = vld [vmem:[#allocation30_spill] sm:$0xff]  ;;  %v13649_v16 = vand.u32 4294901760, %v14857_v9  ;;  %v13648_v33 = vand.u32 4294901760, %v14858_v54 }
 0x1c8   :  { %6904 = vmatprep.subr.bf16.mxu1 %v6903_v39  ;;  %v14843_v55 = vand.u32 4294901760, %v14842_v34  ;;  %v14846_v39 = vld [vmem:[#allocation40_spill] sm:$0xff] }
 0x1ca   :  { %v6913_v30 = vpack.c.bf16 %v14843_v55, %v14841_v24  ;;  %v14860_v24 = vld [vmem:[#allocation154_spill] sm:$0xff] }
 0x1cb   :  { %6906 = vmatpush1.bf16.msra.mxu1 %v6905_v14  ;;  %v10870_v14 = vshrl.u32 %v155_v19, 7  ;;  %v14863_v19 = vld [vmem:[#allocation2_spill] sm:$0xff] }
 0x1cc   :  { %6908 = vmatprep.subr.bf16.mxu1 %v6907_v27  ;;  %v14853_v27 = vld [vmem:[#allocation17_spill] sm:$0xff] }
 0x1cd   :  { %14850 = vst [vmem:[#allocation94_spill] sm:$0xff] %v10870_v14  ;;  %v157_v1 = vsub.s32 0, %v10870_v14 }
 0x1cf   :  { %6910 = vmatpush1.bf16.msra.mxu1 %v6909_v59  ;;  %v158_v57 = vrot.slane %v153_v60, %v157_v1  ;;  %v14856_v59 = vld [vmem:[#allocation28_spill] sm:$0xff]  ;;  %v3025_v1 = vsub.f32 %v14857_v9, %v13649_v16 }
 0x1d0   :  { %6912 = vmatprep.subr.bf16.mxu1 %v6911_v7  ;;  %v14859_v7 = vld [vmem:[#allocation153_spill] sm:$0xff] }
 0x1d1   :  { %v7951_v23 = vadd.f32 %v14859_v7, %v158_v57  ;;  %v14868_v7 = vld [vmem:[#allocation12_spill] sm:$0xff] }
 0x1d3   :  { %6914 = vmatpush1.bf16.msra.mxu1 %v6913_v30  ;;  %v14861_v30 = vld [vmem:[#allocation34_spill] sm:$0xff] }
 0x1d4   :  { %6916 = vmatprep.subr.bf16.mxu1 %v14844_v53 }
 0x1d6   :  { %2600 = vmatmul.mubr.f32.vlgmr.msra.gmra.mrb[2].mxu1 %v14845_v3 }
 0x1d7   :  { %6918 = vmatpush1.bf16.msra.mxu1 %v14846_v39  ;;  %2735 = vmatprep.mubr.f32.mxu1 %v14741_v13  ;;  %v161_v13 = vsub.s32 1, %v10870_v14 }
 0x1d8   :  { %6920 = vmatprep.subr.bf16.mxu1 %v14847_v37  ;;  %v14862_v37 = vld [vmem:[#allocation35_spill] sm:$0xff] }
 0x1d9   :  { %v162_v41 = vrot.slane %v153_v60, %v161_v13  ;;  %v3037_v60 = vsub.f32 %v14858_v54, %v13648_v33 }
 0x1db   :  { %6922 = vmatpush1.bf16.msra.mxu1 %v14848_v15  ;;  %v7953_v34 = vadd.f32 %v14860_v24, %v162_v41  ;;  %v13650_v15 = vand.u32 4294901760, %v14863_v19  ;;  %v14866_v41 = vld [vmem:[#allocation37_spill] sm:$0xff] }
 0x1dc   :  { %6924 = vmatprep.subr.bf16.mxu1 %v14849_v10  ;;  %v14864_v10 = vld [vmem:[#allocation6_spill] sm:$0xff] }
 0x1df   :  { %6926 = vmatpush1.bf16.msra.mxu1 %v14851_v61  ;;  %v13651_v61 = vand.u32 4294901760, %v14864_v10 }
 0x1e0   :  { %6928 = vmatprep.subr.bf16.mxu1 %v14852_v28 }
 0x1e3   :  { %6930 = vmatpush1.bf16.msra.mxu1 %v14853_v27  ;;  %v14865_v27 = vld [vmem:[#allocation9_spill] sm:$0xff] }
 0x1e4   :  { %6932 = vmatprep.subr.bf16.mxu1 %v14854_v43  ;;  %v13654_v43 = vand.u32 4294901760, %v14865_v27 }
 0x1e7   :  { %6934 = vmatpush1.bf16.msra.mxu1 %v14855_v62  ;;  %v14867_v62 = vld [vmem:[#allocation10_spill] sm:$0xff] }
 0x1e8   :  { %6936 = vmatprep.subr.bf16.mxu1 %v14856_v59  ;;  %v13661_v59 = vand.u32 4294901760, %v14867_v62 }
 0x1eb   :  { %6938 = vmatpush1.bf16.msra.mxu1 %v14861_v30  ;;  %v3055_v30 = vsub.f32 %v14864_v10, %v13651_v61  ;;  %v3061_v61 = vsub.f32 %v14867_v62, %v13661_v59  ;;  %v14893_v10 = vld [vmem:[#allocation59_spill] sm:$0xff] }
 0x1ec   :  { %6940 = vmatprep.subr.bf16.mxu1 %v14862_v37  ;;  %v3038_v37 = vand.u32 4294901760, %v3037_v60  ;;  %v14876_v60 = vld [vmem:[#allocation15_spill] sm:$0xff] }
 0x1ed   :  { %v3056_v52 = vand.u32 4294901760, %v3055_v30  ;;  %v3062_v30 = vand.u32 4294901760, %v3061_v61  ;;  %v14887_v61 = vld [vmem:[#allocation44_spill] sm:$0xff] }
 0x1ee   :  { %v1454_v55 = vpop.f32.mrb[0].mxu0 }
 0x1ef   :  { %v7952_v53 = vadd.f32 %v7951_v23, %v1454_v55  ;;  %v1456_v39 = vpop.f32.mrb[1].mxu0  ;;  %6942 = vmatpush1.bf16.msra.mxu1 %v14866_v41  ;;  %v13663_v23 = vand.u32 4294901760, %v14868_v7  ;;  %v3043_v55 = vsub.f32 %v14863_v19, %v13650_v15  ;;  %v3049_v41 = vsub.f32 %v14865_v27, %v13654_v43  ;;  %v14875_v15 = vld [vmem:[#allocation77_spill] sm:$0xff]  ;;  %v14877_v43 = vld [vmem:[#allocation79_spill] sm:$0xff]  ;;  %v14881_v27 = vld [vmem:[#allocation26_spill] sm:$0xff] }
 0x1f0   :  { %v7954_v28 = vadd.f32 %v7953_v34, %v1456_v39  ;;  %v14870_v34 = vld [vmem:[#allocation46_spill] sm:$0xff]  ;;  %v3026_v39 = vand.u32 4294901760, %v3025_v1 }
 0x1f1   :  { %v2743_v13 = vmul.f32 %v7952_v53, %v7952_v53  ;;  %6944 = vmatprep.subr.bf16.mxu1 %v14870_v34  ;;  %v14873_v34 = vld [vmem:[#allocation13_spill] sm:$0xff]  ;;  %v3067_v1 = vsub.f32 %v14868_v7, %v13663_v23  ;;  %v3044_v33 = vand.u32 4294901760, %v3043_v55  ;;  %v3050_v55 = vand.u32 4294901760, %v3049_v41 }
 0x1f2   :  { %v2744_v57 = vmul.f32 %v7954_v28, %v7954_v28  ;;  %v7045_v40 = vpack.c.bf16 %v3038_v37, %v3026_v39  ;;  %v14879_v62 = vand.u32 4294901760, %v14873_v34  ;;  %v14882_v39 = vld [vmem:[#allocation32_spill] sm:$0xff] }
 0x1f3   :  { %v10901_v24 = vand.u32 4294901760, %v2743_v13  ;;  %6946 = vmatpush1.bf16.msra.mxu1 %v14875_v15  ;;  %v3068_v29 = vand.u32 4294901760, %v3067_v1 }
 0x1f4   :  { %v10910_v53 = vand.u32 4294901760, %v2744_v57  ;;  %6948 = vmatprep.subr.bf16.mxu1 %v14877_v43  ;;  %v3079_v23 = vsub.f32 %v14873_v34, %v14879_v62  ;;  %v14883_v62 = vand.u32 4294901760, %v14876_v60  ;;  %v14885_v34 = vld [vmem:[#allocation33_spill] sm:$0xff] }
 0x1f5   :  { %14869 = vst [vmem:[#allocation97_spill] sm:$0xff] %v10901_v24  ;;  %v10913_v28 = vsub.f32 %v2743_v13, %v10901_v24  ;;  %v14880_v13 = vld [vmem:[#allocation21_spill] sm:$0xff] }
 0x1f6   :  { %14871 = vst [vmem:[#allocation100_spill] sm:$0xff] %v10910_v53  ;;  %v10920_v16 = vsub.f32 %v2744_v57, %v10910_v53  ;;  %v14878_v57 = vld [vmem:[#allocation16_spill] sm:$0xff]  ;;  %v3073_v7 = vsub.f32 %v14876_v60, %v14883_v62  ;;  %v3080_v19 = vand.u32 4294901760, %v3079_v23  ;;  %v14891_v62 = vld [vmem:[#allocation50_spill] sm:$0xff]  ;;  %v7049_v23 = vpack.c.bf16 %v3062_v30, %v3050_v55 }
 0x1f7   :  { %14872 = vst [vmem:[#allocation103_spill] sm:$0xff] %v10913_v28  ;;  %v13668_v14 = vand.u32 4294901760, %v10913_v28  ;;  %6950 = vmatpush1.bf16.msra.mxu1 %v14706_v44  ;;  %v14884_v24 = vand.u32 4294901760, %v14878_v57 }
 0x1f8   :  { %14874 = vst [vmem:[#allocation105_spill] sm:$0xff] %v10920_v16  ;;  %v13673_v15 = vand.u32 4294901760, %v10920_v16  ;;  %6952 = vmatprep.subr.bf16.mxu1 %v14711_v22  ;;  %v14888_v22 = vand.u32 4294901760, %v14880_v13  ;;  %v7051_v55 = vpack.c.bf16 %v3080_v19, %v3068_v29 }
 0x1f9   :  { %v3008_v59 = vsub.f32 %v10913_v28, %v13668_v14  ;;  %v7047_v14 = vpack.c.bf16 %v3056_v52, %v3044_v33  ;;  %v3085_v44 = vsub.f32 %v14878_v57, %v14884_v24  ;;  %v14889_v33 = vand.u32 4294901760, %v14881_v27  ;;  %v14894_v57 = vld [vmem:[#allocation60_spill] sm:$0xff] }
 0x1fa   :  { %v3002_v43 = vsub.f32 %v10920_v16, %v13673_v15  ;;  %v14886_v15 = vld [vmem:[#allocation41_spill] sm:$0xff]  ;;  %v3091_v52 = vsub.f32 %v14880_v13, %v14888_v22  ;;  %v14890_v24 = vand.u32 4294901760, %v14882_v39  ;;  %v14892_v16 = vld [vmem:[#allocation51_spill] sm:$0xff]  ;;  %v3074_v22 = vand.u32 4294901760, %v3073_v7 }
 0x1fb   :  { %v3009_v37 = vand.u32 4294901760, %v3008_v59  ;;  %v3103_v1 = vsub.f32 %v14881_v27, %v14889_v33  ;;  %6954 = vmatpush1.bf16.msra.mxu1 %v14719_v56  ;;  %v13682_v59 = vand.u32 4294901760, %v14892_v16  ;;  %v3086_v56 = vand.u32 4294901760, %v3085_v44 }
 0x1fc   :  { %v3003_v28 = vand.u32 4294901760, %v3002_v43  ;;  %v3097_v43 = vsub.f32 %v14882_v39, %v14890_v24  ;;  %6956 = vmatprep.subr.bf16.mxu1 %v14720_v35  ;;  %v14896_v41 = vand.u32 4294901760, %v14886_v15  ;;  %v14897_v35 = vand.u32 4294901760, %v14887_v61 }
 0x1fd   :  { %v3092_v30 = vand.u32 4294901760, %v3091_v52  ;;  %v3104_v33 = vand.u32 4294901760, %v3103_v1  ;;  %v14898_v44 = vand.u32 4294901760, %v14891_v62  ;;  %v14900_v29 = vand.u32 4294901760, %v14894_v57  ;;  %v14902_v1 = vld [vmem:[#allocation67_spill] sm:$0xff]  ;;  %v14906_v52 = vld [vmem:[#allocation124_spill] sm:$0xff] }
 0x1fe   :  { %3004 = vmatprep.mubr.f32.mxu0 %v3003_v28  ;;  %v14895_v28 = vand.u32 4294901760, %v14885_v34  ;;  %v3127_v7 = vsub.f32 %v14887_v61, %v14897_v35  ;;  %v7053_v35 = vpack.c.bf16 %v3086_v56, %v3074_v22  ;;  %v14904_v61 = vld [vmem:[#allocation75_spill] sm:$0xff] }
 0x1ff   :  { %3010 = vmatmul.mubr.f32.vlgmr.msra.gmra.mrb[2].mxu0 %v3009_v37  ;;  %v3115_v37 = vsub.f32 %v14886_v15, %v14896_v41  ;;  %6958 = vmatpush1.bf16.msra.mxu1 %v14721_v32  ;;  %v3121_v13 = vsub.f32 %v14891_v62, %v14898_v44  ;;  %v14899_v41 = vand.u32 4294901760, %v14893_v10  ;;  %v3151_v19 = vsub.f32 %v14894_v57, %v14900_v29  ;;  %v14901_v32 = vld [vmem:[#allocation63_spill] sm:$0xff] }
 0x200   :  { %7046 = vmatpush1.bf16.msra.mxu0 %v7045_v40  ;;  %3401 = vmatprep.mubr.f32.mxu0 %v10910_v53  ;;  %v3109_v24 = vsub.f32 %v14885_v34, %v14895_v28  ;;  %v3098_v40 = vand.u32 4294901760, %v3097_v43  ;;  %v3133_v28 = vsub.f32 %v14892_v16, %v13682_v59  ;;  %v13691_v43 = vand.u32 4294901760, %v14902_v1  ;;  %v14905_v29 = vld [vmem:[#allocation123_spill] sm:$0xff] }
 0x201   :  { %7048 = vmatprep.subr.bf16.mxu0 %v7047_v14  ;;  %6960 = vmatprep.subr.bf16.mxu1 %v14722_v11  ;;  %v3139_v14 = vsub.f32 %v14893_v10, %v14899_v41  ;;  %v3116_v53 = vand.u32 4294901760, %v3115_v37  ;;  %v3128_v62 = vand.u32 4294901760, %v3127_v7  ;;  %v7055_v59 = vpack.c.bf16 %v3104_v33, %v3092_v30  ;;  %v14903_v11 = vld [vmem:[#allocation74_spill] sm:$0xff]  ;;  %v14908_v7 = vld [vmem:[#allocation71_spill] sm:$0xff]  ;;  %v14909_v30 = vld [vmem:[#allocation125_spill] sm:$0xff] }
 0x202   :  { %v3110_v44 = vand.u32 4294901760, %v3109_v24  ;;  %v13690_v16 = vand.u32 4294901760, %v14903_v11  ;;  %v13689_v15 = vand.u32 4294901760, %v14904_v61  ;;  %v3122_v41 = vand.u32 4294901760, %v3121_v13 }
 0x203   :  { %6962 = vmatpush1.bf16.msra.mxu1 %v14723_v31  ;;  %v3134_v10 = vand.u32 4294901760, %v3133_v28  ;;  %v13692_v57 = vand.u32 4294901760, %v14905_v29  ;;  %v13693_v34 = vand.u32 4294901760, %v14906_v52  ;;  %v3152_v22 = vand.u32 4294901760, %v3151_v19  ;;  %v14919_v28 = vld [vmem:[#allocation137_spill] sm:$0xff] }
 0x204   :  { %7050 = vmatpush1.bf16.msra.mxu0 %v7049_v23  ;;  %6964 = vmatprep.subr.bf16.mxu1 %v14724_v17  ;;  %v3140_v23 = vand.u32 4294901760, %v3139_v14  ;;  %v14907_v56 = vand.u32 4294901760, %v14901_v32  ;;  %v3157_v24 = vsub.f32 %v14902_v1, %v13691_v43  ;;  %v7057_v31 = vpack.c.bf16 %v3110_v44, %v3098_v40  ;;  %v14913_v43 = vld [vmem:[#allocation131_spill] sm:$0xff] }
 0x205   :  { %7052 = vmatprep.subr.bf16.mxu0 %v7051_v55  ;;  %v7059_v13 = vpack.c.bf16 %v3128_v62, %v3116_v53  ;;  %v3163_v37 = vsub.f32 %v14903_v11, %v13690_v16  ;;  %v3175_v17 = vsub.f32 %v14904_v61, %v13689_v15  ;;  %v3169_v40 = vsub.f32 %v14905_v29, %v13692_v57 }
 0x206   :  { %v3145_v33 = vsub.f32 %v14901_v32, %v14907_v56  ;;  %v3181_v53 = vsub.f32 %v14906_v52, %v13693_v34  ;;  %v7061_v62 = vpack.c.bf16 %v3134_v10, %v3122_v41  ;;  %v3158_v19 = vand.u32 4294901760, %v3157_v24  ;;  %v14911_v56 = vld [vmem:[#allocation128_spill] sm:$0xff] }
 0x207   :  { %6966 = vmatpush1.bf16.msra.mxu1 %v14725_v5  ;;  %v14912_v5 = vld [vmem:[#allocation130_spill] sm:$0xff]  ;;  %v3164_v57 = vand.u32 4294901760, %v3163_v37  ;;  %v3176_v55 = vand.u32 4294901760, %v3175_v17  ;;  %v14914_v34 = vand.u32 4294901760, %v14908_v7  ;;  %v14915_v10 = vand.u32 4294901760, %v14909_v30  ;;  %v14918_v37 = vld [vmem:[#allocation136_spill] sm:$0xff] }
 0x208   :  { %7054 = vmatpush1.bf16.msra.mxu0 %v7053_v35  ;;  %6968 = vmatprep.subr.bf16.mxu1 %v14726_v21  ;;  %v3146_v14 = vand.u32 4294901760, %v3145_v33  ;;  %v14910_v35 = vld [vmem:[#allocation127_spill] sm:$0xff]  ;;  %v14916_v33 = vld [vmem:[#allocation133_spill] sm:$0xff] }
 0x209   :  { %7056 = vmatprep.subr.bf16.mxu0 %v7055_v59  ;;  %v7063_v59 = vpack.c.bf16 %v3152_v22, %v3140_v23  ;;  %v13694_v44 = vand.u32 4294901760, %v14910_v35  ;;  %v3187_v21 = vsub.f32 %v14908_v7, %v14914_v34  ;;  %v3199_v41 = vsub.f32 %v14909_v30, %v14915_v10 }
 0x20a   :  { %v3170_v23 = vand.u32 4294901760, %v3169_v40  ;;  %v3182_v22 = vand.u32 4294901760, %v3181_v53  ;;  %v13695_v24 = vand.u32 4294901760, %v14916_v33  ;;  %v14921_v53 = vand.u32 4294901760, %v14912_v5 }
 0x20b   :  { %6970 = vmatpush1.bf16.msra.mxu1 %v14727_v36  ;;  %v3193_v34 = vsub.f32 %v14910_v35, %v13694_v44  ;;  %v14920_v36 = vand.u32 4294901760, %v14911_v56  ;;  %v3188_v15 = vand.u32 4294901760, %v3187_v21  ;;  %v14930_v21 = vld [vmem:[#allocation146_spill] sm:$0xff] }
 0x20c   :  { %7058 = vmatpush1.bf16.msra.mxu0 %v7057_v31  ;;  %v14917_v31 = vld [vmem:[#allocation134_spill] sm:$0xff]  ;;  %6972 = vmatprep.subr.bf16.mxu1 %v14728_v58  ;;  %v3211_v10 = vsub.f32 %v14912_v5, %v14921_v53  ;;  %v14922_v58 = vand.u32 4294901760, %v14913_v43  ;;  %v7069_v17 = vpack.c.bf16 %v3182_v22, %v3170_v23  ;;  %v3217_v44 = vsub.f32 %v14916_v33, %v13695_v24 }
 0x20d   :  { %7060 = vmatprep.subr.bf16.mxu0 %v7059_v13  ;;  %v13697_v16 = vand.u32 4294901760, %v14917_v31  ;;  %v7065_v13 = vpack.c.bf16 %v3158_v19, %v3146_v14  ;;  %v3205_v40 = vsub.f32 %v14911_v56, %v14920_v36  ;;  %v7067_v19 = vpack.c.bf16 %v3176_v55, %v3164_v57 }
 0x20e   :  { %v3223_v14 = vsub.f32 %v14913_v43, %v14922_v58  ;;  %v14923_v53 = vand.u32 4294901760, %v14918_v37  ;;  %v14924_v57 = vand.u32 4294901760, %v14919_v28  ;;  %v3194_v22 = vand.u32 4294901760, %v3193_v34  ;;  %v14928_v43 = vld [vmem:[#allocation143_spill] sm:$0xff] }
 0x20f   :  { %6974 = vmatpush1.bf16.msra.mxu1 %v14729_v18  ;;  %v3229_v36 = vsub.f32 %v14917_v31, %v13697_v16  ;;  %v14925_v18 = vld [vmem:[#allocation139_spill] sm:$0xff]  ;;  %v3206_v58 = vand.u32 4294901760, %v3205_v40  ;;  %v3212_v24 = vand.u32 4294901760, %v3211_v10  ;;  %v13704_v5 = vand.u32 4294901760, %v14928_v43 }
 0x210   :  { %7062 = vmatpush1.bf16.msra.mxu0 %v7061_v62  ;;  %v3200_v62 = vand.u32 4294901760, %v3199_v41  ;;  %6976 = vmatprep.subr.bf16.mxu1 %v14730_v12  ;;  %v3247_v55 = vsub.f32 %v14919_v28, %v14924_v57  ;;  %v14926_v41 = vld [vmem:[#allocation140_spill] sm:$0xff]  ;;  %v3224_v33 = vand.u32 4294901760, %v3223_v14  ;;  %v14927_v12 = vld [vmem:[#allocation142_spill] sm:$0xff]  ;;  %v14929_v57 = vld [vmem:[#allocation145_spill] sm:$0xff]  ;;  %v13708_v56 = vand.u32 4294901760, %v14930_v21 }
 0x211   :  { %7064 = vmatprep.subr.bf16.mxu0 %v7063_v59  ;;  %v3235_v59 = vsub.f32 %v14918_v37, %v14923_v53  ;;  %v13705_v31 = vand.u32 4294901760, %v14927_v12  ;;  %v3218_v53 = vand.u32 4294901760, %v3217_v44  ;;  %v3230_v37 = vand.u32 4294901760, %v3229_v36 }
 0x212   :  { %v7071_v16 = vpack.c.bf16 %v3200_v62, %v3188_v15  ;;  %v13706_v28 = vand.u32 4294901760, %v14929_v57  ;;  %v14931_v34 = vand.u32 4294901760, %v14925_v18  ;;  %v14932_v15 = vand.u32 4294901760, %v14926_v41  ;;  %v14933_v62 = vld [vmem:[#allocation148_spill] sm:$0xff] }
 0x213   :  { %6978 = vmatpush1.bf16.msra.mxu1 %v14733_v6  ;;  %v3236_v23 = vand.u32 4294901760, %v3235_v59  ;;  %v7073_v14 = vpack.c.bf16 %v3206_v58, %v3194_v22  ;;  %v3259_v6 = vsub.f32 %v14927_v12, %v13705_v31  ;;  %v3271_v44 = vsub.f32 %v14928_v43, %v13704_v5  ;;  %v14934_v59 = vld [vmem:[#allocation149_spill] sm:$0xff]  ;;  %v14935_v58 = vld [vmem:[#allocation151_spill] sm:$0xff] }
 0x214   :  { %7066 = vmatpush1.bf16.msra.mxu0 %v7065_v13  ;;  %v3248_v13 = vand.u32 4294901760, %v3247_v55  ;;  %v3241_v40 = vsub.f32 %v14925_v18, %v14931_v34  ;;  %v3253_v10 = vsub.f32 %v14926_v41, %v14932_v15  ;;  %v13709_v34 = vand.u32 4294901760, %v14935_v58  ;;  %v14936_v15 = vld [vmem:[#allocation152_spill] sm:$0xff] }
 0x215   :  { %7068 = vmatprep.subr.bf16.mxu0 %v7067_v19  ;;  %v7075_v19 = vpack.c.bf16 %v3224_v33, %v3212_v24  ;;  %v13710_v5 = vand.u32 4294901760, %v14936_v15  ;;  %v13711_v31 = vand.u32 4294901760, %v10680_v45  ;;  %v3260_v36 = vand.u32 4294901760, %v3259_v6 }
 0x216   :  { %2737 = vmatmul.mubr.f32.vlgmr.msra.gmra.mrb[2].mxu1 %v14845_v3  ;;  %v3277_v3 = vsub.f32 %v14930_v21, %v13708_v56  ;;  %v7079_v33 = vpack.c.bf16 %v3248_v13, %v3236_v23  ;;  %v3242_v24 = vand.u32 4294901760, %v3241_v40  ;;  %v3254_v22 = vand.u32 4294901760, %v3253_v10 }
 0x217   :  { %v13713_v40 = vand.u32 4294901760, %v10685_v51  ;;  %v13712_v10 = vand.u32 4294901760, %v10687_v47  ;;  %v13714_v55 = vand.u32 4294901760, %v10691_v2  ;;  %v3301_v6 = vsub.f32 %v14936_v15, %v13710_v5 }
 0x218   :  { %7070 = vmatpush1.bf16.msra.mxu0 %v7069_v17  ;;  %v3265_v17 = vsub.f32 %v14929_v57, %v13706_v28  ;;  %v3272_v28 = vand.u32 4294901760, %v3271_v44  ;;  %v14937_v57 = vand.u32 4294901760, %v14933_v62  ;;  %v3278_v13 = vand.u32 4294901760, %v3277_v3 }
 0x219   :  { %7072 = vmatprep.subr.bf16.mxu0 %v7071_v16  ;;  %v7077_v16 = vpack.c.bf16 %v3230_v37, %v3218_v53  ;;  %v14938_v37 = vand.u32 4294901760, %v14934_v59  ;;  %v3307_v44 = vsub.f32 %v10680_v45, %v13711_v31  ;;  %v3325_v5 = vsub.f32 %v10687_v47, %v13712_v10 }
 0x21a   :  { %v3283_v56 = vsub.f32 %v14933_v62, %v14937_v57  ;;  %v3266_v53 = vand.u32 4294901760, %v3265_v17  ;;  %v3289_v57 = vsub.f32 %v14935_v58, %v13709_v34  ;;  %v14939_v17 = vand.u32 4294901760, %v10683_v38 }
 0x21b   :  { %v3295_v23 = vsub.f32 %v14934_v59, %v14938_v37  ;;  %v3313_v34 = vsub.f32 %v10685_v51, %v13713_v40  ;;  %v3331_v31 = vsub.f32 %v10691_v2, %v13714_v55  ;;  %v13729_v10 = vand.u32 4294901760, %v10700_v48 }
 0x21c   :  { %7074 = vmatpush1.bf16.msra.mxu0 %v7073_v14  ;;  %v7081_v14 = vpack.c.bf16 %v3254_v22, %v3242_v24  ;;  %v3319_v3 = vsub.f32 %v10683_v38, %v14939_v17  ;;  %v7083_v24 = vpack.c.bf16 %v3272_v28, %v3260_v36  ;;  %v3284_v22 = vand.u32 4294901760, %v3283_v56 }
 0x21d   :  { %7076 = vmatprep.subr.bf16.mxu0 %v7075_v19  ;;  %v13721_v19 = vand.u32 4294901760, %v10693_v20  ;;  %v7085_v37 = vpack.c.bf16 %v3278_v13, %v3266_v53  ;;  %v13731_v28 = vand.u32 4294901760, %v10695_v26  ;;  %v13730_v56 = vand.u32 4294901760, %v10697_v46 }
 0x21e   :  { %v3290_v36 = vand.u32 4294901760, %v3289_v57  ;;  %v3308_v53 = vand.u32 4294901760, %v3307_v44  ;;  %v3320_v13 = vand.u32 4294901760, %v3319_v3  ;;  %v13722_v40 = vand.u32 4294901760, %v10702_v42 }
 0x21f   :  { %v3314_v55 = vand.u32 4294901760, %v3313_v34  ;;  %v3326_v2 = vand.u32 4294901760, %v3325_v5  ;;  %v3332_v47 = vand.u32 4294901760, %v3331_v31  ;;  %v13728_v44 = vand.u32 4294901760, %v10704_v8 }
 0x220   :  { %7078 = vmatpush1.bf16.msra.mxu0 %v7077_v16  ;;  %v3296_v16 = vand.u32 4294901760, %v3295_v23  ;;  %v3302_v23 = vand.u32 4294901760, %v3301_v6  ;;  %v7091_v6 = vpack.c.bf16 %v3320_v13, %v3308_v53  ;;  %v13724_v3 = vand.u32 4294901760, %v10706_v49 }
 0x221   :  { %7080 = vmatprep.subr.bf16.mxu0 %v7079_v33  ;;  %v3343_v33 = vsub.f32 %v10693_v20, %v13721_v19  ;;  %v3337_v19 = vsub.f32 %v10695_v26, %v13731_v28  ;;  %v3355_v5 = vsub.f32 %v10700_v48, %v13729_v10  ;;  %v3367_v31 = vsub.f32 %v10702_v42, %v13722_v40 }
 0x222   :  { %v7087_v17 = vpack.c.bf16 %v3296_v16, %v3284_v22  ;;  %v7089_v57 = vpack.c.bf16 %v3302_v23, %v3290_v36  ;;  %v13723_v34 = vand.u32 4294901760, %v10709_v25  ;;  %v7093_v22 = vpack.c.bf16 %v3326_v2, %v3314_v55 }
 0x223   :  { %v3344_v51 = vand.u32 4294901760, %v3343_v33  ;;  %v3361_v36 = vsub.f32 %v10704_v8, %v13728_v44  ;;  %v3373_v23 = vsub.f32 %v10706_v49, %v13724_v3  ;;  %v13727_v53 = vand.u32 4294901760, %v10715_v63 }
 0x224   :  { %7082 = vmatpush1.bf16.msra.mxu0 %v7081_v14  ;;  %v3349_v14 = vsub.f32 %v10697_v46, %v13730_v56  ;;  %v13726_v13 = vand.u32 4294901760, %v10717_v0  ;;  %v3368_v40 = vand.u32 4294901760, %v3367_v31 }
 0x225   :  { %7084 = vmatprep.subr.bf16.mxu0 %v7083_v24  ;;  %v13725_v24 = vand.u32 4294901760, %v10711_v50  ;;  %v7095_v16 = vpack.c.bf16 %v3344_v51, %v3332_v47  ;;  %v3379_v47 = vsub.f32 %v10709_v25, %v13723_v34  ;;  %v3362_v55 = vand.u32 4294901760, %v3361_v36 }
 0x226   :  { %v3350_v33 = vand.u32 4294901760, %v3349_v14  ;;  %v3385_v14 = vsub.f32 %v10715_v63, %v13727_v53 }
 0x227   :  { %v3391_v2 = vsub.f32 %v10711_v50, %v13725_v24 }
 0x228   :  { %7086 = vmatpush1.bf16.msra.mxu0 %v7085_v37  ;;  %v3338_v37 = vand.u32 4294901760, %v3337_v19  ;;  %v3374_v19 = vand.u32 4294901760, %v3373_v23  ;;  %v3386_v3 = vand.u32 4294901760, %v3385_v14  ;;  %v7109_v23 = vpack.c.bf16 %v14858_v54, %v14857_v9  ;;  %v2812_v14 = vld [vmem:[%s13165_s3 + $0x208] sm:$0xff] }
 0x229   :  { %7088 = vmatprep.subr.bf16.mxu0 %v7087_v17  ;;  %v3356_v17 = vand.u32 4294901760, %v3355_v5  ;;  %v3380_v5 = vand.u32 4294901760, %v3379_v47  ;;  %v3392_v31 = vand.u32 4294901760, %v3391_v2  ;;  %v14943_v47 = vld [vmem:[#allocation97_spill] sm:$0xff] }
 0x22a   :  { %v7097_v51 = vpack.c.bf16 %v3350_v33, %v3338_v37  ;;  %v7101_v34 = vpack.c.bf16 %v3374_v19, %v3362_v55  ;;  %v14940_v33 = vld [vmem:[#allocation159_spill] sm:$0xff]  ;;  %v14944_v2 = vld [vmem:[#allocation105_spill] sm:$0xff] }
 0x22b   :  { %v7107_v36 = vpack.c.bf16 %v10639_v4, %v14940_v33  ;;  %v14948_v55 = vld [vmem:[#allocation13_spill] sm:$0xff] }
 0x22c   :  { %7090 = vmatpush1.bf16.msra.mxu0 %v7089_v57  ;;  %v3397_v57 = vsub.f32 %v10717_v0, %v13726_v13  ;;  %v14950_v13 = vld [vmem:[#allocation21_spill] sm:$0xff] }
 0x22d   :  { %7092 = vmatprep.subr.bf16.mxu0 %v7091_v6  ;;  %v7099_v6 = vpack.c.bf16 %v3368_v40, %v3356_v17  ;;  %v14941_v40 = vld [vmem:[#allocation2_spill] sm:$0xff]  ;;  %v7119_v53 = vpack.c.bf16 %v14881_v27, %v14950_v13 }
 0x22e   :  { %v3398_v24 = vand.u32 4294901760, %v3397_v57  ;;  %v2814_v57 = vld [vmem:[%s13165_s3 + $0x218] sm:$0xff] }
 0x230   :  { %7094 = vmatpush1.bf16.msra.mxu0 %v7093_v22  ;;  %v7103_v22 = vpack.c.bf16 %v3392_v31, %v3380_v5  ;;  %v7105_v37 = vpack.c.bf16 %v3398_v24, %v3386_v3  ;;  %v14947_v24 = vld [vmem:[#allocation12_spill] sm:$0xff]  ;;  %v4159_v5 = vand.u32 4294901760, %v2814_v57  ;;  %v2811_v31 = vld [vmem:[%s13165_s3 + $0x200] sm:$0xff] }
 0x231   :  { %7096 = vmatprep.subr.bf16.mxu0 %v7095_v16  ;;  %v14942_v16 = vld [vmem:[#allocation6_spill] sm:$0xff]  ;;  %v7115_v19 = vpack.c.bf16 %v14948_v55, %v14947_v24  ;;  %v14958_v55 = vld [vmem:[#allocation44_spill] sm:$0xff] }
 0x232   :  { %v7111_v17 = vpack.c.bf16 %v14942_v16, %v14941_v40  ;;  %v11206_v56 = vsub.f32 %v2814_v57, %v4159_v5  ;;  %v2817_v57 = vld [vmem:[%s13165_s3 + $0x230] sm:$0xff] }
 0x234   :  { %7098 = vmatpush1.bf16.msra.mxu0 %v7097_v51  ;;  %v14945_v51 = vld [vmem:[#allocation9_spill] sm:$0xff]  ;;  %14952 = vst [vmem:[#allocation5_spill] sm:$0xff] %v11206_v56 }
 0x235   :  { %7100 = vmatprep.subr.bf16.mxu0 %v7099_v6  ;;  %v4155_v6 = vand.u32 4294901760, %v2812_v14 }
 0x237   :  { %v11202_v44 = vpack.c.bf16 %v4159_v5, %v4155_v6  ;;  %v11204_v10 = vsub.f32 %v2812_v14, %v4155_v6  ;;  %v2815_v14 = vld [vmem:[%s13165_s3 + $0x220] sm:$0xff]  ;;  %v14954_v6 = vld [vmem:[#allocation33_spill] sm:$0xff] }
 0x238   :  { %7102 = vmatpush1.bf16.msra.mxu0 %v7101_v34  ;;  %v14946_v34 = vld [vmem:[#allocation10_spill] sm:$0xff]  ;;  %v7121_v5 = vpack.c.bf16 %v14954_v6, %v14882_v39  ;;  %v14966_v6 = vld [vmem:[#allocation60_spill] sm:$0xff] }
 0x239   :  { %7104 = vmatprep.subr.bf16.mxu0 %v7103_v22  ;;  %v7113_v3 = vpack.c.bf16 %v14946_v34, %v14945_v51  ;;  %v2813_v22 = vld [vmem:[%s13165_s3 + $0x210] sm:$0xff]  ;;  %14951 = vst [vmem:[#allocation108_spill] sm:$0xff] %v11202_v44  ;;  %7364 = vmatprep.subr.bf16.mxu1 %v11202_v44  ;;  %v4165_v44 = vand.u32 4294901760, %v2815_v14 }
 0x23c   :  { %7106 = vmatpush1.bf16.msra.mxu0 %v7105_v37  ;;  %v14949_v37 = vld [vmem:[#allocation16_spill] sm:$0xff] }
 0x23d   :  { %7108 = vmatprep.subr.bf16.mxu0 %v7107_v36  ;;  %v7117_v36 = vpack.c.bf16 %v14949_v37, %v14876_v60  ;;  %v14957_v60 = vld [vmem:[#allocation41_spill] sm:$0xff] }
 0x23e   :  { %v7123_v24 = vpack.c.bf16 %v14958_v55, %v14957_v60  ;;  %v11255_v55 = vsub.f32 %v2815_v14, %v4165_v44 }
 0x23f   :  { %3403 = vmatmul.mubr.f32.vlgmr.msra.gmra.mrb[2].mxu0 %v14943_v47  ;;  %v2818_v47 = vld [vmem:[%s13165_s3 + $0x238] sm:$0xff] }
 0x240   :  { %7110 = vmatpush1.bf16.msra.mxu0 %v7109_v23  ;;  %3603 = vmatprep.mubr.f32.mxu0 %v14944_v2  ;;  %v4157_v23 = vand.u32 4294901760, %v2811_v31  ;;  %v4167_v27 = vand.u32 4294901760, %v2818_v47 }
 0x241   :  { %7112 = vmatprep.subr.bf16.mxu0 %v7111_v17  ;;  %v4161_v17 = vand.u32 4294901760, %v2813_v22 }
 0x242   :  { %v11226_v13 = vsub.f32 %v2811_v31, %v4157_v23  ;;  %v11236_v16 = vsub.f32 %v2818_v47, %v4167_v27  ;;  %v2822_v31 = vld [vmem:[%s13165_s3 + $0x258] sm:$0xff]  ;;  %v14962_v47 = vld [vmem:[#allocation50_spill] sm:$0xff] }
 0x243   :  { %v11208_v28 = vpack.c.bf16 %v4161_v17, %v4157_v23  ;;  %v11228_v37 = vsub.f32 %v2813_v22, %v4161_v17  ;;  %v4175_v22 = vand.u32 4294901760, %v2822_v31  ;;  %v2819_v23 = vld [vmem:[%s13165_s3 + $0x240] sm:$0xff]  ;;  %v14963_v17 = vld [vmem:[#allocation51_spill] sm:$0xff] }
 0x244   :  { %7114 = vmatpush1.bf16.msra.mxu0 %v7113_v3  ;;  %v2816_v3 = vld [vmem:[%s13165_s3 + $0x228] sm:$0xff]  ;;  %14955 = vst [vmem:[#allocation115_spill] sm:$0xff] %v11226_v13  ;;  %14961 = vst [vmem:[#allocation24_spill] sm:$0xff] %v11236_v16 }
 0x245   :  { %7116 = vmatprep.subr.bf16.mxu0 %v7115_v19  ;;  %14953 = vst [vmem:[#allocation112_spill] sm:$0xff] %v11208_v28  ;;  %v4163_v19 = vand.u32 4294901760, %v2816_v3  ;;  %7366 = vmatpush1.bf16.msra.mxu1 %v11208_v28  ;;  %14956 = vst [vmem:[#allocation117_spill] sm:$0xff] %v11228_v37  ;;  %v2820_v28 = vld [vmem:[%s13165_s3 + $0x248] sm:$0xff]  ;;  %v11265_v37 = vsub.f32 %v2822_v31, %v4175_v22  ;;  %v7129_v31 = vpack.c.bf16 %v14902_v1, %v14901_v32 }
 0x247   :  { %v11232_v34 = vpack.c.bf16 %v4167_v27, %v4163_v19  ;;  %v11234_v51 = vsub.f32 %v2816_v3, %v4163_v19  ;;  %v2821_v27 = vld [vmem:[%s13165_s3 + $0x250] sm:$0xff]  ;;  %v7125_v3 = vpack.c.bf16 %v14963_v17, %v14962_v47 }
 0x248   :  { %7118 = vmatpush1.bf16.msra.mxu0 %v7117_v36  ;;  %v4169_v36 = vand.u32 4294901760, %v2817_v57  ;;  %v4177_v17 = vand.u32 4294901760, %v2821_v27 }
 0x249   :  { %7120 = vmatprep.subr.bf16.mxu0 %v7119_v53  ;;  %14959 = vst [vmem:[#allocation18_spill] sm:$0xff] %v11232_v34  ;;  %14960 = vst [vmem:[#allocation122_spill] sm:$0xff] %v11234_v51  ;;  %7368 = vmatprep.subr.bf16.mxu1 %v11232_v34  ;;  %v4171_v53 = vand.u32 4294901760, %v2820_v28  ;;  %v14965_v34 = vld [vmem:[#allocation59_spill] sm:$0xff] }
 0x24a   :  { %v11253_v19 = vpack.c.bf16 %v4169_v36, %v4165_v44  ;;  %v11257_v60 = vsub.f32 %v2817_v57, %v4169_v36  ;;  %v7127_v39 = vpack.c.bf16 %v14966_v6, %v14965_v34  ;;  %v2824_v44 = vld [vmem:[%s13165_s3 + $0x268] sm:$0xff]  ;;  %v2825_v36 = vld [vmem:[%s13165_s3 + $0x270] sm:$0xff] }
 0x24b   :  { %v11261_v16 = vpack.c.bf16 %v4175_v22, %v4171_v53  ;;  %v11263_v51 = vsub.f32 %v2820_v28, %v4171_v53  ;;  %v4179_v14 = vand.u32 4294901760, %v2824_v44  ;;  %v2823_v28 = vld [vmem:[%s13165_s3 + $0x260] sm:$0xff]  ;;  %v4185_v1 = vand.u32 4294901760, %v2825_v36 }
 0x24c   :  { %7122 = vmatpush1.bf16.msra.mxu0 %v7121_v5  ;;  %14964 = vst [vmem:[#allocation72_spill] sm:$0xff] %v11253_v19  ;;  %7370 = vmatpush1.bf16.msra.mxu1 %v11253_v19  ;;  %v4173_v5 = vand.u32 4294901760, %v2819_v23  ;;  %v11287_v19 = vsub.f32 %v2821_v27, %v4177_v17 }
 0x24d   :  { %7124 = vmatprep.subr.bf16.mxu0 %v7123_v24  ;;  %14967 = vst [vmem:[#allocation64_spill] sm:$0xff] %v11261_v16  ;;  %v2826_v24 = vld [vmem:[%s13165_s3 + $0x278] sm:$0xff]  ;;  %7372 = vmatprep.subr.bf16.mxu1 %v11261_v16  ;;  %v7131_v16 = vpack.c.bf16 %v14904_v61, %v14903_v11  ;;  %v11293_v34 = vsub.f32 %v2824_v44, %v4179_v14  ;;  %v2829_v44 = vld [vmem:[%s13165_s3 + $0x290] sm:$0xff] }
 0x24e   :  { %v4183_v57 = vand.u32 4294901760, %v2826_v24  ;;  %v11283_v53 = vpack.c.bf16 %v4177_v17, %v4173_v5  ;;  %v11285_v22 = vsub.f32 %v2819_v23, %v4173_v5  ;;  %v2828_v23 = vld [vmem:[%s13165_s3 + $0x288] sm:$0xff]  ;;  %v2827_v5 = vld [vmem:[%s13165_s3 + $0x280] sm:$0xff] }
 0x24f   :  { %v4187_v27 = vand.u32 4294901760, %v2828_v23 }
 0x250   :  { %7126 = vmatpush1.bf16.msra.mxu0 %v7125_v3  ;;  %14968 = vst [vmem:[#allocation49_spill] sm:$0xff] %v11283_v53  ;;  %14969 = vst [vmem:[#allocation52_spill] sm:$0xff] %v11285_v22  ;;  %v11291_v6 = vpack.c.bf16 %v4183_v57, %v4179_v14  ;;  %v11295_v47 = vsub.f32 %v2826_v24, %v4183_v57  ;;  %7374 = vmatpush1.bf16.msra.mxu1 %v11283_v53  ;;  %v4181_v3 = vand.u32 4294901760, %v2823_v28 }
 0x251   :  { %7128 = vmatprep.subr.bf16.mxu0 %v7127_v39  ;;  %v2830_v39 = vld [vmem:[%s13165_s3 + $0x298] sm:$0xff]  ;;  %v7133_v24 = vpack.c.bf16 %v14906_v52, %v14905_v29  ;;  %v11317_v53 = vsub.f32 %v2825_v36, %v4185_v1  ;;  %v11323_v11 = vsub.f32 %v2828_v23, %v4187_v27  ;;  %v4193_v52 = vand.u32 4294901760, %v2829_v44  ;;  %v2833_v23 = vld [vmem:[%s13165_s3 + $0x2b0] sm:$0xff] }
 0x252   :  { %14970 = vst [vmem:[#allocation53_spill] sm:$0xff] %v11291_v6  ;;  %14971 = vst [vmem:[#allocation54_spill] sm:$0xff] %v11295_v47  ;;  %7376 = vmatprep.subr.bf16.mxu1 %v11291_v6  ;;  %v4191_v17 = vand.u32 4294901760, %v2830_v39  ;;  %v11313_v14 = vpack.c.bf16 %v4185_v1, %v4181_v3  ;;  %v11315_v57 = vsub.f32 %v2823_v28, %v4181_v3  ;;  %v2832_v28 = vld [vmem:[%s13165_s3 + $0x2a8] sm:$0xff]  ;;  %v2834_v1 = vld [vmem:[%s13165_s3 + $0x2b8] sm:$0xff] }
 0x253   :  { %14974 = vst [vmem:[#allocation58_spill] sm:$0xff] %v11317_v53  ;;  %v7135_v6 = vpack.c.bf16 %v14909_v30, %v14908_v7  ;;  %14976 = vst [vmem:[#allocation80_spill] sm:$0xff] %v11323_v11  ;;  %v4199_v36 = vand.u32 4294901760, %v2834_v1  ;;  %v2831_v3 = vld [vmem:[%s13165_s3 + $0x2a0] sm:$0xff]  ;;  %v11347_v30 = vsub.f32 %v2829_v44, %v4193_v52  ;;  %v14983_v7 = vld [vmem:[#allocation131_spill] sm:$0xff] }
 0x254   :  { %7130 = vmatpush1.bf16.msra.mxu0 %v7129_v31  ;;  %14972 = vst [vmem:[#allocation55_spill] sm:$0xff] %v11313_v14  ;;  %14973 = vst [vmem:[#allocation57_spill] sm:$0xff] %v11315_v57  ;;  %v11321_v61 = vpack.c.bf16 %v4191_v17, %v4187_v27  ;;  %v11325_v32 = vsub.f32 %v2830_v39, %v4191_v17  ;;  %7378 = vmatpush1.bf16.msra.mxu1 %v11313_v14  ;;  %v4189_v31 = vand.u32 4294901760, %v2827_v5  ;;  %v14978_v39 = vld [vmem:[#allocation128_spill] sm:$0xff] }
 0x255   :  { %7132 = vmatprep.subr.bf16.mxu0 %v7131_v16  ;;  %v4195_v16 = vand.u32 4294901760, %v2832_v28  ;;  %v7137_v27 = vpack.c.bf16 %v14978_v39, %v14910_v35  ;;  %14981 = vst [vmem:[#allocation84_spill] sm:$0xff] %v11347_v30  ;;  %v11355_v53 = vsub.f32 %v2834_v1, %v4199_v36  ;;  %v4201_v39 = vand.u32 4294901760, %v2833_v23  ;;  %v14987_v1 = vld [vmem:[#allocation133_spill] sm:$0xff] }
 0x256   :  { %14975 = vst [vmem:[#allocation78_spill] sm:$0xff] %v11321_v61  ;;  %14977 = vst [vmem:[#allocation81_spill] sm:$0xff] %v11325_v32  ;;  %7380 = vmatprep.subr.bf16.mxu1 %v11321_v61  ;;  %v11343_v17 = vpack.c.bf16 %v4193_v52, %v4189_v31  ;;  %v11345_v14 = vsub.f32 %v2827_v5, %v4189_v31  ;;  %v14982_v61 = vld [vmem:[#allocation130_spill] sm:$0xff]  ;;  %v2836_v5 = vld [vmem:[%s13165_s3 + $0x2c8] sm:$0xff] }
 0x257   :  { %v7139_v29 = vpack.c.bf16 %v14983_v7, %v14982_v61  ;;  %v11351_v32 = vpack.c.bf16 %v4199_v36, %v4195_v16  ;;  %v11353_v11 = vsub.f32 %v2832_v28, %v4195_v16  ;;  %14986 = vst [vmem:[#allocation88_spill] sm:$0xff] %v11355_v53  ;;  %v2838_v52 = vld [vmem:[%s13165_s3 + $0x2d8] sm:$0xff]  ;;  %v2835_v31 = vld [vmem:[%s13165_s3 + $0x2c0] sm:$0xff]  ;;  %v2837_v28 = vld [vmem:[%s13165_s3 + $0x2d0] sm:$0xff]  ;;  %v11377_v61 = vsub.f32 %v2833_v23, %v4201_v39 }
 0x258   :  { %7134 = vmatpush1.bf16.msra.mxu0 %v7133_v24  ;;  %14979 = vst [vmem:[#allocation82_spill] sm:$0xff] %v11343_v17  ;;  %14980 = vst [vmem:[#allocation83_spill] sm:$0xff] %v11345_v14  ;;  %7382 = vmatpush1.bf16.msra.mxu1 %v11343_v17  ;;  %v4197_v24 = vand.u32 4294901760, %v2831_v3  ;;  %v4207_v44 = vand.u32 4294901760, %v2838_v52  ;;  %v14988_v16 = vld [vmem:[#allocation134_spill] sm:$0xff]  ;;  %v14993_v35 = vld [vmem:[#allocation137_spill] sm:$0xff] }
 0x259   :  { %7136 = vmatprep.subr.bf16.mxu0 %v7135_v6  ;;  %14984 = vst [vmem:[#allocation85_spill] sm:$0xff] %v11351_v32  ;;  %14985 = vst [vmem:[#allocation86_spill] sm:$0xff] %v11353_v11  ;;  %7384 = vmatprep.subr.bf16.mxu1 %v11351_v32  ;;  %v4203_v6 = vand.u32 4294901760, %v2836_v5  ;;  %v7141_v36 = vpack.c.bf16 %v14988_v16, %v14987_v1  ;;  %v14992_v32 = vld [vmem:[#allocation136_spill] sm:$0xff]  ;;  %v4209_v16 = vand.u32 4294901760, %v2837_v28 }
 0x25a   :  { %v11373_v17 = vpack.c.bf16 %v4201_v39, %v4197_v24  ;;  %v11375_v7 = vsub.f32 %v2831_v3, %v4197_v24  ;;  %14991 = vst [vmem:[#allocation92_spill] sm:$0xff] %v11377_v61  ;;  %v7143_v53 = vpack.c.bf16 %v14993_v35, %v14992_v32  ;;  %v11385_v14 = vsub.f32 %v2838_v52, %v4207_v44  ;;  %v2840_v3 = vld [vmem:[%s13165_s3 + $0x2e8] sm:$0xff]  ;;  %v2839_v24 = vld [vmem:[%s13165_s3 + $0x2e0] sm:$0xff] }
 0x25b   :  { %v11381_v11 = vpack.c.bf16 %v4207_v44, %v4203_v6  ;;  %v11383_v30 = vsub.f32 %v2836_v5, %v4203_v6  ;;  %v4211_v23 = vand.u32 4294901760, %v2840_v3  ;;  %v2841_v5 = vld [vmem:[%s13165_s3 + $0x2f0] sm:$0xff]  ;;  %v7145_v52 = vpack.c.bf16 %v14926_v41, %v14925_v18 }
 0x25c   :  { %7138 = vmatpush1.bf16.msra.mxu0 %v7137_v27  ;;  %14989 = vst [vmem:[#allocation89_spill] sm:$0xff] %v11373_v17  ;;  %14990 = vst [vmem:[#allocation90_spill] sm:$0xff] %v11375_v7  ;;  %7386 = vmatpush1.bf16.msra.mxu1 %v11373_v17  ;;  %v4205_v27 = vand.u32 4294901760, %v2835_v31  ;;  %v11407_v17 = vsub.f32 %v2837_v28, %v4209_v16  ;;  %v4217_v41 = vand.u32 4294901760, %v2841_v5 }
 0x25d   :  { %7140 = vmatprep.subr.bf16.mxu0 %v7139_v29  ;;  %14994 = vst [vmem:[#allocation93_spill] sm:$0xff] %v11381_v11  ;;  %14995 = vst [vmem:[#allocation95_spill] sm:$0xff] %v11383_v30  ;;  %v2842_v29 = vld [vmem:[%s13165_s3 + $0x2f8] sm:$0xff]  ;;  %7388 = vmatprep.subr.bf16.mxu1 %v11381_v11  ;;  %v7147_v11 = vpack.c.bf16 %v14928_v43, %v14927_v12  ;;  %v11413_v32 = vsub.f32 %v2840_v3, %v4211_v23  ;;  %v2845_v3 = vld [vmem:[%s13165_s3 + $0x310] sm:$0xff] }
 0x25e   :  { %14996 = vst [vmem:[#allocation96_spill] sm:$0xff] %v11385_v14  ;;  %v4215_v39 = vand.u32 4294901760, %v2842_v29  ;;  %v11403_v6 = vpack.c.bf16 %v4209_v16, %v4205_v27  ;;  %v11405_v44 = vsub.f32 %v2835_v31, %v4205_v27  ;;  %14999 = vst [vmem:[#allocation101_spill] sm:$0xff] %v11407_v17  ;;  %v2844_v31 = vld [vmem:[%s13165_s3 + $0x308] sm:$0xff]  ;;  %v2843_v27 = vld [vmem:[%s13165_s3 + $0x300] sm:$0xff]  ;;  %v11437_v43 = vsub.f32 %v2841_v5, %v4217_v41 }
 0x25f   :  { %15001 = vst [vmem:[#allocation61_spill] sm:$0xff] %v11413_v32  ;;  %v4219_v28 = vand.u32 4294901760, %v2844_v31 }
 0x260   :  { %7142 = vmatpush1.bf16.msra.mxu0 %v7141_v36  ;;  %14997 = vst [vmem:[#allocation98_spill] sm:$0xff] %v11403_v6  ;;  %14998 = vst [vmem:[#allocation99_spill] sm:$0xff] %v11405_v44  ;;  %v11411_v35 = vpack.c.bf16 %v4215_v39, %v4211_v23  ;;  %v11415_v1 = vsub.f32 %v2842_v29, %v4215_v39  ;;  %7390 = vmatpush1.bf16.msra.mxu1 %v11403_v6  ;;  %v4213_v36 = vand.u32 4294901760, %v2839_v24  ;;  %v15003_v29 = vld [vmem:[#allocation145_spill] sm:$0xff] }
 0x261   :  { %7144 = vmatprep.subr.bf16.mxu0 %v7143_v53  ;;  %v2846_v53 = vld [vmem:[%s13165_s3 + $0x318] sm:$0xff]  ;;  %v7149_v23 = vpack.c.bf16 %v14930_v21, %v15003_v29  ;;  %15006 = vst [vmem:[#allocation65_spill] sm:$0xff] %v11437_v43  ;;  %v11443_v18 = vsub.f32 %v2844_v31, %v4219_v28  ;;  %v4225_v21 = vand.u32 4294901760, %v2845_v3  ;;  %v2849_v31 = vld [vmem:[%s13165_s3 + $0x330] sm:$0xff] }
 0x262   :  { %15000 = vst [vmem:[#allocation102_spill] sm:$0xff] %v11411_v35  ;;  %15002 = vst [vmem:[#allocation104_spill] sm:$0xff] %v11415_v1  ;;  %7392 = vmatprep.subr.bf16.mxu1 %v11411_v35  ;;  %v4223_v16 = vand.u32 4294901760, %v2846_v53  ;;  %v11433_v39 = vpack.c.bf16 %v4217_v41, %v4213_v36  ;;  %v11435_v6 = vsub.f32 %v2839_v24, %v4213_v36  ;;  %v2848_v24 = vld [vmem:[%s13165_s3 + $0x328] sm:$0xff]  ;;  %v2847_v36 = vld [vmem:[%s13165_s3 + $0x320] sm:$0xff] }
 0x263   :  { %v7151_v35 = vpack.c.bf16 %v14934_v59, %v14933_v62  ;;  %15008 = vst [vmem:[#allocation110_spill] sm:$0xff] %v11443_v18  ;;  %v4227_v41 = vand.u32 4294901760, %v2848_v24  ;;  %v7169_v18 = vpack.c.bf16 %v10717_v0, %v10715_v63 }
 0x264   :  { %7146 = vmatpush1.bf16.msra.mxu0 %v7145_v52  ;;  %15004 = vst [vmem:[#allocation106_spill] sm:$0xff] %v11433_v39  ;;  %15005 = vst [vmem:[#allocation107_spill] sm:$0xff] %v11435_v6  ;;  %v11441_v12 = vpack.c.bf16 %v4223_v16, %v4219_v28  ;;  %v11445_v1 = vsub.f32 %v2846_v53, %v4223_v16  ;;  %7394 = vmatpush1.bf16.msra.mxu1 %v11433_v39  ;;  %v4221_v52 = vand.u32 4294901760, %v2843_v27 }
 0x265   :  { %7148 = vmatprep.subr.bf16.mxu0 %v7147_v11  ;;  %v2850_v11 = vld [vmem:[%s13165_s3 + $0x338] sm:$0xff]  ;;  %v7153_v53 = vpack.c.bf16 %v14936_v15, %v14935_v58  ;;  %v11467_v39 = vsub.f32 %v2845_v3, %v4225_v21  ;;  %v11473_v62 = vsub.f32 %v2848_v24, %v4227_v41  ;;  %v4233_v15 = vand.u32 4294901760, %v2849_v31  ;;  %v2853_v24 = vld [vmem:[%s13165_s3 + $0x350] sm:$0xff] }
 0x266   :  { %15007 = vst [vmem:[#allocation109_spill] sm:$0xff] %v11441_v12  ;;  %15009 = vst [vmem:[#allocation111_spill] sm:$0xff] %v11445_v1  ;;  %7396 = vmatprep.subr.bf16.mxu1 %v11441_v12  ;;  %v4231_v5 = vand.u32 4294901760, %v2850_v11  ;;  %v11463_v28 = vpack.c.bf16 %v4225_v21, %v4221_v52  ;;  %v11465_v16 = vsub.f32 %v2843_v27, %v4221_v52  ;;  %v2852_v27 = vld [vmem:[%s13165_s3 + $0x348] sm:$0xff]  ;;  %v2851_v52 = vld [vmem:[%s13165_s3 + $0x340] sm:$0xff] }
 0x267   :  { %15012 = vst [vmem:[#allocation116_spill] sm:$0xff] %v11467_v39  ;;  %v7155_v12 = vpack.c.bf16 %v10683_v38, %v10680_v45  ;;  %15014 = vst [vmem:[#allocation118_spill] sm:$0xff] %v11473_v62  ;;  %v4235_v21 = vand.u32 4294901760, %v2852_v27  ;;  %v11497_v45 = vsub.f32 %v2849_v31, %v4233_v15  ;;  %v4237_v62 = vand.u32 4294901760, %v2851_v52  ;;  %v2855_v31 = vld [vmem:[%s13165_s3 + $0x360] sm:$0xff] }
 0x268   :  { %7150 = vmatpush1.bf16.msra.mxu0 %v7149_v23  ;;  %15010 = vst [vmem:[#allocation113_spill] sm:$0xff] %v11463_v28  ;;  %15011 = vst [vmem:[#allocation114_spill] sm:$0xff] %v11465_v16  ;;  %v11471_v59 = vpack.c.bf16 %v4231_v5, %v4227_v41  ;;  %v11475_v29 = vsub.f32 %v2850_v11, %v4231_v5  ;;  %7398 = vmatpush1.bf16.msra.mxu1 %v11463_v28  ;;  %v4229_v23 = vand.u32 4294901760, %v2847_v36  ;;  %v15016_v11 = vld [vmem:[#allocation165_spill] sm:$0xff]  ;;  %v15017_v41 = vld [vmem:[#allocation166_spill] sm:$0xff] }
 0x269   :  { %7152 = vmatprep.subr.bf16.mxu0 %v7151_v35  ;;  %v2854_v35 = vld [vmem:[%s13165_s3 + $0x358] sm:$0xff]  ;;  %v7157_v5 = vpack.c.bf16 %v15017_v41, %v15016_v11  ;;  %15020 = vst [vmem:[#allocation29_spill] sm:$0xff] %v11497_v45  ;;  %v4241_v39 = vand.u32 4294901760, %v2853_v24  ;;  %v11552_v6 = vsub.f32 %v2852_v27, %v4235_v21 }
 0x26a   :  { %15013 = vst [vmem:[#allocation8_spill] sm:$0xff] %v11471_v59  ;;  %15015 = vst [vmem:[#allocation119_spill] sm:$0xff] %v11475_v29  ;;  %7400 = vmatprep.subr.bf16.mxu1 %v11471_v59  ;;  %v4239_v3 = vand.u32 4294901760, %v2854_v35  ;;  %v11493_v28 = vpack.c.bf16 %v4233_v15, %v4229_v23  ;;  %v11495_v38 = vsub.f32 %v2847_v36, %v4229_v23  ;;  %v15021_v59 = vld [vmem:[#allocation87_spill] sm:$0xff]  ;;  %v2858_v36 = vld [vmem:[%s13165_s3 + $0x378] sm:$0xff] }
 0x26b   :  { %v7159_v58 = vpack.c.bf16 %v10693_v20, %v15021_v59  ;;  %v4247_v15 = vand.u32 4294901760, %v2858_v36  ;;  %v2857_v23 = vld [vmem:[%s13165_s3 + $0x370] sm:$0xff]  ;;  %v11519_v20 = vpack.c.bf16 %v4241_v39, %v4237_v62  ;;  %v4245_v59 = vand.u32 4294901760, %v2855_v31  ;;  %15028 = vst [vmem:[#allocation42_spill] sm:$0xff] %v11552_v6 }
 0x26c   :  { %7154 = vmatpush1.bf16.msra.mxu0 %v7153_v53  ;;  %15018 = vst [vmem:[#allocation120_spill] sm:$0xff] %v11493_v28  ;;  %15019 = vst [vmem:[#allocation121_spill] sm:$0xff] %v11495_v38  ;;  %v11501_v29 = vpack.c.bf16 %v4239_v3, %v4235_v21  ;;  %7402 = vmatpush1.bf16.msra.mxu1 %v11493_v28  ;;  %v2856_v53 = vld [vmem:[%s13165_s3 + $0x368] sm:$0xff]  ;;  %v7161_v28 = vpack.c.bf16 %v10697_v46, %v10695_v26  ;;  %v4249_v41 = vand.u32 4294901760, %v2857_v23  ;;  %v2862_v46 = vld [vmem:[%s13165_s3 + $0x398] sm:$0xff] }
 0x26d   :  { %7156 = vmatprep.subr.bf16.mxu0 %v7155_v12  ;;  %v4243_v12 = vand.u32 4294901760, %v2856_v53  ;;  %15023 = vst [vmem:[#allocation25_spill] sm:$0xff] %v11519_v20  ;;  %v4255_v26 = vand.u32 4294901760, %v2862_v46  ;;  %v11569_v27 = vsub.f32 %v2858_v36, %v4247_v15  ;;  %v2865_v21 = vld [vmem:[%s13165_s3 + $0x3b0] sm:$0xff] }
 0x26e   :  { %15022 = vst [vmem:[#allocation19_spill] sm:$0xff] %v11501_v29  ;;  %7404 = vmatprep.subr.bf16.mxu1 %v11501_v29  ;;  %v7163_v29 = vpack.c.bf16 %v10702_v42, %v10700_v48  ;;  %v11526_v45 = vpack.c.bf16 %v4249_v41, %v4245_v59  ;;  %v2859_v42 = vld [vmem:[%s13165_s3 + $0x380] sm:$0xff]  ;;  %v7165_v48 = vpack.c.bf16 %v10706_v49, %v10704_v8  ;;  %v4265_v36 = vand.u32 4294901760, %v2865_v21 }
 0x26f   :  { %v11523_v11 = vpack.c.bf16 %v4247_v15, %v4243_v12  ;;  %v4253_v38 = vand.u32 4294901760, %v2859_v42  ;;  %v11556_v49 = vsub.f32 %v2851_v52, %v4237_v62  ;;  %v11558_v8 = vsub.f32 %v2853_v24, %v4241_v39  ;;  %15033 = vst [vmem:[#allocation17_spill] sm:$0xff] %v11569_v27  ;;  %v2863_v39 = vld [vmem:[%s13165_s3 + $0x3a0] sm:$0xff] }
 0x270   :  { %7158 = vmatpush1.bf16.msra.mxu0 %v7157_v5  ;;  %7406 = vmatpush1.bf16.msra.mxu1 %v11519_v20  ;;  %15025 = vst [vmem:[#allocation39_spill] sm:$0xff] %v11526_v45  ;;  %v2860_v5 = vld [vmem:[%s13165_s3 + $0x388] sm:$0xff]  ;;  %v2861_v20 = vld [vmem:[%s13165_s3 + $0x390] sm:$0xff]  ;;  %v11567_v0 = vsub.f32 %v2856_v53, %v4243_v12  ;;  %v11573_v62 = vsub.f32 %v2857_v23, %v4249_v41  ;;  %v4261_v53 = vand.u32 4294901760, %v2863_v39 }
 0x271   :  { %7160 = vmatprep.subr.bf16.mxu0 %v7159_v58  ;;  %15024 = vst [vmem:[#allocation30_spill] sm:$0xff] %v11523_v11  ;;  %7408 = vmatprep.subr.bf16.mxu1 %v11523_v11  ;;  %v4251_v58 = vand.u32 4294901760, %v2860_v5  ;;  %v4257_v16 = vand.u32 4294901760, %v2861_v20  ;;  %v7167_v11 = vpack.c.bf16 %v10711_v50, %v10709_v25  ;;  %15030 = vst [vmem:[#allocation47_spill] sm:$0xff] %v11556_v49  ;;  %v15052_v23 = vld [vmem:[#allocation11_spill] sm:$0xff] }
 0x272   :  { %15031 = vst [vmem:[#allocation3_spill] sm:$0xff] %v11558_v8  ;;  %15032 = vst [vmem:[#allocation4_spill] sm:$0xff] %v11567_v0  ;;  %v11585_v52 = vsub.f32 %v2859_v42, %v4253_v38  ;;  %v15048_v42 = vld [vmem:[#allocation36_spill] sm:$0xff] }
 0x273   :  { %v11545_v1 = vpack.c.bf16 %v4255_v26, %v4251_v58  ;;  %v11550_v43 = vpack.c.bf16 %v4257_v16, %v4253_v38  ;;  %15035 = vst [vmem:[#allocation23_spill] sm:$0xff] %v11573_v62  ;;  %v11587_v24 = vsub.f32 %v2861_v20, %v4257_v16  ;;  %v11599_v38 = vsub.f32 %v2863_v39, %v4261_v53  ;;  %v15051_v16 = vld [vmem:[#allocation7_spill] sm:$0xff]  ;;  %v15056_v39 = vld [vmem:[#allocation38_spill] sm:$0xff] }
 0x274   :  { %7162 = vmatpush1.bf16.msra.mxu0 %v7161_v28  ;;  %7410 = vmatpush1.bf16.msra.mxu1 %v11526_v45  ;;  %v11554_v28 = vsub.f32 %v2854_v35, %v4239_v3  ;;  %v2866_v45 = vld [vmem:[%s13165_s3 + $0x3b8] sm:$0xff]  ;;  %v11571_v35 = vsub.f32 %v2855_v31, %v4245_v59  ;;  %v11581_v3 = vsub.f32 %v2860_v5, %v4251_v58  ;;  %v15043_v31 = vld [vmem:[#allocation31_spill] sm:$0xff]  ;;  %v15053_v5 = vld [vmem:[#allocation14_spill] sm:$0xff] }
 0x275   :  { %7164 = vmatprep.subr.bf16.mxu0 %v7163_v29  ;;  %15026 = vst [vmem:[#allocation66_spill] sm:$0xff] %v11545_v1  ;;  %15027 = vst [vmem:[#allocation40_spill] sm:$0xff] %v11550_v43  ;;  %7412 = vmatprep.subr.bf16.mxu1 %v11545_v1  ;;  %v2864_v29 = vld [vmem:[%s13165_s3 + $0x3a8] sm:$0xff]  ;;  %v4263_v41 = vand.u32 4294901760, %v2866_v45  ;;  %v11601_v20 = vsub.f32 %v2865_v21, %v4265_v36  ;;  %v15054_v58 = vld [vmem:[#allocation20_spill] sm:$0xff] }
 0x276   :  { %15029 = vst [vmem:[#allocation43_spill] sm:$0xff] %v11554_v28  ;;  %15034 = vst [vmem:[#allocation22_spill] sm:$0xff] %v11571_v35  ;;  %v4259_v59 = vand.u32 4294901760, %v2864_v29  ;;  %v15057_v21 = vld [vmem:[#allocation45_spill] sm:$0xff]  ;;  %v15067_v1 = vld [vmem:[#allocation138_spill] sm:$0xff] }
 0x277   :  { %15036 = vst [vmem:[#allocation28_spill] sm:$0xff] %v11581_v3  ;;  %15038 = vst [vmem:[#allocation48_spill] sm:$0xff] %v11585_v52 }
 0x278   :  { %7166 = vmatpush1.bf16.msra.mxu0 %v7165_v48  ;;  %v11583_v48 = vsub.f32 %v2862_v46, %v4255_v26  ;;  %15039 = vst [vmem:[#allocation153_spill] sm:$0xff] %v11587_v24  ;;  %7414 = vmatpush1.bf16.msra.mxu1 %v11550_v43  ;;  %v11590_v12 = vpack.c.bf16 %v4263_v41, %v4259_v59  ;;  %15045 = vst [vmem:[#allocation46_spill] sm:$0xff] %v11599_v38  ;;  %v15047_v26 = vld [vmem:[#allocation103_spill] sm:$0xff] }
 0x279   :  { %7168 = vmatprep.subr.bf16.mxu0 %v7167_v11  ;;  %v11592_v15 = vsub.f32 %v2864_v29, %v4259_v59  ;;  %v11594_v11 = vsub.f32 %v2866_v45, %v4263_v41  ;;  %v11597_v46 = vpack.c.bf16 %v4265_v36, %v4261_v53  ;;  %15046 = vst [vmem:[#allocation77_spill] sm:$0xff] %v11601_v20  ;;  %v15050_v45 = vld [vmem:[#allocation76_spill] sm:$0xff]  ;;  %v15055_v29 = vld [vmem:[#allocation27_spill] sm:$0xff]  ;;  %v15060_v41 = vld [vmem:[#allocation69_spill] sm:$0xff] }
 0x27a   :  { %15037 = vst [vmem:[#allocation73_spill] sm:$0xff] %v11583_v48  ;;  %15040 = vst [vmem:[#allocation154_spill] sm:$0xff] %v11590_v12  ;;  %7416 = vmatprep.subr.bf16.mxu1 %v11590_v12  ;;  %v15058_v59 = vld [vmem:[#allocation56_spill] sm:$0xff]  ;;  %v15062_v36 = vld [vmem:[#allocation70_spill] sm:$0xff] }
 0x27b   :  { %15041 = vst [vmem:[#allocation34_spill] sm:$0xff] %v11592_v15  ;;  %15042 = vst [vmem:[#allocation35_spill] sm:$0xff] %v11594_v11  ;;  %v15061_v53 = vld [vmem:[#allocation68_spill] sm:$0xff]  ;;  %v15066_v43 = vld [vmem:[#allocation135_spill] sm:$0xff] }
 0x27c   :  { %7170 = vmatpush1.bf16.msra.mxu0 %v7169_v18  ;;  %15044 = vst [vmem:[#allocation37_spill] sm:$0xff] %v11597_v46  ;;  %7418 = vmatpush1.bf16.msra.mxu1 %v11597_v46  ;;  %v15049_v18 = vand.u32 4294901760, %v14944_v2  ;;  %v15059_v2 = vld [vmem:[#allocation62_spill] sm:$0xff]  ;;  %v15064_v46 = vld [vmem:[#allocation129_spill] sm:$0xff]  ;;  %v15065_v12 = vld [vmem:[#allocation132_spill] sm:$0xff] }
 0x27d   :  { %7172 = vmatprep.subr.bf16.mxu0 %v15043_v31  ;;  %v15109_v31 = vld [vmem:[#allocation173_spill] sm:$0xff] }
 0x27f   :  { %3606 = vmatmul.mubr.f32.vlgmr.msra.gmra.mrb[2].mxu0 %v15047_v26 }
 0x280   :  { %7174 = vmatpush1.bf16.msra.mxu0 %v15048_v42  ;;  %3743 = vmatprep.mubr.f32.mxu0 %v15049_v18  ;;  %v15063_v18 = vld [vmem:[#allocation126_spill] sm:$0xff] }
 0x281   :  { %7176 = vmatprep.subr.bf16.mxu0 %v15050_v45  ;;  %v15107_v42 = vld [vmem:[#allocation122_spill] sm:$0xff] }
 0x284   :  { %7178 = vmatpush1.bf16.msra.mxu0 %v15051_v16 }
 0x285   :  { %7180 = vmatprep.subr.bf16.mxu0 %v15052_v23 }
 0x288   :  { %7182 = vmatpush1.bf16.msra.mxu0 %v15053_v5 }
 0x289   :  { %7184 = vmatprep.subr.bf16.mxu0 %v15054_v58  ;;  %v15089_v58 = vld [vmem:[#allocation10_spill] sm:$0xff] }
 0x28c   :  { %7186 = vmatpush1.bf16.msra.mxu0 %v15055_v29 }
 0x28d   :  { %7188 = vmatprep.subr.bf16.mxu0 %v15056_v39  ;;  %v15083_v39 = vld [vmem:[#allocation6_spill] sm:$0xff] }
 0x290   :  { %7190 = vmatpush1.bf16.msra.mxu0 %v15057_v21  ;;  %v15068_v21 = vld [vmem:[#allocation141_spill] sm:$0xff] }
 0x291   :  { %7192 = vmatprep.subr.bf16.mxu0 %v15058_v59  ;;  %v15069_v59 = vld [vmem:[#allocation144_spill] sm:$0xff] }
 0x294   :  { %7194 = vmatpush1.bf16.msra.mxu0 %v15059_v2  ;;  %v15070_v2 = vld [vmem:[#allocation147_spill] sm:$0xff] }
 0x295   :  { %7196 = vmatprep.subr.bf16.mxu0 %v15060_v41  ;;  %v15071_v41 = vld [vmem:[#allocation150_spill] sm:$0xff] }
 0x298   :  { %7198 = vmatpush1.bf16.msra.mxu0 %v15061_v53  ;;  %v15072_v53 = vld [vmem:[#allocation155_spill] sm:$0xff] }
 0x299   :  { %7200 = vmatprep.subr.bf16.mxu0 %v15062_v36  ;;  %v15073_v36 = vld [vmem:[#allocation156_spill] sm:$0xff] }
 0x29c   :  { %7202 = vmatpush1.bf16.msra.mxu0 %v15063_v18  ;;  %v15074_v18 = vld [vmem:[#allocation157_spill] sm:$0xff] }
 0x29d   :  { %7204 = vmatprep.subr.bf16.mxu0 %v15064_v46  ;;  %v15075_v46 = vld [vmem:[#allocation158_spill] sm:$0xff] }
 0x2a0   :  { %7206 = vmatpush1.bf16.msra.mxu0 %v15065_v12  ;;  %v15076_v12 = vld [vmem:[#allocation160_spill] sm:$0xff] }
 0x2a1   :  { %7208 = vmatprep.subr.bf16.mxu0 %v15066_v43 }
 0x2a4   :  { %7210 = vmatpush1.bf16.msra.mxu0 %v15067_v1  ;;  %v15077_v1 = vand.u32 4294901760, %v14940_v33 }
 0x2a5   :  { %7212 = vmatprep.subr.bf16.mxu0 %v15068_v21  ;;  %v15078_v21 = vand.u32 4294901760, %v10639_v4  ;;  %v15085_v4 = vld [vmem:[#allocation117_spill] sm:$0xff] }
 0x2a7   :  { %v7235_v43 = vpack.c.bf16 %v15078_v21, %v15077_v1  ;;  %v15086_v21 = vld [vmem:[#allocation162_spill] sm:$0xff]  ;;  %v15097_v1 = vld [vmem:[#allocation15_spill] sm:$0xff] }
 0x2a8   :  { %7214 = vmatpush1.bf16.msra.mxu0 %v15069_v59  ;;  %v15087_v59 = vld [vmem:[#allocation9_spill] sm:$0xff]  ;;  %v15098_v33 = vand.u32 4294901760, %v15097_v1 }
 0x2a9   :  { %7216 = vmatprep.subr.bf16.mxu0 %v15070_v2  ;;  %v15088_v2 = vand.u32 4294901760, %v15087_v59 }
 0x2ac   :  { %7218 = vmatpush1.bf16.msra.mxu0 %v15071_v41  ;;  %v15079_v41 = vld [vmem:[#allocation161_spill] sm:$0xff] }
 0x2ad   :  { %7220 = vmatprep.subr.bf16.mxu0 %v15072_v53  ;;  %v15080_v53 = vand.u32 4294901760, %v14857_v9  ;;  %v15091_v9 = vld [vmem:[#allocation12_spill] sm:$0xff] }
 0x2ae   :  { %v15092_v23 = vand.u32 4294901760, %v15091_v9 }
 0x2b0   :  { %7222 = vmatpush1.bf16.msra.mxu0 %v15073_v36  ;;  %v15081_v36 = vand.u32 4294901760, %v14858_v54  ;;  %v15093_v54 = vld [vmem:[#allocation13_spill] sm:$0xff] }
 0x2b1   :  { %7224 = vmatprep.subr.bf16.mxu0 %v15074_v18 }
 0x2b2   :  { %v7237_v18 = vpack.c.bf16 %v15081_v36, %v15080_v53  ;;  %v15094_v53 = vand.u32 4294901760, %v15093_v54 }
 0x2b4   :  { %7226 = vmatpush1.bf16.msra.mxu0 %v15075_v46  ;;  %v15082_v46 = vand.u32 4294901760, %v14941_v40  ;;  %v7243_v36 = vpack.c.bf16 %v15094_v53, %v15092_v23  ;;  %v15095_v40 = vand.u32 4294901760, %v11204_v10  ;;  %v15105_v23 = vand.u32 4294901760, %v11226_v13 }
 0x2b5   :  { %7228 = vmatprep.subr.bf16.mxu0 %v15076_v12  ;;  %v15084_v12 = vand.u32 4294901760, %v15083_v39 }
 0x2b6   :  { %v4301_v53 = vsub.f32 %v11226_v13, %v15105_v23  ;;  %v15110_v23 = vld [vmem:[#allocation32_spill] sm:$0xff]  ;;  %v15112_v13 = vld [vmem:[#allocation33_spill] sm:$0xff] }
 0x2b7   :  { %v7239_v29 = vpack.c.bf16 %v15084_v12, %v15082_v46  ;;  %v4295_v12 = vsub.f32 %v11204_v10, %v15095_v40  ;;  %v15096_v46 = vand.u32 4294901760, %v11206_v56  ;;  %v15106_v40 = vand.u32 4294901760, %v15085_v4 }
 0x2b8   :  { %7230 = vmatpush1.bf16.msra.mxu0 %v15079_v41  ;;  %v15090_v41 = vand.u32 4294901760, %v15089_v58  ;;  %v15101_v58 = vld [vmem:[#allocation21_spill] sm:$0xff]  ;;  %v15111_v63 = vand.u32 4294901760, %v15110_v23 }
 0x2b9   :  { %7232 = vmatprep.subr.bf16.mxu0 %v15086_v21  ;;  %v4307_v39 = vsub.f32 %v11206_v56, %v15096_v46  ;;  %v15099_v21 = vld [vmem:[#allocation16_spill] sm:$0xff]  ;;  %v4313_v46 = vsub.f32 %v15085_v4, %v15106_v40  ;;  %v4296_v45 = vand.u32 4294901760, %v4295_v12  ;;  %v15113_v56 = vand.u32 4294901760, %v15112_v13 }
 0x2ba   :  { %v7241_v5 = vpack.c.bf16 %v15090_v41, %v15088_v2  ;;  %v15100_v59 = vand.u32 4294901760, %v15099_v21  ;;  %v15102_v2 = vand.u32 4294901760, %v15101_v58  ;;  %v15103_v41 = vld [vmem:[#allocation26_spill] sm:$0xff]  ;;  %v13846_v21 = vand.u32 4294901760, %v15107_v42 }
 0x2bb   :  { %v15104_v9 = vand.u32 4294901760, %v15103_v41  ;;  %v4308_v1 = vand.u32 4294901760, %v4307_v39  ;;  %v4302_v58 = vand.u32 4294901760, %v4301_v53  ;;  %v4314_v41 = vand.u32 4294901760, %v4313_v46  ;;  %v15115_v46 = vld [vmem:[#allocation41_spill] sm:$0xff] }
 0x2bc   :  { %v11672_v16 = vpack.c.bf16 %v15100_v59, %v15098_v33  ;;  %v15108_v33 = vld [vmem:[#allocation24_spill] sm:$0xff]  ;;  %7234 = vmatpush1.bf16.msra.mxu0 %v15109_v31  ;;  %v11695_v40 = vpack.c.bf16 %v15113_v56, %v15111_v63  ;;  %v4319_v39 = vsub.f32 %v15107_v42, %v13846_v21  ;;  %v15120_v63 = vand.u32 4294901760, %v11255_v55 }
 0x2bd   :  { %v11678_v54 = vpack.c.bf16 %v15104_v9, %v15102_v2  ;;  %v13845_v59 = vand.u32 4294901760, %v15108_v33  ;;  %7236 = vmatprep.subr.bf16.mxu0 %v7235_v43  ;;  %v11697_v12 = vpack.c.bf16 %v4308_v1, %v4296_v45  ;;  %v15116_v2 = vand.u32 4294901760, %v15115_v46  ;;  %v15117_v9 = vld [vmem:[#allocation44_spill] sm:$0xff] }
 0x2be   :  { %v15118_v43 = vand.u32 4294901760, %v15117_v9  ;;  %v11711_v23 = vpack.c.bf16 %v4314_v41, %v4302_v58  ;;  %v4325_v56 = vsub.f32 %v11255_v55, %v15120_v63  ;;  %v15121_v13 = vand.u32 4294901760, %v11257_v60  ;;  %v15123_v58 = vld [vmem:[#allocation100_spill] sm:$0xff] }
 0x2bf   :  { %15114 = vst [vmem:[#allocation79_spill] sm:$0xff] %v11697_v12  ;;  %v4331_v53 = vsub.f32 %v15108_v33, %v13845_v59  ;;  %v15122_v1 = vand.u32 4294901760, %v15047_v26  ;;  %v4320_v59 = vand.u32 4294901760, %v4319_v39  ;;  %v13847_v46 = vand.u32 4294901760, %v11263_v51  ;;  %v15126_v26 = vld [vmem:[#allocation51_spill] sm:$0xff]  ;;  %v15131_v63 = vld [vmem:[#allocation60_spill] sm:$0xff] }
 0x2c0   :  { %v11709_v31 = vpack.c.bf16 %v15118_v43, %v15116_v2  ;;  %15119 = vst [vmem:[#allocation159_spill] sm:$0xff] %v11711_v23  ;;  %v4337_v45 = vsub.f32 %v11257_v60, %v15121_v13  ;;  %v13848_v2 = vand.u32 4294901760, %v11265_v37  ;;  %v4326_v41 = vand.u32 4294901760, %v4325_v56  ;;  %v15124_v13 = vld [vmem:[#allocation50_spill] sm:$0xff] }
 0x2c1   :  { %3747 = vmatmul.mubr.f32.vlgmr.msra.gmra.mrb[2].mxu0 %v15122_v1  ;;  %v4332_v21 = vand.u32 4294901760, %v4331_v53  ;;  %v15125_v23 = vand.u32 4294901760, %v15124_v13  ;;  %v15127_v1 = vand.u32 4294901760, %v15126_v26 }
 0x2c2   :  { %7238 = vmatpush1.bf16.msra.mxu0 %v7237_v18  ;;  %4010 = vmatprep.mubr.f32.mxu0 %v15123_v58  ;;  %v4338_v9 = vand.u32 4294901760, %v4337_v45  ;;  %v4343_v18 = vsub.f32 %v11263_v51, %v13847_v46  ;;  %v4355_v56 = vsub.f32 %v11265_v37, %v13848_v2  ;;  %v15129_v45 = vld [vmem:[#allocation59_spill] sm:$0xff]  ;;  %v13851_v2 = vand.u32 4294901760, %v11293_v34 }
 0x2c3   :  { %7240 = vmatprep.subr.bf16.mxu0 %v7239_v29  ;;  %v11730_v39 = vpack.c.bf16 %v15127_v1, %v15125_v23  ;;  %v11732_v53 = vpack.c.bf16 %v4332_v21, %v4320_v59  ;;  %v15130_v43 = vand.u32 4294901760, %v15129_v45  ;;  %v15132_v29 = vand.u32 4294901760, %v15131_v63 }
 0x2c4   :  { %v11746_v13 = vpack.c.bf16 %v4338_v9, %v4326_v41  ;;  %v15134_v23 = vand.u32 4294901760, %v11285_v22  ;;  %v15135_v59 = vand.u32 4294901760, %v11287_v19  ;;  %v4344_v1 = vand.u32 4294901760, %v4343_v18  ;;  %v15136_v9 = vld [vmem:[#allocation58_spill] sm:$0xff] }
 0x2c5   :  { %15128 = vst [vmem:[#allocation2_spill] sm:$0xff] %v11732_v53  ;;  %v11744_v12 = vpack.c.bf16 %v15132_v29, %v15130_v43  ;;  %v4356_v46 = vand.u32 4294901760, %v4355_v56  ;;  %v13852_v45 = vand.u32 4294901760, %v11295_v47  ;;  %v13853_v41 = vand.u32 4294901760, %v11315_v57  ;;  %v15139_v53 = vld [vmem:[#allocation67_spill] sm:$0xff] }
 0x2c6   :  { %15133 = vst [vmem:[#allocation105_spill] sm:$0xff] %v11746_v13  ;;  %v4349_v21 = vsub.f32 %v11285_v22, %v15134_v23  ;;  %v4361_v26 = vsub.f32 %v11287_v19, %v15135_v59  ;;  %7242 = vmatpush1.bf16.msra.mxu0 %v7241_v5  ;;  %v15137_v13 = vld [vmem:[#allocation63_spill] sm:$0xff]  ;;  %v15140_v58 = vand.u32 4294901760, %v15139_v53  ;;  %v4367_v56 = vsub.f32 %v11293_v34, %v13851_v2  ;;  %v15148_v2 = vld [vmem:[#allocation80_spill] sm:$0xff] }
 0x2c7   :  { %7244 = vmatprep.subr.bf16.mxu0 %v7243_v36  ;;  %v15138_v23 = vand.u32 4294901760, %v15137_v13  ;;  %v11764_v18 = vpack.c.bf16 %v4356_v46, %v4344_v1  ;;  %v4379_v5 = vsub.f32 %v11295_v47, %v13852_v45  ;;  %v4373_v46 = vsub.f32 %v11315_v57, %v13853_v41  ;;  %v15152_v41 = vld [vmem:[#allocation123_spill] sm:$0xff]  ;;  %v15154_v47 = vld [vmem:[#allocation124_spill] sm:$0xff] }
 0x2c8   :  { %v4350_v63 = vand.u32 4294901760, %v4349_v21  ;;  %v4362_v43 = vand.u32 4294901760, %v4361_v26  ;;  %v15142_v21 = vld [vmem:[#allocation74_spill] sm:$0xff]  ;;  %v15144_v26 = vld [vmem:[#allocation75_spill] sm:$0xff]  ;;  %v4368_v1 = vand.u32 4294901760, %v4367_v56  ;;  %v13859_v45 = vand.u32 4294901760, %v15148_v2 }
 0x2c9   :  { %v11762_v22 = vpack.c.bf16 %v15140_v58, %v15138_v23  ;;  %15141 = vst [vmem:[#allocation103_spill] sm:$0xff] %v11764_v18  ;;  %v15143_v59 = vand.u32 4294901760, %v15142_v21  ;;  %v15145_v36 = vand.u32 4294901760, %v15144_v26  ;;  %v15147_v58 = vand.u32 4294901760, %v15136_v9  ;;  %v15149_v18 = vld [vmem:[#allocation81_spill] sm:$0xff] }
 0x2ca   :  { %v11778_v13 = vpack.c.bf16 %v4362_v43, %v4350_v63  ;;  %v4380_v23 = vand.u32 4294901760, %v4379_v5  ;;  %v13860_v21 = vand.u32 4294901760, %v15149_v18  ;;  %7246 = vmatpush1.bf16.msra.mxu0 %v11672_v16  ;;  %v15150_v63 = vld [vmem:[#allocation83_spill] sm:$0xff]  ;;  %v15153_v57 = vand.u32 4294901760, %v15152_v41  ;;  %v15159_v43 = vld [vmem:[#allocation125_spill] sm:$0xff] }
 0x2cb   :  { %v11776_v29 = vpack.c.bf16 %v15145_v36, %v15143_v59  ;;  %v4385_v53 = vsub.f32 %v15136_v9, %v15147_v58  ;;  %v4374_v59 = vand.u32 4294901760, %v4373_v46  ;;  %v15151_v36 = vld [vmem:[#allocation84_spill] sm:$0xff]  ;;  %7248 = vmatprep.subr.bf16.mxu0 %v11678_v54  ;;  %v15155_v58 = vand.u32 4294901760, %v15154_v47 }
 0x2cc   :  { %15146 = vst [vmem:[#allocation6_spill] sm:$0xff] %v11778_v13  ;;  %v11798_v5 = vpack.c.bf16 %v4380_v23, %v4368_v1  ;;  %v4391_v16 = vsub.f32 %v15148_v2, %v13859_v45  ;;  %v4403_v46 = vsub.f32 %v15149_v18, %v13860_v21  ;;  %v15160_v54 = vand.u32 4294901760, %v15159_v43  ;;  %v15165_v18 = vld [vmem:[#allocation88_spill] sm:$0xff] }
 0x2cd   :  { %v4386_v26 = vand.u32 4294901760, %v4385_v53  ;;  %v11796_v56 = vpack.c.bf16 %v15155_v58, %v15153_v57  ;;  %v15157_v53 = vld [vmem:[#allocation71_spill] sm:$0xff]  ;;  %v15162_v47 = vand.u32 4294901760, %v15150_v63  ;;  %v15163_v1 = vand.u32 4294901760, %v15151_v36 }
 0x2ce   :  { %15156 = vst [vmem:[#allocation117_spill] sm:$0xff] %v11798_v5  ;;  %v15158_v13 = vand.u32 4294901760, %v15157_v53  ;;  %v4392_v58 = vand.u32 4294901760, %v4391_v16  ;;  %v4404_v45 = vand.u32 4294901760, %v4403_v46  ;;  %v15164_v5 = vld [vmem:[#allocation86_spill] sm:$0xff]  ;;  %v13864_v53 = vand.u32 4294901760, %v15165_v18  ;;  %7250 = vmatpush1.bf16.msra.mxu0 %v11695_v40 }
 0x2cf   :  { %v11812_v41 = vpack.c.bf16 %v4386_v26, %v4374_v59  ;;  %v4397_v57 = vsub.f32 %v15150_v63, %v15162_v47  ;;  %v4409_v23 = vsub.f32 %v15151_v36, %v15163_v1  ;;  %v13863_v21 = vand.u32 4294901760, %v15164_v5  ;;  %7252 = vmatprep.subr.bf16.mxu0 %v11709_v31  ;;  %v15173_v59 = vld [vmem:[#allocation131_spill] sm:$0xff] }
 0x2d0   :  { %v11810_v9 = vpack.c.bf16 %v15160_v54, %v15158_v13  ;;  %v15166_v54 = vld [vmem:[#allocation127_spill] sm:$0xff]  ;;  %v11832_v46 = vpack.c.bf16 %v4404_v45, %v4392_v58  ;;  %v15174_v31 = vand.u32 4294901760, %v15173_v59  ;;  %v15177_v58 = vand.u32 4294901760, %v11377_v61 }
 0x2d1   :  { %15161 = vst [vmem:[#allocation9_spill] sm:$0xff] %v11812_v41  ;;  %v4398_v13 = vand.u32 4294901760, %v4397_v57  ;;  %v4410_v43 = vand.u32 4294901760, %v4409_v23  ;;  %v15167_v47 = vand.u32 4294901760, %v15166_v54  ;;  %v15168_v41 = vld [vmem:[#allocation128_spill] sm:$0xff]  ;;  %v4415_v40 = vsub.f32 %v15164_v5, %v13863_v21  ;;  %v15171_v23 = vld [vmem:[#allocation130_spill] sm:$0xff] }
 0x2d2   :  { %v15169_v1 = vand.u32 4294901760, %v15168_v41  ;;  %15170 = vst [vmem:[#allocation10_spill] sm:$0xff] %v11832_v46  ;;  %v4427_v57 = vsub.f32 %v15165_v18, %v13864_v53  ;;  %v15172_v26 = vand.u32 4294901760, %v15171_v23  ;;  %v15176_v41 = vand.u32 4294901760, %v11375_v7  ;;  %7254 = vmatpush1.bf16.msra.mxu0 %v11730_v39  ;;  %v15303_v5 = vld [vmem:[#allocation56_spill] sm:$0xff]  ;;  %v15305_v18 = vld [vmem:[#allocation65_spill] sm:$0xff] }
 0x2d3   :  { %v11846_v54 = vpack.c.bf16 %v4410_v43, %v4398_v13  ;;  %v13865_v53 = vand.u32 4294901760, %v11383_v30  ;;  %v13866_v23 = vand.u32 4294901760, %v11385_v14  ;;  %7256 = vmatprep.subr.bf16.mxu0 %v11744_v12  ;;  %v15185_v13 = vld [vmem:[#allocation137_spill] sm:$0xff] }
 0x2d4   :  { %v11830_v16 = vpack.c.bf16 %v15169_v1, %v15167_v47  ;;  %v11844_v36 = vpack.c.bf16 %v15174_v31, %v15172_v26  ;;  %v4421_v45 = vsub.f32 %v11375_v7, %v15176_v41  ;;  %v4433_v47 = vsub.f32 %v11377_v61, %v15177_v58  ;;  %v15178_v31 = vld [vmem:[#allocation133_spill] sm:$0xff]  ;;  %v15306_v7 = vld [vmem:[#allocation62_spill] sm:$0xff]  ;;  %v15308_v61 = vld [vmem:[#allocation111_spill] sm:$0xff] }
 0x2d5   :  { %15175 = vst [vmem:[#allocation12_spill] sm:$0xff] %v11846_v54  ;;  %v4416_v1 = vand.u32 4294901760, %v4415_v40  ;;  %v4428_v21 = vand.u32 4294901760, %v4427_v57  ;;  %v15179_v41 = vand.u32 4294901760, %v15178_v31  ;;  %v15180_v54 = vld [vmem:[#allocation134_spill] sm:$0xff]  ;;  %v4439_v39 = vsub.f32 %v11383_v30, %v13865_v53  ;;  %v15309_v30 = vld [vmem:[#allocation69_spill] sm:$0xff] }
 0x2d6   :  { %v4422_v59 = vand.u32 4294901760, %v4421_v45  ;;  %v4434_v26 = vand.u32 4294901760, %v4433_v47  ;;  %v15181_v58 = vand.u32 4294901760, %v15180_v54  ;;  %v4451_v45 = vsub.f32 %v11385_v14, %v13866_v23  ;;  %v15183_v47 = vld [vmem:[#allocation136_spill] sm:$0xff]  ;;  %7258 = vmatpush1.bf16.msra.mxu0 %v11762_v22 }
 0x2d7   :  { %v11866_v57 = vpack.c.bf16 %v4428_v21, %v4416_v1  ;;  %v15184_v43 = vand.u32 4294901760, %v15183_v47  ;;  %v15186_v12 = vand.u32 4294901760, %v15185_v13  ;;  %v15188_v54 = vand.u32 4294901760, %v11405_v44  ;;  %7260 = vmatprep.subr.bf16.mxu0 %v11776_v29  ;;  %v15195_v14 = vld [vmem:[#allocation140_spill] sm:$0xff] }
 0x2d8   :  { %v11864_v40 = vpack.c.bf16 %v15181_v58, %v15179_v41  ;;  %v11880_v31 = vpack.c.bf16 %v4434_v26, %v4422_v59  ;;  %v15189_v1 = vand.u32 4294901760, %v11407_v17  ;;  %v4440_v58 = vand.u32 4294901760, %v4439_v39  ;;  %v15191_v59 = vld [vmem:[#allocation107_spill] sm:$0xff] }
 0x2d9   :  { %15182 = vst [vmem:[#allocation13_spill] sm:$0xff] %v11866_v57  ;;  %v11878_v46 = vpack.c.bf16 %v15186_v12, %v15184_v43  ;;  %v4445_v21 = vsub.f32 %v11405_v44, %v15188_v54  ;;  %v4452_v53 = vand.u32 4294901760, %v4451_v45  ;;  %v13873_v23 = vand.u32 4294901760, %v11413_v32  ;;  %v15190_v57 = vld [vmem:[#allocation104_spill] sm:$0xff]  ;;  %v15192_v12 = vld [vmem:[#allocation65_spill] sm:$0xff]  ;;  %v15193_v54 = vld [vmem:[#allocation139_spill] sm:$0xff] }
 0x2da   :  { %15187 = vst [vmem:[#allocation15_spill] sm:$0xff] %v11880_v31  ;;  %v4457_v41 = vsub.f32 %v11407_v17, %v15189_v1  ;;  %v13874_v47 = vand.u32 4294901760, %v15190_v57  ;;  %v15194_v44 = vand.u32 4294901760, %v15193_v54  ;;  %v15196_v1 = vand.u32 4294901760, %v15195_v14  ;;  %v15200_v26 = vld [vmem:[#allocation143_spill] sm:$0xff]  ;;  %7262 = vmatpush1.bf16.msra.mxu0 %v11796_v56 }
 0x2db   :  { %v4446_v13 = vand.u32 4294901760, %v4445_v21  ;;  %v11900_v45 = vpack.c.bf16 %v4452_v53, %v4440_v58  ;;  %v4463_v22 = vsub.f32 %v11413_v32, %v13873_v23  ;;  %v15201_v29 = vand.u32 4294901760, %v15200_v26  ;;  %7264 = vmatprep.subr.bf16.mxu0 %v11810_v9  ;;  %v15211_v32 = vld [vmem:[#allocation146_spill] sm:$0xff] }
 0x2dc   :  { %v4458_v43 = vand.u32 4294901760, %v4457_v41  ;;  %v11898_v39 = vpack.c.bf16 %v15196_v1, %v15194_v44  ;;  %v4475_v21 = vsub.f32 %v15190_v57, %v13874_v47  ;;  %v15198_v41 = vld [vmem:[#allocation142_spill] sm:$0xff]  ;;  %v15203_v14 = vand.u32 4294901760, %v15191_v59  ;;  %v15206_v57 = vld [vmem:[#allocation111_spill] sm:$0xff] }
 0x2dd   :  { %15197 = vst [vmem:[#allocation16_spill] sm:$0xff] %v11900_v45  ;;  %v15199_v31 = vand.u32 4294901760, %v15198_v41  ;;  %v15204_v53 = vand.u32 4294901760, %v15192_v12  ;;  %v4464_v1 = vand.u32 4294901760, %v4463_v22  ;;  %v15205_v45 = vld [vmem:[#allocation110_spill] sm:$0xff]  ;;  %v13881_v41 = vand.u32 4294901760, %v15206_v57 }
 0x2de   :  { %v11914_v54 = vpack.c.bf16 %v4458_v43, %v4446_v13  ;;  %v4469_v44 = vsub.f32 %v15191_v59, %v15203_v14  ;;  %v4476_v23 = vand.u32 4294901760, %v4475_v21  ;;  %v13880_v47 = vand.u32 4294901760, %v15205_v45  ;;  %v15207_v13 = vld [vmem:[#allocation114_spill] sm:$0xff]  ;;  %v15209_v14 = vld [vmem:[#allocation145_spill] sm:$0xff]  ;;  %7266 = vmatpush1.bf16.msra.mxu0 %v11830_v16 }
 0x2df   :  { %v11912_v17 = vpack.c.bf16 %v15201_v29, %v15199_v31  ;;  %v4481_v58 = vsub.f32 %v15192_v12, %v15204_v53  ;;  %v15208_v29 = vld [vmem:[#allocation116_spill] sm:$0xff]  ;;  %v15210_v59 = vand.u32 4294901760, %v15209_v14  ;;  %v15212_v53 = vand.u32 4294901760, %v15211_v32  ;;  %v15216_v43 = vld [vmem:[#allocation149_spill] sm:$0xff]  ;;  %7268 = vmatprep.subr.bf16.mxu0 %v11844_v36 }
 0x2e0   :  { %15202 = vst [vmem:[#allocation21_spill] sm:$0xff] %v11914_v54  ;;  %v4470_v31 = vand.u32 4294901760, %v4469_v44  ;;  %v11934_v21 = vpack.c.bf16 %v4476_v23, %v4464_v1  ;;  %v4487_v56 = vsub.f32 %v15205_v45, %v13880_v47  ;;  %v4499_v44 = vsub.f32 %v15206_v57, %v13881_v41  ;;  %v15222_v57 = vld [vmem:[#allocation119_spill] sm:$0xff]  ;;  %v15227_v45 = vld [vmem:[#allocation152_spill] sm:$0xff] }
 0x2e1   :  { %v4482_v26 = vand.u32 4294901760, %v4481_v58  ;;  %v11932_v22 = vpack.c.bf16 %v15212_v53, %v15210_v59  ;;  %v15214_v58 = vld [vmem:[#allocation148_spill] sm:$0xff]  ;;  %v15217_v9 = vand.u32 4294901760, %v15216_v43  ;;  %v15219_v32 = vand.u32 4294901760, %v15207_v13 }
 0x2e2   :  { %15213 = vst [vmem:[#allocation26_spill] sm:$0xff] %v11934_v21  ;;  %v15215_v54 = vand.u32 4294901760, %v15214_v58  ;;  %v15220_v59 = vand.u32 4294901760, %v15208_v29  ;;  %v4488_v53 = vand.u32 4294901760, %v4487_v56  ;;  %v4500_v47 = vand.u32 4294901760, %v4499_v44  ;;  %v15221_v21 = vld [vmem:[#allocation118_spill] sm:$0xff]  ;;  %7270 = vmatpush1.bf16.msra.mxu0 %v11864_v40 }
 0x2e3   :  { %v11948_v14 = vpack.c.bf16 %v4482_v26, %v4470_v31  ;;  %v4493_v23 = vsub.f32 %v15207_v13, %v15219_v32  ;;  %v13885_v41 = vand.u32 4294901760, %v15221_v21  ;;  %v13886_v58 = vand.u32 4294901760, %v15222_v57  ;;  %v15223_v31 = vld [vmem:[#allocation121_spill] sm:$0xff]  ;;  %v15225_v32 = vld [vmem:[#allocation151_spill] sm:$0xff]  ;;  %7272 = vmatprep.subr.bf16.mxu0 %v11878_v46 }
 0x2e4   :  { %v11946_v12 = vpack.c.bf16 %v15217_v9, %v15215_v54  ;;  %v4505_v1 = vsub.f32 %v15208_v29, %v15220_v59  ;;  %v15224_v9 = vld [vmem:[#allocation29_spill] sm:$0xff]  ;;  %v15226_v13 = vand.u32 4294901760, %v15225_v32  ;;  %v15228_v59 = vand.u32 4294901760, %v15227_v45 }
 0x2e5   :  { %15218 = vst [vmem:[#allocation122_spill] sm:$0xff] %v11948_v14  ;;  %v4494_v54 = vand.u32 4294901760, %v4493_v23  ;;  %v11968_v44 = vpack.c.bf16 %v4500_v47, %v4488_v53  ;;  %v4511_v16 = vsub.f32 %v15221_v21, %v13885_v41  ;;  %v4523_v23 = vsub.f32 %v15222_v57, %v13886_v58 }
 0x2e6   :  { %v4506_v43 = vand.u32 4294901760, %v4505_v1  ;;  %v11966_v56 = vpack.c.bf16 %v15228_v59, %v15226_v13  ;;  %v15230_v1 = vld [vmem:[#allocation94_spill] sm:$0xff]  ;;  %v15232_v36 = vand.u32 4294901760, %v15223_v31  ;;  %v15233_v13 = vand.u32 4294901760, %v15224_v9  ;;  %7274 = vmatpush1.bf16.msra.mxu0 %v11898_v39  ;;  %v15237_v39 = vld [vmem:[#allocation163_spill] sm:$0xff] }
 0x2e7   :  { %15229 = vst [vmem:[#allocation24_spill] sm:$0xff] %v11968_v44  ;;  %v165_v14 = vsub.s32 2, %v15230_v1  ;;  %v4512_v53 = vand.u32 4294901760, %v4511_v16  ;;  %v4524_v32 = vand.u32 4294901760, %v4523_v23  ;;  %v13888_v59 = vand.u32 4294901760, %v11552_v6  ;;  %7276 = vmatprep.subr.bf16.mxu0 %v11912_v17 }
 0x2e8   :  { %v11977_v26 = vpack.c.bf16 %v4506_v43, %v4494_v54  ;;  %v4517_v45 = vsub.f32 %v15223_v31, %v15232_v36  ;;  %v4529_v47 = vsub.f32 %v15224_v9, %v15233_v13  ;;  %v13887_v41 = vand.u32 4294901760, %v11554_v28  ;;  %v8014_v23 = vld [vmem:[%s13166_s2] sm:$0xf] }
 0x2e9   :  { %v13889_v54 = vand.u32 4294901760, %v11556_v49  ;;  %v13890_v43 = vand.u32 4294901760, %v11558_v8  ;;  %v169_v36 = vsub.s32 3, %v15230_v1  ;;  %v4535_v16 = vsub.f32 %v11552_v6, %v13888_v59 }
 0x2ea   :  { %15231 = vst [vmem:[#allocation32_spill] sm:$0xff] %v11977_v26  ;;  %v4518_v58 = vand.u32 4294901760, %v4517_v45  ;;  %v4530_v44 = vand.u32 4294901760, %v4529_v47  ;;  %v11992_v26 = vpack.c.bf16 %v4524_v32, %v4512_v53  ;;  %v4547_v40 = vsub.f32 %v11554_v28, %v13887_v41  ;;  %7278 = vmatpush1.bf16.msra.mxu0 %v11932_v22 }
 0x2eb   :  { %v166_v45 = vrot.slane %v8014_v23, %v165_v14  ;;  %v4541_v46 = vsub.f32 %v11556_v49, %v13889_v54  ;;  %v4553_v1 = vsub.f32 %v11558_v8, %v13890_v43  ;;  %v4536_v47 = vand.u32 4294901760, %v4535_v16  ;;  %7280 = vmatprep.subr.bf16.mxu0 %v11946_v12 }
 0x2ec   :  { %15234 = vst [vmem:[#allocation33_spill] sm:$0xff] %v11992_v26  ;;  %v12003_v13 = vpack.c.bf16 %v4530_v44, %v4518_v58  ;;  %v4548_v53 = vand.u32 4294901760, %v4547_v40  ;;  %v13891_v32 = vand.u32 4294901760, %v11567_v0  ;;  %v13892_v41 = vand.u32 4294901760, %v11569_v27 }
 0x2ed   :  { %v4542_v59 = vand.u32 4294901760, %v4541_v46  ;;  %v4554_v14 = vand.u32 4294901760, %v4553_v1  ;;  %v13893_v44 = vand.u32 4294901760, %v11573_v62  ;;  %v170_v54 = vrot.slane %v8014_v23, %v169_v36  ;;  %v15239_v1 = vld [vmem:[#allocation164_spill] sm:$0xff] }
 0x2ee   :  { %15235 = vst [vmem:[#allocation41_spill] sm:$0xff] %v12003_v13  ;;  %v12017_v13 = vpack.c.bf16 %v4548_v53, %v4536_v47  ;;  %v4559_v16 = vsub.f32 %v11567_v0, %v13891_v32  ;;  %v4571_v40 = vsub.f32 %v11569_v27, %v13892_v41  ;;  %v15238_v46 = vand.u32 4294901760, %v15237_v39  ;;  %7282 = vmatpush1.bf16.msra.mxu0 %v11966_v56 }
 0x2ef   :  { %v15240_v43 = vand.u32 4294901760, %v15239_v1  ;;  %v12029_v26 = vpack.c.bf16 %v4554_v14, %v4542_v59  ;;  %v15242_v17 = vand.u32 4294901760, %v11571_v35  ;;  %v4577_v23 = vsub.f32 %v11573_v62, %v13893_v44  ;;  %v15251_v14 = vld [vmem:[#allocation167_spill] sm:$0xff] }
 0x2f0   :  { %15236 = vst [vmem:[#allocation44_spill] sm:$0xff] %v12017_v13  ;;  %v4560_v47 = vand.u32 4294901760, %v4559_v16  ;;  %v4572_v53 = vand.u32 4294901760, %v4571_v40  ;;  %v13894_v32 = vand.u32 4294901760, %v11581_v3  ;;  %v15248_v22 = vand.u32 4294901760, %v11583_v48 }
 0x2f1   :  { %v7283_v58 = vpack.c.bf16 %v15240_v43, %v15238_v46  ;;  %15241 = vst [vmem:[#allocation50_spill] sm:$0xff] %v12029_v26  ;;  %v4565_v36 = vsub.f32 %v11571_v35, %v15242_v17  ;;  %v4578_v43 = vand.u32 4294901760, %v4577_v23  ;;  %v15243_v46 = vld [vmem:[#allocation165_spill] sm:$0xff]  ;;  %v15245_v17 = vld [vmem:[#allocation166_spill] sm:$0xff]  ;;  %v15249_v23 = vld [vmem:[#allocation87_spill] sm:$0xff]  ;;  %v15252_v26 = vand.u32 4294901760, %v15251_v14 }
 0x2f2   :  { %v15244_v1 = vand.u32 4294901760, %v15243_v46  ;;  %v15246_v44 = vand.u32 4294901760, %v15245_v17  ;;  %v12047_v40 = vpack.c.bf16 %v4572_v53, %v4560_v47  ;;  %v4583_v41 = vsub.f32 %v11581_v3, %v13894_v32  ;;  %v2738_v14 = vpop.f32.mrb[2].mxu1  ;;  %v15322_v35 = vld [vmem:[#allocation150_spill] sm:$0xff] }
 0x2f3   :  { %v4566_v39 = vand.u32 4294901760, %v4565_v36  ;;  %v4595_v36 = vsub.f32 %v11583_v48, %v15248_v22  ;;  %v15250_v59 = vand.u32 4294901760, %v15249_v23  ;;  %v15254_v46 = vand.u32 4294901760, %v11585_v52  ;;  %7284 = vmatprep.subr.bf16.mxu0 %v7283_v58  ;;  %v15326_v3 = vld [vmem:[#allocation158_spill] sm:$0xff] }
 0x2f4   :  { %v7285_v16 = vpack.c.bf16 %v15246_v44, %v15244_v1  ;;  %15247 = vst [vmem:[#allocation51_spill] sm:$0xff] %v12047_v40  ;;  %v15255_v47 = vand.u32 4294901760, %v11587_v24  ;;  %v4584_v1 = vand.u32 4294901760, %v4583_v41  ;;  %v13895_v32 = vand.u32 4294901760, %v11592_v15  ;;  %v15265_v40 = vld [vmem:[#allocation170_spill] sm:$0xff] }
 0x2f5   :  { %v7287_v12 = vpack.c.bf16 %v15252_v26, %v15250_v59  ;;  %v12059_v13 = vpack.c.bf16 %v4578_v43, %v4566_v39  ;;  %v4589_v44 = vsub.f32 %v11585_v52, %v15254_v46  ;;  %v4596_v17 = vand.u32 4294901760, %v4595_v36  ;;  %v2740_v46 = vpop.f32.mrb[3].mxu1 }
 0x2f6   :  { %v4601_v53 = vsub.f32 %v11587_v24, %v15255_v47  ;;  %v13896_v22 = vand.u32 4294901760, %v11594_v11  ;;  %v13897_v43 = vand.u32 4294901760, %v11599_v38  ;;  %v13898_v59 = vand.u32 4294901760, %v11601_v20  ;;  %7286 = vmatpush1.bf16.msra.mxu0 %v7285_v16 }
 0x2f7   :  { %15253 = vst [vmem:[#allocation59_spill] sm:$0xff] %v12059_v13  ;;  %v4590_v26 = vand.u32 4294901760, %v4589_v44  ;;  %v7955_v23 = vadd.f32 %v2738_v14, %v166_v45  ;;  %v12072_v13 = vpack.c.bf16 %v4596_v17, %v4584_v1  ;;  %v4607_v41 = vsub.f32 %v11592_v15, %v13895_v32  ;;  %v15258_v14 = vld [vmem:[#allocation168_spill] sm:$0xff]  ;;  %7288 = vmatprep.subr.bf16.mxu0 %v7287_v12  ;;  %v15331_v15 = vld [vmem:[#allocation79_spill] sm:$0xff] }
 0x2f8   :  { %v4602_v39 = vand.u32 4294901760, %v4601_v53  ;;  %v4619_v56 = vsub.f32 %v11594_v11, %v13896_v22  ;;  %v7956_v36 = vadd.f32 %v2740_v46, %v170_v54  ;;  %v4613_v47 = vsub.f32 %v11599_v38, %v13897_v43  ;;  %v15260_v22 = vld [vmem:[#allocation169_spill] sm:$0xff]  ;;  %v15263_v43 = vld [vmem:[#allocation91_spill] sm:$0xff] }
 0x2f9   :  { %15256 = vst [vmem:[#allocation60_spill] sm:$0xff] %v12072_v13  ;;  %v4625_v45 = vsub.f32 %v11601_v20, %v13898_v59  ;;  %v2745_v58 = vmul.f32 %v7955_v23, %v7955_v23  ;;  %v4608_v53 = vand.u32 4294901760, %v4607_v41  ;;  %v15259_v32 = vand.u32 4294901760, %v15258_v14  ;;  %v15299_v14 = vld [vmem:[#allocation101_spill] sm:$0xff] }
 0x2fa   :  { %v12080_v44 = vpack.c.bf16 %v4602_v39, %v4590_v26  ;;  %v4620_v1 = vand.u32 4294901760, %v4619_v56  ;;  %v2746_v17 = vmul.f32 %v7956_v36, %v7956_v36  ;;  %v15261_v54 = vand.u32 4294901760, %v15260_v22 }
 0x2fb   :  { %v4614_v39 = vand.u32 4294901760, %v4613_v47  ;;  %v4626_v46 = vand.u32 4294901760, %v4625_v45  ;;  %v15264_v13 = vand.u32 4294901760, %v15263_v43  ;;  %v15266_v59 = vand.u32 4294901760, %v15265_v40  ;;  %v15270_v47 = vld [vmem:[#allocation172_spill] sm:$0xff] }
 0x2fc   :  { %15257 = vst [vmem:[#allocation63_spill] sm:$0xff] %v12080_v44  ;;  %v7289_v26 = vpack.c.bf16 %v15261_v54, %v15259_v32  ;;  %v12092_v44 = vand.u32 4294901760, %v2745_v58  ;;  %v12098_v20 = vpack.c.bf16 %v4620_v1, %v4608_v53  ;;  %v2869_v41 = vsel %vm2867_vm0, %v2746_v17, 0  ;;  %v15268_v32 = vld [vmem:[#allocation171_spill] sm:$0xff]  ;;  %v15274_v53 = vld [vmem:[#allocation5_spill] sm:$0xff] }
 0x2fd   :  { %v7291_v23 = vpack.c.bf16 %v15266_v59, %v15264_v13  ;;  %v12100_v56 = vpack.c.bf16 %v4626_v46, %v4614_v39  ;;  %v12105_v22 = vand.u32 4294901760, %v2869_v41  ;;  %v15269_v36 = vand.u32 4294901760, %v15268_v32  ;;  %v15275_v17 = vld [vmem:[#allocation115_spill] sm:$0xff]  ;;  %v15276_v39 = vld [vmem:[#allocation174_spill] sm:$0xff]  ;;  %v15300_v1 = vld [vmem:[#allocation45_spill] sm:$0xff] }
 0x2fe   :  { %15262 = vst [vmem:[#allocation67_spill] sm:$0xff] %v12092_v44  ;;  %v12103_v16 = vsub.f32 %v2745_v58, %v12092_v44  ;;  %7290 = vmatpush1.bf16.msra.mxu0 %v7289_v26  ;;  %v15271_v12 = vand.u32 4294901760, %v15270_v47  ;;  %v15272_v40 = vand.u32 4294901760, %v10709_v25  ;;  %v15273_v59 = vand.u32 4294901760, %v10711_v50  ;;  %v15297_v50 = vld [vmem:[#allocation38_spill] sm:$0xff] }
 0x2ff   :  { %v12113_v13 = vsub.f32 %v2869_v41, %v12105_v22  ;;  %7292 = vmatprep.subr.bf16.mxu0 %v7291_v23  ;;  %v15277_v46 = vand.u32 4294901760, %v15276_v39  ;;  %v15278_v23 = vld [vmem:[#allocation175_spill] sm:$0xff]  ;;  %v15314_v39 = vld [vmem:[#allocation129_spill] sm:$0xff] }
 0x300   :  { %15267 = vst [vmem:[#allocation74_spill] sm:$0xff] %v12103_v16  ;;  %v7293_v45 = vpack.c.bf16 %v15271_v12, %v15269_v36  ;;  %v13901_v43 = vand.u32 4294901760, %v12103_v16  ;;  %v7295_v58 = vpack.c.bf16 %v15273_v59, %v15272_v40  ;;  %v15279_v25 = vand.u32 4294901760, %v15278_v23  ;;  %v15280_v40 = vld [vmem:[#allocation31_spill] sm:$0xff]  ;;  %v15281_v59 = vld [vmem:[#allocation52_spill] sm:$0xff]  ;;  %v15293_v36 = vld [vmem:[#allocation14_spill] sm:$0xff] }
 0x301   :  { %v13902_v54 = vand.u32 4294901760, %v12113_v13  ;;  %v15284_v23 = vld [vmem:[#allocation100_spill] sm:$0xff] }
 0x302   :  { %v4284_v26 = vsub.f32 %v12103_v16, %v13901_v43  ;;  %7294 = vmatpush1.bf16.msra.mxu0 %v7293_v45  ;;  %v7297_v41 = vpack.c.bf16 %v15279_v25, %v15277_v46  ;;  %v15283_v46 = vld [vmem:[#allocation36_spill] sm:$0xff]  ;;  %v15285_v25 = vld [vmem:[#allocation54_spill] sm:$0xff] }
 0x303   :  { %7296 = vmatprep.subr.bf16.mxu0 %v7295_v58  ;;  %v4278_v32 = vsub.f32 %v12113_v13, %v13902_v54  ;;  %v15282_v58 = vld [vmem:[#allocation97_spill] sm:$0xff]  ;;  %v15288_v43 = vld [vmem:[#allocation58_spill] sm:$0xff]  ;;  %v15289_v54 = vld [vmem:[#allocation7_spill] sm:$0xff] }
 0x304   :  { %v4285_v12 = vand.u32 4294901760, %v4284_v26  ;;  %v15286_v26 = vld [vmem:[#allocation76_spill] sm:$0xff] }
 0x305   :  { %v4279_v47 = vand.u32 4294901760, %v4278_v32  ;;  %v15287_v32 = vld [vmem:[#allocation57_spill] sm:$0xff]  ;;  %v15292_v45 = vld [vmem:[#allocation84_spill] sm:$0xff] }
 0x306   :  { %7298 = vmatpush1.bf16.msra.mxu0 %v7297_v41  ;;  %v15294_v41 = vld [vmem:[#allocation20_spill] sm:$0xff] }
 0x307   :  { %4280 = vmatprep.mubr.f32.mxu1 %v4279_v47  ;;  %7300 = vmatprep.subr.bf16.mxu0 %v15280_v40  ;;  %v15290_v40 = vld [vmem:[#allocation81_spill] sm:$0xff]  ;;  %v15295_v47 = vld [vmem:[#allocation27_spill] sm:$0xff]  ;;  %v15302_v16 = vld [vmem:[#allocation104_spill] sm:$0xff] }
 0x308   :  { %4286 = vmatmul.mubr.f32.vlgmr.msra.gmra.mrb[4].mxu1 %v4285_v12  ;;  %v15291_v12 = vld [vmem:[#allocation11_spill] sm:$0xff] }
 0x309   :  { %4012 = vmatmul.mubr.f32.vlgmr.msra.gmra.mrb[2].mxu0 %v15282_v58 }
 0x30a   :  { %7302 = vmatpush1.bf16.msra.mxu0 %v15283_v46  ;;  %4147 = vmatprep.mubr.f32.mxu0 %v15284_v23  ;;  %v15312_v23 = vld [vmem:[#allocation70_spill] sm:$0xff]  ;;  %v15315_v46 = vld [vmem:[#allocation132_spill] sm:$0xff] }
 0x30b   :  { %7304 = vmatprep.subr.bf16.mxu0 %v15286_v26  ;;  %v15313_v26 = vld [vmem:[#allocation126_spill] sm:$0xff] }
 0x30e   :  { %7306 = vmatpush1.bf16.msra.mxu0 %v15289_v54  ;;  %v15296_v54 = vld [vmem:[#allocation96_spill] sm:$0xff] }
 0x30f   :  { %7308 = vmatprep.subr.bf16.mxu0 %v15291_v12  ;;  %v15311_v12 = vld [vmem:[#allocation68_spill] sm:$0xff] }
 0x312   :  { %7310 = vmatpush1.bf16.msra.mxu0 %v15293_v36  ;;  %v15301_v36 = vld [vmem:[#allocation61_spill] sm:$0xff] }
 0x313   :  { %7312 = vmatprep.subr.bf16.mxu0 %v15294_v41  ;;  %v15304_v41 = vld [vmem:[#allocation107_spill] sm:$0xff] }
 0x316   :  { %7314 = vmatpush1.bf16.msra.mxu0 %v15295_v47  ;;  %v15307_v47 = vld [vmem:[#allocation110_spill] sm:$0xff] }
 0x317   :  { %7316 = vmatprep.subr.bf16.mxu0 %v15297_v50  ;;  %v15310_v50 = vld [vmem:[#allocation114_spill] sm:$0xff] }
 0x31a   :  { %7318 = vmatpush1.bf16.msra.mxu0 %v15300_v1  ;;  %v15316_v1 = vld [vmem:[#allocation135_spill] sm:$0xff] }
 0x31b   :  { %7320 = vmatprep.subr.bf16.mxu0 %v15303_v5  ;;  %v15317_v5 = vld [vmem:[#allocation138_spill] sm:$0xff] }
 0x31e   :  { %7322 = vmatpush1.bf16.msra.mxu0 %v15306_v7  ;;  %v15318_v7 = vld [vmem:[#allocation141_spill] sm:$0xff] }
 0x31f   :  { %7324 = vmatprep.subr.bf16.mxu0 %v15309_v30  ;;  %v15319_v30 = vld [vmem:[#allocation144_spill] sm:$0xff] }
 0x322   :  { %7326 = vmatpush1.bf16.msra.mxu0 %v15311_v12  ;;  %v15320_v12 = vld [vmem:[#allocation147_spill] sm:$0xff] }
 0x323   :  { %7328 = vmatprep.subr.bf16.mxu0 %v15312_v23 }
 0x326   :  { %7330 = vmatpush1.bf16.msra.mxu0 %v15313_v26  ;;  %v15324_v26 = vld [vmem:[#allocation156_spill] sm:$0xff] }
 0x327   :  { %7332 = vmatprep.subr.bf16.mxu0 %v15314_v39  ;;  %v15327_v39 = vld [vmem:[#allocation160_spill] sm:$0xff] }
 0x32a   :  { %7334 = vmatpush1.bf16.msra.mxu0 %v15315_v46  ;;  %v15329_v46 = vld [vmem:[#allocation162_spill] sm:$0xff] }
 0x32b   :  { %7336 = vmatprep.subr.bf16.mxu0 %v15316_v1  ;;  %v15321_v1 = vld [vmem:[#allocation77_spill] sm:$0xff] }
 0x32e   :  { %7338 = vmatpush1.bf16.msra.mxu0 %v15317_v5  ;;  %v15323_v5 = vld [vmem:[#allocation155_spill] sm:$0xff] }
 0x32f   :  { %7340 = vmatprep.subr.bf16.mxu0 %v15318_v7  ;;  %v15325_v7 = vld [vmem:[#allocation157_spill] sm:$0xff] }
 0x332   :  { %7342 = vmatpush1.bf16.msra.mxu0 %v15319_v30  ;;  %v15328_v30 = vld [vmem:[#allocation161_spill] sm:$0xff] }
 0x333   :  { %7344 = vmatprep.subr.bf16.mxu0 %v15320_v12  ;;  %v15330_v12 = vld [vmem:[#allocation173_spill] sm:$0xff] }
 0x336   :  { %7346 = vmatpush1.bf16.msra.mxu0 %v15322_v35  ;;  %v15332_v35 = vld [vmem:[#allocation159_spill] sm:$0xff] }
 0x337   :  { %7348 = vmatprep.subr.bf16.mxu0 %v15323_v5  ;;  %v15334_v5 = vld [vmem:[#allocation105_spill] sm:$0xff] }
 0x33a   :  { %7350 = vmatpush1.bf16.msra.mxu0 %v15324_v26  ;;  %v15333_v26 = vld [vmem:[#allocation2_spill] sm:$0xff] }
 0x33b   :  { %7352 = vmatprep.subr.bf16.mxu0 %v15325_v7  ;;  %v15337_v7 = vld [vmem:[#allocation117_spill] sm:$0xff] }
 0x33e   :  { %7354 = vmatpush1.bf16.msra.mxu0 %v15326_v3  ;;  %v15335_v3 = vld [vmem:[#allocation103_spill] sm:$0xff] }
 0x33f   :  { %7356 = vmatprep.subr.bf16.mxu0 %v15327_v39  ;;  %v15336_v39 = vld [vmem:[#allocation6_spill] sm:$0xff] }
 0x342   :  { %7358 = vmatpush1.bf16.msra.mxu0 %v15328_v30  ;;  %v15339_v30 = vld [vmem:[#allocation10_spill] sm:$0xff] }
 0x343   :  { %7360 = vmatprep.subr.bf16.mxu0 %v15329_v46  ;;  %v15338_v46 = vld [vmem:[#allocation9_spill] sm:$0xff] }
 0x346   :  { %7362 = vmatpush1.bf16.msra.mxu0 %v15330_v12  ;;  %v15342_v12 = vld [vmem:[#allocation15_spill] sm:$0xff] }
 0x347   :  { %7420 = vmatprep.subr.bf16.mxu0 %v15331_v15  ;;  %v15340_v15 = vld [vmem:[#allocation12_spill] sm:$0xff] }
 0x349   :  { %4149 = vmatmul.mubr.f32.vlgmr.msra.gmra.mrb[2].mxu0 %v15282_v58  ;;  %v15341_v58 = vld [vmem:[#allocation13_spill] sm:$0xff] }
 0x34a   :  { %7422 = vmatpush1.bf16.msra.mxu0 %v15332_v35  ;;  %4637 = vmatprep.mubr.f32.mxu0 %v12105_v22  ;;  %v15343_v35 = vld [vmem:[#allocation16_spill] sm:$0xff] }
 0x34b   :  { %7424 = vmatprep.subr.bf16.mxu0 %v15333_v26  ;;  %v15344_v26 = vld [vmem:[#allocation21_spill] sm:$0xff] }
 0x34e   :  { %7426 = vmatpush1.bf16.msra.mxu0 %v15334_v5  ;;  %v15345_v5 = vld [vmem:[#allocation26_spill] sm:$0xff] }
 0x34f   :  { %7428 = vmatprep.subr.bf16.mxu0 %v15335_v3  ;;  %v15346_v3 = vld [vmem:[#allocation122_spill] sm:$0xff] }
 0x352   :  { %7430 = vmatpush1.bf16.msra.mxu0 %v15336_v39  ;;  %v15347_v39 = vld [vmem:[#allocation24_spill] sm:$0xff] }
 0x353   :  { %7432 = vmatprep.subr.bf16.mxu0 %v15337_v7  ;;  %v15348_v7 = vld [vmem:[#allocation32_spill] sm:$0xff] }
 0x356   :  { %7434 = vmatpush1.bf16.msra.mxu0 %v15338_v46  ;;  %v15349_v46 = vld [vmem:[#allocation33_spill] sm:$0xff] }
 0x357   :  { %7436 = vmatprep.subr.bf16.mxu0 %v15339_v30  ;;  %v15350_v30 = vld [vmem:[#allocation41_spill] sm:$0xff] }
 0x35a   :  { %7438 = vmatpush1.bf16.msra.mxu0 %v15340_v15  ;;  %v15351_v15 = vld [vmem:[#allocation44_spill] sm:$0xff] }
 0x35b   :  { %7440 = vmatprep.subr.bf16.mxu0 %v15341_v58  ;;  %v15352_v58 = vld [vmem:[#allocation50_spill] sm:$0xff] }
 0x35e   :  { %7442 = vmatpush1.bf16.msra.mxu0 %v15342_v12  ;;  %v15353_v12 = vld [vmem:[#allocation51_spill] sm:$0xff] }
 0x35f   :  { %7444 = vmatprep.subr.bf16.mxu0 %v15343_v35  ;;  %v15354_v35 = vld [vmem:[#allocation59_spill] sm:$0xff] }
 0x362   :  { %7446 = vmatpush1.bf16.msra.mxu0 %v15344_v26  ;;  %v15355_v26 = vld [vmem:[#allocation60_spill] sm:$0xff] }
 0x363   :  { %7448 = vmatprep.subr.bf16.mxu0 %v15345_v5  ;;  %v15356_v5 = vld [vmem:[#allocation63_spill] sm:$0xff] }
 0x366   :  { %7450 = vmatpush1.bf16.msra.mxu0 %v15346_v3  ;;  %v15357_v3 = vpack.c.bf16 %v15274_v53, %v11204_v10 }
 0x367   :  { %7452 = vmatprep.subr.bf16.mxu0 %v15347_v39  ;;  %v15358_v39 = vpack.c.bf16 %v15085_v4, %v15275_v17 }
 0x36a   :  { %7454 = vmatpush1.bf16.msra.mxu0 %v15348_v7  ;;  %v15359_v7 = vpack.c.bf16 %v15108_v33, %v15107_v42 }
 0x36b   :  { %7456 = vmatprep.subr.bf16.mxu0 %v15349_v46  ;;  %v15362_v46 = vpack.c.bf16 %v11287_v19, %v15281_v59 }
 0x36e   :  { %7458 = vmatpush1.bf16.msra.mxu0 %v15350_v30  ;;  %v15363_v30 = vpack.c.bf16 %v15285_v25, %v11293_v34 }
 0x36f   :  { %7460 = vmatprep.subr.bf16.mxu0 %v15351_v15  ;;  %v15364_v15 = vpack.c.bf16 %v15288_v43, %v15287_v32 }
 0x372   :  { %7462 = vmatpush1.bf16.msra.mxu0 %v15352_v58  ;;  %v15365_v58 = vpack.c.bf16 %v15290_v40, %v15148_v2 }
 0x373   :  { %7464 = vmatprep.subr.bf16.mxu0 %v15353_v12  ;;  %v15366_v12 = vpack.c.bf16 %v15292_v45, %v15150_v63 }
 0x376   :  { %7466 = vmatpush1.bf16.msra.mxu0 %v15354_v35  ;;  %v15367_v35 = vld [vmem:[#allocation88_spill] sm:$0xff] }
 0x377   :  { %7468 = vmatprep.subr.bf16.mxu0 %v15355_v26  ;;  %v15368_v26 = vld [vmem:[#allocation86_spill] sm:$0xff] }
 0x37a   :  { %7470 = vmatpush1.bf16.msra.mxu0 %v15356_v5  ;;  %v15369_v5 = vpack.c.bf16 %v15367_v35, %v15368_v26 }
 0x37b   :  { %7472 = vmatprep.subr.bf16.mxu0 %v12098_v20  ;;  %v15360_v20 = vpack.c.bf16 %v11257_v60, %v11255_v55 }
 0x37e   :  { %7474 = vmatpush1.bf16.msra.mxu0 %v12100_v56  ;;  %v15361_v56 = vpack.c.bf16 %v11265_v37, %v11263_v51 }
 0x37f   :  { %7476 = vmatprep.subr.bf16.mxu0 %v15357_v3  ;;  %v15370_v3 = vld [vmem:[#allocation92_spill] sm:$0xff] }
 0x381   :  { %4639 = vmatmul.mubr.f32.vlgmr.msra.gmra.mrb[4].mxu0 %v12092_v44 }
 0x382   :  { %7478 = vmatpush1.bf16.msra.mxu0 %v15358_v39  ;;  %4823 = vmatprep.mubr.f32.mxu0 %v12113_v13  ;;  %v15371_v39 = vld [vmem:[#allocation90_spill] sm:$0xff] }
 0x383   :  { %7480 = vmatprep.subr.bf16.mxu0 %v15359_v7  ;;  %v15372_v7 = vpack.c.bf16 %v15370_v3, %v15371_v39 }
 0x386   :  { %7482 = vmatpush1.bf16.msra.mxu0 %v15360_v20  ;;  %v15373_v20 = vld [vmem:[#allocation95_spill] sm:$0xff] }
 0x387   :  { %7484 = vmatprep.subr.bf16.mxu0 %v15361_v56  ;;  %v15374_v56 = vpack.c.bf16 %v15296_v54, %v15373_v20 }
 0x38a   :  { %7486 = vmatpush1.bf16.msra.mxu0 %v15362_v46  ;;  %v15375_v46 = vld [vmem:[#allocation99_spill] sm:$0xff] }
 0x38b   :  { %7488 = vmatprep.subr.bf16.mxu0 %v15363_v30  ;;  %v15376_v30 = vpack.c.bf16 %v15299_v14, %v15375_v46 }
 0x38e   :  { %7490 = vmatpush1.bf16.msra.mxu0 %v15364_v15  ;;  %v15377_v15 = vpack.c.bf16 %v15302_v16, %v15301_v36 }
 0x38f   :  { %7492 = vmatprep.subr.bf16.mxu0 %v15365_v58  ;;  %v15378_v58 = vpack.c.bf16 %v15305_v18, %v15304_v41 }
 0x392   :  { %7494 = vmatpush1.bf16.msra.mxu0 %v15366_v12  ;;  %v15379_v12 = vpack.c.bf16 %v15308_v61, %v15307_v47  ;;  %v15435_v61 = vld [vmem:[#allocation154_spill] sm:$0xff] }
 0x393   :  { %7496 = vmatprep.subr.bf16.mxu0 %v15369_v5  ;;  %v15380_v5 = vpack.c.bf16 %v15208_v29, %v15310_v50 }
 0x396   :  { %7498 = vmatpush1.bf16.msra.mxu0 %v15372_v7  ;;  %v15381_v7 = vpack.c.bf16 %v15222_v57, %v15221_v21  ;;  %v15434_v57 = vand.u32 4294901760, %v15274_v53 }
 0x397   :  { %7500 = vmatprep.subr.bf16.mxu0 %v15374_v56  ;;  %v15382_v56 = vpack.c.bf16 %v15224_v9, %v15223_v31  ;;  %v15425_v9 = vld [vmem:[#allocation39_spill] sm:$0xff] }
 0x39a   :  { %7502 = vmatpush1.bf16.msra.mxu0 %v15376_v30  ;;  %v15383_v30 = vpack.c.bf16 %v11554_v28, %v11552_v6  ;;  %v5351_v28 = vld [vmem:[%s13167_s4 + $0x50] sm:$0xff]  ;;  %v5352_v6 = vld [vmem:[%s13167_s4 + $0x58] sm:$0xff] }
 0x39b   :  { %7504 = vmatprep.subr.bf16.mxu0 %v15377_v15  ;;  %v15384_v15 = vpack.c.bf16 %v11558_v8, %v11556_v49  ;;  %v5350_v49 = vld [vmem:[%s13167_s4 + $0x48] sm:$0xff] }
 0x39e   :  { %7506 = vmatpush1.bf16.msra.mxu0 %v15378_v58  ;;  %v15385_v58 = vpack.c.bf16 %v11569_v27, %v11567_v0 }
 0x39f   :  { %7508 = vmatprep.subr.bf16.mxu0 %v15379_v12  ;;  %v15386_v12 = vld [vmem:[#allocation22_spill] sm:$0xff] }
 0x3a2   :  { %7510 = vmatpush1.bf16.msra.mxu0 %v15380_v5  ;;  %v15387_v5 = vpack.c.bf16 %v11573_v62, %v15386_v12  ;;  %v15395_v62 = vld [vmem:[#allocation74_spill] sm:$0xff] }
 0x3a3   :  { %7512 = vmatprep.subr.bf16.mxu0 %v15381_v7  ;;  %v15388_v7 = vld [vmem:[#allocation28_spill] sm:$0xff] }
 0x3a4   :  { %v15389_v23 = vpack.c.bf16 %v11583_v48, %v15388_v7  ;;  %v15398_v48 = vld [vmem:[#allocation18_spill] sm:$0xff] }
 0x3a5   :  { %v5349_v7 = vld [vmem:[%s13167_s4 + $0x40] sm:$0xff] }
 0x3a6   :  { %7514 = vmatpush1.bf16.msra.mxu0 %v15382_v56  ;;  %v15390_v56 = vpack.c.bf16 %v11587_v24, %v11585_v52  ;;  %v15400_v24 = vld [vmem:[#allocation64_spill] sm:$0xff]  ;;  %v5406_v31 = vand.u32 4294901760, %v5349_v7 }
 0x3a7   :  { %7516 = vmatprep.subr.bf16.mxu0 %v15383_v30  ;;  %v15391_v30 = vld [vmem:[#allocation34_spill] sm:$0xff] }
 0x3a8   :  { %v15392_v44 = vpack.c.bf16 %v11594_v11, %v15391_v30  ;;  %v15402_v11 = vld [vmem:[#allocation53_spill] sm:$0xff] }
 0x3aa   :  { %7518 = vmatpush1.bf16.msra.mxu0 %v15384_v15  ;;  %v15393_v15 = vpack.c.bf16 %v15321_v1, %v11599_v38  ;;  %v15405_v1 = vld [vmem:[#allocation82_spill] sm:$0xff]  ;;  %v5346_v38 = vld [vmem:[%s13167_s4 + $0x28] sm:$0xff] }
 0x3ab   :  { %7520 = vmatprep.subr.bf16.mxu0 %v15385_v58  ;;  %v15394_v58 = vld [vmem:[#allocation108_spill] sm:$0xff] }
 0x3ae   :  { %7522 = vmatpush1.bf16.msra.mxu0 %v15387_v5  ;;  %v15396_v5 = vld [vmem:[#allocation112_spill] sm:$0xff] }
 0x3af   :  { %7524 = vmatprep.subr.bf16.mxu0 %v15389_v23  ;;  %v15397_v23 = vand.u32 4294901760, %v12113_v13  ;;  %v15407_v13 = vld [vmem:[#allocation89_spill] sm:$0xff] }
 0x3b2   :  { %7526 = vmatpush1.bf16.msra.mxu0 %v15390_v56  ;;  %v15399_v56 = vld [vmem:[#allocation72_spill] sm:$0xff] }
 0x3b3   :  { %7528 = vmatprep.subr.bf16.mxu0 %v15392_v44  ;;  %v15401_v44 = vld [vmem:[#allocation49_spill] sm:$0xff] }
 0x3b6   :  { %7530 = vmatpush1.bf16.msra.mxu0 %v15393_v15  ;;  %v15403_v15 = vld [vmem:[#allocation55_spill] sm:$0xff] }
 0x3b7   :  { %7532 = vmatprep.subr.bf16.mxu0 %v15394_v58  ;;  %v15404_v58 = vld [vmem:[#allocation78_spill] sm:$0xff] }
 0x3b9   :  { %4826 = vmatmul.mubr.f32.vlgmr.msra.gmra.mrb[4].mxu0 %v15395_v62 }
 0x3ba   :  { %7534 = vmatpush1.bf16.msra.mxu0 %v15396_v5  ;;  %4955 = vmatprep.mubr.f32.mxu0 %v15397_v23  ;;  %v15406_v5 = vld [vmem:[#allocation85_spill] sm:$0xff] }
 0x3bb   :  { %7536 = vmatprep.subr.bf16.mxu0 %v15398_v48  ;;  %v15408_v23 = vld [vmem:[#allocation93_spill] sm:$0xff]  ;;  %v15409_v48 = vld [vmem:[#allocation98_spill] sm:$0xff] }
 0x3be   :  { %7538 = vmatpush1.bf16.msra.mxu0 %v15399_v56  ;;  %v15410_v56 = vld [vmem:[#allocation102_spill] sm:$0xff] }
 0x3bf   :  { %7540 = vmatprep.subr.bf16.mxu0 %v15400_v24  ;;  %v15411_v24 = vld [vmem:[#allocation106_spill] sm:$0xff] }
 0x3c2   :  { %7542 = vmatpush1.bf16.msra.mxu0 %v15401_v44  ;;  %v15412_v44 = vld [vmem:[#allocation109_spill] sm:$0xff] }
 0x3c3   :  { %7544 = vmatprep.subr.bf16.mxu0 %v15402_v11  ;;  %v15413_v11 = vld [vmem:[#allocation113_spill] sm:$0xff] }
 0x3c6   :  { %7546 = vmatpush1.bf16.msra.mxu0 %v15403_v15 }
 0x3c7   :  { %7548 = vmatprep.subr.bf16.mxu0 %v15404_v58  ;;  %v15415_v58 = vld [vmem:[#allocation8_spill] sm:$0xff] }
 0x3ca   :  { %7550 = vmatpush1.bf16.msra.mxu0 %v15405_v1 }
 0x3cb   :  { %7552 = vmatprep.subr.bf16.mxu0 %v15406_v5  ;;  %v15417_v5 = vld [vmem:[#allocation120_spill] sm:$0xff] }
 0x3ce   :  { %7554 = vmatpush1.bf16.msra.mxu0 %v15407_v13  ;;  %v15418_v13 = vld [vmem:[#allocation19_spill] sm:$0xff] }
 0x3cf   :  { %7556 = vmatprep.subr.bf16.mxu0 %v15408_v23  ;;  %v15419_v23 = vld [vmem:[#allocation25_spill] sm:$0xff] }
 0x3d2   :  { %7558 = vmatpush1.bf16.msra.mxu0 %v15409_v48  ;;  %v13926_v48 = vmov 0.0|0.0  }
 0x3d3   :  { %7560 = vmatprep.subr.bf16.mxu0 %v15410_v56  ;;  %7699 = vmatprep.subr.bf16.mxu1 %v13926_v48  ;;  %v5344_v48 = vld [vmem:[%s13167_s4 + $0x18] sm:$0xff]  ;;  %v5345_v56 = vld [vmem:[%s13167_s4 + $0x20] sm:$0xff] }
 0x3d4   :  { %v5391_v30 = vand.u32 4294901760, %v5344_v48  ;;  %v5394_v52 = vand.u32 4294901760, %v5345_v56 }
 0x3d6   :  { %7562 = vmatpush1.bf16.msra.mxu0 %v15411_v24 }
 0x3d7   :  { %7564 = vmatprep.subr.bf16.mxu0 %v15412_v44  ;;  %v5341_v44 = vld [vmem:[%s13167_s4] sm:$0xff] }
 0x3da   :  { %7566 = vmatpush1.bf16.msra.mxu0 %v15413_v11  ;;  %v5342_v11 = vld [vmem:[%s13167_s4 + $0x8] sm:$0xff] }
 0x3db   :  { %v12357_v15 = vpop.f32.mrb[4].mxu1  ;;  %7568 = vmatprep.subr.bf16.mxu0 %v15415_v58  ;;  %v5343_v58 = vld [vmem:[%s13167_s4 + $0x10] sm:$0xff]  ;;  %v5385_v24 = vand.u32 4294901760, %v5342_v11 }
 0x3dc   :  { %15414 = vst [vmem:[#allocation75_spill] sm:$0xff] %v12357_v15  ;;  %v12360_v1 = vpop.f32.mrb[5].mxu1  ;;  %v5348_v15 = vld [vmem:[%s13167_s4 + $0x38] sm:$0xff] }
 0x3dd   :  { %15416 = vst [vmem:[#allocation80_spill] sm:$0xff] %v12360_v1  ;;  %v5397_v1 = vand.u32 4294901760, %v5346_v38  ;;  %v12398_v0 = vsub.f32 %v5342_v11, %v5385_v24  ;;  %v12416_v11 = vsub.f32 %v5345_v56, %v5394_v52  ;;  %v5354_v56 = vld [vmem:[%s13167_s4 + $0x68] sm:$0xff] }
 0x3de   :  { %7570 = vmatpush1.bf16.msra.mxu0 %v15417_v5  ;;  %v15420_v5 = vld [vmem:[#allocation30_spill] sm:$0xff] }
 0x3df   :  { %7572 = vmatprep.subr.bf16.mxu0 %v15418_v13  ;;  %v5382_v13 = vand.u32 4294901760, %v5341_v44  ;;  %15423 = vst [vmem:[#allocation124_spill] sm:$0xff] %v12398_v0  ;;  %15427 = vst [vmem:[#allocation127_spill] sm:$0xff] %v12416_v11 }
 0x3e1   :  { %v12394_v12 = vpack.c.bf16 %v5385_v24, %v5382_v13  ;;  %v12396_v27 = vsub.f32 %v5341_v44, %v5382_v13  ;;  %v12414_v24 = vsub.f32 %v5344_v48, %v5391_v30  ;;  %v15428_v13 = vld [vmem:[#allocation66_spill] sm:$0xff]  ;;  %v5412_v48 = vand.u32 4294901760, %v5351_v28 }
 0x3e2   :  { %7574 = vmatpush1.bf16.msra.mxu0 %v15419_v23  ;;  %v5388_v23 = vand.u32 4294901760, %v5343_v58 }
 0x3e3   :  { %7576 = vmatprep.subr.bf16.mxu0 %v15420_v5  ;;  %v5347_v5 = vld [vmem:[%s13167_s4 + $0x30] sm:$0xff]  ;;  %15421 = vst [vmem:[#allocation83_spill] sm:$0xff] %v12394_v12  ;;  %15422 = vst [vmem:[#allocation123_spill] sm:$0xff] %v12396_v27  ;;  %7701 = vmatpush1.bf16.msra.mxu1 %v12394_v12  ;;  %v5403_v27 = vand.u32 4294901760, %v5348_v15  ;;  %v12442_v50 = vsub.f32 %v5351_v28, %v5412_v48  ;;  %v15438_v28 = vand.u32 4294901760, %v15085_v4  ;;  %v15442_v4 = vand.u32 4294901760, %v11255_v55 }
 0x3e4   :  { %v12400_v8 = vsub.f32 %v5343_v58, %v5388_v23  ;;  %v12412_v44 = vpack.c.bf16 %v5391_v30, %v5388_v23  ;;  %15426 = vst [vmem:[#allocation125_spill] sm:$0xff] %v12414_v24  ;;  %v5353_v58 = vld [vmem:[%s13167_s4 + $0x60] sm:$0xff]  ;;  %v5400_v0 = vand.u32 4294901760, %v5347_v5  ;;  %v5409_v23 = vand.u32 4294901760, %v5350_v49  ;;  %v15432_v12 = vld [vmem:[#allocation40_spill] sm:$0xff] }
 0x3e5   :  { %v5415_v30 = vand.u32 4294901760, %v5352_v6  ;;  %v12431_v24 = vsub.f32 %v5348_v15, %v5403_v27  ;;  %v5421_v15 = vand.u32 4294901760, %v5354_v56  ;;  %v15447_v55 = vand.u32 4294901760, %v11287_v19 }
 0x3e6   :  { %15424 = vst [vmem:[#allocation71_spill] sm:$0xff] %v12400_v8  ;;  %7578 = vmatpush1.bf16.msra.mxu0 %v15425_v9  ;;  %v12423_v8 = vsub.f32 %v5346_v38, %v5397_v1  ;;  %v15430_v9 = vmov 0.0|0.0   ;;  %v12429_v11 = vsub.f32 %v5347_v5, %v5400_v0  ;;  %v5418_v38 = vand.u32 4294901760, %v5353_v58 }
 0x3e7   :  { %7580 = vmatprep.subr.bf16.mxu0 %v15428_v13  ;;  %7702 = vmatprep.subr.bf16.mxu1 %v15430_v9  ;;  %v12433_v13 = vsub.f32 %v5349_v7, %v5406_v31  ;;  %v12440_v29 = vsub.f32 %v5350_v49, %v5409_v23  ;;  %v12446_v5 = vpack.c.bf16 %v5397_v1, %v5394_v52  ;;  %v15437_v49 = vand.u32 4294901760, %v15275_v17 }
 0x3e8   :  { %15429 = vst [vmem:[#allocation128_spill] sm:$0xff] %v12423_v8  ;;  %v15433_v8 = vand.u32 4294901760, %v11204_v10  ;;  %7704 = vmatpush1.bf16.msra.mxu1 %v12412_v44  ;;  %v12448_v7 = vsub.f32 %v5352_v6, %v5415_v30  ;;  %v12453_v10 = vsub.f32 %v5354_v56, %v5421_v15  ;;  %v15439_v52 = vand.u32 4294901760, %v15107_v42 }
 0x3e9   :  { %15431 = vst [vmem:[#allocation130_spill] sm:$0xff] %v12433_v13  ;;  %v12450_v13 = vsub.f32 %v5353_v58, %v5418_v38  ;;  %7705 = vmatprep.subr.bf16.mxu1 %v15430_v9  ;;  %v15440_v6 = vand.u32 4294901760, %v15108_v33  ;;  %v12465_v1 = vpack.c.bf16 %v5403_v27, %v5400_v0  ;;  %v15441_v58 = vand.u32 4294901760, %v15395_v62 }
 0x3ea   :  { %7582 = vmatpush1.bf16.msra.mxu0 %v15432_v12  ;;  %v7587_v21 = vpack.c.bf16 %v15434_v57, %v15433_v8  ;;  %v15436_v8 = vld [vmem:[#allocation37_spill] sm:$0xff]  ;;  %v7589_v57 = vpack.c.bf16 %v15438_v28, %v15437_v49  ;;  %v15444_v33 = vand.u32 4294901760, %v11263_v51  ;;  %v15445_v17 = vand.u32 4294901760, %v11265_v37 }
 0x3eb   :  { %7584 = vmatprep.subr.bf16.mxu0 %v15435_v61  ;;  %v7591_v53 = vpack.c.bf16 %v15440_v6, %v15439_v52  ;;  %v12480_v27 = vpack.c.bf16 %v5409_v23, %v5406_v31  ;;  %v15446_v62 = vand.u32 4294901760, %v15281_v59  ;;  %v15449_v51 = vand.u32 4294901760, %v15285_v25 }
 0x3ec   :  { %7707 = vmatpush1.bf16.msra.mxu1 %v12446_v5  ;;  %v7595_v0 = vpack.c.bf16 %v15445_v17, %v15444_v33  ;;  %v12492_v37 = vpack.c.bf16 %v5415_v30, %v5412_v48  ;;  %v15450_v31 = vand.u32 4294901760, %v15287_v32  ;;  %v15451_v59 = vand.u32 4294901760, %v15288_v43  ;;  %v15474_v17 = vld [vmem:[#allocation116_spill] sm:$0xff] }
 0x3ed   :  { %7708 = vmatprep.subr.bf16.mxu1 %v15430_v9  ;;  %v7597_v56 = vpack.c.bf16 %v15447_v55, %v15446_v62  ;;  %v15452_v19 = vand.u32 4294901760, %v15148_v2  ;;  %v12504_v25 = vpack.c.bf16 %v5421_v15, %v5418_v38  ;;  %v15455_v48 = vand.u32 4294901760, %v15150_v63  ;;  %v15478_v55 = vld [vmem:[#allocation119_spill] sm:$0xff] }
 0x3ee   :  { %7586 = vmatpush1.bf16.msra.mxu0 %v15436_v8  ;;  %v7601_v23 = vpack.c.bf16 %v15451_v59, %v15450_v31  ;;  %v15456_v32 = vand.u32 4294901760, %v15292_v45  ;;  %v15457_v43 = vand.u32 4294901760, %v15368_v26  ;;  %v15458_v2 = vand.u32 4294901760, %v15367_v35  ;;  %v15484_v31 = vld [vmem:[#allocation42_spill] sm:$0xff] }
 0x3ef   :  { %7588 = vmatprep.subr.bf16.mxu0 %v7587_v21  ;;  %v15443_v21 = vand.u32 4294901760, %v11257_v60  ;;  %v15448_v60 = vand.u32 4294901760, %v11293_v34  ;;  %v15453_v34 = vand.u32 4294901760, %v15290_v40  ;;  %15454 = vst [vmem:[#allocation131_spill] sm:$0xff] %v12504_v25  ;;  %v15459_v40 = vand.u32 4294901760, %v15371_v39 }
 0x3f0   :  { %7710 = vmatpush1.bf16.msra.mxu1 %v12465_v1  ;;  %v7605_v30 = vpack.c.bf16 %v15456_v32, %v15455_v48  ;;  %v15460_v38 = vand.u32 4294901760, %v15370_v3  ;;  %v15461_v63 = vand.u32 4294901760, %v15373_v20  ;;  %v15462_v45 = vand.u32 4294901760, %v15296_v54  ;;  %v15490_v32 = vld [vmem:[#allocation3_spill] sm:$0xff] }
 0x3f1   :  { %4959 = vmatmul.mubr.f32.vlgmr.msra.gmra.mrb[4].mxu0 %v15441_v58  ;;  %v7593_v42 = vpack.c.bf16 %v15443_v21, %v15442_v4  ;;  %7711 = vmatprep.subr.bf16.mxu1 %v15430_v9  ;;  %v7599_v49 = vpack.c.bf16 %v15449_v51, %v15448_v60  ;;  %v7603_v28 = vpack.c.bf16 %v15453_v34, %v15452_v19  ;;  %v15463_v35 = vand.u32 4294901760, %v15375_v46  ;;  %v15470_v21 = vld [vmem:[#allocation111_spill] sm:$0xff]  ;;  %v15482_v51 = vld [vmem:[#allocation29_spill] sm:$0xff] }
 0x3f2   :  { %7590 = vmatpush1.bf16.msra.mxu0 %v7589_v57  ;;  %5198 = vmatprep.mubr.f32.mxu0 %v12105_v22  ;;  %v7607_v57 = vpack.c.bf16 %v15458_v2, %v15457_v43  ;;  %v7609_v15 = vpack.c.bf16 %v15460_v38, %v15459_v40  ;;  %v7611_v52 = vpack.c.bf16 %v15462_v45, %v15461_v63  ;;  %v15464_v26 = vand.u32 4294901760, %v15299_v14  ;;  %v15472_v14 = vld [vmem:[#allocation114_spill] sm:$0xff]  ;;  %v15492_v2 = vld [vmem:[#allocation4_spill] sm:$0xff]  ;;  %v15494_v40 = vld [vmem:[#allocation17_spill] sm:$0xff] }
 0x3f3   :  { %7592 = vmatprep.subr.bf16.mxu0 %v7591_v53  ;;  %v15465_v53 = vand.u32 4294901760, %v15301_v36  ;;  %v15466_v39 = vand.u32 4294901760, %v15302_v16  ;;  %v15467_v3 = vand.u32 4294901760, %v15304_v41  ;;  %v15468_v20 = vand.u32 4294901760, %v15305_v18  ;;  %v15476_v16 = vld [vmem:[#allocation118_spill] sm:$0xff]  ;;  %v15480_v18 = vld [vmem:[#allocation121_spill] sm:$0xff] }
 0x3f4   :  { %7713 = vmatpush1.bf16.msra.mxu1 %v12480_v27  ;;  %v7613_v6 = vpack.c.bf16 %v15464_v26, %v15463_v35  ;;  %v15469_v54 = vand.u32 4294901760, %v15307_v47  ;;  %v15471_v46 = vand.u32 4294901760, %v15470_v21  ;;  %v15473_v33 = vand.u32 4294901760, %v15472_v14  ;;  %v15496_v63 = vld [vmem:[#allocation22_spill] sm:$0xff]  ;;  %v15506_v14 = vld [vmem:[#allocation48_spill] sm:$0xff] }
 0x3f5   :  { %7714 = vmatprep.subr.bf16.mxu1 %v15430_v9  ;;  %v7615_v58 = vpack.c.bf16 %v15466_v39, %v15465_v53  ;;  %v7617_v4 = vpack.c.bf16 %v15468_v20, %v15467_v3  ;;  %v15475_v36 = vand.u32 4294901760, %v15474_v17  ;;  %v15477_v62 = vand.u32 4294901760, %v15476_v16  ;;  %v15502_v39 = vld [vmem:[#allocation73_spill] sm:$0xff]  ;;  %v15510_v16 = vld [vmem:[#allocation34_spill] sm:$0xff] }
 0x3f6   :  { %7594 = vmatpush1.bf16.msra.mxu0 %v7593_v42  ;;  %v7619_v42 = vpack.c.bf16 %v15471_v46, %v15469_v54  ;;  %v15479_v41 = vand.u32 4294901760, %v15478_v55  ;;  %v15481_v60 = vand.u32 4294901760, %v15480_v18  ;;  %v15483_v47 = vand.u32 4294901760, %v15482_v51  ;;  %v15505_v46 = vld [vmem:[#allocation80_spill] sm:$0xff]  ;;  %v15508_v17 = vld [vmem:[#allocation153_spill] sm:$0xff]  ;;  %v15512_v55 = vld [vmem:[#allocation35_spill] sm:$0xff] }
 0x3f7   :  { %7596 = vmatprep.subr.bf16.mxu0 %v7595_v0  ;;  %v7621_v0 = vpack.c.bf16 %v15475_v36, %v15473_v33  ;;  %v15485_v59 = vand.u32 4294901760, %v15484_v31  ;;  %v15495_v38 = vand.u32 4294901760, %v15494_v40  ;;  %v15497_v45 = vand.u32 4294901760, %v15496_v63  ;;  %v15514_v18 = vld [vmem:[#allocation46_spill] sm:$0xff]  ;;  %v15516_v51 = vld [vmem:[#allocation77_spill] sm:$0xff]  ;;  %v15518_v31 = vld [vmem:[#allocation108_spill] sm:$0xff] }
 0x3f8   :  { %7716 = vmatpush1.bf16.msra.mxu1 %v12492_v37  ;;  %v15507_v33 = vand.u32 4294901760, %v15506_v14  ;;  %v15509_v36 = vand.u32 4294901760, %v15508_v17  ;;  %v15530_v40 = vld [vmem:[#allocation89_spill] sm:$0xff]  ;;  %v15534_v63 = vld [vmem:[#allocation106_spill] sm:$0xff] }
 0x3f9   :  { %7717 = vmatprep.subr.bf16.mxu1 %v15430_v9 }
 0x3fa   :  { %7598 = vmatpush1.bf16.msra.mxu0 %v7597_v56  ;;  %v7623_v56 = vpack.c.bf16 %v15479_v41, %v15477_v62  ;;  %v15511_v62 = vand.u32 4294901760, %v15510_v16  ;;  %v15513_v41 = vand.u32 4294901760, %v15512_v55 }
 0x3fb   :  { %7600 = vmatprep.subr.bf16.mxu0 %v7599_v49  ;;  %v7625_v49 = vpack.c.bf16 %v15483_v47, %v15481_v60  ;;  %v15515_v60 = vand.u32 4294901760, %v15514_v18  ;;  %v15517_v47 = vand.u32 4294901760, %v15516_v51 }
 0x3fc   :  { %7719 = vmatpush1.bf16.msra.mxu1 %v12504_v25 }
 0x3fd   :  { %7720 = vmatprep.subr.bf16.mxu1 %v15430_v9 }
 0x3fe   :  { %7602 = vmatpush1.bf16.msra.mxu0 %v7601_v23  ;;  %v15486_v23 = vld [vmem:[#allocation43_spill] sm:$0xff] }
 0x3ff   :  { %7604 = vmatprep.subr.bf16.mxu0 %v7603_v28  ;;  %v15487_v19 = vand.u32 4294901760, %v15486_v23  ;;  %v15488_v28 = vld [vmem:[#allocation47_spill] sm:$0xff]  ;;  %v15520_v23 = vld [vmem:[#allocation112_spill] sm:$0xff] }
 0x400   :  { %v15489_v48 = vand.u32 4294901760, %v15488_v28  ;;  %v15523_v28 = vld [vmem:[#allocation64_spill] sm:$0xff] }
 0x401   :  { %v7627_v34 = vpack.c.bf16 %v15487_v19, %v15485_v59  ;;  %v15519_v59 = vld [vmem:[#allocation67_spill] sm:$0xff]  ;;  %v15521_v19 = vld [vmem:[#allocation18_spill] sm:$0xff] }
 0x402   :  { %7606 = vmatpush1.bf16.msra.mxu0 %v7605_v30  ;;  %v15491_v30 = vand.u32 4294901760, %v15490_v32  ;;  %v15525_v32 = vld [vmem:[#allocation53_spill] sm:$0xff] }
 0x403   :  { %7608 = vmatprep.subr.bf16.mxu0 %v7607_v57  ;;  %v15493_v57 = vand.u32 4294901760, %v15492_v2  ;;  %v15528_v2 = vld [vmem:[#allocation82_spill] sm:$0xff] }
 0x404   :  { %v7629_v43 = vpack.c.bf16 %v15491_v30, %v15489_v48  ;;  %v15524_v48 = vld [vmem:[#allocation49_spill] sm:$0xff]  ;;  %v15526_v30 = vld [vmem:[#allocation55_spill] sm:$0xff] }
 0x406   :  { %7610 = vmatpush1.bf16.msra.mxu0 %v7609_v15  ;;  %v7631_v15 = vpack.c.bf16 %v15495_v38, %v15493_v57  ;;  %v15529_v57 = vld [vmem:[#allocation85_spill] sm:$0xff]  ;;  %v15532_v38 = vld [vmem:[#allocation98_spill] sm:$0xff] }
 0x407   :  { %7612 = vmatprep.subr.bf16.mxu0 %v7611_v52  ;;  %v15498_v52 = vld [vmem:[#allocation23_spill] sm:$0xff] }
 0x408   :  { %v15499_v35 = vand.u32 4294901760, %v15498_v52  ;;  %v15536_v52 = vld [vmem:[#allocation113_spill] sm:$0xff] }
 0x40a   :  { %7614 = vmatpush1.bf16.msra.mxu0 %v7613_v6  ;;  %v7633_v26 = vpack.c.bf16 %v15499_v35, %v15497_v45  ;;  %v15500_v6 = vld [vmem:[#allocation28_spill] sm:$0xff]  ;;  %v15535_v45 = vld [vmem:[#allocation109_spill] sm:$0xff] }
 0x40b   :  { %7616 = vmatprep.subr.bf16.mxu0 %v7615_v58  ;;  %v15501_v53 = vand.u32 4294901760, %v15500_v6  ;;  %v15503_v58 = vand.u32 4294901760, %v15502_v39  ;;  %v15537_v35 = vld [vmem:[#allocation8_spill] sm:$0xff]  ;;  %v15539_v6 = vld [vmem:[#allocation19_spill] sm:$0xff]  ;;  %v15541_v39 = vld [vmem:[#allocation30_spill] sm:$0xff] }
 0x40d   :  { %v7635_v3 = vpack.c.bf16 %v15503_v58, %v15501_v53  ;;  %v15540_v53 = vld [vmem:[#allocation25_spill] sm:$0xff]  ;;  %v15542_v58 = vld [vmem:[#allocation39_spill] sm:$0xff] }
 0x40e   :  { %7618 = vmatpush1.bf16.msra.mxu0 %v7617_v4  ;;  %v15504_v4 = vld [vmem:[#allocation75_spill] sm:$0xff] }
 0x40f   :  { %7620 = vmatprep.subr.bf16.mxu0 %v7619_v42 }
 0x412   :  { %7622 = vmatpush1.bf16.msra.mxu0 %v7621_v0  ;;  %v7637_v0 = vpack.c.bf16 %v15509_v36, %v15507_v33  ;;  %v5359_v36 = vld [vmem:[%s13167_s4 + $0x90] sm:$0xff] }
 0x413   :  { %7624 = vmatprep.subr.bf16.mxu0 %v7623_v56  ;;  %v7639_v56 = vpack.c.bf16 %v15513_v41, %v15511_v62  ;;  %v5436_v16 = vand.u32 4294901760, %v5359_v36  ;;  %v5361_v41 = vld [vmem:[%s13167_s4 + $0xa0] sm:$0xff] }
 0x414   :  { %v5442_v18 = vand.u32 4294901760, %v5361_v41 }
 0x416   :  { %7626 = vmatpush1.bf16.msra.mxu0 %v7625_v49  ;;  %v7641_v49 = vpack.c.bf16 %v15517_v47, %v15515_v60  ;;  %v5363_v47 = vld [vmem:[%s13167_s4 + $0xb0] sm:$0xff] }
 0x417   :  { %7628 = vmatprep.subr.bf16.mxu0 %v7627_v34  ;;  %v15522_v34 = vld [vmem:[#allocation72_spill] sm:$0xff] }
 0x41a   :  { %7630 = vmatpush1.bf16.msra.mxu0 %v7629_v43  ;;  %v15527_v43 = vld [vmem:[#allocation78_spill] sm:$0xff] }
 0x41b   :  { %7632 = vmatprep.subr.bf16.mxu0 %v7631_v15  ;;  %v15533_v15 = vld [vmem:[#allocation102_spill] sm:$0xff] }
 0x41c   :  { %v4150_v20 = vpop.f32.mrb[2].mxu0 }
 0x41d   :  { %v12574_v54 = vadd.f32 %v15504_v4, %v4150_v20  ;;  %v4152_v21 = vpop.f32.mrb[3].mxu0  ;;  %v5355_v20 = vld [vmem:[%s13167_s4 + $0x70] sm:$0xff]  ;;  %v5356_v4 = vld [vmem:[%s13167_s4 + $0x78] sm:$0xff] }
 0x41e   :  { %v12577_v42 = vadd.f32 %v15505_v46, %v4152_v21  ;;  %7634 = vmatpush1.bf16.msra.mxu0 %v7633_v26  ;;  %v15538_v26 = vld [vmem:[#allocation120_spill] sm:$0xff]  ;;  %v5424_v21 = vand.u32 4294901760, %v5355_v20  ;;  %v5427_v46 = vand.u32 4294901760, %v5356_v4 }
 0x41f   :  { %7636 = vmatprep.subr.bf16.mxu0 %v7635_v3  ;;  %v15543_v3 = vld [vmem:[#allocation66_spill] sm:$0xff] }
 0x420   :  { %v12628_v14 = vpack.c.bf16 %v5427_v46, %v5424_v21 }
 0x422   :  { %7638 = vmatpush1.bf16.msra.mxu0 %v7637_v0  ;;  %15544 = vst [vmem:[#allocation133_spill] sm:$0xff] %v12628_v14  ;;  %7722 = vmatpush1.bf16.msra.mxu1 %v12628_v14  ;;  %v5360_v0 = vld [vmem:[%s13167_s4 + $0x98] sm:$0xff] }
 0x423   :  { %7640 = vmatprep.subr.bf16.mxu0 %v7639_v56  ;;  %7723 = vmatprep.subr.bf16.mxu1 %v15430_v9  ;;  %v5439_v62 = vand.u32 4294901760, %v5360_v0  ;;  %v5362_v56 = vld [vmem:[%s13167_s4 + $0xa8] sm:$0xff] }
 0x424   :  { %v5445_v60 = vand.u32 4294901760, %v5362_v56 }
 0x425   :  { %v12648_v55 = vpack.c.bf16 %v5439_v62, %v5436_v16 }
 0x426   :  { %7642 = vmatpush1.bf16.msra.mxu0 %v7641_v49  ;;  %v12658_v51 = vpack.c.bf16 %v5445_v60, %v5442_v18  ;;  %v5364_v49 = vld [vmem:[%s13167_s4 + $0xb8] sm:$0xff] }
 0x427   :  { %7644 = vmatprep.subr.bf16.mxu0 %v15518_v31  ;;  %15546 = vst [vmem:[#allocation136_spill] sm:$0xff] %v12648_v55  ;;  %v5448_v31 = vand.u32 4294901760, %v5363_v47 }
 0x428   :  { %15547 = vst [vmem:[#allocation137_spill] sm:$0xff] %v12658_v51 }
 0x429   :  { %5200 = vmatmul.mubr.f32.vlgmr.msra.gmra.mrb[4].mxu0 %v15519_v59 }
 0x42a   :  { %7646 = vmatpush1.bf16.msra.mxu0 %v15520_v23  ;;  %5327 = vmatprep.mubr.f32.mxu0 %v12105_v22  ;;  %v15531_v22 = vld [vmem:[#allocation93_spill] sm:$0xff] }
 0x42b   :  { %7648 = vmatprep.subr.bf16.mxu0 %v15521_v19  ;;  %v5365_v19 = vld [vmem:[%s13167_s4 + $0xc0] sm:$0xff] }
 0x42e   :  { %7650 = vmatpush1.bf16.msra.mxu0 %v15522_v34  ;;  %v5366_v34 = vld [vmem:[%s13167_s4 + $0xc8] sm:$0xff] }
 0x42f   :  { %7652 = vmatprep.subr.bf16.mxu0 %v15523_v28  ;;  %v5454_v28 = vand.u32 4294901760, %v5365_v19 }
 0x432   :  { %7654 = vmatpush1.bf16.msra.mxu0 %v15524_v48  ;;  %v5457_v48 = vand.u32 4294901760, %v5366_v34 }
 0x433   :  { %7656 = vmatprep.subr.bf16.mxu0 %v15525_v32 }
 0x434   :  { %v12678_v32 = vpack.c.bf16 %v5457_v48, %v5454_v28 }
 0x436   :  { %7658 = vmatpush1.bf16.msra.mxu0 %v15526_v30  ;;  %15549 = vst [vmem:[#allocation140_spill] sm:$0xff] %v12678_v32  ;;  %v5367_v30 = vld [vmem:[%s13167_s4 + $0xd0] sm:$0xff] }
 0x437   :  { %7660 = vmatprep.subr.bf16.mxu0 %v15527_v43  ;;  %v5368_v43 = vld [vmem:[%s13167_s4 + $0xd8] sm:$0xff] }
 0x43a   :  { %7662 = vmatpush1.bf16.msra.mxu0 %v15528_v2  ;;  %v5460_v2 = vand.u32 4294901760, %v5367_v30 }
 0x43b   :  { %7664 = vmatprep.subr.bf16.mxu0 %v15529_v57  ;;  %v5463_v57 = vand.u32 4294901760, %v5368_v43 }
 0x43e   :  { %7666 = vmatpush1.bf16.msra.mxu0 %v15530_v40  ;;  %v12687_v40 = vsub.f32 %v5355_v20, %v5424_v21  ;;  %v12719_v20 = vsub.f32 %v5367_v30, %v5460_v2  ;;  %v15551_v21 = vld [vmem:[#allocation123_spill] sm:$0xff] }
 0x43f   :  { %7668 = vmatprep.subr.bf16.mxu0 %v15531_v22  ;;  %v12689_v22 = vsub.f32 %v5356_v4, %v5427_v46  ;;  %v12721_v4 = vsub.f32 %v5368_v43, %v5463_v57  ;;  %v13962_v46 = vand.u32 4294901760, %v15551_v21 }
 0x442   :  { %7670 = vmatpush1.bf16.msra.mxu0 %v15532_v38 }
 0x443   :  { %7672 = vmatprep.subr.bf16.mxu0 %v15533_v15 }
 0x446   :  { %7674 = vmatpush1.bf16.msra.mxu0 %v15534_v63  ;;  %v12696_v63 = vsub.f32 %v5359_v36, %v5436_v16  ;;  %v5494_v36 = vsub.f32 %v15551_v21, %v13962_v46  ;;  %v15553_v16 = vld [vmem:[#allocation71_spill] sm:$0xff] }
 0x447   :  { %7676 = vmatprep.subr.bf16.mxu0 %v15535_v45  ;;  %v12698_v45 = vsub.f32 %v5360_v0, %v5439_v62  ;;  %v13956_v62 = vand.u32 4294901760, %v15553_v16 }
 0x44a   :  { %7678 = vmatpush1.bf16.msra.mxu0 %v15536_v52  ;;  %v12700_v52 = vsub.f32 %v5361_v41, %v5442_v18  ;;  %v15554_v41 = vld [vmem:[#allocation125_spill] sm:$0xff]  ;;  %v5495_v18 = vand.u32 4294901760, %v5494_v36 }
 0x44b   :  { %7680 = vmatprep.subr.bf16.mxu0 %v15537_v35  ;;  %v12702_v35 = vsub.f32 %v5362_v56, %v5445_v60  ;;  %v13953_v56 = vand.u32 4294901760, %v15554_v41 }
 0x44e   :  { %7682 = vmatpush1.bf16.msra.mxu0 %v15538_v26  ;;  %v12704_v26 = vsub.f32 %v5363_v47, %v5448_v31  ;;  %v5508_v47 = vsub.f32 %v15553_v16, %v13956_v62 }
 0x44f   :  { %7684 = vmatprep.subr.bf16.mxu0 %v15539_v6 }
 0x452   :  { %7686 = vmatpush1.bf16.msra.mxu0 %v15540_v53  ;;  %v12708_v53 = vsub.f32 %v5365_v19, %v5454_v28  ;;  %v15555_v19 = vld [vmem:[#allocation127_spill] sm:$0xff]  ;;  %v15556_v28 = vld [vmem:[#allocation128_spill] sm:$0xff] }
 0x453   :  { %7688 = vmatprep.subr.bf16.mxu0 %v15541_v39  ;;  %v12710_v39 = vsub.f32 %v5366_v34, %v5457_v48  ;;  %v13952_v34 = vand.u32 4294901760, %v15555_v19  ;;  %v13954_v48 = vand.u32 4294901760, %v15556_v28 }
 0x455   :  { %v5522_v43 = vsub.f32 %v15555_v19, %v13952_v34 }
 0x456   :  { %7690 = vmatpush1.bf16.msra.mxu0 %v15542_v58  ;;  %v12715_v58 = vld [vmem:[%s13167_s4 + $0xe0] sm:$0xff] }
 0x457   :  { %7692 = vmatprep.subr.bf16.mxu0 %v15543_v3  ;;  %v12717_v3 = vpack.c.bf16 %v5463_v57, %v5460_v2  ;;  %v5529_v2 = vsub.f32 %v15556_v28, %v13954_v48  ;;  %v5523_v36 = vand.u32 4294901760, %v5522_v43  ;;  %v13960_v43 = vand.u32 4294901760, %v12440_v29 }
 0x459   :  { %15550 = vst [vmem:[#allocation142_spill] sm:$0xff] %v12717_v3 }
 0x45a   :  { %7694 = vmatpush1.bf16.msra.mxu0 %v15432_v12  ;;  %v5358_v12 = vld [vmem:[%s13167_s4 + $0x88] sm:$0xff] }
 0x45b   :  { %7696 = vmatprep.subr.bf16.mxu0 %v15435_v61  ;;  %v5357_v61 = vld [vmem:[%s13167_s4 + $0x80] sm:$0xff]  ;;  %v5433_v33 = vand.u32 4294901760, %v5358_v12 }
 0x45d   :  { %v12693_v15 = vsub.f32 %v5358_v12, %v5433_v33 }
 0x45e   :  { %7698 = vmatpush1.bf16.msra.mxu0 %v15436_v8  ;;  %v5430_v8 = vand.u32 4294901760, %v5357_v61 }
 0x460   :  { %v12638_v17 = vpack.c.bf16 %v5433_v33, %v5430_v8  ;;  %v12691_v38 = vsub.f32 %v5357_v61, %v5430_v8  ;;  %v15552_v61 = vld [vmem:[#allocation124_spill] sm:$0xff]  ;;  %v12727_v8 = vand.u32 4294901760, %v12715_v58  ;;  %v13965_v33 = vmov 0.0  }
 0x461   :  { %5329 = vmatmul.mubr.f32.vlgmr.msra.gmra.mrb[4].mxu0 %v15519_v59  ;;  %v5451_v59 = vand.u32 4294901760, %v5364_v49  ;;  %v13959_v12 = vand.u32 4294901760, %v15552_v61 }
 0x462   :  { %15545 = vst [vmem:[#allocation134_spill] sm:$0xff] %v12638_v17  ;;  %7725 = vmatpush1.bf16.msra.mxu1 %v12638_v17 }
 0x463   :  { %7726 = vmatprep.subr.bf16.mxu1 %v15430_v9  ;;  %v12668_v23 = vpack.c.bf16 %v5451_v59, %v5448_v31  ;;  %v12706_v6 = vsub.f32 %v5364_v49, %v5451_v59  ;;  %v5501_v0 = vsub.f32 %v15552_v61, %v13959_v12  ;;  %v5515_v49 = vsub.f32 %v15554_v41, %v13953_v56 }
 0x464   :  { %v5509_v59 = vand.u32 4294901760, %v5508_v47 }
 0x465   :  { %15548 = vst [vmem:[#allocation139_spill] sm:$0xff] %v12668_v23  ;;  %v5502_v60 = vand.u32 4294901760, %v5501_v0  ;;  %v5516_v30 = vand.u32 4294901760, %v5515_v49  ;;  %v5530_v0 = vand.u32 4294901760, %v5529_v2 }
 0x466   :  { %7728 = vmatpush1.bf16.msra.mxu1 %v12648_v55 }
 0x467   :  { %7729 = vmatprep.subr.bf16.mxu1 %v15430_v9  ;;  %v12746_v31 = vpack.c.bf16 %v5502_v60, %v5495_v18  ;;  %v12756_v57 = vpack.c.bf16 %v5516_v30, %v5509_v59  ;;  %v13955_v18 = vand.u32 4294901760, %v12429_v11  ;;  %v13957_v60 = vand.u32 4294901760, %v12431_v24  ;;  %v15557_v59 = vld [vmem:[#allocation130_spill] sm:$0xff] }
 0x468   :  { %v12760_v47 = vpack.c.bf16 %v5530_v0, %v5523_v36  ;;  %v13958_v30 = vand.u32 4294901760, %v15557_v59  ;;  %v5557_v0 = vsub.f32 %v12440_v29, %v13960_v43  ;;  %v13964_v43 = vand.u32 4294901760, %v12450_v13 }
 0x469   :  { %v5536_v49 = vsub.f32 %v12429_v11, %v13955_v18  ;;  %v5543_v34 = vsub.f32 %v12431_v24, %v13957_v60  ;;  %v13961_v60 = vand.u32 4294901760, %v12442_v50 }
 0x46a   :  { %7731 = vmatpush1.bf16.msra.mxu1 %v12658_v51  ;;  %v5550_v36 = vsub.f32 %v15557_v59, %v13958_v30  ;;  %v5558_v62 = vand.u32 4294901760, %v5557_v0 }
 0x46b   :  { %7732 = vmatprep.subr.bf16.mxu1 %v15430_v9  ;;  %v5537_v56 = vand.u32 4294901760, %v5536_v49  ;;  %v5544_v48 = vand.u32 4294901760, %v5543_v34  ;;  %v13963_v34 = vand.u32 4294901760, %v12448_v7 }
 0x46c   :  { %v5551_v18 = vand.u32 4294901760, %v5550_v36  ;;  %v13967_v36 = vand.u32 4294901760, %v12453_v10 }
 0x46d   :  { %v12770_v2 = vpack.c.bf16 %v5544_v48, %v5537_v56  ;;  %v5564_v56 = vsub.f32 %v12442_v50, %v13961_v60  ;;  %v5571_v48 = vsub.f32 %v12448_v7, %v13963_v34  ;;  %v13968_v34 = vand.u32 4294901760, %v12687_v40 }
 0x46e   :  { %7734 = vmatpush1.bf16.msra.mxu1 %v12668_v23  ;;  %v12780_v49 = vpack.c.bf16 %v5558_v62, %v5551_v18  ;;  %v5578_v62 = vsub.f32 %v12450_v13, %v13964_v43  ;;  %v5585_v18 = vsub.f32 %v12453_v10, %v13967_v36  ;;  %v13972_v36 = vand.u32 4294901760, %v12691_v38 }
 0x46f   :  { %7735 = vmatprep.subr.bf16.mxu1 %v15430_v9  ;;  %v5565_v30 = vand.u32 4294901760, %v5564_v56  ;;  %v5572_v12 = vand.u32 4294901760, %v5571_v48  ;;  %v13971_v56 = vand.u32 4294901760, %v12689_v22 }
 0x470   :  { %v5579_v60 = vand.u32 4294901760, %v5578_v62  ;;  %v5586_v46 = vand.u32 4294901760, %v5585_v18  ;;  %v13975_v62 = vand.u32 4294901760, %v12693_v15 }
 0x471   :  { %v12790_v0 = vpack.c.bf16 %v5572_v12, %v5565_v30  ;;  %v5592_v12 = vsub.f32 %v12687_v40, %v13968_v34  ;;  %v5599_v30 = vsub.f32 %v12689_v22, %v13971_v56  ;;  %v13976_v56 = vand.u32 4294901760, %v12696_v63 }
 0x472   :  { %7737 = vmatpush1.bf16.msra.mxu1 %v12678_v32  ;;  %v12800_v48 = vpack.c.bf16 %v5586_v46, %v5579_v60  ;;  %v5606_v46 = vsub.f32 %v12691_v38, %v13972_v36  ;;  %v5613_v60 = vsub.f32 %v12693_v15, %v13975_v62  ;;  %v13980_v62 = vand.u32 4294901760, %v12700_v52 }
 0x473   :  { %7738 = vmatprep.subr.bf16.mxu1 %v15430_v9  ;;  %v5593_v43 = vand.u32 4294901760, %v5592_v12  ;;  %v13979_v12 = vand.u32 4294901760, %v12698_v45 }
 0x474   :  { %v5607_v34 = vand.u32 4294901760, %v5606_v46  ;;  %v13983_v46 = vand.u32 4294901760, %v12702_v35 }
 0x476   :  { %7740 = vmatpush1.bf16.msra.mxu1 %v12717_v3  ;;  %v5614_v3 = vand.u32 4294901760, %v5613_v60 }
 0x477   :  { %5465 = vmatprep.subr.mxu1 %v13965_v33  ;;  %v5600_v33 = vand.u32 4294901760, %v5599_v30 }
 0x478   :  { %v12820_v30 = vpack.c.bf16 %v5614_v3, %v5607_v34  ;;  %v5634_v3 = vsub.f32 %v12700_v52, %v13980_v62  ;;  %v5641_v34 = vsub.f32 %v12702_v35, %v13983_v46  ;;  %v13988_v46 = vand.u32 4294901760, %v12708_v53 }
 0x479   :  { %v12810_v18 = vpack.c.bf16 %v5600_v33, %v5593_v43  ;;  %v5620_v33 = vsub.f32 %v12696_v63, %v13976_v56  ;;  %v5627_v43 = vsub.f32 %v12698_v45, %v13979_v12  ;;  %v13984_v12 = vand.u32 4294901760, %v12704_v26 }
 0x47a   :  { %5467 = vmatpush1.msra.mxu1 %v12727_v8  ;;  %v5635_v56 = vand.u32 4294901760, %v5634_v3  ;;  %v5642_v23 = vand.u32 4294901760, %v5641_v34  ;;  %v13995_v3 = vand.u32 4294901760, %v12710_v39 }
 0x47b   :  { %7741 = vmatprep.subr.bf16.mxu1 %v15430_v9  ;;  %v5621_v36 = vand.u32 4294901760, %v5620_v33  ;;  %v5628_v32 = vand.u32 4294901760, %v5627_v43  ;;  %v13987_v33 = vand.u32 4294901760, %v12706_v6 }
 0x47c   :  { %v12840_v43 = vpack.c.bf16 %v5642_v23, %v5635_v56  ;;  %v5662_v23 = vsub.f32 %v12708_v53, %v13988_v46  ;;  %v5669_v56 = vsub.f32 %v12710_v39, %v13995_v3 }
 0x47d   :  { %v12830_v60 = vpack.c.bf16 %v5628_v32, %v5621_v36  ;;  %v5648_v32 = vsub.f32 %v12704_v26, %v13984_v12  ;;  %v5655_v36 = vsub.f32 %v12706_v6, %v13987_v33  ;;  %v13993_v33 = vand.u32 4294901760, %v12719_v20 }
 0x47e   :  { %v5663_v12 = vand.u32 4294901760, %v5662_v23  ;;  %v5670_v55 = vand.u32 4294901760, %v5669_v56 }
 0x47f   :  { %v5649_v62 = vand.u32 4294901760, %v5648_v32  ;;  %v5656_v51 = vand.u32 4294901760, %v5655_v36  ;;  %v13994_v32 = vand.u32 4294901760, %v12721_v4 }
 0x480   :  { %v12860_v36 = vpack.c.bf16 %v5670_v55, %v5663_v12 }
 0x481   :  { %v12850_v34 = vpack.c.bf16 %v5656_v51, %v5649_v62  ;;  %v5676_v51 = vsub.f32 %v12719_v20, %v13993_v33  ;;  %v5683_v62 = vsub.f32 %v12721_v4, %v13994_v32  ;;  %v7823_v32 = vpack.c.bf16 %v12721_v4, %v12719_v20 }
 0x483   :  { %v5677_v46 = vand.u32 4294901760, %v5676_v51  ;;  %v5684_v17 = vand.u32 4294901760, %v5683_v62  ;;  %v7820_v62 = vpack.c.bf16 %v12710_v39, %v12708_v53 }
 0x485   :  { %v12868_v14 = vpack.c.bf16 %v5684_v17, %v5677_v46  ;;  %v7817_v17 = vpack.c.bf16 %v12706_v6, %v12704_v26 }
 0x534   :  { %v5330_v12 = vpop.f32.mrb[4].mxu0 }
 0x535   :  { %v7958_v33 = vadd.f32 %v12574_v54, %v5330_v12  ;;  %v5332_v55 = vpop.f32.mrb[5].mxu0 }
 0x536   :  { %v7960_v51 = vadd.f32 %v12577_v42, %v5332_v55 }
 0x537   :  { %v5335_v56 = vmax.f32 %v7958_v33, 1e-06 }
 0x538   :  { %v5336_v46 = vmax.f32 %v7960_v51, 1e-06 }
 0x539   :  { %8010 = vlog2.f32 %v5335_v56 }
 0x53a   :  { %8012 = vlog2.f32 %v5336_v46 }
 0x543   :  { %v8011_v3 = vpop.eup %8010 }
 0x544   :  { %v8013_v23 = vpop.eup %8012  ;;  %v5338_v25 = vmul.f32 0.6931472, %v8011_v3 }
 0x545   :  { %v5340_v54 = vmul.f32 0.6931472, %v8013_v23 }
 0x546   :  { %v12900_v12 = vand.u32 4294901760, %v5338_v25 }
 0x547   :  { %v5379_v42 = vsel %vm5377_vm1, %v5340_v54, 0 }
 0x548   :  { %v12903_v33 = vsub.f32 %v5338_v25, %v12900_v12  ;;  %v12905_v55 = vand.u32 4294901760, %v5379_v42 }
 0x54a   :  { %v12908_v56 = vsub.f32 %v5379_v42, %v12905_v55  ;;  %v5482_v51 = vand.u32 4294901760, %v12903_v33  ;;  %v15569_v42 = vpack.c.bf16 %v12702_v35, %v12700_v52 }
 0x54c   :  { %v5476_v46 = vand.u32 4294901760, %v12908_v56  ;;  %v5483_v3 = vsub.f32 %v12903_v33, %v5482_v51 }
 0x54e   :  { %v5477_v23 = vsub.f32 %v12908_v56, %v5476_v46  ;;  %v5484_v25 = vand.u32 4294901760, %v5483_v3  ;;  %v15575_v3 = vld [vmem:[#allocation137_spill] sm:$0xff] }
 0x550   :  { %v5478_v54 = vand.u32 4294901760, %v5477_v23  ;;  %v15576_v23 = vld [vmem:[#allocation139_spill] sm:$0xff] }
 0x552   :  { %5479 = vmatprep.mubr.f32.mxu1 %v5478_v54  ;;  %v15577_v54 = vld [vmem:[#allocation140_spill] sm:$0xff] }
 0x553   :  { %5485 = vmatmul.mubr.f32.vlgmr.msra.gmra.mrb[6].mxu1 %v5484_v25  ;;  %v15578_v25 = vld [vmem:[#allocation142_spill] sm:$0xff] }
 0x554   :  { %7743 = vmatpush1.bf16.msra.mxu1 %v12746_v31  ;;  %5700 = vmatprep.mubr.f32.mxu1 %v12905_v55  ;;  %v12941_v31 = vsub.f32 %v12715_v58, %v12727_v8 }
 0x555   :  { %7744 = vmatprep.subr.bf16.mxu1 %v15430_v9 }
 0x558   :  { %7746 = vmatpush1.bf16.msra.mxu1 %v12756_v57  ;;  %v5689_v57 = vand.u32 4294901760, %v12941_v31 }
 0x559   :  { %7747 = vmatprep.subr.bf16.mxu1 %v15430_v9 }
 0x55c   :  { %7749 = vmatpush1.bf16.msra.mxu1 %v12760_v47  ;;  %v5690_v47 = vsub.f32 %v12941_v31, %v5689_v57 }
 0x55d   :  { %7750 = vmatprep.subr.bf16.mxu1 %v15430_v9 }
 0x55e   :  { %v5691_v58 = vand.u32 4294901760, %v5690_v47  ;;  %v15579_v47 = vand.u32 4294901760, %v15551_v21 }
 0x560   :  { %7752 = vmatpush1.bf16.msra.mxu1 %v12770_v2  ;;  %v15558_v2 = vmov 0.0  }
 0x561   :  { %7753 = vmatprep.subr.bf16.mxu1 %v15430_v9 }
 0x564   :  { %7755 = vmatpush1.bf16.msra.mxu1 %v12780_v49  ;;  %v15559_v49 = vpack.c.bf16 %v15552_v61, %v15551_v21  ;;  %v15583_v21 = vand.u32 4294901760, %v15555_v19 }
 0x565   :  { %7756 = vmatprep.subr.bf16.mxu1 %v15430_v9 }
 0x568   :  { %7758 = vmatpush1.bf16.msra.mxu1 %v12790_v0  ;;  %v15560_v0 = vpack.c.bf16 %v15554_v41, %v15553_v16 }
 0x569   :  { %7759 = vmatprep.subr.bf16.mxu1 %v15430_v9 }
 0x56c   :  { %7761 = vmatpush1.bf16.msra.mxu1 %v12800_v48  ;;  %v15562_v48 = vpack.c.bf16 %v12431_v24, %v12429_v11 }
 0x56d   :  { %7762 = vmatprep.subr.bf16.mxu1 %v15430_v9 }
 0x570   :  { %7764 = vmatpush1.bf16.msra.mxu1 %v12810_v18  ;;  %v15563_v18 = vpack.c.bf16 %v12440_v29, %v15557_v59 }
 0x571   :  { %7765 = vmatprep.subr.bf16.mxu1 %v15430_v9 }
 0x574   :  { %7767 = vmatpush1.bf16.msra.mxu1 %v12820_v30  ;;  %v15564_v30 = vpack.c.bf16 %v12448_v7, %v12442_v50 }
 0x575   :  { %7768 = vmatprep.subr.bf16.mxu1 %v15430_v9 }
 0x578   :  { %7770 = vmatpush1.bf16.msra.mxu1 %v12830_v60  ;;  %v15565_v60 = vpack.c.bf16 %v12453_v10, %v12450_v13 }
 0x579   :  { %7771 = vmatprep.subr.bf16.mxu1 %v15430_v9 }
 0x57c   :  { %7773 = vmatpush1.bf16.msra.mxu1 %v12840_v43  ;;  %v15566_v43 = vpack.c.bf16 %v12689_v22, %v12687_v40 }
 0x57d   :  { %7774 = vmatprep.subr.bf16.mxu1 %v15430_v9 }
 0x580   :  { %7776 = vmatpush1.bf16.msra.mxu1 %v12850_v34  ;;  %v15567_v34 = vpack.c.bf16 %v12693_v15, %v12691_v38 }
 0x581   :  { %7777 = vmatprep.subr.bf16.mxu1 %v15430_v9 }
 0x584   :  { %7779 = vmatpush1.bf16.msra.mxu1 %v12860_v36  ;;  %v15568_v36 = vpack.c.bf16 %v12698_v45, %v12696_v63 }
 0x585   :  { %7780 = vmatprep.subr.bf16.mxu1 %v15430_v9 }
 0x588   :  { %7782 = vmatpush1.bf16.msra.mxu1 %v12868_v14  ;;  %v15561_v14 = vpack.c.bf16 %v15556_v28, %v15555_v19  ;;  %v15589_v19 = vand.u32 4294901760, %v12442_v50  ;;  %v15595_v50 = vand.u32 4294901760, %v12691_v38  ;;  %v15601_v38 = vand.u32 4294901760, %v12704_v26 }
 0x589   :  { %5686 = vmatprep.subr.mxu1 %v15558_v2 }
 0x58c   :  { %5692 = vmatpush1.msra.mxu1 %v5691_v58  ;;  %v15580_v58 = vand.u32 4294901760, %v15552_v61  ;;  %v15584_v61 = vand.u32 4294901760, %v15556_v28  ;;  %v15590_v28 = vand.u32 4294901760, %v12448_v7  ;;  %v15596_v7 = vand.u32 4294901760, %v12693_v15 }
 0x58d   :  { %5702 = vmatmul.mubr.f32.vlgmr.msra.gmra.mrb[6].mxu1 %v12900_v12  ;;  %7783 = vmatprep.subr.bf16.mxu1 %v15430_v9  ;;  %v15602_v15 = vand.u32 4294901760, %v12706_v6 }
 0x58e   :  { %7785 = vmatpush1.bf16.msra.mxu1 %v15559_v49  ;;  %5831 = vmatprep.mubr.f32.mxu1 %v12908_v56  ;;  %v15573_v56 = vld [vmem:[#allocation134_spill] sm:$0xff]  ;;  %v7868_v49 = vpack.c.bf16 %v15580_v58, %v15579_v47 }
 0x58f   :  { %7786 = vmatprep.subr.bf16.mxu1 %v15430_v9 }
 0x592   :  { %7788 = vmatpush1.bf16.msra.mxu1 %v15560_v0  ;;  %v15581_v0 = vand.u32 4294901760, %v15553_v16  ;;  %v15587_v16 = vand.u32 4294901760, %v15557_v59  ;;  %v15594_v59 = vand.u32 4294901760, %v12689_v22  ;;  %v15600_v22 = vand.u32 4294901760, %v12702_v35 }
 0x593   :  { %7789 = vmatprep.subr.bf16.mxu1 %v15430_v9  ;;  %v15606_v35 = vand.u32 4294901760, %v12721_v4 }
 0x596   :  { %7791 = vmatpush1.bf16.msra.mxu1 %v15561_v14  ;;  %v15582_v14 = vand.u32 4294901760, %v15554_v41  ;;  %v15588_v41 = vand.u32 4294901760, %v12440_v29  ;;  %v15593_v29 = vand.u32 4294901760, %v12687_v40  ;;  %v15599_v40 = vand.u32 4294901760, %v12700_v52 }
 0x597   :  { %7792 = vmatprep.subr.bf16.mxu1 %v15430_v9  ;;  %v15605_v52 = vand.u32 4294901760, %v12719_v20 }
 0x598   :  { %v7898_v58 = vpack.c.bf16 %v15600_v22, %v15599_v40 }
 0x59a   :  { %7794 = vmatpush1.bf16.msra.mxu1 %v15562_v48  ;;  %v7871_v48 = vpack.c.bf16 %v15582_v14, %v15581_v0  ;;  %v7907_v14 = vpack.c.bf16 %v15606_v35, %v15605_v52 }
 0x59b   :  { %7795 = vmatprep.subr.bf16.mxu1 %v15430_v9 }
 0x59e   :  { %7797 = vmatpush1.bf16.msra.mxu1 %v15563_v18  ;;  %v7874_v18 = vpack.c.bf16 %v15584_v61, %v15583_v21 }
 0x59f   :  { %7798 = vmatprep.subr.bf16.mxu1 %v15430_v9 }
 0x5a2   :  { %7800 = vmatpush1.bf16.msra.mxu1 %v15564_v30 }
 0x5a3   :  { %7801 = vmatprep.subr.bf16.mxu1 %v15430_v9 }
 0x5a6   :  { %7803 = vmatpush1.bf16.msra.mxu1 %v15565_v60  ;;  %v7880_v60 = vpack.c.bf16 %v15588_v41, %v15587_v16 }
 0x5a7   :  { %7804 = vmatprep.subr.bf16.mxu1 %v15430_v9 }
 0x5aa   :  { %7806 = vmatpush1.bf16.msra.mxu1 %v15566_v43  ;;  %v7883_v43 = vpack.c.bf16 %v15590_v28, %v15589_v19 }
 0x5ab   :  { %7807 = vmatprep.subr.bf16.mxu1 %v15430_v9 }
 0x5ae   :  { %7809 = vmatpush1.bf16.msra.mxu1 %v15567_v34 }
 0x5af   :  { %7810 = vmatprep.subr.bf16.mxu1 %v15430_v9 }
 0x5b2   :  { %7812 = vmatpush1.bf16.msra.mxu1 %v15568_v36  ;;  %v7889_v36 = vpack.c.bf16 %v15594_v59, %v15593_v29 }
 0x5b3   :  { %7813 = vmatprep.subr.bf16.mxu1 %v15430_v9 }
 0x5b6   :  { %7815 = vmatpush1.bf16.msra.mxu1 %v15569_v42  ;;  %v7892_v42 = vpack.c.bf16 %v15596_v7, %v15595_v50 }
 0x5b7   :  { %7816 = vmatprep.subr.bf16.mxu1 %v15430_v9 }
 0x5ba   :  { %7818 = vmatpush1.bf16.msra.mxu1 %v7817_v17  ;;  %v15570_v17 = vld [vmem:[#allocation83_spill] sm:$0xff] }
 0x5bb   :  { %7819 = vmatprep.subr.bf16.mxu1 %v15430_v9 }
 0x5be   :  { %7821 = vmatpush1.bf16.msra.mxu1 %v7820_v62  ;;  %v15572_v62 = vld [vmem:[#allocation133_spill] sm:$0xff] }
 0x5bf   :  { %7822 = vmatprep.subr.bf16.mxu1 %v15430_v9 }
 0x5c2   :  { %7824 = vmatpush1.bf16.msra.mxu1 %v7823_v32  ;;  %v15571_v32 = vld [vmem:[#allocation131_spill] sm:$0xff] }
 0x5c3   :  { %5819 = vmatprep.subr.mxu1 %v15558_v2 }
 0x5c6   :  { %5822 = vmatpush1.msra.mxu1 %v12941_v31 }
 0x5c7   :  { %5834 = vmatmul.mubr.f32.vlgmr.msra.gmra.mrb[6].mxu1 %v12903_v33  ;;  %7825 = vmatprep.subr.bf16.mxu1 %v15430_v9  ;;  %v15585_v33 = vand.u32 4294901760, %v12429_v11  ;;  %v15592_v11 = vand.u32 4294901760, %v12453_v10  ;;  %v15598_v10 = vand.u32 4294901760, %v12698_v45  ;;  %v15604_v45 = vand.u32 4294901760, %v12710_v39 }
 0x5c8   :  { %7827 = vmatpush1.bf16.msra.mxu1 %v15570_v17  ;;  %5935 = vmatprep.mubr.f32.mxu1 %v5476_v46  ;;  %v15574_v46 = vld [vmem:[#allocation136_spill] sm:$0xff] }
 0x5c9   :  { %7828 = vmatprep.subr.bf16.mxu1 %v15430_v9 }
 0x5cc   :  { %7830 = vmatpush1.bf16.msra.mxu1 %v12412_v44 }
 0x5cd   :  { %7831 = vmatprep.subr.bf16.mxu1 %v15430_v9 }
 0x5d0   :  { %7833 = vmatpush1.bf16.msra.mxu1 %v12446_v5 }
 0x5d1   :  { %7834 = vmatprep.subr.bf16.mxu1 %v15430_v9 }
 0x5d4   :  { %7836 = vmatpush1.bf16.msra.mxu1 %v12465_v1 }
 0x5d5   :  { %7837 = vmatprep.subr.bf16.mxu1 %v15430_v9 }
 0x5d8   :  { %7839 = vmatpush1.bf16.msra.mxu1 %v12480_v27 }
 0x5d9   :  { %7840 = vmatprep.subr.bf16.mxu1 %v15430_v9 }
 0x5dc   :  { %7842 = vmatpush1.bf16.msra.mxu1 %v12492_v37 }
 0x5dd   :  { %7843 = vmatprep.subr.bf16.mxu1 %v15430_v9 }
 0x5e0   :  { %7845 = vmatpush1.bf16.msra.mxu1 %v15571_v32 }
 0x5e1   :  { %7846 = vmatprep.subr.bf16.mxu1 %v15430_v9 }
 0x5e4   :  { %7848 = vmatpush1.bf16.msra.mxu1 %v15572_v62 }
 0x5e5   :  { %7849 = vmatprep.subr.bf16.mxu1 %v15430_v9 }
 0x5e8   :  { %7851 = vmatpush1.bf16.msra.mxu1 %v15573_v56 }
 0x5e9   :  { %7852 = vmatprep.subr.bf16.mxu1 %v15430_v9 }
 0x5ec   :  { %7854 = vmatpush1.bf16.msra.mxu1 %v15574_v46 }
 0x5ed   :  { %7855 = vmatprep.subr.bf16.mxu1 %v15430_v9 }
 0x5f0   :  { %7857 = vmatpush1.bf16.msra.mxu1 %v15575_v3 }
 0x5f1   :  { %7858 = vmatprep.subr.bf16.mxu1 %v15430_v9 }
 0x5f4   :  { %7860 = vmatpush1.bf16.msra.mxu1 %v15576_v23 }
 0x5f5   :  { %7861 = vmatprep.subr.bf16.mxu1 %v15430_v9 }
 0x5f8   :  { %7863 = vmatpush1.bf16.msra.mxu1 %v15577_v54 }
 0x5f9   :  { %7864 = vmatprep.subr.bf16.mxu1 %v15430_v9 }
 0x5fc   :  { %7866 = vmatpush1.bf16.msra.mxu1 %v15578_v25 }
 0x5fd   :  { %5923 = vmatprep.subr.mxu1 %v15558_v2 }
 0x600   :  { %5925 = vmatpush1.msra.mxu1 %v12727_v8 }
 0x601   :  { %5939 = vmatmul.mubr.f32.vlgmr.msra.gmra.mrb[6].mxu1 %v5482_v51  ;;  %7867 = vmatprep.subr.bf16.mxu1 %v15430_v9  ;;  %v15586_v51 = vand.u32 4294901760, %v12431_v24  ;;  %v15591_v24 = vand.u32 4294901760, %v12450_v13  ;;  %v15597_v13 = vand.u32 4294901760, %v12696_v63  ;;  %v15603_v63 = vand.u32 4294901760, %v12708_v53 }
 0x602   :  { %7869 = vmatpush1.bf16.msra.mxu1 %v7868_v49  ;;  %6096 = vmatprep.mubr.f32.mxu1 %v12905_v55  ;;  %v7901_v49 = vpack.c.bf16 %v15602_v15, %v15601_v38 }
 0x603   :  { %7870 = vmatprep.subr.bf16.mxu1 %v15430_v9  ;;  %v7877_v30 = vpack.c.bf16 %v15586_v51, %v15585_v33  ;;  %v7886_v34 = vpack.c.bf16 %v15592_v11, %v15591_v24  ;;  %v7895_v47 = vpack.c.bf16 %v15598_v10, %v15597_v13  ;;  %v7904_v0 = vpack.c.bf16 %v15604_v45, %v15603_v63 }
 0x606   :  { %7872 = vmatpush1.bf16.msra.mxu1 %v7871_v48 }
 0x607   :  { %7873 = vmatprep.subr.bf16.mxu1 %v15430_v9 }
 0x60a   :  { %7875 = vmatpush1.bf16.msra.mxu1 %v7874_v18 }
 0x60b   :  { %7876 = vmatprep.subr.bf16.mxu1 %v15430_v9 }
 0x60e   :  { %7878 = vmatpush1.bf16.msra.mxu1 %v7877_v30 }
 0x60f   :  { %7879 = vmatprep.subr.bf16.mxu1 %v15430_v9 }
 0x612   :  { %7881 = vmatpush1.bf16.msra.mxu1 %v7880_v60 }
 0x613   :  { %7882 = vmatprep.subr.bf16.mxu1 %v15430_v9 }
 0x616   :  { %7884 = vmatpush1.bf16.msra.mxu1 %v7883_v43 }
 0x617   :  { %7885 = vmatprep.subr.bf16.mxu1 %v15430_v9 }
 0x61a   :  { %7887 = vmatpush1.bf16.msra.mxu1 %v7886_v34 }
 0x61b   :  { %7888 = vmatprep.subr.bf16.mxu1 %v15430_v9 }
 0x61e   :  { %7890 = vmatpush1.bf16.msra.mxu1 %v7889_v36 }
 0x61f   :  { %7891 = vmatprep.subr.bf16.mxu1 %v15430_v9 }
 0x622   :  { %7893 = vmatpush1.bf16.msra.mxu1 %v7892_v42 }
 0x623   :  { %7894 = vmatprep.subr.bf16.mxu1 %v15430_v9 }
 0x626   :  { %7896 = vmatpush1.bf16.msra.mxu1 %v7895_v47 }
 0x627   :  { %7897 = vmatprep.subr.bf16.mxu1 %v15430_v9 }
 0x62a   :  { %7899 = vmatpush1.bf16.msra.mxu1 %v7898_v58 }
 0x62b   :  { %7900 = vmatprep.subr.bf16.mxu1 %v15430_v9 }
 0x62e   :  { %7902 = vmatpush1.bf16.msra.mxu1 %v7901_v49 }
 0x62f   :  { %7903 = vmatprep.subr.bf16.mxu1 %v15430_v9 }
 0x632   :  { %7905 = vmatpush1.bf16.msra.mxu1 %v7904_v0 }
 0x633   :  { %7906 = vmatprep.subr.bf16.mxu1 %v15430_v9 }
 0x636   :  { %7908 = vmatpush1.bf16.msra.mxu1 %v7907_v14 }
 0x637   :  { %6084 = vmatprep.subr.mxu1 %v15558_v2 }
 0x63a   :  { %6088 = vmatpush1.msra.mxu1 %v5689_v57 }
 0x63b   :  { %6098 = vmatmul.mubr.f32.vlgmr.msra.gmra.mrb[6].mxu1 %v12900_v12  ;;  %7909 = vmatprep.subr.bf16.mxu1 %v15430_v9 }
 0x63c   :  { %7911 = vmatpush1.bf16.msra.mxu1 %v15570_v17  ;;  %6197 = vmatprep.mubr.f32.mxu1 %v12905_v55 }
 0x63d   :  { %7912 = vmatprep.subr.bf16.mxu1 %v15430_v9 }
 0x640   :  { %7914 = vmatpush1.bf16.msra.mxu1 %v12412_v44  ;;  %v6210_v44 = vld [vmem:[%s13168_s5] ss:$0 sm:$0xff] }
 0x641   :  { %7915 = vmatprep.subr.bf16.mxu1 %v15430_v9 }
 0x644   :  { %7917 = vmatpush1.bf16.msra.mxu1 %v12446_v5 }
 0x645   :  { %7918 = vmatprep.subr.bf16.mxu1 %v15430_v9 }
 0x648   :  { %7920 = vmatpush1.bf16.msra.mxu1 %v12465_v1 }
 0x649   :  { %7921 = vmatprep.subr.bf16.mxu1 %v15430_v9 }
 0x64c   :  { %7923 = vmatpush1.bf16.msra.mxu1 %v12480_v27 }
 0x64d   :  { %7924 = vmatprep.subr.bf16.mxu1 %v15430_v9 }
 0x650   :  { %7926 = vmatpush1.bf16.msra.mxu1 %v12492_v37 }
 0x651   :  { %7927 = vmatprep.subr.bf16.mxu1 %v15430_v9 }
 0x654   :  { %7929 = vmatpush1.bf16.msra.mxu1 %v15571_v32 }
 0x655   :  { %7930 = vmatprep.subr.bf16.mxu1 %v15430_v9 }
 0x658   :  { %7932 = vmatpush1.bf16.msra.mxu1 %v15572_v62 }
 0x659   :  { %7933 = vmatprep.subr.bf16.mxu1 %v15430_v9 }
 0x65c   :  { %7935 = vmatpush1.bf16.msra.mxu1 %v15573_v56 }
 0x65d   :  { %7936 = vmatprep.subr.bf16.mxu1 %v15430_v9 }
 0x660   :  { %7938 = vmatpush1.bf16.msra.mxu1 %v15574_v46 }
 0x661   :  { %7939 = vmatprep.subr.bf16.mxu1 %v15430_v9 }
 0x664   :  { %7941 = vmatpush1.bf16.msra.mxu1 %v15575_v3 }
 0x665   :  { %7942 = vmatprep.subr.bf16.mxu1 %v15430_v9 }
 0x668   :  { %7944 = vmatpush1.bf16.msra.mxu1 %v15576_v23 }
 0x669   :  { %7945 = vmatprep.subr.bf16.mxu1 %v15430_v9 }
 0x66c   :  { %7947 = vmatpush1.bf16.msra.mxu1 %v15577_v54 }
 0x66d   :  { %7948 = vmatprep.subr.bf16.mxu1 %v15430_v9 }
 0x670   :  { %7950 = vmatpush1.bf16.msra.mxu1 %v15578_v25 }
 0x671   :  { %6187 = vmatprep.subr.mxu1 %v15558_v2 }
 0x674   :  { %6189 = vmatpush1.msra.mxu1 %v12727_v8 }
 0x675   :  { %6199 = vmatmul.mubr.f32.vlgmr.msra.gmra.mrb[6].mxu1 %v12900_v12 }
 0x748   :  { %v6200_v5 = vpop.f32.mrb[6].mxu1 }
 0x749   :  { %v7961_v1 = vadd.f32 %v6210_v44, %v6200_v5  ;;  %v6202_v27 = vpop.f32.mrb[7].mxu1 }
 0x74b   :  { %6205 = vst.msk [vmem:[%s13169_s6] sm:$0xff] %vm6204_vm2, %v7961_v1 }

</bundles_post_ra>
